<compile_context>
chip_gen: v6e
topology: v6e:2x2x1
jax: 0.10.0
libtpu: 0.0.40
codegen_flags: <defaults>
</compile_context>

<pallas_src>
import jax
import jax.numpy as jnp
import numpy as np
from jax.experimental import pallas as pl
from jax.experimental.pallas import tpu as pltpu


_TAPS = ((0, 0), (0, 1), (1, 0), (1, 1))   # (dh, dw) / (sh, sw) enumeration


# ----------------------------------------------------------------------------
# Fused kernel: full ConvVAE.encode for one batch element.
# ----------------------------------------------------------------------------
def _convvae_kernel(x_ref, w1, b1, w2, b2, w3, b3, w4, b4, wf, bf,
                    o_ref, p2, s2, p3, s3, p4, s4, s4f):
    """x_ref: (1024, 48) conv1 im2col patches, row p = oh*32+ow,
    channel k = (kh*4+kw)*3 + c.  w1: (48, 24).  w2/w3/w4: (4, 4*Cin, Cout)
    space-to-depth-folded conv weights (tap t = dh*2+dw, rows ordered
    (sh*2+sw)*Cin + c).  b_l: (1, Cout).  wf: (3072, A) with rows reordered
    to p*192 + c.  bf: (1, A).  o_ref: (1, A).
    p2/p3/p4: plain zero-padded NHWC conv1/2/3 outputs.
    s2/s3/s4: space-to-depth repacks of p2/p3/p4 (next conv's input).
    s4f: (1, 3072) lane-sliced conv4 output feeding the FC."""
    f32 = jnp.float32

    def zero_border(p_ref):
        # Interior is fully overwritten every grid step; only the 1-pixel
        # padding frame needs zeros, and it is rewritten every step too, so
        # nothing relies on scratch persistence across grid steps / cores.
        h2, wp, c = p_ref.shape
        zr = jnp.zeros((1, wp, c), f32)
        p_ref[0:1, :, :] = zr
        p_ref[h2 - 1:h2, :, :] = zr
        zc = jnp.zeros((h2, 1, c), f32)
        p_ref[:, 0:1, :] = zc
        p_ref[:, wp - 1:wp, :] = zc

    def repack(p_ref, s_ref, half, cin):
        # space-to-depth: s[i, j, (sh*2+sw)*cin + c] = p[2i+sh, 2j+sw, c].
        # 4 bulk strided copies per layer replace 16 per-row-block stride-2
        # gathers; all indexers are pure pl.ds slices.
        for q, (sh, sw) in enumerate(_TAPS):
            s_ref[:, 0:half, q * cin:(q + 1) * cin] = p_ref[
                pl.ds(sh, half, 2), pl.ds(sw, half, 2), :]

    # ---- conv1: (128, 48) @ (48, 24) per 4 output rows ---------------------
    zero_border(p2)
    for oh0 in range(0, 32, 4):
        patch = x_ref[pl.ds(oh0 * 32, 128), :]                    # (128, 48)
        acc = jnp.dot(patch, w1[...], preferred_element_type=f32)
        h = jnp.maximum(acc + b1[...], 0.0).reshape(4, 32, 24)
        p2[1 + oh0:5 + oh0, 1:33, :] = h
    repack(p2, s2, 17, 24)

    # ---- conv2 / conv3: 4 dots per row block, K = 4*Cin ---------------------
    def s2d_conv(s_in, w_ref, b_ref, p_out, oh_total, ow, k, cout, rb):
        zero_border(p_out)
        for oh0 in range(0, oh_total, rb):
            acc = None
            for t, (dh, dw) in enumerate(_TAPS):
                patch = s_in[pl.ds(oh0 + dh, rb), pl.ds(dw, ow), :]
                patch = patch.reshape(rb * ow, k)                 # aligned
                d = jnp.dot(patch, w_ref[t], preferred_element_type=f32)
                acc = d if acc is None else acc + d
            h = jnp.maximum(acc + b_ref[...], 0.0).reshape(rb, ow, cout)
            p_out[1 + oh0:1 + oh0 + rb, 1:1 + ow, :] = h

    s2d_conv(s2, w2, b2, p3, 16, 16, 96, 48, 8)    # (17,17,96) -> 16x16x48
    repack(p3, s3, 9, 48)
    s2d_conv(s3, w3, b3, p4, 8, 8, 192, 96, 8)     # (9,9,192)  -> 8x8x96
    repack(p4, s4, 5, 96)

    # ---- conv4: single accumulator, 4 dots, M padded 16 -> 32 ---------------
    # s4 has 9 columns so each tap reads an 8-wide window and the
    # (4, 8, 384) -> (32, 384) collapse stays sublane-aligned.  Rows
    # oh*8 + ow with ow >= 4 mix in the spare (unwritten) columns; they are
    # simply discarded — valid rows only ever read columns 0..4.
    acc4 = None
    for t, (dh, dw) in enumerate(_TAPS):
        patch = s4[pl.ds(dh, 4), pl.ds(dw, 8), :].reshape(32, 384)
        d = jnp.dot(patch, w4[t], preferred_element_type=f32)
        acc4 = d if acc4 is None else acc4 + d
    h4 = jnp.maximum(acc4 + b4[...], 0.0)                         # (32, 192)

    # Lane-sliced flatten: s4f[0, p*192 + c] = conv4[oh, ow, c], p = oh*4+ow.
    for oh in range(4):
        for ow in range(4):
            p = oh * 4 + ow
            r = oh * 8 + ow
            s4f[0:1, 192 * p:192 * (p + 1)] = h4[r:r + 1, :]

    # ---- fc + sigmoid: one (1, 3072) x (3072, A) dot ------------------------
    y = jnp.dot(s4f[...], wf[...], preferred_element_type=f32) + bf[...]
    o_ref[...] = 1.0 / (1.0 + jnp.exp(-y))


# ----------------------------------------------------------------------------
# Host-side layout prep + the single pallas_call.
# ----------------------------------------------------------------------------
def _fold_conv_weight(w):
    """OIHW (Cout, Cin, 4, 4) -> (4, 4*Cin, Cout) for the space-to-depth conv.

    Tap t = dh*2+dw is the stride-1 2x2 window position on the space-to-depth
    input; within a tap, rows are ordered (sh*2+sw)*Cin + c to match the S
    scratch channel layout."""
    whwio = jnp.transpose(w, (2, 3, 1, 0))                 # (kh, kw, cin, cout)
    taps = []
    for dh in range(2):
        for dw in range(2):
            rows = [whwio[2 * dh + sh, 2 * dw + sw]
                    for sh in range(2) for sw in range(2)]
            taps.append(jnp.concatenate(rows, axis=0))     # (4*cin, cout)
    return jnp.stack(taps, axis=0)                         # (4, 4*cin, cout)


def conv_vae_forward(x_nchw, params):
    """ConvVAE.encode.  x_nchw: (N, 3, 64, 64) float32 -> (N, n_actions)."""
    N, C, H, W = x_nchw.shape
    assert (C, H, W) == (3, 64, 64), "ConvVAE expects 3x64x64 inputs"
    (w1, b1), (w2, b2), (w3, b3), (w4, b4) = params["convs"]
    wf, bf = params["fc"]
    n_actions = bf.shape[0]

    # conv1 im2col on the host (~196 KB/image of XLA glue): kills the C=3
    # lane-sparse input block and makes conv1 a single K=48 matmul.
    xp = jnp.pad(jnp.transpose(x_nchw, (0, 2, 3, 1)),
                 ((0, 0), (1, 1), (1, 1), (0, 0)))         # (N, 66, 66, 3)
    cols = [xp[:, kh:kh + 64:2, kw:kw + 64:2, :]
            for kh in range(4) for kw in range(4)]
    x_cols = jnp.concatenate(cols, axis=-1).reshape(N, 1024, 48)

    # Weight relayouts (tiny one-time XLA glue).
    w1k = jnp.transpose(w1, (2, 3, 1, 0)).reshape(48, 24)
    w2k = _fold_conv_weight(w2)                            # (4,  96,  48)
    w3k = _fold_conv_weight(w3)                            # (4, 192,  96)
    w4k = _fold_conv_weight(w4)                            # (4, 384, 192)
    # PyTorch flattens NCHW -> row c*16 + p; the kernel emits rows p*192 + c.
    wfk = jnp.transpose(wf.reshape(192, 16, n_actions), (1, 0, 2))
    wfk = wfk.reshape(192 * 16, n_actions)
    b1k, b2k, b3k, b4k = (b.reshape(1, -1) for b in (b1, b2, b3, b4))
    bfk = bf.reshape(1, n_actions)

    in_specs = [
        pl.BlockSpec((None, 1024, 48), lambda n: (n, 0, 0)),
        pl.BlockSpec((48, 24), lambda n: (0, 0)),
        pl.BlockSpec((1, 24), lambda n: (0, 0)),
        pl.BlockSpec((4, 96, 48), lambda n: (0, 0, 0)),
        pl.BlockSpec((1, 48), lambda n: (0, 0)),
        pl.BlockSpec((4, 192, 96), lambda n: (0, 0, 0)),
        pl.BlockSpec((1, 96), lambda n: (0, 0)),
        pl.BlockSpec((4, 384, 192), lambda n: (0, 0, 0)),
        pl.BlockSpec((1, 192), lambda n: (0, 0)),
        pl.BlockSpec((3072, n_actions), lambda n: (0, 0)),
        pl.BlockSpec((1, n_actions), lambda n: (0, 0)),
    ]

    out = pl.pallas_call(
        _convvae_kernel,
        out_shape=jax.ShapeDtypeStruct((N, 1, n_actions), jnp.float32),
        grid=(N,),
        in_specs=in_specs,
        out_specs=pl.BlockSpec((None, 1, n_actions), lambda n: (n, 0, 0)),
        scratch_shapes=[
            pltpu.VMEM((34, 34, 24), jnp.float32),   # p2: conv1 out, padded
            pltpu.VMEM((17, 17, 96), jnp.float32),   # s2: space-to-depth(p2)
            pltpu.VMEM((18, 18, 48), jnp.float32),   # p3: conv2 out, padded
            pltpu.VMEM((9, 9, 192), jnp.float32),    # s3: space-to-depth(p3)
            pltpu.VMEM((10, 10, 96), jnp.float32),   # p4: conv3 out, padded
            pltpu.VMEM((5, 9, 384), jnp.float32),    # s4: space-to-depth(p4)
            pltpu.VMEM((1, 3072), jnp.float32),      # s4f: conv4 out, flat
        ],
        compiler_params=pltpu.CompilerParams(
            dimension_semantics=("parallel",),
            vmem_limit_bytes=32 * 1024 * 1024),
    )(x_cols, w1k, b1k, w2k, b2k, w3k, b3k, w4k, b4k, wfk, bfk)
    return out.reshape(N, n_actions)


# ----------------------------------------------------------------------------
# Deterministic parameter construction (synthetic, not a checkpoint load)
# ----------------------------------------------------------------------------
def init_params(key, n_actions):
    conv_dims = [(3, 24), (24, 48), (48, 96), (96, 192)]
    params = {"convs": [], "fc": None}
    keys = jax.random.split(key, len(conv_dims) + 1)
    for k, (cin, cout) in zip(keys[:-1], conv_dims):
        kw_, kb_ = jax.random.split(k)
        scale = 1.0 / np.sqrt(cin * 4 * 4)
        w = jax.random.normal(kw_, (cout, cin, 4, 4), jnp.float32) * scale
        b = jax.random.normal(kb_, (cout,), jnp.float32) * 0.01
        params["convs"].append((w, b))
    kw_, kb_ = jax.random.split(keys[-1])
    scale = 1.0 / np.sqrt(192 * 4 * 4)
    wf = jax.random.normal(kw_, (192 * 4 * 4, n_actions), jnp.float32) * scale
    bf = jax.random.normal(kb_, (n_actions,), jnp.float32) * 0.01
    params["fc"] = (wf, bf)
    return params


# ----------------------------------------------------------------------------
# Pure-JAX reference for verification
# ----------------------------------------------------------------------------
def ref_forward(x, params):
    h = x
    for (w, b) in params["convs"]:
        h = jax.lax.conv_general_dilated(
            h, w, window_strides=(2, 2), padding=((1, 1), (1, 1)),
            dimension_numbers=("NCHW", "OIHW", "NCHW"))
        h = jax.nn.relu(h + b[None, :, None, None])
    h = h.reshape(h.shape[0], -1)
    wf, bf = params["fc"]
    return jax.nn.sigmoid(h @ wf + bf)


if __name__ == "__main__":
    key = jax.random.PRNGKey(0)
    k_x, k_p = jax.random.split(key)

    n_actions = 16
    batch = 2
    # Architecture requires 3x64x64 spatial input so conv4 yields 4x4.
    x = jax.random.normal(k_x, (batch, 3, 64, 64), jnp.float32)
    params = init_params(k_p, n_actions)

    out = jax.block_until_ready(jax.jit(conv_vae_forward)(x, params))

    ref = jax.block_until_ready(ref_forward(x, params))
    assert out.shape == (batch, n_actions), out.shape
    np.testing.assert_allclose(np.asarray(out), np.asarray(ref),
                               rtol=1e-4, atol=1e-4)

    print("KERNEL_OK")
</pallas_src>

<mosaic_0001>
module attributes {stable_mosaic.version = 11 : i64} {
  func.func @_convvae_kernel(%arg0: i32, %arg1: memref<1x1024x48xf32, #tpu.memory_space<vmem>>, %arg2: memref<48x24xf32, #tpu.memory_space<vmem>>, %arg3: memref<1x24xf32, #tpu.memory_space<vmem>>, %arg4: memref<4x96x48xf32, #tpu.memory_space<vmem>>, %arg5: memref<1x48xf32, #tpu.memory_space<vmem>>, %arg6: memref<4x192x96xf32, #tpu.memory_space<vmem>>, %arg7: memref<1x96xf32, #tpu.memory_space<vmem>>, %arg8: memref<4x384x192xf32, #tpu.memory_space<vmem>>, %arg9: memref<1x192xf32, #tpu.memory_space<vmem>>, %arg10: memref<3072x16xf32, #tpu.memory_space<vmem>>, %arg11: memref<1x16xf32, #tpu.memory_space<vmem>>, %arg12: memref<1x1x16xf32, #tpu.memory_space<vmem>>, %arg13: memref<34x34x24xf32, #tpu.memory_space<vmem>>, %arg14: memref<17x17x96xf32, #tpu.memory_space<vmem>>, %arg15: memref<18x18x48xf32, #tpu.memory_space<vmem>>, %arg16: memref<9x9x192xf32, #tpu.memory_space<vmem>>, %arg17: memref<10x10x96xf32, #tpu.memory_space<vmem>>, %arg18: memref<5x9x384xf32, #tpu.memory_space<vmem>>, %arg19: memref<1x3072xf32, #tpu.memory_space<vmem>>) attributes {dimension_semantics = [#tpu.dimension_semantics<parallel>], iteration_bounds = array<i64: 2>, scalar_prefetch = 0 : i64, scratch_operands = 7 : i64, tpu.core_type = #tpu.core_type<tc>, window_params = [{transform_indices = @transform_0, window_bounds = array<i64: 1, 1024, 48>}, {pipeline_mode = #tpu.pipeline_mode<synchronous>, transform_indices = @transform_1, window_bounds = array<i64: 48, 24>}, {pipeline_mode = #tpu.pipeline_mode<synchronous>, transform_indices = @transform_2, window_bounds = array<i64: 1, 24>}, {pipeline_mode = #tpu.pipeline_mode<synchronous>, transform_indices = @transform_3, window_bounds = array<i64: 4, 96, 48>}, {pipeline_mode = #tpu.pipeline_mode<synchronous>, transform_indices = @transform_4, window_bounds = array<i64: 1, 48>}, {pipeline_mode = #tpu.pipeline_mode<synchronous>, transform_indices = @transform_5, window_bounds = array<i64: 4, 192, 96>}, {pipeline_mode = #tpu.pipeline_mode<synchronous>, transform_indices = @transform_6, window_bounds = array<i64: 1, 96>}, {pipeline_mode = #tpu.pipeline_mode<synchronous>, transform_indices = @transform_7, window_bounds = array<i64: 4, 384, 192>}, {pipeline_mode = #tpu.pipeline_mode<synchronous>, transform_indices = @transform_8, window_bounds = array<i64: 1, 192>}, {pipeline_mode = #tpu.pipeline_mode<synchronous>, transform_indices = @transform_9, window_bounds = array<i64: 3072, 16>}, {pipeline_mode = #tpu.pipeline_mode<synchronous>, transform_indices = @transform_10, window_bounds = array<i64: 1, 16>}, {transform_indices = @transform_11, window_bounds = array<i64: 1, 1, 16>}]} {
    %cst = arith.constant 0.000000e+00 : f32
    %0 = vector.broadcast %cst : f32 to vector<1x34x24xf32>
    %c0 = arith.constant 0 : index
    %c0_0 = arith.constant 0 : index
    %c0_1 = arith.constant 0 : index
    %1 = vector.load %arg13[%c0, %c0_0, %c0_1] : memref<34x34x24xf32, #tpu.memory_space<vmem>>, vector<1x34x24xf32>
    tpu.vector_store %arg13[%c0, %c0_0, %c0_1], %0 {strides = array<i32>} : memref<34x34x24xf32, #tpu.memory_space<vmem>>, vector<1x34x24xf32>,
    %c33 = arith.constant 33 : index
    %c0_2 = arith.constant 0 : index
    %c0_3 = arith.constant 0 : index
    %2 = vector.load %arg13[%c33, %c0_2, %c0_3] : memref<34x34x24xf32, #tpu.memory_space<vmem>>, vector<1x34x24xf32>
    tpu.vector_store %arg13[%c33, %c0_2, %c0_3], %0 {strides = array<i32>} : memref<34x34x24xf32, #tpu.memory_space<vmem>>, vector<1x34x24xf32>,
    %cst_4 = arith.constant 0.000000e+00 : f32
    %3 = vector.broadcast %cst_4 : f32 to vector<34x1x24xf32>
    %c0_5 = arith.constant 0 : index
    %c0_6 = arith.constant 0 : index
    %c0_7 = arith.constant 0 : index
    %4 = vector.load %arg13[%c0_5, %c0_6, %c0_7] : memref<34x34x24xf32, #tpu.memory_space<vmem>>, vector<34x1x24xf32>
    tpu.vector_store %arg13[%c0_5, %c0_6, %c0_7], %3 {strides = array<i32>} : memref<34x34x24xf32, #tpu.memory_space<vmem>>, vector<34x1x24xf32>,
    %c0_8 = arith.constant 0 : index
    %c33_9 = arith.constant 33 : index
    %c0_10 = arith.constant 0 : index
    %5 = vector.load %arg13[%c0_8, %c33_9, %c0_10] : memref<34x34x24xf32, #tpu.memory_space<vmem>>, vector<34x1x24xf32>
    tpu.vector_store %arg13[%c0_8, %c33_9, %c0_10], %3 {strides = array<i32>} : memref<34x34x24xf32, #tpu.memory_space<vmem>>, vector<34x1x24xf32>,
    %c0_11 = arith.constant 0 : index
    %c0_12 = arith.constant 0 : index
    %c0_13 = arith.constant 0 : index
    %6 = vector.load %arg1[%c0_11, %c0_12, %c0_13] : memref<1x1024x48xf32, #tpu.memory_space<vmem>>, vector<1x128x48xf32>
    %7 = vector.shape_cast %6 : vector<1x128x48xf32> to vector<128x48xf32>
    %c0_14 = arith.constant 0 : index
    %c0_15 = arith.constant 0 : index
    %8 = vector.load %arg2[%c0_14, %c0_15] : memref<48x24xf32, #tpu.memory_space<vmem>>, vector<48x24xf32>
    %cst_16 = arith.constant dense<0.000000e+00> : vector<128x24xf32>
    %9 = tpu.matmul %7, %8, %cst_16 {dimension_numbers = #tpu.dot_dimension_numbers<[1], [0], [0], [1], [0, 0, 1, 1], [], []>} : vector<128x48xf32>, vector<48x24xf32>, vector<128x24xf32> -> vector<128x24xf32>
    %c0_17 = arith.constant 0 : index
    %c0_18 = arith.constant 0 : index
    %10 = vector.load %arg3[%c0_17, %c0_18] : memref<1x24xf32, #tpu.memory_space<vmem>>, vector<1x24xf32>
    %11 = vector.broadcast %10 : vector<1x24xf32> to vector<128x24xf32>
    %12 = arith.addf %9, %11 : vector<128x24xf32>
    %cst_19 = arith.constant 0.000000e+00 : f32
    %13 = vector.broadcast %cst_19 : f32 to vector<128x24xf32>
    %14 = arith.maximumf %12, %13 : vector<128x24xf32>
    %15 = vector.shape_cast %14 : vector<128x24xf32> to vector<4x32x24xf32>
    %c1 = arith.constant 1 : index
    %c1_20 = arith.constant 1 : index
    %c0_21 = arith.constant 0 : index
    %16 = vector.load %arg13[%c1, %c1_20, %c0_21] : memref<34x34x24xf32, #tpu.memory_space<vmem>>, vector<4x32x24xf32>
    tpu.vector_store %arg13[%c1, %c1_20, %c0_21], %15 {strides = array<i32>} : memref<34x34x24xf32, #tpu.memory_space<vmem>>, vector<4x32x24xf32>,
    %c0_22 = arith.constant 0 : index
    %c128 = arith.constant 128 : index
    %c0_23 = arith.constant 0 : index
    %17 = vector.load %arg1[%c0_22, %c128, %c0_23] : memref<1x1024x48xf32, #tpu.memory_space<vmem>>, vector<1x128x48xf32>
    %18 = vector.shape_cast %17 : vector<1x128x48xf32> to vector<128x48xf32>
    %c0_24 = arith.constant 0 : index
    %c0_25 = arith.constant 0 : index
    %19 = vector.load %arg2[%c0_24, %c0_25] : memref<48x24xf32, #tpu.memory_space<vmem>>, vector<48x24xf32>
    %cst_26 = arith.constant dense<0.000000e+00> : vector<128x24xf32>
    %20 = tpu.matmul %18, %19, %cst_26 {dimension_numbers = #tpu.dot_dimension_numbers<[1], [0], [0], [1], [0, 0, 1, 1], [], []>} : vector<128x48xf32>, vector<48x24xf32>, vector<128x24xf32> -> vector<128x24xf32>
    %c0_27 = arith.constant 0 : index
    %c0_28 = arith.constant 0 : index
    %21 = vector.load %arg3[%c0_27, %c0_28] : memref<1x24xf32, #tpu.memory_space<vmem>>, vector<1x24xf32>
    %22 = vector.broadcast %21 : vector<1x24xf32> to vector<128x24xf32>
    %23 = arith.addf %20, %22 : vector<128x24xf32>
    %cst_29 = arith.constant 0.000000e+00 : f32
    %24 = vector.broadcast %cst_29 : f32 to vector<128x24xf32>
    %25 = arith.maximumf %23, %24 : vector<128x24xf32>
    %26 = vector.shape_cast %25 : vector<128x24xf32> to vector<4x32x24xf32>
    %c5 = arith.constant 5 : index
    %c1_30 = arith.constant 1 : index
    %c0_31 = arith.constant 0 : index
    %27 = vector.load %arg13[%c5, %c1_30, %c0_31] : memref<34x34x24xf32, #tpu.memory_space<vmem>>, vector<4x32x24xf32>
    tpu.vector_store %arg13[%c5, %c1_30, %c0_31], %26 {strides = array<i32>} : memref<34x34x24xf32, #tpu.memory_space<vmem>>, vector<4x32x24xf32>,
    %c0_32 = arith.constant 0 : index
    %c256 = arith.constant 256 : index
    %c0_33 = arith.constant 0 : index
    %28 = vector.load %arg1[%c0_32, %c256, %c0_33] : memref<1x1024x48xf32, #tpu.memory_space<vmem>>, vector<1x128x48xf32>
    %29 = vector.shape_cast %28 : vector<1x128x48xf32> to vector<128x48xf32>
    %c0_34 = arith.constant 0 : index
    %c0_35 = arith.constant 0 : index
    %30 = vector.load %arg2[%c0_34, %c0_35] : memref<48x24xf32, #tpu.memory_space<vmem>>, vector<48x24xf32>
    %cst_36 = arith.constant dense<0.000000e+00> : vector<128x24xf32>
    %31 = tpu.matmul %29, %30, %cst_36 {dimension_numbers = #tpu.dot_dimension_numbers<[1], [0], [0], [1], [0, 0, 1, 1], [], []>} : vector<128x48xf32>, vector<48x24xf32>, vector<128x24xf32> -> vector<128x24xf32>
    %c0_37 = arith.constant 0 : index
    %c0_38 = arith.constant 0 : index
    %32 = vector.load %arg3[%c0_37, %c0_38] : memref<1x24xf32, #tpu.memory_space<vmem>>, vector<1x24xf32>
    %33 = vector.broadcast %32 : vector<1x24xf32> to vector<128x24xf32>
    %34 = arith.addf %31, %33 : vector<128x24xf32>
    %cst_39 = arith.constant 0.000000e+00 : f32
    %35 = vector.broadcast %cst_39 : f32 to vector<128x24xf32>
    %36 = arith.maximumf %34, %35 : vector<128x24xf32>
    %37 = vector.shape_cast %36 : vector<128x24xf32> to vector<4x32x24xf32>
    %c9 = arith.constant 9 : index
    %c1_40 = arith.constant 1 : index
    %c0_41 = arith.constant 0 : index
    %38 = vector.load %arg13[%c9, %c1_40, %c0_41] : memref<34x34x24xf32, #tpu.memory_space<vmem>>, vector<4x32x24xf32>
    tpu.vector_store %arg13[%c9, %c1_40, %c0_41], %37 {strides = array<i32>} : memref<34x34x24xf32, #tpu.memory_space<vmem>>, vector<4x32x24xf32>,
    %c0_42 = arith.constant 0 : index
    %c384 = arith.constant 384 : index
    %c0_43 = arith.constant 0 : index
    %39 = vector.load %arg1[%c0_42, %c384, %c0_43] : memref<1x1024x48xf32, #tpu.memory_space<vmem>>, vector<1x128x48xf32>
    %40 = vector.shape_cast %39 : vector<1x128x48xf32> to vector<128x48xf32>
    %c0_44 = arith.constant 0 : index
    %c0_45 = arith.constant 0 : index
    %41 = vector.load %arg2[%c0_44, %c0_45] : memref<48x24xf32, #tpu.memory_space<vmem>>, vector<48x24xf32>
    %cst_46 = arith.constant dense<0.000000e+00> : vector<128x24xf32>
    %42 = tpu.matmul %40, %41, %cst_46 {dimension_numbers = #tpu.dot_dimension_numbers<[1], [0], [0], [1], [0, 0, 1, 1], [], []>} : vector<128x48xf32>, vector<48x24xf32>, vector<128x24xf32> -> vector<128x24xf32>
    %c0_47 = arith.constant 0 : index
    %c0_48 = arith.constant 0 : index
    %43 = vector.load %arg3[%c0_47, %c0_48] : memref<1x24xf32, #tpu.memory_space<vmem>>, vector<1x24xf32>
    %44 = vector.broadcast %43 : vector<1x24xf32> to vector<128x24xf32>
    %45 = arith.addf %42, %44 : vector<128x24xf32>
    %cst_49 = arith.constant 0.000000e+00 : f32
    %46 = vector.broadcast %cst_49 : f32 to vector<128x24xf32>
    %47 = arith.maximumf %45, %46 : vector<128x24xf32>
    %48 = vector.shape_cast %47 : vector<128x24xf32> to vector<4x32x24xf32>
    %c13 = arith.constant 13 : index
    %c1_50 = arith.constant 1 : index
    %c0_51 = arith.constant 0 : index
    %49 = vector.load %arg13[%c13, %c1_50, %c0_51] : memref<34x34x24xf32, #tpu.memory_space<vmem>>, vector<4x32x24xf32>
    tpu.vector_store %arg13[%c13, %c1_50, %c0_51], %48 {strides = array<i32>} : memref<34x34x24xf32, #tpu.memory_space<vmem>>, vector<4x32x24xf32>,
    %c0_52 = arith.constant 0 : index
    %c512 = arith.constant 512 : index
    %c0_53 = arith.constant 0 : index
    %50 = vector.load %arg1[%c0_52, %c512, %c0_53] : memref<1x1024x48xf32, #tpu.memory_space<vmem>>, vector<1x128x48xf32>
    %51 = vector.shape_cast %50 : vector<1x128x48xf32> to vector<128x48xf32>
    %c0_54 = arith.constant 0 : index
    %c0_55 = arith.constant 0 : index
    %52 = vector.load %arg2[%c0_54, %c0_55] : memref<48x24xf32, #tpu.memory_space<vmem>>, vector<48x24xf32>
    %cst_56 = arith.constant dense<0.000000e+00> : vector<128x24xf32>
    %53 = tpu.matmul %51, %52, %cst_56 {dimension_numbers = #tpu.dot_dimension_numbers<[1], [0], [0], [1], [0, 0, 1, 1], [], []>} : vector<128x48xf32>, vector<48x24xf32>, vector<128x24xf32> -> vector<128x24xf32>
    %c0_57 = arith.constant 0 : index
    %c0_58 = arith.constant 0 : index
    %54 = vector.load %arg3[%c0_57, %c0_58] : memref<1x24xf32, #tpu.memory_space<vmem>>, vector<1x24xf32>
    %55 = vector.broadcast %54 : vector<1x24xf32> to vector<128x24xf32>
    %56 = arith.addf %53, %55 : vector<128x24xf32>
    %cst_59 = arith.constant 0.000000e+00 : f32
    %57 = vector.broadcast %cst_59 : f32 to vector<128x24xf32>
    %58 = arith.maximumf %56, %57 : vector<128x24xf32>
    %59 = vector.shape_cast %58 : vector<128x24xf32> to vector<4x32x24xf32>
    %c17 = arith.constant 17 : index
    %c1_60 = arith.constant 1 : index
    %c0_61 = arith.constant 0 : index
    %60 = vector.load %arg13[%c17, %c1_60, %c0_61] : memref<34x34x24xf32, #tpu.memory_space<vmem>>, vector<4x32x24xf32>
    tpu.vector_store %arg13[%c17, %c1_60, %c0_61], %59 {strides = array<i32>} : memref<34x34x24xf32, #tpu.memory_space<vmem>>, vector<4x32x24xf32>,
    %c0_62 = arith.constant 0 : index
    %c640 = arith.constant 640 : index
    %c0_63 = arith.constant 0 : index
    %61 = vector.load %arg1[%c0_62, %c640, %c0_63] : memref<1x1024x48xf32, #tpu.memory_space<vmem>>, vector<1x128x48xf32>
    %62 = vector.shape_cast %61 : vector<1x128x48xf32> to vector<128x48xf32>
    %c0_64 = arith.constant 0 : index
    %c0_65 = arith.constant 0 : index
    %63 = vector.load %arg2[%c0_64, %c0_65] : memref<48x24xf32, #tpu.memory_space<vmem>>, vector<48x24xf32>
    %cst_66 = arith.constant dense<0.000000e+00> : vector<128x24xf32>
    %64 = tpu.matmul %62, %63, %cst_66 {dimension_numbers = #tpu.dot_dimension_numbers<[1], [0], [0], [1], [0, 0, 1, 1], [], []>} : vector<128x48xf32>, vector<48x24xf32>, vector<128x24xf32> -> vector<128x24xf32>
    %c0_67 = arith.constant 0 : index
    %c0_68 = arith.constant 0 : index
    %65 = vector.load %arg3[%c0_67, %c0_68] : memref<1x24xf32, #tpu.memory_space<vmem>>, vector<1x24xf32>
    %66 = vector.broadcast %65 : vector<1x24xf32> to vector<128x24xf32>
    %67 = arith.addf %64, %66 : vector<128x24xf32>
    %cst_69 = arith.constant 0.000000e+00 : f32
    %68 = vector.broadcast %cst_69 : f32 to vector<128x24xf32>
    %69 = arith.maximumf %67, %68 : vector<128x24xf32>
    %70 = vector.shape_cast %69 : vector<128x24xf32> to vector<4x32x24xf32>
    %c21 = arith.constant 21 : index
    %c1_70 = arith.constant 1 : index
    %c0_71 = arith.constant 0 : index
    %71 = vector.load %arg13[%c21, %c1_70, %c0_71] : memref<34x34x24xf32, #tpu.memory_space<vmem>>, vector<4x32x24xf32>
    tpu.vector_store %arg13[%c21, %c1_70, %c0_71], %70 {strides = array<i32>} : memref<34x34x24xf32, #tpu.memory_space<vmem>>, vector<4x32x24xf32>,
    %c0_72 = arith.constant 0 : index
    %c768 = arith.constant 768 : index
    %c0_73 = arith.constant 0 : index
    %72 = vector.load %arg1[%c0_72, %c768, %c0_73] : memref<1x1024x48xf32, #tpu.memory_space<vmem>>, vector<1x128x48xf32>
    %73 = vector.shape_cast %72 : vector<1x128x48xf32> to vector<128x48xf32>
    %c0_74 = arith.constant 0 : index
    %c0_75 = arith.constant 0 : index
    %74 = vector.load %arg2[%c0_74, %c0_75] : memref<48x24xf32, #tpu.memory_space<vmem>>, vector<48x24xf32>
    %cst_76 = arith.constant dense<0.000000e+00> : vector<128x24xf32>
    %75 = tpu.matmul %73, %74, %cst_76 {dimension_numbers = #tpu.dot_dimension_numbers<[1], [0], [0], [1], [0, 0, 1, 1], [], []>} : vector<128x48xf32>, vector<48x24xf32>, vector<128x24xf32> -> vector<128x24xf32>
    %c0_77 = arith.constant 0 : index
    %c0_78 = arith.constant 0 : index
    %76 = vector.load %arg3[%c0_77, %c0_78] : memref<1x24xf32, #tpu.memory_space<vmem>>, vector<1x24xf32>
    %77 = vector.broadcast %76 : vector<1x24xf32> to vector<128x24xf32>
    %78 = arith.addf %75, %77 : vector<128x24xf32>
    %cst_79 = arith.constant 0.000000e+00 : f32
    %79 = vector.broadcast %cst_79 : f32 to vector<128x24xf32>
    %80 = arith.maximumf %78, %79 : vector<128x24xf32>
    %81 = vector.shape_cast %80 : vector<128x24xf32> to vector<4x32x24xf32>
    %c25 = arith.constant 25 : index
    %c1_80 = arith.constant 1 : index
    %c0_81 = arith.constant 0 : index
    %82 = vector.load %arg13[%c25, %c1_80, %c0_81] : memref<34x34x24xf32, #tpu.memory_space<vmem>>, vector<4x32x24xf32>
    tpu.vector_store %arg13[%c25, %c1_80, %c0_81], %81 {strides = array<i32>} : memref<34x34x24xf32, #tpu.memory_space<vmem>>, vector<4x32x24xf32>,
    %c0_82 = arith.constant 0 : index
    %c896 = arith.constant 896 : index
    %c0_83 = arith.constant 0 : index
    %83 = vector.load %arg1[%c0_82, %c896, %c0_83] : memref<1x1024x48xf32, #tpu.memory_space<vmem>>, vector<1x128x48xf32>
    %84 = vector.shape_cast %83 : vector<1x128x48xf32> to vector<128x48xf32>
    %c0_84 = arith.constant 0 : index
    %c0_85 = arith.constant 0 : index
    %85 = vector.load %arg2[%c0_84, %c0_85] : memref<48x24xf32, #tpu.memory_space<vmem>>, vector<48x24xf32>
    %cst_86 = arith.constant dense<0.000000e+00> : vector<128x24xf32>
    %86 = tpu.matmul %84, %85, %cst_86 {dimension_numbers = #tpu.dot_dimension_numbers<[1], [0], [0], [1], [0, 0, 1, 1], [], []>} : vector<128x48xf32>, vector<48x24xf32>, vector<128x24xf32> -> vector<128x24xf32>
    %c0_87 = arith.constant 0 : index
    %c0_88 = arith.constant 0 : index
    %87 = vector.load %arg3[%c0_87, %c0_88] : memref<1x24xf32, #tpu.memory_space<vmem>>, vector<1x24xf32>
    %88 = vector.broadcast %87 : vector<1x24xf32> to vector<128x24xf32>
    %89 = arith.addf %86, %88 : vector<128x24xf32>
    %cst_89 = arith.constant 0.000000e+00 : f32
    %90 = vector.broadcast %cst_89 : f32 to vector<128x24xf32>
    %91 = arith.maximumf %89, %90 : vector<128x24xf32>
    %92 = vector.shape_cast %91 : vector<128x24xf32> to vector<4x32x24xf32>
    %c29 = arith.constant 29 : index
    %c1_90 = arith.constant 1 : index
    %c0_91 = arith.constant 0 : index
    %93 = vector.load %arg13[%c29, %c1_90, %c0_91] : memref<34x34x24xf32, #tpu.memory_space<vmem>>, vector<4x32x24xf32>
    tpu.vector_store %arg13[%c29, %c1_90, %c0_91], %92 {strides = array<i32>} : memref<34x34x24xf32, #tpu.memory_space<vmem>>, vector<4x32x24xf32>,
    %c0_92 = arith.constant 0 : index
    %c0_93 = arith.constant 0 : index
    %c0_94 = arith.constant 0 : index
    %94 = tpu.strided_load %arg13[%c0_92, %c0_93, %c0_94] {strides = array<i32: 2, 2, 1>} : memref<34x34x24xf32, #tpu.memory_space<vmem>>, vector<17x17x24xf32>
    %c0_95 = arith.constant 0 : index
    %c0_96 = arith.constant 0 : index
    %c0_97 = arith.constant 0 : index
    %95 = vector.load %arg14[%c0_95, %c0_96, %c0_97] : memref<17x17x96xf32, #tpu.memory_space<vmem>>, vector<17x17x24xf32>
    tpu.vector_store %arg14[%c0_95, %c0_96, %c0_97], %94 {strides = array<i32>} : memref<17x17x96xf32, #tpu.memory_space<vmem>>, vector<17x17x24xf32>,
    %c0_98 = arith.constant 0 : index
    %c1_99 = arith.constant 1 : index
    %c0_100 = arith.constant 0 : index
    %96 = tpu.strided_load %arg13[%c0_98, %c1_99, %c0_100] {strides = array<i32: 2, 2, 1>} : memref<34x34x24xf32, #tpu.memory_space<vmem>>, vector<17x17x24xf32>
    %c0_101 = arith.constant 0 : index
    %c0_102 = arith.constant 0 : index
    %c24 = arith.constant 24 : index
    %97 = vector.load %arg14[%c0_101, %c0_102, %c24] : memref<17x17x96xf32, #tpu.memory_space<vmem>>, vector<17x17x24xf32>
    tpu.vector_store %arg14[%c0_101, %c0_102, %c24], %96 {strides = array<i32>} : memref<17x17x96xf32, #tpu.memory_space<vmem>>, vector<17x17x24xf32>,
    %c1_103 = arith.constant 1 : index
    %c0_104 = arith.constant 0 : index
    %c0_105 = arith.constant 0 : index
    %98 = tpu.strided_load %arg13[%c1_103, %c0_104, %c0_105] {strides = array<i32: 2, 2, 1>} : memref<34x34x24xf32, #tpu.memory_space<vmem>>, vector<17x17x24xf32>
    %c0_106 = arith.constant 0 : index
    %c0_107 = arith.constant 0 : index
    %c48 = arith.constant 48 : index
    %99 = vector.load %arg14[%c0_106, %c0_107, %c48] : memref<17x17x96xf32, #tpu.memory_space<vmem>>, vector<17x17x24xf32>
    tpu.vector_store %arg14[%c0_106, %c0_107, %c48], %98 {strides = array<i32>} : memref<17x17x96xf32, #tpu.memory_space<vmem>>, vector<17x17x24xf32>,
    %c1_108 = arith.constant 1 : index
    %c1_109 = arith.constant 1 : index
    %c0_110 = arith.constant 0 : index
    %100 = tpu.strided_load %arg13[%c1_108, %c1_109, %c0_110] {strides = array<i32: 2, 2, 1>} : memref<34x34x24xf32, #tpu.memory_space<vmem>>, vector<17x17x24xf32>
    %c0_111 = arith.constant 0 : index
    %c0_112 = arith.constant 0 : index
    %c72 = arith.constant 72 : index
    %101 = vector.load %arg14[%c0_111, %c0_112, %c72] : memref<17x17x96xf32, #tpu.memory_space<vmem>>, vector<17x17x24xf32>
    tpu.vector_store %arg14[%c0_111, %c0_112, %c72], %100 {strides = array<i32>} : memref<17x17x96xf32, #tpu.memory_space<vmem>>, vector<17x17x24xf32>,
    %cst_113 = arith.constant 0.000000e+00 : f32
    %102 = vector.broadcast %cst_113 : f32 to vector<1x18x48xf32>
    %c0_114 = arith.constant 0 : index
    %c0_115 = arith.constant 0 : index
    %c0_116 = arith.constant 0 : index
    %103 = vector.load %arg15[%c0_114, %c0_115, %c0_116] : memref<18x18x48xf32, #tpu.memory_space<vmem>>, vector<1x18x48xf32>
    tpu.vector_store %arg15[%c0_114, %c0_115, %c0_116], %102 {strides = array<i32>} : memref<18x18x48xf32, #tpu.memory_space<vmem>>, vector<1x18x48xf32>,
    %c17_117 = arith.constant 17 : index
    %c0_118 = arith.constant 0 : index
    %c0_119 = arith.constant 0 : index
    %104 = vector.load %arg15[%c17_117, %c0_118, %c0_119] : memref<18x18x48xf32, #tpu.memory_space<vmem>>, vector<1x18x48xf32>
    tpu.vector_store %arg15[%c17_117, %c0_118, %c0_119], %102 {strides = array<i32>} : memref<18x18x48xf32, #tpu.memory_space<vmem>>, vector<1x18x48xf32>,
    %cst_120 = arith.constant 0.000000e+00 : f32
    %105 = vector.broadcast %cst_120 : f32 to vector<18x1x48xf32>
    %c0_121 = arith.constant 0 : index
    %c0_122 = arith.constant 0 : index
    %c0_123 = arith.constant 0 : index
    %106 = vector.load %arg15[%c0_121, %c0_122, %c0_123] : memref<18x18x48xf32, #tpu.memory_space<vmem>>, vector<18x1x48xf32>
    tpu.vector_store %arg15[%c0_121, %c0_122, %c0_123], %105 {strides = array<i32>} : memref<18x18x48xf32, #tpu.memory_space<vmem>>, vector<18x1x48xf32>,
    %c0_124 = arith.constant 0 : index
    %c17_125 = arith.constant 17 : index
    %c0_126 = arith.constant 0 : index
    %107 = vector.load %arg15[%c0_124, %c17_125, %c0_126] : memref<18x18x48xf32, #tpu.memory_space<vmem>>, vector<18x1x48xf32>
    tpu.vector_store %arg15[%c0_124, %c17_125, %c0_126], %105 {strides = array<i32>} : memref<18x18x48xf32, #tpu.memory_space<vmem>>, vector<18x1x48xf32>,
    %c0_127 = arith.constant 0 : index
    %c0_128 = arith.constant 0 : index
    %c0_129 = arith.constant 0 : index
    %108 = vector.load %arg14[%c0_127, %c0_128, %c0_129] : memref<17x17x96xf32, #tpu.memory_space<vmem>>, vector<8x16x96xf32>
    %109 = vector.shape_cast %108 : vector<8x16x96xf32> to vector<128x96xf32>
    %c0_130 = arith.constant 0 : index
    %c0_131 = arith.constant 0 : index
    %c0_132 = arith.constant 0 : index
    %110 = vector.load %arg4[%c0_130, %c0_131, %c0_132] : memref<4x96x48xf32, #tpu.memory_space<vmem>>, vector<1x96x48xf32>
    %111 = vector.shape_cast %110 : vector<1x96x48xf32> to vector<96x48xf32>
    %cst_133 = arith.constant dense<0.000000e+00> : vector<128x48xf32>
    %112 = tpu.matmul %109, %111, %cst_133 {dimension_numbers = #tpu.dot_dimension_numbers<[1], [0], [0], [1], [0, 0, 1, 1], [], []>} : vector<128x96xf32>, vector<96x48xf32>, vector<128x48xf32> -> vector<128x48xf32>
    %c0_134 = arith.constant 0 : index
    %c1_135 = arith.constant 1 : index
    %c0_136 = arith.constant 0 : index
    %113 = vector.load %arg14[%c0_134, %c1_135, %c0_136] : memref<17x17x96xf32, #tpu.memory_space<vmem>>, vector<8x16x96xf32>
    %114 = vector.shape_cast %113 : vector<8x16x96xf32> to vector<128x96xf32>
    %c1_137 = arith.constant 1 : index
    %c0_138 = arith.constant 0 : index
    %c0_139 = arith.constant 0 : index
    %115 = vector.load %arg4[%c1_137, %c0_138, %c0_139] : memref<4x96x48xf32, #tpu.memory_space<vmem>>, vector<1x96x48xf32>
    %116 = vector.shape_cast %115 : vector<1x96x48xf32> to vector<96x48xf32>
    %cst_140 = arith.constant dense<0.000000e+00> : vector<128x48xf32>
    %117 = tpu.matmul %114, %116, %cst_140 {dimension_numbers = #tpu.dot_dimension_numbers<[1], [0], [0], [1], [0, 0, 1, 1], [], []>} : vector<128x96xf32>, vector<96x48xf32>, vector<128x48xf32> -> vector<128x48xf32>
    %118 = arith.addf %112, %117 : vector<128x48xf32>
    %c1_141 = arith.constant 1 : index
    %c0_142 = arith.constant 0 : index
    %c0_143 = arith.constant 0 : index
    %119 = vector.load %arg14[%c1_141, %c0_142, %c0_143] : memref<17x17x96xf32, #tpu.memory_space<vmem>>, vector<8x16x96xf32>
    %120 = vector.shape_cast %119 : vector<8x16x96xf32> to vector<128x96xf32>
    %c2 = arith.constant 2 : index
    %c0_144 = arith.constant 0 : index
    %c0_145 = arith.constant 0 : index
    %121 = vector.load %arg4[%c2, %c0_144, %c0_145] : memref<4x96x48xf32, #tpu.memory_space<vmem>>, vector<1x96x48xf32>
    %122 = vector.shape_cast %121 : vector<1x96x48xf32> to vector<96x48xf32>
    %cst_146 = arith.constant dense<0.000000e+00> : vector<128x48xf32>
    %123 = tpu.matmul %120, %122, %cst_146 {dimension_numbers = #tpu.dot_dimension_numbers<[1], [0], [0], [1], [0, 0, 1, 1], [], []>} : vector<128x96xf32>, vector<96x48xf32>, vector<128x48xf32> -> vector<128x48xf32>
    %124 = arith.addf %118, %123 : vector<128x48xf32>
    %c1_147 = arith.constant 1 : index
    %c1_148 = arith.constant 1 : index
    %c0_149 = arith.constant 0 : index
    %125 = vector.load %arg14[%c1_147, %c1_148, %c0_149] : memref<17x17x96xf32, #tpu.memory_space<vmem>>, vector<8x16x96xf32>
    %126 = vector.shape_cast %125 : vector<8x16x96xf32> to vector<128x96xf32>
    %c3 = arith.constant 3 : index
    %c0_150 = arith.constant 0 : index
    %c0_151 = arith.constant 0 : index
    %127 = vector.load %arg4[%c3, %c0_150, %c0_151] : memref<4x96x48xf32, #tpu.memory_space<vmem>>, vector<1x96x48xf32>
    %128 = vector.shape_cast %127 : vector<1x96x48xf32> to vector<96x48xf32>
    %cst_152 = arith.constant dense<0.000000e+00> : vector<128x48xf32>
    %129 = tpu.matmul %126, %128, %cst_152 {dimension_numbers = #tpu.dot_dimension_numbers<[1], [0], [0], [1], [0, 0, 1, 1], [], []>} : vector<128x96xf32>, vector<96x48xf32>, vector<128x48xf32> -> vector<128x48xf32>
    %130 = arith.addf %124, %129 : vector<128x48xf32>
    %c0_153 = arith.constant 0 : index
    %c0_154 = arith.constant 0 : index
    %131 = vector.load %arg5[%c0_153, %c0_154] : memref<1x48xf32, #tpu.memory_space<vmem>>, vector<1x48xf32>
    %132 = vector.broadcast %131 : vector<1x48xf32> to vector<128x48xf32>
    %133 = arith.addf %130, %132 : vector<128x48xf32>
    %cst_155 = arith.constant 0.000000e+00 : f32
    %134 = vector.broadcast %cst_155 : f32 to vector<128x48xf32>
    %135 = arith.maximumf %133, %134 : vector<128x48xf32>
    %136 = vector.shape_cast %135 : vector<128x48xf32> to vector<8x16x48xf32>
    %c1_156 = arith.constant 1 : index
    %c1_157 = arith.constant 1 : index
    %c0_158 = arith.constant 0 : index
    %137 = vector.load %arg15[%c1_156, %c1_157, %c0_158] : memref<18x18x48xf32, #tpu.memory_space<vmem>>, vector<8x16x48xf32>
    tpu.vector_store %arg15[%c1_156, %c1_157, %c0_158], %136 {strides = array<i32>} : memref<18x18x48xf32, #tpu.memory_space<vmem>>, vector<8x16x48xf32>,
    %c8 = arith.constant 8 : index
    %c0_159 = arith.constant 0 : index
    %c0_160 = arith.constant 0 : index
    %138 = vector.load %arg14[%c8, %c0_159, %c0_160] : memref<17x17x96xf32, #tpu.memory_space<vmem>>, vector<8x16x96xf32>
    %139 = vector.shape_cast %138 : vector<8x16x96xf32> to vector<128x96xf32>
    %c0_161 = arith.constant 0 : index
    %c0_162 = arith.constant 0 : index
    %c0_163 = arith.constant 0 : index
    %140 = vector.load %arg4[%c0_161, %c0_162, %c0_163] : memref<4x96x48xf32, #tpu.memory_space<vmem>>, vector<1x96x48xf32>
    %141 = vector.shape_cast %140 : vector<1x96x48xf32> to vector<96x48xf32>
    %cst_164 = arith.constant dense<0.000000e+00> : vector<128x48xf32>
    %142 = tpu.matmul %139, %141, %cst_164 {dimension_numbers = #tpu.dot_dimension_numbers<[1], [0], [0], [1], [0, 0, 1, 1], [], []>} : vector<128x96xf32>, vector<96x48xf32>, vector<128x48xf32> -> vector<128x48xf32>
    %c8_165 = arith.constant 8 : index
    %c1_166 = arith.constant 1 : index
    %c0_167 = arith.constant 0 : index
    %143 = vector.load %arg14[%c8_165, %c1_166, %c0_167] : memref<17x17x96xf32, #tpu.memory_space<vmem>>, vector<8x16x96xf32>
    %144 = vector.shape_cast %143 : vector<8x16x96xf32> to vector<128x96xf32>
    %c1_168 = arith.constant 1 : index
    %c0_169 = arith.constant 0 : index
    %c0_170 = arith.constant 0 : index
    %145 = vector.load %arg4[%c1_168, %c0_169, %c0_170] : memref<4x96x48xf32, #tpu.memory_space<vmem>>, vector<1x96x48xf32>
    %146 = vector.shape_cast %145 : vector<1x96x48xf32> to vector<96x48xf32>
    %cst_171 = arith.constant dense<0.000000e+00> : vector<128x48xf32>
    %147 = tpu.matmul %144, %146, %cst_171 {dimension_numbers = #tpu.dot_dimension_numbers<[1], [0], [0], [1], [0, 0, 1, 1], [], []>} : vector<128x96xf32>, vector<96x48xf32>, vector<128x48xf32> -> vector<128x48xf32>
    %148 = arith.addf %142, %147 : vector<128x48xf32>
    %c9_172 = arith.constant 9 : index
    %c0_173 = arith.constant 0 : index
    %c0_174 = arith.constant 0 : index
    %149 = vector.load %arg14[%c9_172, %c0_173, %c0_174] : memref<17x17x96xf32, #tpu.memory_space<vmem>>, vector<8x16x96xf32>
    %150 = vector.shape_cast %149 : vector<8x16x96xf32> to vector<128x96xf32>
    %c2_175 = arith.constant 2 : index
    %c0_176 = arith.constant 0 : index
    %c0_177 = arith.constant 0 : index
    %151 = vector.load %arg4[%c2_175, %c0_176, %c0_177] : memref<4x96x48xf32, #tpu.memory_space<vmem>>, vector<1x96x48xf32>
    %152 = vector.shape_cast %151 : vector<1x96x48xf32> to vector<96x48xf32>
    %cst_178 = arith.constant dense<0.000000e+00> : vector<128x48xf32>
    %153 = tpu.matmul %150, %152, %cst_178 {dimension_numbers = #tpu.dot_dimension_numbers<[1], [0], [0], [1], [0, 0, 1, 1], [], []>} : vector<128x96xf32>, vector<96x48xf32>, vector<128x48xf32> -> vector<128x48xf32>
    %154 = arith.addf %148, %153 : vector<128x48xf32>
    %c9_179 = arith.constant 9 : index
    %c1_180 = arith.constant 1 : index
    %c0_181 = arith.constant 0 : index
    %155 = vector.load %arg14[%c9_179, %c1_180, %c0_181] : memref<17x17x96xf32, #tpu.memory_space<vmem>>, vector<8x16x96xf32>
    %156 = vector.shape_cast %155 : vector<8x16x96xf32> to vector<128x96xf32>
    %c3_182 = arith.constant 3 : index
    %c0_183 = arith.constant 0 : index
    %c0_184 = arith.constant 0 : index
    %157 = vector.load %arg4[%c3_182, %c0_183, %c0_184] : memref<4x96x48xf32, #tpu.memory_space<vmem>>, vector<1x96x48xf32>
    %158 = vector.shape_cast %157 : vector<1x96x48xf32> to vector<96x48xf32>
    %cst_185 = arith.constant dense<0.000000e+00> : vector<128x48xf32>
    %159 = tpu.matmul %156, %158, %cst_185 {dimension_numbers = #tpu.dot_dimension_numbers<[1], [0], [0], [1], [0, 0, 1, 1], [], []>} : vector<128x96xf32>, vector<96x48xf32>, vector<128x48xf32> -> vector<128x48xf32>
    %160 = arith.addf %154, %159 : vector<128x48xf32>
    %c0_186 = arith.constant 0 : index
    %c0_187 = arith.constant 0 : index
    %161 = vector.load %arg5[%c0_186, %c0_187] : memref<1x48xf32, #tpu.memory_space<vmem>>, vector<1x48xf32>
    %162 = vector.broadcast %161 : vector<1x48xf32> to vector<128x48xf32>
    %163 = arith.addf %160, %162 : vector<128x48xf32>
    %cst_188 = arith.constant 0.000000e+00 : f32
    %164 = vector.broadcast %cst_188 : f32 to vector<128x48xf32>
    %165 = arith.maximumf %163, %164 : vector<128x48xf32>
    %166 = vector.shape_cast %165 : vector<128x48xf32> to vector<8x16x48xf32>
    %c9_189 = arith.constant 9 : index
    %c1_190 = arith.constant 1 : index
    %c0_191 = arith.constant 0 : index
    %167 = vector.load %arg15[%c9_189, %c1_190, %c0_191] : memref<18x18x48xf32, #tpu.memory_space<vmem>>, vector<8x16x48xf32>
    tpu.vector_store %arg15[%c9_189, %c1_190, %c0_191], %166 {strides = array<i32>} : memref<18x18x48xf32, #tpu.memory_space<vmem>>, vector<8x16x48xf32>,
    %c0_192 = arith.constant 0 : index
    %c0_193 = arith.constant 0 : index
    %c0_194 = arith.constant 0 : index
    %168 = tpu.strided_load %arg15[%c0_192, %c0_193, %c0_194] {strides = array<i32: 2, 2, 1>} : memref<18x18x48xf32, #tpu.memory_space<vmem>>, vector<9x9x48xf32>
    %c0_195 = arith.constant 0 : index
    %c0_196 = arith.constant 0 : index
    %c0_197 = arith.constant 0 : index
    %169 = vector.load %arg16[%c0_195, %c0_196, %c0_197] : memref<9x9x192xf32, #tpu.memory_space<vmem>>, vector<9x9x48xf32>
    tpu.vector_store %arg16[%c0_195, %c0_196, %c0_197], %168 {strides = array<i32>} : memref<9x9x192xf32, #tpu.memory_space<vmem>>, vector<9x9x48xf32>,
    %c0_198 = arith.constant 0 : index
    %c1_199 = arith.constant 1 : index
    %c0_200 = arith.constant 0 : index
    %170 = tpu.strided_load %arg15[%c0_198, %c1_199, %c0_200] {strides = array<i32: 2, 2, 1>} : memref<18x18x48xf32, #tpu.memory_space<vmem>>, vector<9x9x48xf32>
    %c0_201 = arith.constant 0 : index
    %c0_202 = arith.constant 0 : index
    %c48_203 = arith.constant 48 : index
    %171 = vector.load %arg16[%c0_201, %c0_202, %c48_203] : memref<9x9x192xf32, #tpu.memory_space<vmem>>, vector<9x9x48xf32>
    tpu.vector_store %arg16[%c0_201, %c0_202, %c48_203], %170 {strides = array<i32>} : memref<9x9x192xf32, #tpu.memory_space<vmem>>, vector<9x9x48xf32>,
    %c1_204 = arith.constant 1 : index
    %c0_205 = arith.constant 0 : index
    %c0_206 = arith.constant 0 : index
    %172 = tpu.strided_load %arg15[%c1_204, %c0_205, %c0_206] {strides = array<i32: 2, 2, 1>} : memref<18x18x48xf32, #tpu.memory_space<vmem>>, vector<9x9x48xf32>
    %c0_207 = arith.constant 0 : index
    %c0_208 = arith.constant 0 : index
    %c96 = arith.constant 96 : index
    %173 = vector.load %arg16[%c0_207, %c0_208, %c96] : memref<9x9x192xf32, #tpu.memory_space<vmem>>, vector<9x9x48xf32>
    tpu.vector_store %arg16[%c0_207, %c0_208, %c96], %172 {strides = array<i32>} : memref<9x9x192xf32, #tpu.memory_space<vmem>>, vector<9x9x48xf32>,
    %c1_209 = arith.constant 1 : index
    %c1_210 = arith.constant 1 : index
    %c0_211 = arith.constant 0 : index
    %174 = tpu.strided_load %arg15[%c1_209, %c1_210, %c0_211] {strides = array<i32: 2, 2, 1>} : memref<18x18x48xf32, #tpu.memory_space<vmem>>, vector<9x9x48xf32>
    %c0_212 = arith.constant 0 : index
    %c0_213 = arith.constant 0 : index
    %c144 = arith.constant 144 : index
    %175 = vector.load %arg16[%c0_212, %c0_213, %c144] : memref<9x9x192xf32, #tpu.memory_space<vmem>>, vector<9x9x48xf32>
    tpu.vector_store %arg16[%c0_212, %c0_213, %c144], %174 {strides = array<i32>} : memref<9x9x192xf32, #tpu.memory_space<vmem>>, vector<9x9x48xf32>,
    %cst_214 = arith.constant 0.000000e+00 : f32
    %176 = vector.broadcast %cst_214 : f32 to vector<1x10x96xf32>
    %c0_215 = arith.constant 0 : index
    %c0_216 = arith.constant 0 : index
    %c0_217 = arith.constant 0 : index
    %177 = vector.load %arg17[%c0_215, %c0_216, %c0_217] : memref<10x10x96xf32, #tpu.memory_space<vmem>>, vector<1x10x96xf32>
    tpu.vector_store %arg17[%c0_215, %c0_216, %c0_217], %176 {strides = array<i32>} : memref<10x10x96xf32, #tpu.memory_space<vmem>>, vector<1x10x96xf32>,
    %c9_218 = arith.constant 9 : index
    %c0_219 = arith.constant 0 : index
    %c0_220 = arith.constant 0 : index
    %178 = vector.load %arg17[%c9_218, %c0_219, %c0_220] : memref<10x10x96xf32, #tpu.memory_space<vmem>>, vector<1x10x96xf32>
    tpu.vector_store %arg17[%c9_218, %c0_219, %c0_220], %176 {strides = array<i32>} : memref<10x10x96xf32, #tpu.memory_space<vmem>>, vector<1x10x96xf32>,
    %cst_221 = arith.constant 0.000000e+00 : f32
    %179 = vector.broadcast %cst_221 : f32 to vector<10x1x96xf32>
    %c0_222 = arith.constant 0 : index
    %c0_223 = arith.constant 0 : index
    %c0_224 = arith.constant 0 : index
    %180 = vector.load %arg17[%c0_222, %c0_223, %c0_224] : memref<10x10x96xf32, #tpu.memory_space<vmem>>, vector<10x1x96xf32>
    tpu.vector_store %arg17[%c0_222, %c0_223, %c0_224], %179 {strides = array<i32>} : memref<10x10x96xf32, #tpu.memory_space<vmem>>, vector<10x1x96xf32>,
    %c0_225 = arith.constant 0 : index
    %c9_226 = arith.constant 9 : index
    %c0_227 = arith.constant 0 : index
    %181 = vector.load %arg17[%c0_225, %c9_226, %c0_227] : memref<10x10x96xf32, #tpu.memory_space<vmem>>, vector<10x1x96xf32>
    tpu.vector_store %arg17[%c0_225, %c9_226, %c0_227], %179 {strides = array<i32>} : memref<10x10x96xf32, #tpu.memory_space<vmem>>, vector<10x1x96xf32>,
    %c0_228 = arith.constant 0 : index
    %c0_229 = arith.constant 0 : index
    %c0_230 = arith.constant 0 : index
    %182 = vector.load %arg16[%c0_228, %c0_229, %c0_230] : memref<9x9x192xf32, #tpu.memory_space<vmem>>, vector<8x8x192xf32>
    %183 = vector.shape_cast %182 : vector<8x8x192xf32> to vector<64x192xf32>
    %c0_231 = arith.constant 0 : index
    %c0_232 = arith.constant 0 : index
    %c0_233 = arith.constant 0 : index
    %184 = vector.load %arg6[%c0_231, %c0_232, %c0_233] : memref<4x192x96xf32, #tpu.memory_space<vmem>>, vector<1x192x96xf32>
    %185 = vector.shape_cast %184 : vector<1x192x96xf32> to vector<192x96xf32>
    %cst_234 = arith.constant dense<0.000000e+00> : vector<64x96xf32>
    %186 = tpu.matmul %183, %185, %cst_234 {dimension_numbers = #tpu.dot_dimension_numbers<[1], [0], [0], [1], [0, 0, 1, 1], [], []>} : vector<64x192xf32>, vector<192x96xf32>, vector<64x96xf32> -> vector<64x96xf32>
    %c0_235 = arith.constant 0 : index
    %c1_236 = arith.constant 1 : index
    %c0_237 = arith.constant 0 : index
    %187 = vector.load %arg16[%c0_235, %c1_236, %c0_237] : memref<9x9x192xf32, #tpu.memory_space<vmem>>, vector<8x8x192xf32>
    %188 = vector.shape_cast %187 : vector<8x8x192xf32> to vector<64x192xf32>
    %c1_238 = arith.constant 1 : index
    %c0_239 = arith.constant 0 : index
    %c0_240 = arith.constant 0 : index
    %189 = vector.load %arg6[%c1_238, %c0_239, %c0_240] : memref<4x192x96xf32, #tpu.memory_space<vmem>>, vector<1x192x96xf32>
    %190 = vector.shape_cast %189 : vector<1x192x96xf32> to vector<192x96xf32>
    %cst_241 = arith.constant dense<0.000000e+00> : vector<64x96xf32>
    %191 = tpu.matmul %188, %190, %cst_241 {dimension_numbers = #tpu.dot_dimension_numbers<[1], [0], [0], [1], [0, 0, 1, 1], [], []>} : vector<64x192xf32>, vector<192x96xf32>, vector<64x96xf32> -> vector<64x96xf32>
    %192 = arith.addf %186, %191 : vector<64x96xf32>
    %c1_242 = arith.constant 1 : index
    %c0_243 = arith.constant 0 : index
    %c0_244 = arith.constant 0 : index
    %193 = vector.load %arg16[%c1_242, %c0_243, %c0_244] : memref<9x9x192xf32, #tpu.memory_space<vmem>>, vector<8x8x192xf32>
    %194 = vector.shape_cast %193 : vector<8x8x192xf32> to vector<64x192xf32>
    %c2_245 = arith.constant 2 : index
    %c0_246 = arith.constant 0 : index
    %c0_247 = arith.constant 0 : index
    %195 = vector.load %arg6[%c2_245, %c0_246, %c0_247] : memref<4x192x96xf32, #tpu.memory_space<vmem>>, vector<1x192x96xf32>
    %196 = vector.shape_cast %195 : vector<1x192x96xf32> to vector<192x96xf32>
    %cst_248 = arith.constant dense<0.000000e+00> : vector<64x96xf32>
    %197 = tpu.matmul %194, %196, %cst_248 {dimension_numbers = #tpu.dot_dimension_numbers<[1], [0], [0], [1], [0, 0, 1, 1], [], []>} : vector<64x192xf32>, vector<192x96xf32>, vector<64x96xf32> -> vector<64x96xf32>
    %198 = arith.addf %192, %197 : vector<64x96xf32>
    %c1_249 = arith.constant 1 : index
    %c1_250 = arith.constant 1 : index
    %c0_251 = arith.constant 0 : index
    %199 = vector.load %arg16[%c1_249, %c1_250, %c0_251] : memref<9x9x192xf32, #tpu.memory_space<vmem>>, vector<8x8x192xf32>
    %200 = vector.shape_cast %199 : vector<8x8x192xf32> to vector<64x192xf32>
    %c3_252 = arith.constant 3 : index
    %c0_253 = arith.constant 0 : index
    %c0_254 = arith.constant 0 : index
    %201 = vector.load %arg6[%c3_252, %c0_253, %c0_254] : memref<4x192x96xf32, #tpu.memory_space<vmem>>, vector<1x192x96xf32>
    %202 = vector.shape_cast %201 : vector<1x192x96xf32> to vector<192x96xf32>
    %cst_255 = arith.constant dense<0.000000e+00> : vector<64x96xf32>
    %203 = tpu.matmul %200, %202, %cst_255 {dimension_numbers = #tpu.dot_dimension_numbers<[1], [0], [0], [1], [0, 0, 1, 1], [], []>} : vector<64x192xf32>, vector<192x96xf32>, vector<64x96xf32> -> vector<64x96xf32>
    %204 = arith.addf %198, %203 : vector<64x96xf32>
    %c0_256 = arith.constant 0 : index
    %c0_257 = arith.constant 0 : index
    %205 = vector.load %arg7[%c0_256, %c0_257] : memref<1x96xf32, #tpu.memory_space<vmem>>, vector<1x96xf32>
    %206 = vector.broadcast %205 : vector<1x96xf32> to vector<64x96xf32>
    %207 = arith.addf %204, %206 : vector<64x96xf32>
    %cst_258 = arith.constant 0.000000e+00 : f32
    %208 = vector.broadcast %cst_258 : f32 to vector<64x96xf32>
    %209 = arith.maximumf %207, %208 : vector<64x96xf32>
    %210 = vector.shape_cast %209 : vector<64x96xf32> to vector<8x8x96xf32>
    %c1_259 = arith.constant 1 : index
    %c1_260 = arith.constant 1 : index
    %c0_261 = arith.constant 0 : index
    %211 = vector.load %arg17[%c1_259, %c1_260, %c0_261] : memref<10x10x96xf32, #tpu.memory_space<vmem>>, vector<8x8x96xf32>
    tpu.vector_store %arg17[%c1_259, %c1_260, %c0_261], %210 {strides = array<i32>} : memref<10x10x96xf32, #tpu.memory_space<vmem>>, vector<8x8x96xf32>,
    %c0_262 = arith.constant 0 : index
    %c0_263 = arith.constant 0 : index
    %c0_264 = arith.constant 0 : index
    %212 = tpu.strided_load %arg17[%c0_262, %c0_263, %c0_264] {strides = array<i32: 2, 2, 1>} : memref<10x10x96xf32, #tpu.memory_space<vmem>>, vector<5x5x96xf32>
    %c0_265 = arith.constant 0 : index
    %c0_266 = arith.constant 0 : index
    %c0_267 = arith.constant 0 : index
    %213 = vector.load %arg18[%c0_265, %c0_266, %c0_267] : memref<5x9x384xf32, #tpu.memory_space<vmem>>, vector<5x5x96xf32>
    tpu.vector_store %arg18[%c0_265, %c0_266, %c0_267], %212 {strides = array<i32>} : memref<5x9x384xf32, #tpu.memory_space<vmem>>, vector<5x5x96xf32>,
    %c0_268 = arith.constant 0 : index
    %c1_269 = arith.constant 1 : index
    %c0_270 = arith.constant 0 : index
    %214 = tpu.strided_load %arg17[%c0_268, %c1_269, %c0_270] {strides = array<i32: 2, 2, 1>} : memref<10x10x96xf32, #tpu.memory_space<vmem>>, vector<5x5x96xf32>
    %c0_271 = arith.constant 0 : index
    %c0_272 = arith.constant 0 : index
    %c96_273 = arith.constant 96 : index
    %215 = vector.load %arg18[%c0_271, %c0_272, %c96_273] : memref<5x9x384xf32, #tpu.memory_space<vmem>>, vector<5x5x96xf32>
    tpu.vector_store %arg18[%c0_271, %c0_272, %c96_273], %214 {strides = array<i32>} : memref<5x9x384xf32, #tpu.memory_space<vmem>>, vector<5x5x96xf32>,
    %c1_274 = arith.constant 1 : index
    %c0_275 = arith.constant 0 : index
    %c0_276 = arith.constant 0 : index
    %216 = tpu.strided_load %arg17[%c1_274, %c0_275, %c0_276] {strides = array<i32: 2, 2, 1>} : memref<10x10x96xf32, #tpu.memory_space<vmem>>, vector<5x5x96xf32>
    %c0_277 = arith.constant 0 : index
    %c0_278 = arith.constant 0 : index
    %c192 = arith.constant 192 : index
    %217 = vector.load %arg18[%c0_277, %c0_278, %c192] : memref<5x9x384xf32, #tpu.memory_space<vmem>>, vector<5x5x96xf32>
    tpu.vector_store %arg18[%c0_277, %c0_278, %c192], %216 {strides = array<i32>} : memref<5x9x384xf32, #tpu.memory_space<vmem>>, vector<5x5x96xf32>,
    %c1_279 = arith.constant 1 : index
    %c1_280 = arith.constant 1 : index
    %c0_281 = arith.constant 0 : index
    %218 = tpu.strided_load %arg17[%c1_279, %c1_280, %c0_281] {strides = array<i32: 2, 2, 1>} : memref<10x10x96xf32, #tpu.memory_space<vmem>>, vector<5x5x96xf32>
    %c0_282 = arith.constant 0 : index
    %c0_283 = arith.constant 0 : index
    %c288 = arith.constant 288 : index
    %219 = vector.load %arg18[%c0_282, %c0_283, %c288] : memref<5x9x384xf32, #tpu.memory_space<vmem>>, vector<5x5x96xf32>
    tpu.vector_store %arg18[%c0_282, %c0_283, %c288], %218 {strides = array<i32>} : memref<5x9x384xf32, #tpu.memory_space<vmem>>, vector<5x5x96xf32>,
    %c0_284 = arith.constant 0 : index
    %c0_285 = arith.constant 0 : index
    %c0_286 = arith.constant 0 : index
    %220 = vector.load %arg18[%c0_284, %c0_285, %c0_286] : memref<5x9x384xf32, #tpu.memory_space<vmem>>, vector<4x8x384xf32>
    %221 = vector.shape_cast %220 : vector<4x8x384xf32> to vector<32x384xf32>
    %c0_287 = arith.constant 0 : index
    %c0_288 = arith.constant 0 : index
    %c0_289 = arith.constant 0 : index
    %222 = vector.load %arg8[%c0_287, %c0_288, %c0_289] : memref<4x384x192xf32, #tpu.memory_space<vmem>>, vector<1x384x192xf32>
    %223 = vector.shape_cast %222 : vector<1x384x192xf32> to vector<384x192xf32>
    %cst_290 = arith.constant dense<0.000000e+00> : vector<32x192xf32>
    %224 = tpu.matmul %221, %223, %cst_290 {dimension_numbers = #tpu.dot_dimension_numbers<[1], [0], [0], [1], [0, 0, 1, 1], [], []>} : vector<32x384xf32>, vector<384x192xf32>, vector<32x192xf32> -> vector<32x192xf32>
    %c0_291 = arith.constant 0 : index
    %c1_292 = arith.constant 1 : index
    %c0_293 = arith.constant 0 : index
    %225 = vector.load %arg18[%c0_291, %c1_292, %c0_293] : memref<5x9x384xf32, #tpu.memory_space<vmem>>, vector<4x8x384xf32>
    %226 = vector.shape_cast %225 : vector<4x8x384xf32> to vector<32x384xf32>
    %c1_294 = arith.constant 1 : index
    %c0_295 = arith.constant 0 : index
    %c0_296 = arith.constant 0 : index
    %227 = vector.load %arg8[%c1_294, %c0_295, %c0_296] : memref<4x384x192xf32, #tpu.memory_space<vmem>>, vector<1x384x192xf32>
    %228 = vector.shape_cast %227 : vector<1x384x192xf32> to vector<384x192xf32>
    %cst_297 = arith.constant dense<0.000000e+00> : vector<32x192xf32>
    %229 = tpu.matmul %226, %228, %cst_297 {dimension_numbers = #tpu.dot_dimension_numbers<[1], [0], [0], [1], [0, 0, 1, 1], [], []>} : vector<32x384xf32>, vector<384x192xf32>, vector<32x192xf32> -> vector<32x192xf32>
    %230 = arith.addf %224, %229 : vector<32x192xf32>
    %c1_298 = arith.constant 1 : index
    %c0_299 = arith.constant 0 : index
    %c0_300 = arith.constant 0 : index
    %231 = vector.load %arg18[%c1_298, %c0_299, %c0_300] : memref<5x9x384xf32, #tpu.memory_space<vmem>>, vector<4x8x384xf32>
    %232 = vector.shape_cast %231 : vector<4x8x384xf32> to vector<32x384xf32>
    %c2_301 = arith.constant 2 : index
    %c0_302 = arith.constant 0 : index
    %c0_303 = arith.constant 0 : index
    %233 = vector.load %arg8[%c2_301, %c0_302, %c0_303] : memref<4x384x192xf32, #tpu.memory_space<vmem>>, vector<1x384x192xf32>
    %234 = vector.shape_cast %233 : vector<1x384x192xf32> to vector<384x192xf32>
    %cst_304 = arith.constant dense<0.000000e+00> : vector<32x192xf32>
    %235 = tpu.matmul %232, %234, %cst_304 {dimension_numbers = #tpu.dot_dimension_numbers<[1], [0], [0], [1], [0, 0, 1, 1], [], []>} : vector<32x384xf32>, vector<384x192xf32>, vector<32x192xf32> -> vector<32x192xf32>
    %236 = arith.addf %230, %235 : vector<32x192xf32>
    %c1_305 = arith.constant 1 : index
    %c1_306 = arith.constant 1 : index
    %c0_307 = arith.constant 0 : index
    %237 = vector.load %arg18[%c1_305, %c1_306, %c0_307] : memref<5x9x384xf32, #tpu.memory_space<vmem>>, vector<4x8x384xf32>
    %238 = vector.shape_cast %237 : vector<4x8x384xf32> to vector<32x384xf32>
    %c3_308 = arith.constant 3 : index
    %c0_309 = arith.constant 0 : index
    %c0_310 = arith.constant 0 : index
    %239 = vector.load %arg8[%c3_308, %c0_309, %c0_310] : memref<4x384x192xf32, #tpu.memory_space<vmem>>, vector<1x384x192xf32>
    %240 = vector.shape_cast %239 : vector<1x384x192xf32> to vector<384x192xf32>
    %cst_311 = arith.constant dense<0.000000e+00> : vector<32x192xf32>
    %241 = tpu.matmul %238, %240, %cst_311 {dimension_numbers = #tpu.dot_dimension_numbers<[1], [0], [0], [1], [0, 0, 1, 1], [], []>} : vector<32x384xf32>, vector<384x192xf32>, vector<32x192xf32> -> vector<32x192xf32>
    %242 = arith.addf %236, %241 : vector<32x192xf32>
    %c0_312 = arith.constant 0 : index
    %c0_313 = arith.constant 0 : index
    %243 = vector.load %arg9[%c0_312, %c0_313] : memref<1x192xf32, #tpu.memory_space<vmem>>, vector<1x192xf32>
    %244 = vector.broadcast %243 : vector<1x192xf32> to vector<32x192xf32>
    %245 = arith.addf %242, %244 : vector<32x192xf32>
    %cst_314 = arith.constant 0.000000e+00 : f32
    %246 = vector.broadcast %cst_314 : f32 to vector<32x192xf32>
    %247 = arith.maximumf %245, %246 : vector<32x192xf32>
    %248 = vector.extract_strided_slice %247 {offsets = [0, 0], sizes = [1, 192], strides = [1, 1]} : vector<32x192xf32> to vector<1x192xf32>
    %c0_315 = arith.constant 0 : index
    %c0_316 = arith.constant 0 : index
    %249 = vector.load %arg19[%c0_315, %c0_316] : memref<1x3072xf32, #tpu.memory_space<vmem>>, vector<1x192xf32>
    tpu.vector_store %arg19[%c0_315, %c0_316], %248 {strides = array<i32>} : memref<1x3072xf32, #tpu.memory_space<vmem>>, vector<1x192xf32>,
    %250 = vector.extract_strided_slice %247 {offsets = [1, 0], sizes = [1, 192], strides = [1, 1]} : vector<32x192xf32> to vector<1x192xf32>
    %c0_317 = arith.constant 0 : index
    %c192_318 = arith.constant 192 : index
    %251 = vector.load %arg19[%c0_317, %c192_318] : memref<1x3072xf32, #tpu.memory_space<vmem>>, vector<1x192xf32>
    tpu.vector_store %arg19[%c0_317, %c192_318], %250 {strides = array<i32>} : memref<1x3072xf32, #tpu.memory_space<vmem>>, vector<1x192xf32>,
    %252 = vector.extract_strided_slice %247 {offsets = [2, 0], sizes = [1, 192], strides = [1, 1]} : vector<32x192xf32> to vector<1x192xf32>
    %c0_319 = arith.constant 0 : index
    %c384_320 = arith.constant 384 : index
    %253 = vector.load %arg19[%c0_319, %c384_320] : memref<1x3072xf32, #tpu.memory_space<vmem>>, vector<1x192xf32>
    tpu.vector_store %arg19[%c0_319, %c384_320], %252 {strides = array<i32>} : memref<1x3072xf32, #tpu.memory_space<vmem>>, vector<1x192xf32>,
    %254 = vector.extract_strided_slice %247 {offsets = [3, 0], sizes = [1, 192], strides = [1, 1]} : vector<32x192xf32> to vector<1x192xf32>
    %c0_321 = arith.constant 0 : index
    %c576 = arith.constant 576 : index
    %255 = vector.load %arg19[%c0_321, %c576] : memref<1x3072xf32, #tpu.memory_space<vmem>>, vector<1x192xf32>
    tpu.vector_store %arg19[%c0_321, %c576], %254 {strides = array<i32>} : memref<1x3072xf32, #tpu.memory_space<vmem>>, vector<1x192xf32>,
    %256 = vector.extract_strided_slice %247 {offsets = [8, 0], sizes = [1, 192], strides = [1, 1]} : vector<32x192xf32> to vector<1x192xf32>
    %c0_322 = arith.constant 0 : index
    %c768_323 = arith.constant 768 : index
    %257 = vector.load %arg19[%c0_322, %c768_323] : memref<1x3072xf32, #tpu.memory_space<vmem>>, vector<1x192xf32>
    tpu.vector_store %arg19[%c0_322, %c768_323], %256 {strides = array<i32>} : memref<1x3072xf32, #tpu.memory_space<vmem>>, vector<1x192xf32>,
    %258 = vector.extract_strided_slice %247 {offsets = [9, 0], sizes = [1, 192], strides = [1, 1]} : vector<32x192xf32> to vector<1x192xf32>
    %c0_324 = arith.constant 0 : index
    %c960 = arith.constant 960 : index
    %259 = vector.load %arg19[%c0_324, %c960] : memref<1x3072xf32, #tpu.memory_space<vmem>>, vector<1x192xf32>
    tpu.vector_store %arg19[%c0_324, %c960], %258 {strides = array<i32>} : memref<1x3072xf32, #tpu.memory_space<vmem>>, vector<1x192xf32>,
    %260 = vector.extract_strided_slice %247 {offsets = [10, 0], sizes = [1, 192], strides = [1, 1]} : vector<32x192xf32> to vector<1x192xf32>
    %c0_325 = arith.constant 0 : index
    %c1152 = arith.constant 1152 : index
    %261 = vector.load %arg19[%c0_325, %c1152] : memref<1x3072xf32, #tpu.memory_space<vmem>>, vector<1x192xf32>
    tpu.vector_store %arg19[%c0_325, %c1152], %260 {strides = array<i32>} : memref<1x3072xf32, #tpu.memory_space<vmem>>, vector<1x192xf32>,
    %262 = vector.extract_strided_slice %247 {offsets = [11, 0], sizes = [1, 192], strides = [1, 1]} : vector<32x192xf32> to vector<1x192xf32>
    %c0_326 = arith.constant 0 : index
    %c1344 = arith.constant 1344 : index
    %263 = vector.load %arg19[%c0_326, %c1344] : memref<1x3072xf32, #tpu.memory_space<vmem>>, vector<1x192xf32>
    tpu.vector_store %arg19[%c0_326, %c1344], %262 {strides = array<i32>} : memref<1x3072xf32, #tpu.memory_space<vmem>>, vector<1x192xf32>,
    %264 = vector.extract_strided_slice %247 {offsets = [16, 0], sizes = [1, 192], strides = [1, 1]} : vector<32x192xf32> to vector<1x192xf32>
    %c0_327 = arith.constant 0 : index
    %c1536 = arith.constant 1536 : index
    %265 = vector.load %arg19[%c0_327, %c1536] : memref<1x3072xf32, #tpu.memory_space<vmem>>, vector<1x192xf32>
    tpu.vector_store %arg19[%c0_327, %c1536], %264 {strides = array<i32>} : memref<1x3072xf32, #tpu.memory_space<vmem>>, vector<1x192xf32>,
    %266 = vector.extract_strided_slice %247 {offsets = [17, 0], sizes = [1, 192], strides = [1, 1]} : vector<32x192xf32> to vector<1x192xf32>
    %c0_328 = arith.constant 0 : index
    %c1728 = arith.constant 1728 : index
    %267 = vector.load %arg19[%c0_328, %c1728] : memref<1x3072xf32, #tpu.memory_space<vmem>>, vector<1x192xf32>
    tpu.vector_store %arg19[%c0_328, %c1728], %266 {strides = array<i32>} : memref<1x3072xf32, #tpu.memory_space<vmem>>, vector<1x192xf32>,
    %268 = vector.extract_strided_slice %247 {offsets = [18, 0], sizes = [1, 192], strides = [1, 1]} : vector<32x192xf32> to vector<1x192xf32>
    %c0_329 = arith.constant 0 : index
    %c1920 = arith.constant 1920 : index
    %269 = vector.load %arg19[%c0_329, %c1920] : memref<1x3072xf32, #tpu.memory_space<vmem>>, vector<1x192xf32>
    tpu.vector_store %arg19[%c0_329, %c1920], %268 {strides = array<i32>} : memref<1x3072xf32, #tpu.memory_space<vmem>>, vector<1x192xf32>,
    %270 = vector.extract_strided_slice %247 {offsets = [19, 0], sizes = [1, 192], strides = [1, 1]} : vector<32x192xf32> to vector<1x192xf32>
    %c0_330 = arith.constant 0 : index
    %c2112 = arith.constant 2112 : index
    %271 = vector.load %arg19[%c0_330, %c2112] : memref<1x3072xf32, #tpu.memory_space<vmem>>, vector<1x192xf32>
    tpu.vector_store %arg19[%c0_330, %c2112], %270 {strides = array<i32>} : memref<1x3072xf32, #tpu.memory_space<vmem>>, vector<1x192xf32>,
    %272 = vector.extract_strided_slice %247 {offsets = [24, 0], sizes = [1, 192], strides = [1, 1]} : vector<32x192xf32> to vector<1x192xf32>
    %c0_331 = arith.constant 0 : index
    %c2304 = arith.constant 2304 : index
    %273 = vector.load %arg19[%c0_331, %c2304] : memref<1x3072xf32, #tpu.memory_space<vmem>>, vector<1x192xf32>
    tpu.vector_store %arg19[%c0_331, %c2304], %272 {strides = array<i32>} : memref<1x3072xf32, #tpu.memory_space<vmem>>, vector<1x192xf32>,
    %274 = vector.extract_strided_slice %247 {offsets = [25, 0], sizes = [1, 192], strides = [1, 1]} : vector<32x192xf32> to vector<1x192xf32>
    %c0_332 = arith.constant 0 : index
    %c2496 = arith.constant 2496 : index
    %275 = vector.load %arg19[%c0_332, %c2496] : memref<1x3072xf32, #tpu.memory_space<vmem>>, vector<1x192xf32>
    tpu.vector_store %arg19[%c0_332, %c2496], %274 {strides = array<i32>} : memref<1x3072xf32, #tpu.memory_space<vmem>>, vector<1x192xf32>,
    %276 = vector.extract_strided_slice %247 {offsets = [26, 0], sizes = [1, 192], strides = [1, 1]} : vector<32x192xf32> to vector<1x192xf32>
    %c0_333 = arith.constant 0 : index
    %c2688 = arith.constant 2688 : index
    %277 = vector.load %arg19[%c0_333, %c2688] : memref<1x3072xf32, #tpu.memory_space<vmem>>, vector<1x192xf32>
    tpu.vector_store %arg19[%c0_333, %c2688], %276 {strides = array<i32>} : memref<1x3072xf32, #tpu.memory_space<vmem>>, vector<1x192xf32>,
    %278 = vector.extract_strided_slice %247 {offsets = [27, 0], sizes = [1, 192], strides = [1, 1]} : vector<32x192xf32> to vector<1x192xf32>
    %c0_334 = arith.constant 0 : index
    %c2880 = arith.constant 2880 : index
    %279 = vector.load %arg19[%c0_334, %c2880] : memref<1x3072xf32, #tpu.memory_space<vmem>>, vector<1x192xf32>
    tpu.vector_store %arg19[%c0_334, %c2880], %278 {strides = array<i32>} : memref<1x3072xf32, #tpu.memory_space<vmem>>, vector<1x192xf32>,
    %c0_335 = arith.constant 0 : index
    %c0_336 = arith.constant 0 : index
    %280 = vector.load %arg19[%c0_335, %c0_336] : memref<1x3072xf32, #tpu.memory_space<vmem>>, vector<1x3072xf32>
    %c0_337 = arith.constant 0 : index
    %c0_338 = arith.constant 0 : index
    %281 = vector.load %arg10[%c0_337, %c0_338] : memref<3072x16xf32, #tpu.memory_space<vmem>>, vector<3072x16xf32>
    %cst_339 = arith.constant dense<0.000000e+00> : vector<1x16xf32>
    %282 = tpu.matmul %280, %281, %cst_339 {dimension_numbers = #tpu.dot_dimension_numbers<[1], [0], [0], [1], [0, 0, 1, 1], [], []>} : vector<1x3072xf32>, vector<3072x16xf32>, vector<1x16xf32> -> vector<1x16xf32>
    %c0_340 = arith.constant 0 : index
    %c0_341 = arith.constant 0 : index
    %283 = vector.load %arg11[%c0_340, %c0_341] : memref<1x16xf32, #tpu.memory_space<vmem>>, vector<1x16xf32>
    %284 = arith.addf %282, %283 : vector<1x16xf32>
    %cst_342 = arith.constant 0.000000e+00 : f32
    %285 = vector.broadcast %cst_342 : f32 to vector<1x16xf32>
    %286 = arith.subf %285, %284 : vector<1x16xf32>
    %287 = math.exp %286 : vector<1x16xf32>
    %cst_343 = arith.constant 1.000000e+00 : f32
    %288 = vector.broadcast %cst_343 : f32 to vector<1x16xf32>
    %289 = arith.addf %288, %287 : vector<1x16xf32>
    %cst_344 = arith.constant 1.000000e+00 : f32
    %290 = vector.broadcast %cst_344 : f32 to vector<1x16xf32>
    %291 = arith.divf %290, %289 : vector<1x16xf32>
    %c0_345 = arith.constant 0 : index
    %c0_346 = arith.constant 0 : index
    %c0_347 = arith.constant 0 : index
    %292 = vector.load %arg12[%c0_345, %c0_346, %c0_347] : memref<1x1x16xf32, #tpu.memory_space<vmem>>, vector<1x1x16xf32>
    %293 = vector.shape_cast %292 : vector<1x1x16xf32> to vector<1x16xf32>
    %294 = vector.shape_cast %291 : vector<1x16xf32> to vector<1x1x16xf32>
    tpu.vector_store %arg12[%c0_345, %c0_346, %c0_347], %294 {strides = array<i32>} : memref<1x1x16xf32, #tpu.memory_space<vmem>>, vector<1x1x16xf32>,
    return
  }
  func.func @transform_0(%arg0: i32) -> (i32, i32, i32) {
    %c0_i32 = arith.constant 0 : i32
    %c0_i32_0 = arith.constant 0 : i32
    %c0_i32_1 = arith.constant 0 : i32
    return %arg0, %c0_i32, %c0_i32_0 : i32, i32, i32
  }
  func.func @transform_1(%arg0: i32) -> (i32, i32) {
    %c0_i32 = arith.constant 0 : i32
    %c0_i32_0 = arith.constant 0 : i32
    %c0_i32_1 = arith.constant 0 : i32
    return %c0_i32, %c0_i32_0 : i32, i32
  }
  func.func @transform_2(%arg0: i32) -> (i32, i32) {
    %c0_i32 = arith.constant 0 : i32
    %c0_i32_0 = arith.constant 0 : i32
    %c0_i32_1 = arith.constant 0 : i32
    return %c0_i32, %c0_i32_0 : i32, i32
  }
  func.func @transform_3(%arg0: i32) -> (i32, i32, i32) {
    %c0_i32 = arith.constant 0 : i32
    %c0_i32_0 = arith.constant 0 : i32
    %c0_i32_1 = arith.constant 0 : i32
    %c0_i32_2 = arith.constant 0 : i32
    return %c0_i32, %c0_i32_0, %c0_i32_1 : i32, i32, i32
  }
  func.func @transform_4(%arg0: i32) -> (i32, i32) {
    %c0_i32 = arith.constant 0 : i32
    %c0_i32_0 = arith.constant 0 : i32
    %c0_i32_1 = arith.constant 0 : i32
    return %c0_i32, %c0_i32_0 : i32, i32
  }
  func.func @transform_5(%arg0: i32) -> (i32, i32, i32) {
    %c0_i32 = arith.constant 0 : i32
    %c0_i32_0 = arith.constant 0 : i32
    %c0_i32_1 = arith.constant 0 : i32
    %c0_i32_2 = arith.constant 0 : i32
    return %c0_i32, %c0_i32_0, %c0_i32_1 : i32, i32, i32
  }
  func.func @transform_6(%arg0: i32) -> (i32, i32) {
    %c0_i32 = arith.constant 0 : i32
    %c0_i32_0 = arith.constant 0 : i32
    %c0_i32_1 = arith.constant 0 : i32
    return %c0_i32, %c0_i32_0 : i32, i32
  }
  func.func @transform_7(%arg0: i32) -> (i32, i32, i32) {
    %c0_i32 = arith.constant 0 : i32
    %c0_i32_0 = arith.constant 0 : i32
    %c0_i32_1 = arith.constant 0 : i32
    %c0_i32_2 = arith.constant 0 : i32
    return %c0_i32, %c0_i32_0, %c0_i32_1 : i32, i32, i32
  }
  func.func @transform_8(%arg0: i32) -> (i32, i32) {
    %c0_i32 = arith.constant 0 : i32
    %c0_i32_0 = arith.constant 0 : i32
    %c0_i32_1 = arith.constant 0 : i32
    return %c0_i32, %c0_i32_0 : i32, i32
  }
  func.func @transform_9(%arg0: i32) -> (i32, i32) {
    %c0_i32 = arith.constant 0 : i32
    %c0_i32_0 = arith.constant 0 : i32
    %c0_i32_1 = arith.constant 0 : i32
    return %c0_i32, %c0_i32_0 : i32, i32
  }
  func.func @transform_10(%arg0: i32) -> (i32, i32) {
    %c0_i32 = arith.constant 0 : i32
    %c0_i32_0 = arith.constant 0 : i32
    %c0_i32_1 = arith.constant 0 : i32
    return %c0_i32, %c0_i32_0 : i32, i32
  }
  func.func @transform_11(%arg0: i32) -> (i32, i32, i32) {
    %c0_i32 = arith.constant 0 : i32
    %c0_i32_0 = arith.constant 0 : i32
    %c0_i32_1 = arith.constant 0 : i32
    return %arg0, %c0_i32, %c0_i32_0 : i32, i32, i32
  }
}

</mosaic_0001>

<bundles_post_ra>
// kernel: conv_vae_forward.1
= control target key start
LH: loop header
LB: loop body
LE: loop exit
PB: predicated region body
PF: predicated region fallthrough
CT: control target
= control target key end

     0   :  { %s18589_s0 = inlined_call_operand.vmem [shape: f32[2,1024,48], index: 0, kind: input, shape index: {}]   ;;  %s18590_s1 = inlined_call_operand.vmem [shape: f32[48,24], index: 1, kind: input, shape index: {}]   ;;  %s18591_s2 = inlined_call_operand.vmem [shape: f32[1,24], index: 2, kind: input, shape index: {}]   ;;  %s18592_s3 = inlined_call_operand.vmem [shape: f32[4,96,48], index: 3, kind: input, shape index: {}]   ;;  %s18593_s4 = inlined_call_operand.vmem [shape: f32[1,48], index: 4, kind: input, shape index: {}]   ;;  %s18594_s5 = inlined_call_operand.vmem [shape: f32[4,192,96], index: 5, kind: input, shape index: {}]   ;;  %s18595_s6 = inlined_call_operand.vmem [shape: f32[1,96], index: 6, kind: input, shape index: {}]   ;;  %s18596_s7 = inlined_call_operand.vmem [shape: f32[4,384,192], index: 7, kind: input, shape index: {}]   ;;  %s18597_s8 = inlined_call_operand.vmem [shape: f32[1,192], index: 8, kind: input, shape index: {}]   ;;  %s18598_s9 = inlined_call_operand.vmem [shape: f32[3072,16], index: 9, kind: input, shape index: {}]   ;;  %s18599_s10 = inlined_call_operand.vmem [shape: f32[1,16], index: 10, kind: input, shape index: {}]   ;;  %s18600_s11 = inlined_call_operand.hbm [shape: f32[2,1,16], index: 11, kind: output, shape index: {}]  }
   0x1   :  { %18605 = sst [smem:[#allocation12_spill]] %s18589_s0 }
   0x2   :  { %16 = vsyncpa [#allocation10], 0 }
   0x3   :  { %18 = vsyncpa [#allocation10 + $0x1], 0  ;;  %s12820_s17 = smov 0   ;;  %s12822_s18 = smov 0  }
   0x4   :  { %s12824_s19 = smov 0   ;;  %s12826_s20 = smov 0  }
   0x5 LB: > { %s12841_s21 = sadd.s32 4294967295, %s12748_s20   ;;  %s10380_s22 = sadd.s32 4294967294, %s12748_s20   ;;  %s12748_s20 = sphi %s12826_s20, %s18618_s20   ;;  %s12744_s19 = sphi %s12824_s19, %s18617_s19   ;;  %s12740_s18 = sphi %s12822_s18, %s18616_s18   ;;  %s12736_s17 = sphi %s12820_s17, %s18615_s17  }
   0x6   : > { %s12845_s23 = sadd.s32 1, %s12748_s20   ;;  %s267_s24 = sadd.s32 1, %s12744_s19 }
   0x7   : > { %s264_s25 = ssub.s32 %s12748_s20, %s12845_s23  ;;  %p277_p0 = scmp.ne.s32.totalorder %s12744_s19, %s12740_s18 }
   0x8   : > { %p265_p1 = scmp.eq.s32.totalorder %s264_s25, 0  ;;  %p278_p2 = scmp.eq.s32.totalorder %s12841_s21, 1 }
   0x9   : > { %p283_p3 = scmp.ne.s32.totalorder %s12740_s18, %s12736_s17  ;;  %p284_p4 = scmp.eq.s32.totalorder %s10380_s22, 1 }
   0xa   : > { %s12856_s26 = scalar_select %p265_p1, %s12744_s19, %s267_s24  }
   0xb   : > { %p12858_p5 = por %p278_p2, %p277_p0  ;;  %p12862_p6 = por %p284_p4, %p283_p3 }
   0xc   : > { %p10383_p7 = scmp.ge.s32.totalorder %s12748_s20, 1  ;;  %p340_p8 = scmp.lt.s32.totalorder %s12748_s20, 3 }
   0xe   : > { %p341_p9 = pnand %p10383_p7, %p340_p8 }
   0xf   : > { %p379_p10 = scmp.lt.s32.totalorder (!%p341_p9), %s12841_s21, 1  ;;  %s18608_s0 = sld [smem:[#allocation12_spill]] (!%p341_p9) }
  0x10   : > { %344 = sbr.rel (%p341_p9) target bundleno = 2257 (0x8d1), region = 64  ;;  %s12751_s22 = smov (!%p341_p9), 24  }
  0x11   : > { %s12752_s24 = smov (!%p341_p9), 72   ;;  %s12753_s30 = smov (!%p341_p9), 48  }
  0x12   : > { %s12754_s13 = smov (!%p341_p9), 16   ;;  %s18609_s12 = smov (!%p341_p9), 96  }
  0x13   : > { %s18612_s15 = smov (!%p341_p9), 64  }
  0x15   : > { %v12871_v0 = vld [vmem:[%s18590_s1 + $0x28] sm:$0xff]  ;;  %v12876_v1 = vld [vmem:[%s18590_s1 + $0x20] sm:$0xff]  ;;  %v12886_v2 = vld [vmem:[%s18590_s1 + $0x18] sm:$0xff]  ;;  %s380_s16 = scalar_select %p379_p10, %s12841_s21, 1  ;;  %vm495_vm0 = vcmask 392192   ;;  %vm397_vm1 = vcmask 188416  }
  0x16   : > { %11941 = vmatprep.subr.mxu0 %v12871_v0  ;;  %11977 = vmatprep.subr.mxu1 %v12871_v0  ;;  %v12896_v3 = vld [vmem:[%s18590_s1 + $0x10] sm:$0xff]  ;;  %v12905_v4 = vld [vmem:[%s18590_s1 + $0x8] sm:$0xff]  ;;  %v12919_v5 = vld [vmem:[%s18590_s1] sm:$0xff]  ;;  %v12750_v10 = vmov 0.0   ;;  %vm384_vm2 = vcmask 195584   ;;  %vm389_vm3 = vcmask 189440  }
  0x17   : > { %11942 = vmatpush3.msra.mxu0 %v12871_v0  ;;  %11978 = vmatpush3.msra.mxu1 %v12871_v0  ;;  %s11120_s25 = sshll.u32 %s380_s16, 10  ;;  %434 = vst.msk [vmem:[#allocation2 + $0x71] sm:$0x1] %vm397_vm1, %v12750_v10  ;;  %399 = vst.msk [vmem:[#allocation2 + $0x28] sm:$0x1] %vm397_vm1, %v12750_v10  ;;  %vm2965_vm4 = vcmask 392384  }
  0x18   : > { %11943 = vmatprep.subr.mxu0 %v12876_v1  ;;  %11979 = vmatprep.subr.mxu1 %v12876_v1  ;;  %s12910_s14 = scalar_lea.vmem %s18608_s0, %s11120_s25  ;;  %400 = vst.msk [vmem:[#allocation2 + $0x50] sm:$0x1] %vm397_vm1, %v12750_v10  ;;  %401 = vst.msk [vmem:[#allocation2 + $0x78] sm:$0x1] %vm397_vm1, %v12750_v10  ;;  %vm2968_vm5 = vcmask 385216   ;;  %vm3837_vm6 = vcmask 785408  }
  0x19   : > { %11944 = vmatpush3.msra.mxu0 %v12876_v1  ;;  %11980 = vmatpush3.msra.mxu1 %v12876_v1  ;;  %v12924_v6 = vld [vmem:[%s12910_s14] sm:$0xff]  ;;  %v12934_v8 = vld [vmem:[%s12910_s14 + $0x8] sm:$0xff]  ;;  %402 = vst.msk [vmem:[#allocation2 + $0xa0] sm:$0x1] %vm397_vm1, %v12750_v10  ;;  %403 = vst.msk [vmem:[#allocation2 + $0xc8] sm:$0x1] %vm397_vm1, %v12750_v10 }
  0x1a   : > { %11945 = vmatprep.subr.mxu0 %v12886_v2  ;;  %11981 = vmatprep.subr.mxu1 %v12886_v2  ;;  %v12929_v7 = vld [vmem:[%s12910_s14 + $0x80] sm:$0xff]  ;;  %v12937_v9 = vld [vmem:[%s12910_s14 + $0x88] sm:$0xff]  ;;  %404 = vst.msk [vmem:[#allocation2 + $0xf0] sm:$0x1] %vm397_vm1, %v12750_v10  ;;  %405 = vst.msk [vmem:[#allocation2 + $0x118] sm:$0x1] %vm397_vm1, %v12750_v10 }
  0x1b   : > { %11946 = vmatpush3.msra.mxu0 %v12886_v2  ;;  %11982 = vmatpush3.msra.mxu1 %v12886_v2  ;;  %406 = vst.msk [vmem:[#allocation2 + $0x140] sm:$0x1] %vm397_vm1, %v12750_v10  ;;  %407 = vst.msk [vmem:[#allocation2 + $0x168] sm:$0x1] %vm397_vm1, %v12750_v10  ;;  %v468_v11 = vld [vmem:[%s12910_s14 + $0x10] sm:$0xff]  ;;  %v469_v13 = vld [vmem:[%s12910_s14 + $0x18] sm:$0xff] }
  0x1c   : > { %11947 = vmatprep.subr.mxu0 %v12896_v3  ;;  %11983 = vmatprep.subr.mxu1 %v12896_v3  ;;  %408 = vst.msk [vmem:[#allocation2 + $0x190] sm:$0x1] %vm397_vm1, %v12750_v10  ;;  %409 = vst.msk [vmem:[#allocation2 + $0x1b8] sm:$0x1] %vm397_vm1, %v12750_v10  ;;  %v724_v12 = vld [vmem:[%s12910_s14 + $0x90] sm:$0xff]  ;;  %v725_v14 = vld [vmem:[%s12910_s14 + $0x98] sm:$0xff] }
  0x1d   : > { %11948 = vmatpush3.msra.mxu0 %v12896_v3  ;;  %11984 = vmatpush3.msra.mxu1 %v12896_v3  ;;  %410 = vst.msk [vmem:[#allocation2 + $0x1e0] sm:$0x1] %vm397_vm1, %v12750_v10  ;;  %411 = vst.msk [vmem:[#allocation2 + $0x208] sm:$0x1] %vm397_vm1, %v12750_v10  ;;  %v470_v15 = vld [vmem:[%s12910_s14 + $0x20] sm:$0xff]  ;;  %v471_v17 = vld [vmem:[%s12910_s14 + $0x28] sm:$0xff] }
  0x1e   : > { %11949 = vmatprep.subr.mxu0 %v12905_v4  ;;  %11985 = vmatprep.subr.mxu1 %v12905_v4  ;;  %412 = vst.msk [vmem:[#allocation2 + $0x230] sm:$0x1] %vm397_vm1, %v12750_v10  ;;  %413 = vst.msk [vmem:[#allocation2 + $0x258] sm:$0x1] %vm397_vm1, %v12750_v10  ;;  %v726_v16 = vld [vmem:[%s12910_s14 + $0xa0] sm:$0xff]  ;;  %v727_v18 = vld [vmem:[%s12910_s14 + $0xa8] sm:$0xff] }
  0x1f   : > { %11950 = vmatpush3.msra.mxu0 %v12905_v4  ;;  %11986 = vmatpush3.msra.mxu1 %v12905_v4  ;;  %414 = vst.msk [vmem:[#allocation2 + $0x280] sm:$0x1] %vm397_vm1, %v12750_v10  ;;  %415 = vst.msk [vmem:[#allocation2 + $0x2a8] sm:$0x1] %vm397_vm1, %v12750_v10  ;;  %v472_v19 = vld [vmem:[%s12910_s14 + $0x30] sm:$0xff]  ;;  %v473_v21 = vld [vmem:[%s12910_s14 + $0x38] sm:$0xff] }
  0x20   : > { %11951 = vmatprep.subr.mxu0 %v12919_v5  ;;  %11987 = vmatprep.subr.mxu1 %v12919_v5  ;;  %416 = vst.msk [vmem:[#allocation2 + $0x2d0] sm:$0x1] %vm397_vm1, %v12750_v10  ;;  %417 = vst.msk [vmem:[#allocation2 + $0x2f8] sm:$0x1] %vm397_vm1, %v12750_v10  ;;  %v728_v20 = vld [vmem:[%s12910_s14 + $0xb0] sm:$0xff]  ;;  %v729_v22 = vld [vmem:[%s12910_s14 + $0xb8] sm:$0xff] }
  0x21   : > { %418 = vst.msk [vmem:[#allocation2 + $0x320] sm:$0x1] %vm397_vm1, %v12750_v10  ;;  %419 = vst.msk [vmem:[#allocation2 + $0x348] sm:$0x1] %vm397_vm1, %v12750_v10  ;;  %11952 = vmatpush3.msra.mxu0 %v12919_v5  ;;  %11953 = vmatprep.mubr.msk.f32.mxu0 %vm495_vm0, %v12924_v6  ;;  %v474_v23 = vld [vmem:[%s12910_s14 + $0x40] sm:$0xff]  ;;  %v475_v25 = vld [vmem:[%s12910_s14 + $0x48] sm:$0xff] }
  0x22   : > { %420 = vst.msk [vmem:[#allocation2 + $0x370] sm:$0x1] %vm397_vm1, %v12750_v10  ;;  %421 = vst.msk [vmem:[#allocation2 + $0x398] sm:$0x1] %vm397_vm1, %v12750_v10  ;;  %11988 = vmatpush3.msra.mxu1 %v12919_v5  ;;  %11989 = vmatprep.mubr.msk.f32.mxu1 %vm495_vm0, %v12929_v7  ;;  %v730_v24 = vld [vmem:[%s12910_s14 + $0xc0] sm:$0xff]  ;;  %v731_v26 = vld [vmem:[%s12910_s14 + $0xc8] sm:$0xff] }
  0x23   : > { %422 = vst.msk [vmem:[#allocation2 + $0x3c0] sm:$0x1] %vm397_vm1, %v12750_v10  ;;  %423 = vst.msk [vmem:[#allocation2 + $0x3e8] sm:$0x1] %vm397_vm1, %v12750_v10  ;;  %11954 = vmatmul.mubr.msk.f32.vlgmr.msra.gmra.mxu0 %vm495_vm0, %v12934_v8  ;;  %11990 = vmatmul.mubr.msk.f32.vlgmr.msra.gmra.mxu1 %vm495_vm0, %v12937_v9  ;;  %v476_v27 = vld [vmem:[%s12910_s14 + $0x50] sm:$0xff]  ;;  %v477_v29 = vld [vmem:[%s12910_s14 + $0x58] sm:$0xff] }
  0x24   : > { %424 = vst.msk [vmem:[#allocation2 + $0x410] sm:$0x1] %vm397_vm1, %v12750_v10  ;;  %425 = vst.msk [vmem:[#allocation2 + $0x438] sm:$0x1] %vm397_vm1, %v12750_v10  ;;  %11956 = vmatprep.mubr.msk.f32.mxu0 %vm495_vm0, %v468_v11  ;;  %11992 = vmatprep.mubr.msk.f32.mxu1 %vm495_vm0, %v724_v12  ;;  %v732_v28 = vld [vmem:[%s12910_s14 + $0xd0] sm:$0xff]  ;;  %v733_v30 = vld [vmem:[%s12910_s14 + $0xd8] sm:$0xff] }
  0x25   : > { %426 = vst.msk [vmem:[#allocation2 + $0x460] sm:$0x1] %vm397_vm1, %v12750_v10  ;;  %427 = vst.msk [vmem:[#allocation2 + $0x488] sm:$0x1] %vm397_vm1, %v12750_v10  ;;  %12013 = vmatprep.subr.mxu0 %v12871_v0  ;;  %12049 = vmatprep.subr.mxu1 %v12871_v0  ;;  %v478_v31 = vld [vmem:[%s12910_s14 + $0x60] sm:$0xff]  ;;  %v479_v33 = vld [vmem:[%s12910_s14 + $0x68] sm:$0xff] }
  0x26   : > { %428 = vst.msk [vmem:[#allocation2 + $0x4b0] sm:$0x1] %vm397_vm1, %v12750_v10  ;;  %429 = vst.msk [vmem:[#allocation2 + $0x4d8] sm:$0x1] %vm397_vm1, %v12750_v10  ;;  %12014 = vmatpush3.msra.mxu0 %v12871_v0  ;;  %12050 = vmatpush3.msra.mxu1 %v12871_v0  ;;  %v734_v32 = vld [vmem:[%s12910_s14 + $0xe0] sm:$0xff]  ;;  %v735_v34 = vld [vmem:[%s12910_s14 + $0xe8] sm:$0xff] }
  0x27   : > { %430 = vst.msk [vmem:[#allocation2 + $0x500] sm:$0x1] %vm397_vm1, %v12750_v10  ;;  %433 = vst.msk [vmem:[#allocation2 + $0x49] sm:$0x1] %vm397_vm1, %v12750_v10  ;;  %11957 = vmatmul.mubr.msk.f32.gmra.mxu0 %vm495_vm0, %v469_v13  ;;  %11993 = vmatmul.mubr.msk.f32.gmra.mxu1 %vm495_vm0, %v725_v14  ;;  %v480_v35 = vld [vmem:[%s12910_s14 + $0x70] sm:$0xff]  ;;  %v481_v37 = vld [vmem:[%s12910_s14 + $0x78] sm:$0xff] }
  0x28   : > { %435 = vst.msk [vmem:[#allocation2 + $0x99] sm:$0x1] %vm397_vm1, %v12750_v10  ;;  %436 = vst.msk [vmem:[#allocation2 + $0xc1] sm:$0x1] %vm397_vm1, %v12750_v10  ;;  %11959 = vmatprep.mubr.msk.f32.mxu0 %vm495_vm0, %v470_v15  ;;  %11995 = vmatprep.mubr.msk.f32.mxu1 %vm495_vm0, %v726_v16  ;;  %v736_v36 = vld [vmem:[%s12910_s14 + $0xf0] sm:$0xff]  ;;  %v737_v38 = vld [vmem:[%s12910_s14 + $0xf8] sm:$0xff] }
  0x29   : > { %437 = vst.msk [vmem:[#allocation2 + $0xe9] sm:$0x1] %vm397_vm1, %v12750_v10  ;;  %438 = vst.msk [vmem:[#allocation2 + $0x111] sm:$0x1] %vm397_vm1, %v12750_v10  ;;  %12015 = vmatprep.subr.mxu0 %v12876_v1  ;;  %12051 = vmatprep.subr.mxu1 %v12876_v1  ;;  %v977_v39 = vld [vmem:[%s12910_s14 + $0x100] sm:$0xff]  ;;  %v978_v41 = vld [vmem:[%s12910_s14 + $0x108] sm:$0xff] }
  0x2a   : > { %439 = vst.msk [vmem:[#allocation2 + $0x139] sm:$0x1] %vm397_vm1, %v12750_v10  ;;  %440 = vst.msk [vmem:[#allocation2 + $0x161] sm:$0x1] %vm397_vm1, %v12750_v10  ;;  %12016 = vmatpush3.msra.mxu0 %v12876_v1  ;;  %12052 = vmatpush3.msra.mxu1 %v12876_v1  ;;  %v1232_v40 = vld [vmem:[%s12910_s14 + $0x180] sm:$0xff]  ;;  %v1233_v42 = vld [vmem:[%s12910_s14 + $0x188] sm:$0xff] }
  0x2b   : > { %441 = vst.msk [vmem:[#allocation2 + $0x189] sm:$0x1] %vm397_vm1, %v12750_v10  ;;  %442 = vst.msk [vmem:[#allocation2 + $0x1b1] sm:$0x1] %vm397_vm1, %v12750_v10  ;;  %11960 = vmatmul.mubr.msk.f32.gmra.mxu0 %vm495_vm0, %v471_v17  ;;  %11996 = vmatmul.mubr.msk.f32.gmra.mxu1 %vm495_vm0, %v727_v18  ;;  %v979_v43 = vld [vmem:[%s12910_s14 + $0x110] sm:$0xff]  ;;  %v980_v45 = vld [vmem:[%s12910_s14 + $0x118] sm:$0xff] }
  0x2c   : > { %443 = vst.msk [vmem:[#allocation2 + $0x1d9] sm:$0x1] %vm397_vm1, %v12750_v10  ;;  %444 = vst.msk [vmem:[#allocation2 + $0x201] sm:$0x1] %vm397_vm1, %v12750_v10  ;;  %11962 = vmatprep.mubr.msk.f32.mxu0 %vm495_vm0, %v472_v19  ;;  %11998 = vmatprep.mubr.msk.f32.mxu1 %vm495_vm0, %v728_v20  ;;  %v1234_v44 = vld [vmem:[%s12910_s14 + $0x190] sm:$0xff]  ;;  %v1235_v46 = vld [vmem:[%s12910_s14 + $0x198] sm:$0xff] }
  0x2d   : > { %445 = vst.msk [vmem:[#allocation2 + $0x229] sm:$0x1] %vm397_vm1, %v12750_v10  ;;  %446 = vst.msk [vmem:[#allocation2 + $0x251] sm:$0x1] %vm397_vm1, %v12750_v10  ;;  %12017 = vmatprep.subr.mxu0 %v12886_v2  ;;  %12053 = vmatprep.subr.mxu1 %v12886_v2  ;;  %v981_v47 = vld [vmem:[%s12910_s14 + $0x120] sm:$0xff]  ;;  %v982_v49 = vld [vmem:[%s12910_s14 + $0x128] sm:$0xff] }
  0x2e   : > { %447 = vst.msk [vmem:[#allocation2 + $0x279] sm:$0x1] %vm397_vm1, %v12750_v10  ;;  %448 = vst.msk [vmem:[#allocation2 + $0x2a1] sm:$0x1] %vm397_vm1, %v12750_v10  ;;  %12018 = vmatpush3.msra.mxu0 %v12886_v2  ;;  %12054 = vmatpush3.msra.mxu1 %v12886_v2  ;;  %v1236_v48 = vld [vmem:[%s12910_s14 + $0x1a0] sm:$0xff]  ;;  %v1237_v50 = vld [vmem:[%s12910_s14 + $0x1a8] sm:$0xff] }
  0x2f   : > { %449 = vst.msk [vmem:[#allocation2 + $0x2c9] sm:$0x1] %vm397_vm1, %v12750_v10  ;;  %450 = vst.msk [vmem:[#allocation2 + $0x2f1] sm:$0x1] %vm397_vm1, %v12750_v10  ;;  %11963 = vmatmul.mubr.msk.f32.gmra.mxu0 %vm495_vm0, %v473_v21  ;;  %11999 = vmatmul.mubr.msk.f32.gmra.mxu1 %vm495_vm0, %v729_v22  ;;  %v983_v51 = vld [vmem:[%s12910_s14 + $0x130] sm:$0xff]  ;;  %v984_v53 = vld [vmem:[%s12910_s14 + $0x138] sm:$0xff] }
  0x30   : > { %451 = vst.msk [vmem:[#allocation2 + $0x319] sm:$0x1] %vm397_vm1, %v12750_v10  ;;  %452 = vst.msk [vmem:[#allocation2 + $0x341] sm:$0x1] %vm397_vm1, %v12750_v10  ;;  %11965 = vmatprep.mubr.msk.f32.mxu0 %vm495_vm0, %v474_v23  ;;  %12001 = vmatprep.mubr.msk.f32.mxu1 %vm495_vm0, %v730_v24  ;;  %v1238_v52 = vld [vmem:[%s12910_s14 + $0x1b0] sm:$0xff]  ;;  %v1239_v54 = vld [vmem:[%s12910_s14 + $0x1b8] sm:$0xff] }
  0x31   : > { %453 = vst.msk [vmem:[#allocation2 + $0x369] sm:$0x1] %vm397_vm1, %v12750_v10  ;;  %454 = vst.msk [vmem:[#allocation2 + $0x391] sm:$0x1] %vm397_vm1, %v12750_v10  ;;  %12019 = vmatprep.subr.mxu0 %v12896_v3  ;;  %12055 = vmatprep.subr.mxu1 %v12896_v3  ;;  %v985_v55 = vld [vmem:[%s12910_s14 + $0x140] sm:$0xff]  ;;  %v986_v57 = vld [vmem:[%s12910_s14 + $0x148] sm:$0xff] }
  0x32   : > { %455 = vst.msk [vmem:[#allocation2 + $0x3b9] sm:$0x1] %vm397_vm1, %v12750_v10  ;;  %456 = vst.msk [vmem:[#allocation2 + $0x3e1] sm:$0x1] %vm397_vm1, %v12750_v10  ;;  %12020 = vmatpush3.msra.mxu0 %v12896_v3  ;;  %12056 = vmatpush3.msra.mxu1 %v12896_v3  ;;  %v1240_v56 = vld [vmem:[%s12910_s14 + $0x1c0] sm:$0xff]  ;;  %v1241_v58 = vld [vmem:[%s12910_s14 + $0x1c8] sm:$0xff] }
  0x33   : > { %457 = vst.msk [vmem:[#allocation2 + $0x409] sm:$0x1] %vm397_vm1, %v12750_v10  ;;  %458 = vst.msk [vmem:[#allocation2 + $0x431] sm:$0x1] %vm397_vm1, %v12750_v10  ;;  %11966 = vmatmul.mubr.msk.f32.gmra.mxu0 %vm495_vm0, %v475_v25  ;;  %12002 = vmatmul.mubr.msk.f32.gmra.mxu1 %vm495_vm0, %v731_v26  ;;  %v987_v59 = vld [vmem:[%s12910_s14 + $0x150] sm:$0xff]  ;;  %v988_v61 = vld [vmem:[%s12910_s14 + $0x158] sm:$0xff] }
  0x34   : > { %459 = vst.msk [vmem:[#allocation2 + $0x459] sm:$0x1] %vm397_vm1, %v12750_v10  ;;  %460 = vst.msk [vmem:[#allocation2 + $0x481] sm:$0x1] %vm397_vm1, %v12750_v10  ;;  %11968 = vmatprep.mubr.msk.f32.mxu0 %vm495_vm0, %v476_v27  ;;  %12004 = vmatprep.mubr.msk.f32.mxu1 %vm495_vm0, %v732_v28  ;;  %v1242_v60 = vld [vmem:[%s12910_s14 + $0x1d0] sm:$0xff]  ;;  %v1243_v62 = vld [vmem:[%s12910_s14 + $0x1d8] sm:$0xff] }
  0x35   : > { %461 = vst.msk [vmem:[#allocation2 + $0x4a9] sm:$0x1] %vm397_vm1, %v12750_v10  ;;  %462 = vst.msk [vmem:[#allocation2 + $0x4d1] sm:$0x1] %vm397_vm1, %v12750_v10  ;;  %12021 = vmatprep.subr.mxu0 %v12905_v4  ;;  %12057 = vmatprep.subr.mxu1 %v12905_v4  ;;  %v989_v63 = vld [vmem:[%s12910_s14 + $0x160] sm:$0xff]  ;;  %v990_v7 = vld [vmem:[%s12910_s14 + $0x168] sm:$0xff] }
  0x36   : > { %463 = vst.msk [vmem:[#allocation2 + $0x4f9] sm:$0x1] %vm397_vm1, %v12750_v10  ;;  %464 = vst.msk [vmem:[#allocation2 + $0x521] sm:$0x1] %vm397_vm1, %v12750_v10  ;;  %12022 = vmatpush3.msra.mxu0 %v12905_v4  ;;  %12058 = vmatpush3.msra.mxu1 %v12905_v4  ;;  %v1244_v6 = vld [vmem:[%s12910_s14 + $0x1e0] sm:$0xff]  ;;  %v1245_v8 = vld [vmem:[%s12910_s14 + $0x1e8] sm:$0xff] }
  0x37   : > { %3735 = vst.msk [vmem:[#allocation4] sm:$0xff] %vm495_vm0, %v12750_v10  ;;  %3736 = vst.msk [vmem:[#allocation4 + $0x8] sm:$0xff] %vm495_vm0, %v12750_v10  ;;  %11969 = vmatmul.mubr.msk.f32.gmra.mxu0 %vm495_vm0, %v477_v29  ;;  %12005 = vmatmul.mubr.msk.f32.gmra.mxu1 %vm495_vm0, %v733_v30  ;;  %v991_v9 = vld [vmem:[%s12910_s14 + $0x170] sm:$0xff]  ;;  %v992_v14 = vld [vmem:[%s12910_s14 + $0x178] sm:$0xff]  ;;  %vm3323_vm7 = vcmask 589184   ;;  %vm3682_vm8 = vcmask 785984  }
  0x38   : > { %3740 = vst.msk [vmem:[#allocation4 + $0x198] sm:$0xff] %vm495_vm0, %v12750_v10  ;;  %3741 = vst.msk [vmem:[#allocation4 + $0x1a0] sm:$0xff] %vm495_vm0, %v12750_v10  ;;  %11971 = vmatprep.mubr.msk.f32.mxu0 %vm495_vm0, %v478_v31  ;;  %12023 = vmatprep.subr.mxu0 %v12919_v5  ;;  %v1246_v11 = vld [vmem:[%s12910_s14 + $0x1f0] sm:$0xff]  ;;  %v1247_v15 = vld [vmem:[%s12910_s14 + $0x1f8] sm:$0xff]  ;;  %vm3326_vm9 = vcmask 582016   ;;  %vm3685_vm10 = vcmask 778816  }
  0x39   : > { %385 = vst.msk [vmem:[#allocation2] sm:$0xff] %vm384_vm2, %v12750_v10  ;;  %386 = vst.msk [vmem:[#allocation2 + $0x8] sm:$0xff] %vm384_vm2, %v12750_v10  ;;  %12007 = vmatprep.mubr.msk.f32.mxu1 %vm495_vm0, %v734_v32  ;;  %12024 = vmatpush3.msra.mxu0 %v12919_v5  ;;  %v2670_v12 = vld [vmem:[#allocation2 + $0x71] ss:$2 sm:$0x1]  ;;  %v1487_v16 = vld [vmem:[%s12910_s14 + $0x200] sm:$0xff] }
  0x3a   : > { %387 = vst.msk [vmem:[#allocation2 + $0x10] sm:$0xff] %vm384_vm2, %v12750_v10  ;;  %388 = vst.msk [vmem:[#allocation2 + $0x18] sm:$0xff] %vm384_vm2, %v12750_v10  ;;  %12059 = vmatprep.subr.mxu1 %v12919_v5  ;;  %12085 = vmatprep.subr.mxu0 %v12871_v0  ;;  %v1742_v17 = vld [vmem:[%s12910_s14 + $0x280] sm:$0xff]  ;;  %v3387_v18 = vld [vmem:[#allocation2 + $0x99] ss:$2 sm:$0x1] }
  0x3b   : > { %392 = vst.msk [vmem:[#allocation2 + $0x528] sm:$0xff] %vm384_vm2, %v12750_v10  ;;  %393 = vst.msk [vmem:[#allocation2 + $0x530] sm:$0xff] %vm384_vm2, %v12750_v10  ;;  %11972 = vmatmul.mubr.msk.f32.gmra.mxu0 %vm495_vm0, %v479_v33  ;;  %12008 = vmatmul.mubr.msk.f32.gmra.mxu1 %vm495_vm0, %v735_v34  ;;  %v1488_v20 = vld [vmem:[%s12910_s14 + $0x208] sm:$0xff]  ;;  %v1489_v22 = vld [vmem:[%s12910_s14 + $0x210] sm:$0xff]  ;;  %vm3737_vm11 = vcmask 386048   ;;  %vm3743_vm12 = vcmask 385024  }
  0x3c   : > { %394 = vst.msk [vmem:[#allocation2 + $0x538] sm:$0xff] %vm384_vm2, %v12750_v10  ;;  %395 = vst.msk [vmem:[#allocation2 + $0x540] sm:$0xff] %vm384_vm2, %v12750_v10  ;;  %11974 = vmatprep.mubr.msk.f32.mxu0 %vm495_vm0, %v480_v35  ;;  %12010 = vmatprep.mubr.msk.f32.mxu1 %vm495_vm0, %v736_v36  ;;  %v1743_v21 = vld [vmem:[%s12910_s14 + $0x288] sm:$0xff]  ;;  %v1744_v23 = vld [vmem:[%s12910_s14 + $0x290] sm:$0xff]  ;;  %vm5894_vm13 = vcmask 778624   ;;  %vm5892_vm14 = vcmask 785792  }
  0x3d   : > { %390 = vst.msk [vmem:[#allocation2 + $0x20] sm:$0x3] %vm389_vm3, %v12750_v10  ;;  %396 = vst.msk [vmem:[#allocation2 + $0x548] sm:$0x3] %vm389_vm3, %v12750_v10  ;;  %12060 = vmatpush3.msra.mxu1 %v12919_v5  ;;  %2822 = vrot.lane.b32.xlu1 %v2670_v12, %s12751_s22  ;;  %v1490_v24 = vld [vmem:[%s12910_s14 + $0x218] sm:$0xff]  ;;  %v1491_v26 = vld [vmem:[%s12910_s14 + $0x220] sm:$0xff] }
  0x3e   : > { %398 = vst.msk [vmem:[#allocation2] sm:$0x1] %vm397_vm1, %v12750_v10  ;;  %432 = vst.msk [vmem:[#allocation2 + $0x21] sm:$0x1] %vm397_vm1, %v12750_v10  ;;  %12121 = vmatprep.subr.mxu1 %v12871_v0  ;;  %v1745_v25 = vld [vmem:[%s12910_s14 + $0x298] sm:$0xff]  ;;  %v1746_v27 = vld [vmem:[%s12910_s14 + $0x2a0] sm:$0xff] }
  0x3f   : > { %431 = vst.msk [vmem:[#allocation2 + $0x528] sm:$0x1] %vm397_vm1, %v12750_v10  ;;  %465 = vst.msk [vmem:[#allocation2 + $0x549] sm:$0x1] %vm397_vm1, %v12750_v10  ;;  %11975 = vmatmul.mubr.msk.f32.gmra.mxu0 %vm495_vm0, %v481_v37  ;;  %12011 = vmatmul.mubr.msk.f32.gmra.mxu1 %vm495_vm0, %v737_v38  ;;  %v1492_v28 = vld [vmem:[%s12910_s14 + $0x228] sm:$0xff]  ;;  %v1493_v30 = vld [vmem:[%s12910_s14 + $0x230] sm:$0xff] }
  0x40   : > { %12025 = vmatprep.mubr.msk.f32.mxu0 %vm495_vm0, %v977_v39  ;;  %12061 = vmatprep.mubr.msk.f32.mxu1 %vm495_vm0, %v1232_v40  ;;  %v2660_v13 = vld [vmem:[#allocation2 + $0x1] ss:$2 sm:$0xff]  ;;  %v1494_v31 = vld [vmem:[%s12910_s14 + $0x238] sm:$0xff]  ;;  %v1497_v36 = vld [vmem:[%s12910_s14 + $0x250] sm:$0xff]  ;;  %6187 = vst.msk [vmem:[#allocation6] sm:$0xff] %vm3837_vm6, %v12750_v10  ;;  %s18601_s25 = smov 96  }
  0x41   : > { %2812 = vrot.lane.b32.xlu0 %v2660_v13, %s12751_s22  ;;  %v2662_v19 = vld [vmem:[#allocation2 + $0x11] ss:$2 sm:$0xff]  ;;  %3539 = vrot.lane.b32.xlu1 %v3387_v18, %s12752_s24  ;;  %v1747_v29 = vld [vmem:[%s12910_s14 + $0x2a8] sm:$0xff]  ;;  %v1495_v33 = vld [vmem:[%s12910_s14 + $0x240] sm:$0xff]  ;;  %6191 = vst.msk [vmem:[#allocation6 + $0x90] sm:$0xff] %vm3837_vm6, %v12750_v10  ;;  %vm6023_vm15 = vcmask 1041152  }
  0x42   : > { %v1749_v32 = vld [vmem:[%s12910_s14 + $0x2b8] sm:$0xff]  ;;  %v1496_v34 = vld [vmem:[%s12910_s14 + $0x248] sm:$0xff]  ;;  %v1499_v39 = vld [vmem:[%s12910_s14 + $0x260] sm:$0xff]  ;;  %3738 = vst.msk [vmem:[#allocation4 + $0x10] sm:$0x3] %vm3737_vm11, %v12750_v10  ;;  %vm6019_vm3 = vcmask 1048320  }
  0x43   : > { %12026 = vmatmul.mubr.msk.f32.vlgmr.msra.gmra.mxu0 %vm495_vm0, %v978_v41  ;;  %12062 = vmatmul.mubr.msk.f32.vlgmr.msra.gmra.mxu1 %vm495_vm0, %v1233_v42  ;;  %v1751_v35 = vld [vmem:[%s12910_s14 + $0x2c8] sm:$0xff]  ;;  %v1498_v37 = vld [vmem:[%s12910_s14 + $0x258] sm:$0xff]  ;;  %v2700_v12 = vld [vmem:[#allocation2 + $0x201] ss:$2 sm:$0x1] }
  0x44   : > { %12028 = vmatprep.mubr.msk.f32.mxu0 %vm495_vm0, %v979_v43  ;;  %12064 = vmatprep.mubr.msk.f32.mxu1 %vm495_vm0, %v1234_v44  ;;  %v1753_v38 = vld [vmem:[%s12910_s14 + $0x2d8] sm:$0xff]  ;;  %v3381_v41 = vld [vmem:[#allocation2 + $0x49] ss:$2 sm:$0x1]  ;;  %v1756_v44 = vld [vmem:[%s12910_s14 + $0x2f0] sm:$0xff] }
  0x45   : > { %12086 = vmatpush3.msra.mxu0 %v12871_v0  ;;  %12122 = vmatpush3.msra.mxu1 %v12871_v0  ;;  %v2664_v40 = vld [vmem:[#allocation2 + $0x21] ss:$2 sm:$0x1]  ;;  %v1500_v42 = vld [vmem:[%s12910_s14 + $0x268] sm:$0xff]  ;;  %v2004_v13 = vld [vmem:[%s12910_s14 + $0x338] sm:$0xff] }
  0x46   : > { %12087 = vmatprep.subr.mxu0 %v12876_v1  ;;  %12123 = vmatprep.subr.mxu1 %v12876_v1  ;;  %v1755_v43 = vld [vmem:[%s12910_s14 + $0x2e8] sm:$0xff]  ;;  %3742 = vst.msk [vmem:[#allocation4 + $0x1a8] sm:$0x3] %vm3737_vm11, %v12750_v10  ;;  %vm7264_vm11 = vcmask 1044736  }
  0x47   : > { %12029 = vmatmul.mubr.msk.f32.gmra.mxu0 %vm495_vm0, %v980_v45  ;;  %12065 = vmatmul.mubr.msk.f32.gmra.mxu1 %vm495_vm0, %v1235_v46  ;;  %v2682_v45 = vld [vmem:[#allocation2 + $0x111] ss:$2 sm:$0x1]  ;;  %v2676_v46 = vld [vmem:[#allocation2 + $0xc1] ss:$2 sm:$0x1] }
  0x48   : > { %12031 = vmatprep.mubr.msk.f32.mxu0 %vm495_vm0, %v981_v47  ;;  %12067 = vmatprep.mubr.msk.f32.mxu1 %vm495_vm0, %v1236_v48  ;;  %v1502_v47 = vld [vmem:[%s12910_s14 + $0x278] sm:$0xff]  ;;  %v1997_v48 = vld [vmem:[%s12910_s14 + $0x300] sm:$0xff]  ;;  %v3417_v18 = vld [vmem:[#allocation2 + $0x229] ss:$2 sm:$0x1] }
  0x49   : > { %12088 = vmatpush3.msra.mxu0 %v12876_v1  ;;  %12124 = vmatpush3.msra.mxu1 %v12876_v1  ;;  %3744 = vst.msk [vmem:[#allocation4] sm:$0x1] %vm3743_vm12, %v12750_v10  ;;  %3745 = vst.msk [vmem:[#allocation4 + $0x18] sm:$0x1] %vm3743_vm12, %v12750_v10 }
  0x4a   : > { %12089 = vmatprep.subr.mxu0 %v12886_v2  ;;  %12125 = vmatprep.subr.mxu1 %v12886_v2  ;;  %3746 = vst.msk [vmem:[#allocation4 + $0x30] sm:$0x1] %vm3743_vm12, %v12750_v10  ;;  %3747 = vst.msk [vmem:[#allocation4 + $0x48] sm:$0x1] %vm3743_vm12, %v12750_v10 }
  0x4b   : > { %12032 = vmatmul.mubr.msk.f32.gmra.mxu0 %vm495_vm0, %v982_v49  ;;  %12068 = vmatmul.mubr.msk.f32.gmra.mxu1 %vm495_vm0, %v1237_v50  ;;  %v2252_v49 = vld [vmem:[%s12910_s14 + $0x380] sm:$0xff]  ;;  %v3399_v50 = vld [vmem:[#allocation2 + $0x139] ss:$2 sm:$0x1]  ;;  %3748 = vst.msk [vmem:[#allocation4 + $0x60] sm:$0x1] %vm3743_vm12, %v12750_v10 }
  0x4c   : > { %12034 = vmatprep.mubr.msk.f32.mxu0 %vm495_vm0, %v983_v51  ;;  %12070 = vmatprep.mubr.msk.f32.mxu1 %vm495_vm0, %v1238_v52  ;;  %v3393_v51 = vld [vmem:[#allocation2 + $0xe9] ss:$2 sm:$0x1]  ;;  %3749 = vst.msk [vmem:[#allocation4 + $0x78] sm:$0x1] %vm3743_vm12, %v12750_v10 }
  0x4d   : > { %12090 = vmatpush3.msra.mxu0 %v12886_v2  ;;  %12126 = vmatpush3.msra.mxu1 %v12886_v2  ;;  %v1998_v52 = vld [vmem:[%s12910_s14 + $0x308] sm:$0xff]  ;;  %3750 = vst.msk [vmem:[#allocation4 + $0x90] sm:$0x1] %vm3743_vm12, %v12750_v10  ;;  %3751 = vst.msk [vmem:[#allocation4 + $0xa8] sm:$0x1] %vm3743_vm12, %v12750_v10 }
  0x4e   : > { %12091 = vmatprep.subr.mxu0 %v12896_v3  ;;  %12127 = vmatprep.subr.mxu1 %v12896_v3  ;;  %3752 = vst.msk [vmem:[#allocation4 + $0xc0] sm:$0x1] %vm3743_vm12, %v12750_v10  ;;  %3753 = vst.msk [vmem:[#allocation4 + $0xd8] sm:$0x1] %vm3743_vm12, %v12750_v10 }
  0x4f   : > { %12035 = vmatmul.mubr.msk.f32.gmra.mxu0 %vm495_vm0, %v984_v53  ;;  %12071 = vmatmul.mubr.msk.f32.gmra.mxu1 %vm495_vm0, %v1239_v54  ;;  %v2253_v53 = vld [vmem:[%s12910_s14 + $0x388] sm:$0xff]  ;;  %v1999_v54 = vld [vmem:[%s12910_s14 + $0x310] sm:$0xff]  ;;  %3754 = vst.msk [vmem:[#allocation4 + $0xf0] sm:$0x1] %vm3743_vm12, %v12750_v10  ;;  %3755 = vst.msk [vmem:[#allocation4 + $0x108] sm:$0x1] %vm3743_vm12, %v12750_v10 }
  0x50   : > { %12037 = vmatprep.mubr.msk.f32.mxu0 %vm495_vm0, %v985_v55  ;;  %12073 = vmatprep.mubr.msk.f32.mxu1 %vm495_vm0, %v1240_v56  ;;  %v2254_v55 = vld [vmem:[%s12910_s14 + $0x390] sm:$0xff]  ;;  %3756 = vst.msk [vmem:[#allocation4 + $0x120] sm:$0x1] %vm3743_vm12, %v12750_v10  ;;  %3757 = vst.msk [vmem:[#allocation4 + $0x138] sm:$0x1] %vm3743_vm12, %v12750_v10 }
  0x51   : > { %12092 = vmatpush3.msra.mxu0 %v12896_v3  ;;  %12128 = vmatpush3.msra.mxu1 %v12896_v3  ;;  %v2694_v56 = vld [vmem:[#allocation2 + $0x1b1] ss:$2 sm:$0x1]  ;;  %3758 = vst.msk [vmem:[#allocation4 + $0x150] sm:$0x1] %vm3743_vm12, %v12750_v10 }
  0x52   : > { %12093 = vmatprep.subr.mxu0 %v12905_v4  ;;  %12129 = vmatprep.subr.mxu1 %v12905_v4  ;;  %3759 = vst.msk [vmem:[#allocation4 + $0x168] sm:$0x1] %vm3743_vm12, %v12750_v10  ;;  %3760 = vst.msk [vmem:[#allocation4 + $0x180] sm:$0x1] %vm3743_vm12, %v12750_v10 }
  0x53   : > { %12038 = vmatmul.mubr.msk.f32.gmra.mxu0 %vm495_vm0, %v986_v57  ;;  %12074 = vmatmul.mubr.msk.f32.gmra.mxu1 %vm495_vm0, %v1241_v58  ;;  %v2688_v57 = vld [vmem:[#allocation2 + $0x161] ss:$2 sm:$0x1]  ;;  %v2000_v58 = vld [vmem:[%s12910_s14 + $0x318] sm:$0xff]  ;;  %3761 = vst.msk [vmem:[#allocation4 + $0x198] sm:$0x1] %vm3743_vm12, %v12750_v10 }
  0x54   : > { %12040 = vmatprep.mubr.msk.f32.mxu0 %vm495_vm0, %v987_v59  ;;  %12076 = vmatprep.mubr.msk.f32.mxu1 %vm495_vm0, %v1242_v60  ;;  %v2255_v59 = vld [vmem:[%s12910_s14 + $0x398] sm:$0xff]  ;;  %v2001_v60 = vld [vmem:[%s12910_s14 + $0x320] sm:$0xff]  ;;  %3763 = vst.msk [vmem:[#allocation4 + $0x29] sm:$0x1] %vm3743_vm12, %v12750_v10  ;;  %3764 = vst.msk [vmem:[#allocation4 + $0x41] sm:$0x1] %vm3743_vm12, %v12750_v10 }
  0x55   : > { %12094 = vmatpush3.msra.mxu0 %v12905_v4  ;;  %12130 = vmatpush3.msra.mxu1 %v12905_v4  ;;  %3765 = vst.msk [vmem:[#allocation4 + $0x59] sm:$0x1] %vm3743_vm12, %v12750_v10  ;;  %3766 = vst.msk [vmem:[#allocation4 + $0x71] sm:$0x1] %vm3743_vm12, %v12750_v10 }
  0x56   : > { %12095 = vmatprep.subr.mxu0 %v12919_v5  ;;  %12131 = vmatprep.subr.mxu1 %v12919_v5  ;;  %3767 = vst.msk [vmem:[#allocation4 + $0x89] sm:$0x1] %vm3743_vm12, %v12750_v10  ;;  %3768 = vst.msk [vmem:[#allocation4 + $0xa1] sm:$0x1] %vm3743_vm12, %v12750_v10 }
  0x57   : > { %12041 = vmatmul.mubr.msk.f32.gmra.mxu0 %vm495_vm0, %v988_v61  ;;  %12077 = vmatmul.mubr.msk.f32.gmra.mxu1 %vm495_vm0, %v1243_v62  ;;  %v2256_v61 = vld [vmem:[%s12910_s14 + $0x3a0] sm:$0xff]  ;;  %v3411_v62 = vld [vmem:[#allocation2 + $0x1d9] ss:$2 sm:$0x1]  ;;  %3769 = vst.msk [vmem:[#allocation4 + $0xb9] sm:$0x1] %vm3743_vm12, %v12750_v10 }
  0x58   : > { %12043 = vmatprep.mubr.msk.f32.mxu0 %vm495_vm0, %v989_v63  ;;  %12079 = vmatprep.mubr.msk.f32.mxu1 %vm495_vm0, %v1244_v6  ;;  %v3405_v63 = vld [vmem:[#allocation2 + $0x189] ss:$2 sm:$0x1]  ;;  %3770 = vst.msk [vmem:[#allocation4 + $0xd1] sm:$0x1] %vm3743_vm12, %v12750_v10 }
  0x59   : > { %12096 = vmatpush3.msra.mxu0 %v12919_v5  ;;  %12132 = vmatpush3.msra.mxu1 %v12919_v5  ;;  %v2002_v6 = vld [vmem:[%s12910_s14 + $0x328] sm:$0xff]  ;;  %3771 = vst.msk [vmem:[#allocation4 + $0xe9] sm:$0x1] %vm3743_vm12, %v12750_v10  ;;  %3772 = vst.msk [vmem:[#allocation4 + $0x101] sm:$0x1] %vm3743_vm12, %v12750_v10 }
  0x5a   : > { %12157 = vmatprep.subr.mxu0 %v12871_v0  ;;  %12193 = vmatprep.subr.mxu1 %v12871_v0  ;;  %3773 = vst.msk [vmem:[#allocation4 + $0x119] sm:$0x1] %vm3743_vm12, %v12750_v10  ;;  %3774 = vst.msk [vmem:[#allocation4 + $0x131] sm:$0x1] %vm3743_vm12, %v12750_v10 }
  0x5b   : > { %12044 = vmatmul.mubr.msk.f32.gmra.mxu0 %vm495_vm0, %v990_v7  ;;  %12080 = vmatmul.mubr.msk.f32.gmra.mxu1 %vm495_vm0, %v1245_v8  ;;  %v2257_v7 = vld [vmem:[%s12910_s14 + $0x3a8] sm:$0xff]  ;;  %v2003_v8 = vld [vmem:[%s12910_s14 + $0x330] sm:$0xff]  ;;  %3775 = vst.msk [vmem:[#allocation4 + $0x149] sm:$0x1] %vm3743_vm12, %v12750_v10  ;;  %3776 = vst.msk [vmem:[#allocation4 + $0x161] sm:$0x1] %vm3743_vm12, %v12750_v10 }
  0x5c   : > { %12046 = vmatprep.mubr.msk.f32.mxu0 %vm495_vm0, %v991_v9  ;;  %12082 = vmatprep.mubr.msk.f32.mxu1 %vm495_vm0, %v1246_v11  ;;  %v2258_v9 = vld [vmem:[%s12910_s14 + $0x3b0] sm:$0xff]  ;;  %3777 = vst.msk [vmem:[#allocation4 + $0x179] sm:$0x1] %vm3743_vm12, %v12750_v10  ;;  %3778 = vst.msk [vmem:[#allocation4 + $0x191] sm:$0x1] %vm3743_vm12, %v12750_v10 }
  0x5d   : > { %2814 = vrot.lane.b32.xlu0 %v2662_v19, %s12751_s22  ;;  %2816 = vrot.lane.b32.xlu1 %v2664_v40, %s12751_s22  ;;  %v2706_v11 = vld [vmem:[#allocation2 + $0x251] ss:$2 sm:$0x1]  ;;  %v2006_v19 = vld [vmem:[%s12910_s14 + $0x348] sm:$0xff]  ;;  %3762 = vst.msk [vmem:[#allocation4 + $0x11] sm:$0x1] %vm3743_vm12, %v12750_v10 }
  0x5e   : > { %v2742_v40 = vld [vmem:[#allocation2 + $0x431] ss:$2 sm:$0x1]  ;;  %3779 = vst.msk [vmem:[#allocation4 + $0x1a9] sm:$0x1] %vm3743_vm12, %v12750_v10 }
  0x5f   : > { %12047 = vmatmul.mubr.msk.f32.gmra.mxu0 %vm495_vm0, %v992_v14  ;;  %12083 = vmatmul.mubr.msk.f32.gmra.mxu1 %vm495_vm0, %v1247_v15  ;;  %v2259_v14 = vld [vmem:[%s12910_s14 + $0x3b8] sm:$0xff]  ;;  %v2005_v15 = vld [vmem:[%s12910_s14 + $0x340] sm:$0xff] }
  0x60   : > { %12097 = vmatprep.mubr.msk.f32.mxu0 %vm495_vm0, %v1487_v16  ;;  %12133 = vmatprep.mubr.msk.f32.mxu1 %vm495_vm0, %v1742_v17  ;;  %v2260_v16 = vld [vmem:[%s12910_s14 + $0x3c0] sm:$0xff]  ;;  %v3423_v17 = vld [vmem:[#allocation2 + $0x279] ss:$2 sm:$0x1] }
  0x61   : > { %3533 = vrot.lane.b32.xlu0 %v3381_v41, %s12752_s24  ;;  %2834 = vrot.lane.b32.xlu1 %v2682_v45, %s12751_s22  ;;  %v2748_v41 = vld [vmem:[#allocation2 + $0x481] ss:$2 sm:$0x1]  ;;  %v2754_v45 = vld [vmem:[#allocation2 + $0x4d1] ss:$2 sm:$0x1] }
  0x63   : > { %12098 = vmatmul.mubr.msk.f32.vlgmr.msra.gmra.mxu0 %vm495_vm0, %v1488_v20  ;;  %12134 = vmatmul.mubr.msk.f32.vlgmr.msra.gmra.mxu1 %vm495_vm0, %v1743_v21  ;;  %v2261_v20 = vld [vmem:[%s12910_s14 + $0x3c8] sm:$0xff]  ;;  %v2007_v21 = vld [vmem:[%s12910_s14 + $0x350] sm:$0xff] }
  0x64   : > { %12100 = vmatprep.mubr.msk.f32.mxu0 %vm495_vm0, %v1489_v22  ;;  %12136 = vmatprep.mubr.msk.f32.mxu1 %vm495_vm0, %v1744_v23  ;;  %v2262_v22 = vld [vmem:[%s12910_s14 + $0x3d0] sm:$0xff]  ;;  %v2712_v23 = vld [vmem:[#allocation2 + $0x2a1] ss:$2 sm:$0x1] }
  0x65   : > { %12158 = vmatpush3.msra.mxu0 %v12871_v0  ;;  %12194 = vmatpush3.msra.mxu1 %v12871_v0  ;;  %v1748_v0 = vld [vmem:[%s12910_s14 + $0x2b0] sm:$0xff] }
  0x66   : > { %12159 = vmatprep.subr.mxu0 %v12876_v1  ;;  %12195 = vmatprep.subr.mxu1 %v12876_v1 }
  0x67   : > { %12101 = vmatmul.mubr.msk.f32.gmra.mxu0 %vm495_vm0, %v1490_v24  ;;  %12137 = vmatmul.mubr.msk.f32.gmra.mxu1 %vm495_vm0, %v1745_v25  ;;  %v3429_v24 = vld [vmem:[#allocation2 + $0x2c9] ss:$2 sm:$0x1]  ;;  %v2008_v25 = vld [vmem:[%s12910_s14 + $0x358] sm:$0xff] }
  0x68   : > { %12103 = vmatprep.mubr.msk.f32.mxu0 %vm495_vm0, %v1491_v26  ;;  %12139 = vmatprep.mubr.msk.f32.mxu1 %vm495_vm0, %v1746_v27  ;;  %v2263_v26 = vld [vmem:[%s12910_s14 + $0x3d8] sm:$0xff]  ;;  %v2009_v27 = vld [vmem:[%s12910_s14 + $0x360] sm:$0xff] }
  0x69   : > { %12160 = vmatpush3.msra.mxu0 %v12876_v1  ;;  %12196 = vmatpush3.msra.mxu1 %v12876_v1  ;;  %v1750_v1 = vld [vmem:[%s12910_s14 + $0x2c0] sm:$0xff] }
  0x6a   : > { %12161 = vmatprep.subr.mxu0 %v12886_v2  ;;  %12197 = vmatprep.subr.mxu1 %v12886_v2 }
  0x6b   : > { %12104 = vmatmul.mubr.msk.f32.gmra.mxu0 %vm495_vm0, %v1492_v28  ;;  %12140 = vmatmul.mubr.msk.f32.gmra.mxu1 %vm495_vm0, %v1747_v29  ;;  %v2264_v28 = vld [vmem:[%s12910_s14 + $0x3e0] sm:$0xff]  ;;  %v2718_v29 = vld [vmem:[#allocation2 + $0x2f1] ss:$2 sm:$0x1] }
  0x6c   : > { %12106 = vmatprep.mubr.msk.f32.mxu0 %vm495_vm0, %v1493_v30  ;;  %12142 = vmatprep.mubr.msk.f32.mxu1 %vm495_vm0, %v1748_v0  ;;  %v2724_v30 = vld [vmem:[#allocation2 + $0x341] ss:$2 sm:$0x1]  ;;  %v2010_v0 = vld [vmem:[%s12910_s14 + $0x368] sm:$0xff] }
  0x6d   : > { %12162 = vmatpush3.msra.mxu0 %v12886_v2  ;;  %12198 = vmatpush3.msra.mxu1 %v12886_v2  ;;  %v1752_v2 = vld [vmem:[%s12910_s14 + $0x2d0] sm:$0xff] }
  0x6e   : > { %12163 = vmatprep.subr.mxu0 %v12896_v3  ;;  %12199 = vmatprep.subr.mxu1 %v12896_v3 }
  0x6f   : > { %12107 = vmatmul.mubr.msk.f32.gmra.mxu0 %vm495_vm0, %v1494_v31  ;;  %12143 = vmatmul.mubr.msk.f32.gmra.mxu1 %vm495_vm0, %v1749_v32  ;;  %v2265_v31 = vld [vmem:[%s12910_s14 + $0x3e8] sm:$0xff]  ;;  %v2011_v32 = vld [vmem:[%s12910_s14 + $0x370] sm:$0xff] }
  0x70   : > { %12109 = vmatprep.mubr.msk.f32.mxu0 %vm495_vm0, %v1495_v33  ;;  %12145 = vmatprep.mubr.msk.f32.mxu1 %vm495_vm0, %v1750_v1  ;;  %v3435_v33 = vld [vmem:[#allocation2 + $0x319] ss:$2 sm:$0x1]  ;;  %v3441_v1 = vld [vmem:[#allocation2 + $0x369] ss:$2 sm:$0x1] }
  0x71   : > { %12164 = vmatpush3.msra.mxu0 %v12896_v3  ;;  %12200 = vmatpush3.msra.mxu1 %v12896_v3  ;;  %v1754_v3 = vld [vmem:[%s12910_s14 + $0x2e0] sm:$0xff] }
  0x72   : > { %12165 = vmatprep.subr.mxu0 %v12905_v4  ;;  %12201 = vmatprep.subr.mxu1 %v12905_v4 }
  0x73   : > { %12110 = vmatmul.mubr.msk.f32.gmra.mxu0 %vm495_vm0, %v1496_v34  ;;  %12146 = vmatmul.mubr.msk.f32.gmra.mxu1 %vm495_vm0, %v1751_v35  ;;  %v2266_v34 = vld [vmem:[%s12910_s14 + $0x3f0] sm:$0xff]  ;;  %v2012_v35 = vld [vmem:[%s12910_s14 + $0x378] sm:$0xff] }
  0x74   : > { %12112 = vmatprep.mubr.msk.f32.mxu0 %vm495_vm0, %v1497_v36  ;;  %12148 = vmatprep.mubr.msk.f32.mxu1 %vm495_vm0, %v1752_v2  ;;  %v2267_v36 = vld [vmem:[%s12910_s14 + $0x3f8] sm:$0xff]  ;;  %v2730_v2 = vld [vmem:[#allocation2 + $0x391] ss:$2 sm:$0x1] }
  0x75   : > { %12166 = vmatpush3.msra.mxu0 %v12905_v4  ;;  %12202 = vmatpush3.msra.mxu1 %v12905_v4  ;;  %v1501_v4 = vld [vmem:[%s12910_s14 + $0x270] sm:$0xff] }
  0x76   : > { %12167 = vmatprep.subr.mxu0 %v12919_v5  ;;  %12203 = vmatprep.subr.mxu1 %v12919_v5 }
  0x77   : > { %12113 = vmatmul.mubr.msk.f32.gmra.mxu0 %vm495_vm0, %v1498_v37  ;;  %12149 = vmatmul.mubr.msk.f32.gmra.mxu1 %vm495_vm0, %v1753_v38  ;;  %v2736_v37 = vld [vmem:[#allocation2 + $0x3e1] ss:$2 sm:$0x1]  ;;  %v3447_v38 = vld [vmem:[#allocation2 + $0x3b9] ss:$2 sm:$0x1] }
  0x78   : > { %12115 = vmatprep.mubr.msk.f32.mxu0 %vm495_vm0, %v1499_v39  ;;  %12151 = vmatprep.mubr.msk.f32.mxu1 %vm495_vm0, %v1754_v3  ;;  %v3453_v39 = vld [vmem:[#allocation2 + $0x409] ss:$2 sm:$0x1]  ;;  %v2507_v3 = vld [vmem:[#allocation2] ss:$2 sm:$0xff] }
  0x79   : > { %12168 = vmatpush3.msra.mxu0 %v12919_v5  ;;  %12204 = vmatpush3.msra.mxu1 %v12919_v5  ;;  %v1757_v5 = vld [vmem:[%s12910_s14 + $0x2f8] sm:$0xff]  ;;  %2608 = vst.msk [vmem:[#allocation3] sm:$0xff] %vm384_vm2, %v2507_v3  ;;  %s377_s14 = sand.u32 1, %s12740_s18  }
  0x7a   : > { %2828 = vrot.lane.b32.xlu0 %v2676_v46, %s12751_s22  ;;  %3551 = vrot.lane.b32.xlu1 %v3399_v50, %s12752_s24  ;;  %s10168_s29 = scalar_lea.sflag [#allocation10], %s377_s14 }
  0x7b   : > { %12116 = vmatmul.mubr.msk.f32.gmra.mxu0 %vm495_vm0, %v1500_v42  ;;  %12152 = vmatmul.mubr.msk.f32.gmra.mxu1 %vm495_vm0, %v1755_v43  ;;  %v2509_v42 = vld [vmem:[#allocation2 + $0x10] ss:$2 sm:$0xff]  ;;  %v3459_v43 = vld [vmem:[#allocation2 + $0x459] ss:$2 sm:$0x1] }
  0x7c   : > { %12118 = vmatprep.mubr.msk.f32.mxu0 %vm495_vm0, %v1501_v4  ;;  %12154 = vmatprep.mubr.msk.f32.mxu1 %vm495_vm0, %v1756_v44  ;;  %2609 = vst.msk [vmem:[#allocation3 + $0x8] sm:$0xff] %vm384_vm2, %v2509_v42  ;;  %v3465_v4 = vld [vmem:[#allocation2 + $0x4a9] ss:$2 sm:$0x1] }
  0x7d   : > { %v2511_v44 = vld [vmem:[#allocation2 + $0x20] ss:$2 sm:$0x1] }
  0x7e   : > { %3545 = vrot.lane.b32.xlu0 %v3393_v51, %s12752_s24  ;;  %2846 = vrot.lane.b32.xlu1 %v2694_v56, %s12751_s22  ;;  %2610 = vst.msk [vmem:[#allocation3 + $0x10] sm:$0x1] %vm397_vm1, %v2511_v44  ;;  %v10533_v56 = vld [vmem:[%s18592_s3 + $0xb8] sm:$0xff] }
  0x7f   : > { %12119 = vmatmul.mubr.msk.f32.gmra.mxu0 %vm495_vm0, %v1502_v47  ;;  %12155 = vmatmul.mubr.msk.f32.gmra.mxu1 %vm495_vm0, %v1757_v5 }
  0x80   : > { %12169 = vmatprep.mubr.msk.f32.mxu0 %vm495_vm0, %v1997_v48  ;;  %12205 = vmatprep.mubr.msk.f32.mxu1 %vm495_vm0, %v2252_v49  ;;  %v13474_v48 = vld [vmem:[%s18591_s2] ss:$0 sm:$0xff] }
  0x81   : > { %12229 = vmatprep.subr.mxu0 %v10533_v56 }
  0x82   : > { %2840 = vrot.lane.b32.xlu0 %v2688_v57, %s12751_s22  ;;  %3563 = vrot.lane.b32.xlu1 %v3411_v62, %s12752_s24  ;;  %v3806_v62 = vld [vmem:[%s18592_s3 + $0x50] sm:$0xff] }
  0x83   : > { %12170 = vmatmul.mubr.msk.f32.vlgmr.msra.gmra.mxu0 %vm495_vm0, %v1998_v52  ;;  %12206 = vmatmul.mubr.msk.f32.vlgmr.msra.gmra.mxu1 %vm495_vm0, %v2253_v53  ;;  %v3807_v53 = vld [vmem:[%s18592_s3 + $0x58] sm:$0xff] }
  0x84   : > { %12172 = vmatprep.mubr.msk.f32.mxu0 %vm495_vm0, %v1999_v54  ;;  %12208 = vmatprep.mubr.msk.f32.mxu1 %vm495_vm0, %v2254_v55 }
  0x85   : > { %12277 = vmatprep.subr.mxu1 %v3807_v53  ;;  %12230 = vmatpush3.msra.mxu0 %v10533_v56 }
  0x86   : > { %3557 = vrot.lane.b32.xlu0 %v3405_v63, %s12752_s24  ;;  %2858 = vrot.lane.b32.xlu1 %v2706_v11, %s12751_s22  ;;  %v10532_v63 = vld [vmem:[%s18592_s3 + $0xb0] sm:$0xff] }
  0x87   : > { %12173 = vmatmul.mubr.msk.f32.gmra.mxu0 %vm495_vm0, %v2000_v58  ;;  %12209 = vmatmul.mubr.msk.f32.gmra.mxu1 %vm495_vm0, %v2255_v59 }
  0x88   : > { %12175 = vmatprep.mubr.msk.f32.mxu0 %vm495_vm0, %v2001_v60  ;;  %12211 = vmatprep.mubr.msk.f32.mxu1 %vm495_vm0, %v2256_v61 }
  0x89   : > { %12278 = vmatpush3.msra.mxu1 %v3807_v53  ;;  %12231 = vmatprep.subr.mxu0 %v10532_v63 }
  0x8a   : > { %2852 = vrot.lane.b32.xlu0 %v2700_v12, %s12751_s22  ;;  %3575 = vrot.lane.b32.xlu1 %v3423_v17, %s12752_s24 }
  0x8b   : > { %12176 = vmatmul.mubr.msk.f32.gmra.mxu0 %vm495_vm0, %v2002_v6  ;;  %12212 = vmatmul.mubr.msk.f32.gmra.mxu1 %vm495_vm0, %v2257_v7 }
  0x8c   : > { %12178 = vmatprep.mubr.msk.f32.mxu0 %vm495_vm0, %v2003_v8  ;;  %12214 = vmatprep.mubr.msk.f32.mxu1 %vm495_vm0, %v2258_v9 }
  0x8d   : > { %12279 = vmatprep.subr.mxu1 %v3806_v62  ;;  %12232 = vmatpush3.msra.mxu0 %v10532_v63 }
  0x8e   : > { %3569 = vrot.lane.b32.xlu0 %v3417_v18, %s12752_s24  ;;  %2864 = vrot.lane.b32.xlu1 %v2712_v23, %s12751_s22 }
  0x8f   : > { %12179 = vmatmul.mubr.msk.f32.gmra.mxu0 %vm495_vm0, %v2004_v13  ;;  %12215 = vmatmul.mubr.msk.f32.gmra.mxu1 %vm495_vm0, %v2259_v14  ;;  %v3805_v13 = vld [vmem:[%s18592_s3 + $0x48] sm:$0xff] }
  0x90   : > { %12181 = vmatprep.mubr.msk.f32.mxu0 %vm495_vm0, %v2005_v15  ;;  %12217 = vmatprep.mubr.msk.f32.mxu1 %vm495_vm0, %v2260_v16  ;;  %v10531_v14 = vld [vmem:[%s18592_s3 + $0xa8] sm:$0xff] }
  0x91   : > { %12280 = vmatpush3.msra.mxu1 %v3806_v62  ;;  %12233 = vmatprep.subr.mxu0 %v10531_v14 }
  0x92   : > { %3581 = vrot.lane.b32.xlu0 %v3429_v24, %s12752_s24  ;;  %2870 = vrot.lane.b32.xlu1 %v2718_v29, %s12751_s22 }
  0x93   : > { %12182 = vmatmul.mubr.msk.f32.gmra.mxu0 %vm495_vm0, %v2006_v19  ;;  %12218 = vmatmul.mubr.msk.f32.gmra.mxu1 %vm495_vm0, %v2261_v20 }
  0x94   : > { %12184 = vmatprep.mubr.msk.f32.mxu0 %vm495_vm0, %v2007_v21  ;;  %12220 = vmatprep.mubr.msk.f32.mxu1 %vm495_vm0, %v2262_v22  ;;  %v3804_v21 = vld [vmem:[%s18592_s3 + $0x40] sm:$0xff] }
  0x95   : > { %12281 = vmatprep.subr.mxu1 %v3805_v13  ;;  %v10530_v22 = vld [vmem:[%s18592_s3 + $0xa0] sm:$0xff]  ;;  %12234 = vmatpush3.msra.mxu0 %v10531_v14 }
  0x96   : > { %2876 = vrot.lane.b32.xlu0 %v2724_v30, %s12751_s22  ;;  %3587 = vrot.lane.b32.xlu1 %v3435_v33, %s12752_s24  ;;  %v3803_v30 = vld [vmem:[%s18592_s3 + $0x38] sm:$0xff] }
  0x97   : > { %12185 = vmatmul.mubr.msk.f32.gmra.mxu0 %vm495_vm0, %v2008_v25  ;;  %12221 = vmatmul.mubr.msk.f32.gmra.mxu1 %vm495_vm0, %v2263_v26 }
  0x98   : > { %12187 = vmatprep.mubr.msk.f32.mxu0 %vm495_vm0, %v2009_v27  ;;  %12223 = vmatprep.mubr.msk.f32.mxu1 %vm495_vm0, %v2264_v28 }
  0x99   : > { %12282 = vmatpush3.msra.mxu1 %v3805_v13  ;;  %12235 = vmatprep.subr.mxu0 %v10530_v22  ;;  %v10525_v13 = vld [vmem:[%s18592_s3 + $0x78] sm:$0xff] }
  0x9a   : > { %3593 = vrot.lane.b32.xlu0 %v3441_v1, %s12752_s24  ;;  %2882 = vrot.lane.b32.xlu1 %v2730_v2, %s12751_s22 }
  0x9b   : > { %12188 = vmatmul.mubr.msk.f32.gmra.mxu0 %vm495_vm0, %v2010_v0  ;;  %12224 = vmatmul.mubr.msk.f32.gmra.mxu1 %vm495_vm0, %v2265_v31 }
  0x9c   : > { %12190 = vmatprep.mubr.msk.f32.mxu0 %vm495_vm0, %v2011_v32  ;;  %12226 = vmatprep.mubr.msk.f32.mxu1 %vm495_vm0, %v2266_v34  ;;  %v10529_v32 = vld [vmem:[%s18592_s3 + $0x98] sm:$0xff] }
  0x9d   : > { %12283 = vmatprep.subr.mxu1 %v3804_v21  ;;  %12236 = vmatpush3.msra.mxu0 %v10530_v22  ;;  %v10524_v22 = vld [vmem:[%s18592_s3 + $0x70] sm:$0xff] }
  0x9e   : > { %2888 = vrot.lane.b32.xlu0 %v2736_v37, %s12751_s22  ;;  %3599 = vrot.lane.b32.xlu1 %v3447_v38, %s12752_s24  ;;  %v3802_v37 = vld [vmem:[%s18592_s3 + $0x30] sm:$0xff] }
  0x9f   : > { %12191 = vmatmul.mubr.msk.f32.gmra.mxu0 %vm495_vm0, %v2012_v35  ;;  %12227 = vmatmul.mubr.msk.f32.gmra.mxu1 %vm495_vm0, %v2267_v36  ;;  %v10528_v38 = vld [vmem:[%s18592_s3 + $0x90] sm:$0xff] }
  0xa0   : > { %12284 = vmatpush3.msra.mxu1 %v3804_v21  ;;  %12237 = vmatprep.subr.mxu0 %v10529_v32  ;;  %v3798_v21 = vld [vmem:[%s18592_s3 + $0x10] sm:$0xff] }
  0xa1   : > { %12285 = vmatprep.subr.mxu1 %v3803_v30  ;;  %12238 = vmatpush3.msra.mxu0 %v10529_v32 }
  0xa2   : > { %3605 = vrot.lane.b32.xlu0 %v3453_v39, %s12752_s24  ;;  %2894 = vrot.lane.b32.xlu1 %v2742_v40, %s12751_s22 }
  0xa3   : > { %12286 = vmatpush3.msra.mxu1 %v3803_v30  ;;  %12239 = vmatprep.subr.mxu0 %v10528_v38 }
  0xa4   : > { %12287 = vmatprep.subr.mxu1 %v3802_v37  ;;  %12240 = vmatpush3.msra.mxu0 %v10528_v38 }
  0xa5   : > { %12288 = vmatpush3.msra.mxu1 %v3802_v37 }
  0xa6   : > { %2900 = vrot.lane.b32.xlu0 %v2748_v41, %s12751_s22  ;;  %3611 = vrot.lane.b32.xlu1 %v3459_v43, %s12752_s24 }
  0xaa   : > { %3617 = vrot.lane.b32.xlu0 %v3465_v4, %s12752_s24  ;;  %2906 = vrot.lane.b32.xlu1 %v2754_v45, %s12751_s22 }
  0xaf   : > { %v13469_v5 = vpop.permute.xlu1 %2822 }
  0xb3   : > { %v2813_v46 = vpop.permute.xlu0 %2812  ;;  %v13486_v61 = vpop.permute.xlu1 %3539 }
  0xb4   : > { %2966 = vst.msk [vmem:[#allocation3] sm:$0xff] %vm2965_vm4, %v2813_v46 }
  0xcf   : > { %v2815_v47 = vpop.permute.xlu0 %2814  ;;  %v2817_v29 = vpop.permute.xlu1 %2816 }
  0xd0   : > { %2967 = vst.msk [vmem:[#allocation3 + $0x8] sm:$0xff] %vm2965_vm4, %v2815_v47 }
  0xd1   : > { %2969 = vst.msk [vmem:[#allocation3 + $0x10] sm:$0x1] %vm2968_vm5, %v2817_v29 }
  0xe3   : > { %v11955_v49 = vpop.f32.mrf.mxu0  ;;  %v11991_v50 = vpop.f32.mrf.mxu1 }
  0xe4   : > { %v616_v51 = vadd.f32 %v11955_v49, %v13474_v48  ;;  %v871_v52 = vadd.f32 %v11991_v50, %v13474_v48  ;;  %v3801_v50 = vld [vmem:[%s18592_s3 + $0x28] sm:$0xff] }
  0xe5   : > { %v610_v54 = vpop.f32.mrf.mxu0  ;;  %v865_v55 = vpop.f32.mrf.mxu1  ;;  %12289 = vmatprep.subr.mxu1 %v3801_v50 }
  0xe6   : > { %v690_v57 = vmax.f32 %v616_v51, 0.0  ;;  %v945_v58 = vmax.f32 %v871_v52, 0.0  ;;  %v611_v59 = vadd.f32 %v13474_v48, %v610_v54  ;;  %v866_v60 = vadd.f32 %v13474_v48, %v865_v55  ;;  %v10527_v51 = vld [vmem:[%s18592_s3 + $0x88] sm:$0xff]  ;;  %12290 = vmatpush3.msra.mxu1 %v3801_v50 }
  0xe7   : > { %v11958_v6 = vpop.f32.mrf.mxu0  ;;  %v11994_v7 = vpop.f32.mrf.mxu1  ;;  %12241 = vmatprep.subr.mxu0 %v10527_v51 }
  0xe8   : > { %707 = vst.msk [vmem:[#allocation2 + $0x31] sm:$0xff] %vm384_vm2, %v690_v57  ;;  %962 = vst.msk [vmem:[#allocation2 + $0xd1] sm:$0xff] %vm384_vm2, %v945_v58  ;;  %v689_v8 = vmax.f32 %v611_v59, 0.0  ;;  %v944_v9 = vmax.f32 %v866_v60, 0.0  ;;  %v626_v11 = vadd.f32 %v11958_v6, %v13474_v48  ;;  %v881_v12 = vadd.f32 %v11994_v7, %v13474_v48  ;;  %12242 = vmatpush3.msra.mxu0 %v10527_v51  ;;  %v3800_v58 = vld [vmem:[%s18592_s3 + $0x20] sm:$0xff] }
  0xe9   : > { %v620_v15 = vpop.f32.mrf.mxu0  ;;  %v875_v16 = vpop.f32.mrf.mxu1  ;;  %v10526_v59 = vld [vmem:[%s18592_s3 + $0x80] sm:$0xff]  ;;  %12291 = vmatprep.subr.mxu1 %v3800_v58 }
  0xea   : > { %706 = vst.msk [vmem:[#allocation2 + $0x29] sm:$0xff] %vm384_vm2, %v689_v8  ;;  %961 = vst.msk [vmem:[#allocation2 + $0xc9] sm:$0xff] %vm384_vm2, %v944_v9  ;;  %v692_v17 = vmax.f32 %v626_v11, 0.0  ;;  %v947_v18 = vmax.f32 %v881_v12, 0.0  ;;  %v621_v19 = vadd.f32 %v13474_v48, %v620_v15  ;;  %v876_v20 = vadd.f32 %v13474_v48, %v875_v16  ;;  %12243 = vmatprep.subr.mxu0 %v10526_v59  ;;  %v3799_v12 = vld [vmem:[%s18592_s3 + $0x18] sm:$0xff] }
  0xeb   : > { %v11961_v23 = vpop.f32.mrf.mxu0  ;;  %v11997_v24 = vpop.f32.mrf.mxu1  ;;  %12292 = vmatpush3.msra.mxu1 %v3800_v58  ;;  %12244 = vmatpush3.msra.mxu0 %v10526_v59 }
  0xec   : > { %709 = vst.msk [vmem:[#allocation2 + $0x41] sm:$0xff] %vm384_vm2, %v692_v17  ;;  %964 = vst.msk [vmem:[#allocation2 + $0xe1] sm:$0xff] %vm384_vm2, %v947_v18  ;;  %v691_v25 = vmax.f32 %v621_v19, 0.0  ;;  %v946_v26 = vmax.f32 %v876_v20, 0.0  ;;  %v636_v27 = vadd.f32 %v11961_v23, %v13474_v48  ;;  %v891_v28 = vadd.f32 %v11997_v24, %v13474_v48  ;;  %v13581_v20 = vpop.permute.xlu0 %3533  ;;  %12293 = vmatprep.subr.mxu1 %v3799_v12 }
  0xed   : > { %v630_v0 = vpop.f32.mrf.mxu0  ;;  %v885_v31 = vpop.f32.mrf.mxu1  ;;  %12245 = vmatprep.subr.mxu0 %v10525_v13  ;;  %12294 = vmatpush3.msra.mxu1 %v3799_v12 }
  0xee   : > { %708 = vst.msk [vmem:[#allocation2 + $0x39] sm:$0xff] %vm384_vm2, %v691_v25  ;;  %963 = vst.msk [vmem:[#allocation2 + $0xd9] sm:$0xff] %vm384_vm2, %v946_v26  ;;  %v694_v33 = vmax.f32 %v636_v27, 0.0  ;;  %v631_v1 = vadd.f32 %v13474_v48, %v630_v0  ;;  %v949_v34 = vmax.f32 %v891_v28, 0.0  ;;  %v886_v35 = vadd.f32 %v13474_v48, %v885_v31  ;;  %12246 = vmatpush3.msra.mxu0 %v10525_v13  ;;  %v3797_v0 = vld [vmem:[%s18592_s3 + $0x8] sm:$0xff] }
  0xef   : > { %v11964_v36 = vpop.f32.mrf.mxu0  ;;  %v12000_v2 = vpop.f32.mrf.mxu1  ;;  %v10523_v31 = vld [vmem:[%s18592_s3 + $0x68] sm:$0xff]  ;;  %12295 = vmatprep.subr.mxu1 %v3798_v21  ;;  %12247 = vmatprep.subr.mxu0 %v10524_v22 }
  0xf0   : > { %711 = vst.msk [vmem:[#allocation2 + $0x59] sm:$0xff] %vm384_vm2, %v694_v33  ;;  %v693_v39 = vmax.f32 %v631_v1, 0.0  ;;  %966 = vst.msk [vmem:[#allocation2 + $0xf9] sm:$0xff] %vm384_vm2, %v949_v34  ;;  %v646_v3 = vadd.f32 %v11964_v36, %v13474_v48  ;;  %v948_v40 = vmax.f32 %v886_v35, 0.0  ;;  %v901_v41 = vadd.f32 %v12000_v2, %v13474_v48  ;;  %12296 = vmatpush3.msra.mxu1 %v3798_v21  ;;  %v13624_v50 = vpop.permute.xlu0 %2828 }
  0xf1   : > { %v640_v42 = vpop.f32.mrf.mxu0  ;;  %v3377_v43 = vld [vmem:[#allocation2 + $0x29] ss:$2 sm:$0xff]  ;;  %v3018_v4 = vld [vmem:[#allocation2 + $0x28] ss:$2 sm:$0xff]  ;;  %v895_v44 = vpop.f32.mrf.mxu1  ;;  %12248 = vmatpush3.msra.mxu0 %v10524_v22  ;;  %12297 = vmatprep.subr.mxu1 %v3797_v0 }
  0xf2   : > { %710 = vst.msk [vmem:[#allocation2 + $0x51] sm:$0xff] %vm384_vm2, %v693_v39  ;;  %v696_v45 = vmax.f32 %v646_v3, 0.0  ;;  %965 = vst.msk [vmem:[#allocation2 + $0xf1] sm:$0xff] %vm384_vm2, %v948_v40  ;;  %v641_v46 = vadd.f32 %v13474_v48, %v640_v42  ;;  %v951_v47 = vmax.f32 %v901_v41, 0.0  ;;  %3529 = vrot.lane.b32.xlu0 %v3377_v43, %s12752_s24  ;;  %3170 = vrot.lane.b32.xlu1 %v3018_v4, %s12753_s30  ;;  %v3389_v62 = vld [vmem:[#allocation2 + $0xc9] ss:$2 sm:$0xff]  ;;  %v2835_v40 = vpop.permute.xlu1 %2834 }
  0xf3   : > { %v896_v49 = vadd.f32 %v13474_v48, %v895_v44  ;;  %v11967_v52 = vpop.f32.mrf.mxu0  ;;  %v12003_v53 = vpop.f32.mrf.mxu1  ;;  %v3030_v63 = vld [vmem:[#allocation2 + $0xc8] ss:$2 sm:$0xff]  ;;  %12249 = vmatprep.subr.mxu0 %v10523_v31  ;;  %v3796_v44 = vld [vmem:[%s18592_s3] sm:$0xff]  ;;  %12298 = vmatpush3.msra.mxu1 %v3797_v0 }
  0xf4   : > { %713 = vst.msk [vmem:[#allocation2 + $0x69] sm:$0xff] %vm384_vm2, %v696_v45  ;;  %v695_v54 = vmax.f32 %v641_v46, 0.0  ;;  %968 = vst.msk [vmem:[#allocation2 + $0x109] sm:$0xff] %vm384_vm2, %v951_v47  ;;  %v656_v55 = vadd.f32 %v11967_v52, %v13474_v48  ;;  %v911_v57 = vadd.f32 %v12003_v53, %v13474_v48  ;;  %v3022_v25 = vld [vmem:[#allocation2 + $0x48] ss:$2 sm:$0x1]  ;;  %12250 = vmatpush3.msra.mxu0 %v10523_v31  ;;  %12299 = vmatprep.subr.mxu1 %v3796_v44 }
  0xf5   : > { %v950_v56 = vmax.f32 %v896_v49, 0.0  ;;  %v650_v60 = vpop.f32.mrf.mxu0  ;;  %v905_v6 = vpop.f32.mrf.mxu1  ;;  %v3020_v24 = vld [vmem:[#allocation2 + $0x38] ss:$2 sm:$0xff]  ;;  %v3034_v1 = vld [vmem:[#allocation2 + $0xe8] ss:$2 sm:$0x1]  ;;  %12300 = vmatpush3.msra.mxu1 %v3796_v44 }
  0xf6   : > { %712 = vst.msk [vmem:[#allocation2 + $0x61] sm:$0xff] %vm384_vm2, %v695_v54  ;;  %v698_v7 = vmax.f32 %v656_v55, 0.0  ;;  %v651_v8 = vadd.f32 %v13474_v48, %v650_v60  ;;  %3541 = vrot.lane.b32.xlu0 %v3389_v62, %s12752_s24  ;;  %3182 = vrot.lane.b32.xlu1 %v3030_v63, %s12753_s30  ;;  %v953_v9 = vmax.f32 %v911_v57, 0.0  ;;  %v906_v11 = vadd.f32 %v13474_v48, %v905_v6  ;;  %v3032_v38 = vld [vmem:[#allocation2 + $0xd8] ss:$2 sm:$0xff] }
  0xf7   : > { %967 = vst.msk [vmem:[#allocation2 + $0x101] sm:$0xff] %vm384_vm2, %v950_v56  ;;  %v11970_v14 = vpop.f32.mrf.mxu0  ;;  %v12006_v15 = vpop.f32.mrf.mxu1  ;;  %v10522_v45 = vld [vmem:[%s18592_s3 + $0x60] sm:$0xff] }
  0xf8   : > { %715 = vst.msk [vmem:[#allocation2 + $0x81] sm:$0xff] %vm384_vm2, %v698_v7  ;;  %v697_v16 = vmax.f32 %v651_v8, 0.0  ;;  %v666_v17 = vadd.f32 %v11970_v14, %v13474_v48  ;;  %970 = vst.msk [vmem:[#allocation2 + $0x121] sm:$0xff] %vm384_vm2, %v953_v9  ;;  %v952_v18 = vmax.f32 %v906_v11, 0.0  ;;  %v921_v19 = vadd.f32 %v12006_v15, %v13474_v48  ;;  %12251 = vmatprep.subr.mxu0 %v10522_v45  ;;  %v3379_v60 = vld [vmem:[#allocation2 + $0x39] ss:$2 sm:$0xff] }
  0xf9   : > { %v660_v23 = vpop.f32.mrf.mxu0  ;;  %v915_v26 = vpop.f32.mrf.mxu1  ;;  %v2513_v32 = vld [vmem:[#allocation2 + $0x50] ss:$2 sm:$0xff]  ;;  %12252 = vmatpush3.msra.mxu0 %v10522_v45 }
  0xfa   : > { %714 = vst.msk [vmem:[#allocation2 + $0x79] sm:$0xff] %vm384_vm2, %v697_v16  ;;  %v700_v27 = vmax.f32 %v666_v17, 0.0  ;;  %v661_v28 = vadd.f32 %v13474_v48, %v660_v23  ;;  %3172 = vrot.lane.b32.xlu0 %v3020_v24, %s12753_s30  ;;  %3174 = vrot.lane.b32.xlu1 %v3022_v25, %s12753_s30  ;;  %969 = vst.msk [vmem:[#allocation2 + $0x119] sm:$0xff] %vm384_vm2, %v952_v18  ;;  %v955_v29 = vmax.f32 %v921_v19, 0.0  ;;  %v2525_v41 = vld [vmem:[#allocation2 + $0xf0] ss:$2 sm:$0xff]  ;;  %v13642_v16 = vpop.permute.xlu0 %3545 }
  0xfb   : > { %v916_v30 = vadd.f32 %v13474_v48, %v915_v26  ;;  %v11973_v33 = vpop.f32.mrf.mxu0  ;;  %v12009_v34 = vpop.f32.mrf.mxu1  ;;  %v2517_v35 = vld [vmem:[#allocation2 + $0x70] ss:$2 sm:$0x1]  ;;  %2611 = vst.msk [vmem:[#allocation3 + $0x18] sm:$0xff] %vm384_vm2, %v2513_v32  ;;  %2617 = vst.msk [vmem:[#allocation3 + $0x48] sm:$0xff] %vm384_vm2, %v2525_v41 }
  0xfc   : > { %v2529_v36 = vld [vmem:[#allocation2 + $0x110] ss:$2 sm:$0x1]  ;;  %717 = vst.msk [vmem:[#allocation2 + $0x91] sm:$0xff] %vm384_vm2, %v700_v27  ;;  %v699_v2 = vmax.f32 %v661_v28, 0.0  ;;  %v676_v37 = vadd.f32 %v11973_v33, %v13474_v48  ;;  %972 = vst.msk [vmem:[#allocation2 + $0x131] sm:$0xff] %vm384_vm2, %v955_v29  ;;  %v931_v3 = vadd.f32 %v12009_v34, %v13474_v48 }
  0xfd   : > { %v954_v39 = vmax.f32 %v916_v30, 0.0  ;;  %2613 = vst.msk [vmem:[#allocation3 + $0x28] sm:$0x1] %vm397_vm1, %v2517_v35  ;;  %2619 = vst.msk [vmem:[#allocation3 + $0x58] sm:$0x1] %vm397_vm1, %v2529_v36  ;;  %v670_v42 = vpop.f32.mrf.mxu0  ;;  %v925_v43 = vpop.f32.mrf.mxu1 }
  0xfe   : > { %2972 = vst.msk [vmem:[#allocation3 + $0x28] sm:$0x1] %vm2968_vm5, %v13469_v5  ;;  %2978 = vst.msk [vmem:[#allocation3 + $0x58] sm:$0x1] %vm2968_vm5, %v2835_v40  ;;  %v2515_v4 = vld [vmem:[#allocation2 + $0x60] ss:$2 sm:$0xff]  ;;  %v671_v5 = vadd.f32 %v13474_v48, %v670_v42  ;;  %3184 = vrot.lane.b32.xlu0 %v3032_v38, %s12753_s30  ;;  %3186 = vrot.lane.b32.xlu1 %v3034_v1, %s12753_s30  ;;  %v926_v49 = vadd.f32 %v13474_v48, %v925_v43  ;;  %v13660_v38 = vpop.permute.xlu1 %3551 }
  0xff   : > { %716 = vst.msk [vmem:[#allocation2 + $0x89] sm:$0xff] %vm384_vm2, %v699_v2  ;;  %v702_v46 = vmax.f32 %v676_v37, 0.0  ;;  %971 = vst.msk [vmem:[#allocation2 + $0x129] sm:$0xff] %vm384_vm2, %v954_v39  ;;  %v957_v47 = vmax.f32 %v931_v3, 0.0  ;;  %v2527_v51 = vld [vmem:[#allocation2 + $0x100] ss:$2 sm:$0xff]  ;;  %v11976_v52 = vpop.f32.mrf.mxu0  ;;  %v12012_v53 = vpop.f32.mrf.mxu1 }
 0x100   : > { %2612 = vst.msk [vmem:[#allocation3 + $0x20] sm:$0xff] %vm384_vm2, %v2515_v4  ;;  %2618 = vst.msk [vmem:[#allocation3 + $0x50] sm:$0xff] %vm384_vm2, %v2527_v51  ;;  %v701_v54 = vmax.f32 %v671_v5, 0.0  ;;  %v686_v55 = vadd.f32 %v11976_v52, %v13474_v48  ;;  %v956_v56 = vmax.f32 %v926_v49, 0.0  ;;  %v941_v57 = vadd.f32 %v12012_v53, %v13474_v48  ;;  %v2668_v59 = vld [vmem:[#allocation2 + $0x61] ss:$2 sm:$0xff]  ;;  %v2841_v39 = vpop.permute.xlu0 %2840 }
 0x101   : > { %719 = vst.msk [vmem:[#allocation2 + $0xa9] sm:$0xff] %vm384_vm2, %v702_v46  ;;  %974 = vst.msk [vmem:[#allocation2 + $0x149] sm:$0xff] %vm384_vm2, %v957_v47  ;;  %v680_v58 = vpop.f32.mrf.mxu0  ;;  %v935_v62 = vpop.f32.mrf.mxu1  ;;  %v2680_v18 = vld [vmem:[#allocation2 + $0x101] ss:$2 sm:$0xff]  ;;  %v3024_v32 = vld [vmem:[#allocation2 + $0x78] ss:$2 sm:$0xff] }
 0x102   : > { %718 = vst.msk [vmem:[#allocation2 + $0xa1] sm:$0xff] %vm384_vm2, %v701_v54  ;;  %v704_v63 = vmax.f32 %v686_v55, 0.0  ;;  %v681_v6 = vadd.f32 %v13474_v48, %v680_v58  ;;  %2820 = vrot.lane.b32.xlu0 %v2668_v59, %s12751_s22  ;;  %3531 = vrot.lane.b32.xlu1 %v3379_v60, %s12752_s24  ;;  %973 = vst.msk [vmem:[#allocation2 + $0x141] sm:$0xff] %vm384_vm2, %v956_v56  ;;  %v959_v7 = vmax.f32 %v941_v57, 0.0  ;;  %v3391_v19 = vld [vmem:[#allocation2 + $0xd9] ss:$2 sm:$0xff] }
 0x103   : > { %v936_v8 = vadd.f32 %v13474_v48, %v935_v62  ;;  %v12027_v9 = vpop.f32.mrf.mxu0  ;;  %v12063_v11 = vpop.f32.mrf.mxu1  ;;  %v2666_v33 = vld [vmem:[#allocation2 + $0x51] ss:$2 sm:$0xff]  ;;  %v3036_v47 = vld [vmem:[#allocation2 + $0x118] ss:$2 sm:$0xff] }
 0x104   : > { %721 = vst.msk [vmem:[#allocation2 + $0xb9] sm:$0xff] %vm384_vm2, %v704_v63  ;;  %v703_v12 = vmax.f32 %v681_v6, 0.0  ;;  %v1126_v13 = vadd.f32 %v12027_v9, %v13474_v48  ;;  %976 = vst.msk [vmem:[#allocation2 + $0x159] sm:$0xff] %vm384_vm2, %v959_v7  ;;  %v1381_v15 = vadd.f32 %v12063_v11, %v13474_v48  ;;  %v2678_v49 = vld [vmem:[#allocation2 + $0xf1] ss:$2 sm:$0xff]  ;;  %v13685_v7 = vpop.permute.xlu1 %2846 }
 0x105   : > { %v958_v14 = vmax.f32 %v936_v8, 0.0  ;;  %v1120_v17 = vpop.f32.mrf.mxu0  ;;  %v1375_v21 = vpop.f32.mrf.mxu1  ;;  %v3028_v58 = vld [vmem:[#allocation2 + $0x98] ss:$2 sm:$0x1]  ;;  %v3383_v9 = vld [vmem:[#allocation2 + $0x79] ss:$2 sm:$0xff] }
 0x106   : > { %720 = vst.msk [vmem:[#allocation2 + $0xb1] sm:$0xff] %vm384_vm2, %v703_v12  ;;  %v1200_v22 = vmax.f32 %v1126_v13, 0.0  ;;  %v1121_v23 = vadd.f32 %v13474_v48, %v1120_v17  ;;  %2832 = vrot.lane.b32.xlu0 %v2680_v18, %s12751_s22  ;;  %3543 = vrot.lane.b32.xlu1 %v3391_v19, %s12752_s24  ;;  %v1455_v24 = vmax.f32 %v1381_v15, 0.0  ;;  %v1376_v25 = vadd.f32 %v13474_v48, %v1375_v21  ;;  %v3040_v18 = vld [vmem:[#allocation2 + $0x138] ss:$2 sm:$0x1] }
 0x107   : > { %975 = vst.msk [vmem:[#allocation2 + $0x151] sm:$0xff] %vm384_vm2, %v958_v14  ;;  %v12030_v26 = vpop.f32.mrf.mxu0  ;;  %v12066_v27 = vpop.f32.mrf.mxu1 }
 0x108   : > { %1217 = vst.msk [vmem:[#allocation2 + $0x171] sm:$0xff] %vm384_vm2, %v1200_v22  ;;  %v1199_v28 = vmax.f32 %v1121_v23, 0.0  ;;  %v1136_v29 = vadd.f32 %v12030_v26, %v13474_v48  ;;  %1472 = vst.msk [vmem:[#allocation2 + $0x211] sm:$0xff] %vm384_vm2, %v1455_v24  ;;  %v1454_v30 = vmax.f32 %v1376_v25, 0.0  ;;  %v1391_v0 = vadd.f32 %v12066_v27, %v13474_v48  ;;  %v3395_v26 = vld [vmem:[#allocation2 + $0x119] ss:$2 sm:$0xff] }
 0x109   : > { %v1130_v31 = vpop.f32.mrf.mxu0  ;;  %v1385_v1 = vpop.f32.mrf.mxu1  ;;  %v2519_v34 = vld [vmem:[#allocation2 + $0xa0] ss:$2 sm:$0xff] }
 0x10a   : > { %1216 = vst.msk [vmem:[#allocation2 + $0x169] sm:$0xff] %vm384_vm2, %v1199_v28  ;;  %v1202_v35 = vmax.f32 %v1136_v29, 0.0  ;;  %v1131_v36 = vadd.f32 %v13474_v48, %v1130_v31  ;;  %3176 = vrot.lane.b32.xlu0 %v3024_v32, %s12753_s30  ;;  %2818 = vrot.lane.b32.xlu1 %v2666_v33, %s12751_s22  ;;  %1471 = vst.msk [vmem:[#allocation2 + $0x209] sm:$0xff] %vm384_vm2, %v1454_v30  ;;  %v1457_v2 = vmax.f32 %v1391_v0, 0.0  ;;  %v2531_v3 = vld [vmem:[#allocation2 + $0x140] ss:$2 sm:$0xff]  ;;  %v13703_v31 = vpop.permute.xlu1 %3563 }
 0x10b   : > { %v1386_v37 = vadd.f32 %v13474_v48, %v1385_v1  ;;  %2614 = vst.msk [vmem:[#allocation3 + $0x30] sm:$0xff] %vm384_vm2, %v2519_v34  ;;  %v12033_v40 = vpop.f32.mrf.mxu0  ;;  %v12069_v41 = vpop.f32.mrf.mxu1  ;;  %v2523_v42 = vld [vmem:[#allocation2 + $0xc0] ss:$2 sm:$0x1]  ;;  %2620 = vst.msk [vmem:[#allocation3 + $0x60] sm:$0xff] %vm384_vm2, %v2531_v3 }
 0x10c   : > { %v2535_v43 = vld [vmem:[#allocation2 + $0x160] ss:$2 sm:$0x1]  ;;  %1219 = vst.msk [vmem:[#allocation2 + $0x181] sm:$0xff] %vm384_vm2, %v1202_v35  ;;  %v1201_v4 = vmax.f32 %v1131_v36, 0.0  ;;  %v1146_v44 = vadd.f32 %v12033_v40, %v13474_v48  ;;  %1474 = vst.msk [vmem:[#allocation2 + $0x221] sm:$0xff] %vm384_vm2, %v1457_v2  ;;  %v1401_v46 = vadd.f32 %v12069_v41, %v13474_v48 }
 0x10d   : > { %v1456_v45 = vmax.f32 %v1386_v37, 0.0  ;;  %2616 = vst.msk [vmem:[#allocation3 + $0x40] sm:$0x1] %vm397_vm1, %v2523_v42  ;;  %2622 = vst.msk [vmem:[#allocation3 + $0x70] sm:$0x1] %vm397_vm1, %v2535_v43  ;;  %v1140_v5 = vpop.f32.mrf.mxu0  ;;  %v1395_v51 = vpop.f32.mrf.mxu1 }
 0x10e   : > { %2975 = vst.msk [vmem:[#allocation3 + $0x40] sm:$0x1] %vm2968_vm5, %v13624_v50  ;;  %2981 = vst.msk [vmem:[#allocation3 + $0x70] sm:$0x1] %vm2968_vm5, %v2841_v39  ;;  %v2521_v52 = vld [vmem:[#allocation2 + $0xb0] ss:$2 sm:$0xff]  ;;  %v1141_v54 = vadd.f32 %v13474_v48, %v1140_v5  ;;  %3188 = vrot.lane.b32.xlu0 %v3036_v47, %s12753_s30  ;;  %2830 = vrot.lane.b32.xlu1 %v2678_v49, %s12751_s22  ;;  %v1396_v56 = vadd.f32 %v13474_v48, %v1395_v51 }
 0x10f   : > { %1218 = vst.msk [vmem:[#allocation2 + $0x179] sm:$0xff] %vm384_vm2, %v1201_v4  ;;  %v1204_v53 = vmax.f32 %v1146_v44, 0.0  ;;  %1473 = vst.msk [vmem:[#allocation2 + $0x219] sm:$0xff] %vm384_vm2, %v1456_v45  ;;  %v1459_v55 = vmax.f32 %v1401_v46, 0.0  ;;  %v2533_v50 = vld [vmem:[#allocation2 + $0x150] ss:$2 sm:$0xff]  ;;  %v12036_v57 = vpop.f32.mrf.mxu0  ;;  %v12072_v59 = vpop.f32.mrf.mxu1 }
 0x110   : > { %2615 = vst.msk [vmem:[#allocation3 + $0x38] sm:$0xff] %vm384_vm2, %v2521_v52  ;;  %2621 = vst.msk [vmem:[#allocation3 + $0x68] sm:$0xff] %vm384_vm2, %v2533_v50  ;;  %v1203_v60 = vmax.f32 %v1141_v54, 0.0  ;;  %v1156_v62 = vadd.f32 %v12036_v57, %v13474_v48  ;;  %v1458_v63 = vmax.f32 %v1396_v56, 0.0  ;;  %v1411_v6 = vadd.f32 %v12072_v59, %v13474_v48  ;;  %v3385_v37 = vld [vmem:[#allocation2 + $0x89] ss:$2 sm:$0xff]  ;;  %v2859_v54 = vpop.permute.xlu1 %2858 }
 0x111   : > { %1221 = vst.msk [vmem:[#allocation2 + $0x199] sm:$0xff] %vm384_vm2, %v1204_v53  ;;  %1476 = vst.msk [vmem:[#allocation2 + $0x239] sm:$0xff] %vm384_vm2, %v1459_v55  ;;  %v1150_v8 = vpop.f32.mrf.mxu0  ;;  %v1405_v11 = vpop.f32.mrf.mxu1  ;;  %v3026_v39 = vld [vmem:[#allocation2 + $0x88] ss:$2 sm:$0xff]  ;;  %v3397_v56 = vld [vmem:[#allocation2 + $0x129] ss:$2 sm:$0xff] }
 0x112   : > { %1220 = vst.msk [vmem:[#allocation2 + $0x191] sm:$0xff] %vm384_vm2, %v1203_v60  ;;  %v1206_v12 = vmax.f32 %v1156_v62, 0.0  ;;  %v1151_v13 = vadd.f32 %v13474_v48, %v1150_v8  ;;  %3180 = vrot.lane.b32.xlu0 %v3028_v58, %s12753_s30  ;;  %3535 = vrot.lane.b32.xlu1 %v3383_v9, %s12752_s24  ;;  %1475 = vst.msk [vmem:[#allocation2 + $0x231] sm:$0xff] %vm384_vm2, %v1458_v63  ;;  %v1461_v14 = vmax.f32 %v1411_v6, 0.0  ;;  %v3038_v50 = vld [vmem:[#allocation2 + $0x128] ss:$2 sm:$0xff] }
 0x113   : > { %v1406_v15 = vadd.f32 %v13474_v48, %v1405_v11  ;;  %v12039_v17 = vpop.f32.mrf.mxu0  ;;  %v12075_v19 = vpop.f32.mrf.mxu1  ;;  %v2674_v8 = vld [vmem:[#allocation2 + $0xb1] ss:$2 sm:$0xff] }
 0x114   : > { %1223 = vst.msk [vmem:[#allocation2 + $0x1a9] sm:$0xff] %vm384_vm2, %v1206_v12  ;;  %v1205_v21 = vmax.f32 %v1151_v13, 0.0  ;;  %v1166_v22 = vadd.f32 %v12039_v17, %v13474_v48  ;;  %1478 = vst.msk [vmem:[#allocation2 + $0x249] sm:$0xff] %vm384_vm2, %v1461_v14  ;;  %v1421_v24 = vadd.f32 %v12075_v19, %v13474_v48  ;;  %v2672_v17 = vld [vmem:[#allocation2 + $0xa1] ss:$2 sm:$0xff] }
 0x115   : > { %v1460_v23 = vmax.f32 %v1406_v15, 0.0  ;;  %v1160_v25 = vpop.f32.mrf.mxu0  ;;  %v1415_v27 = vpop.f32.mrf.mxu1 }
 0x116   : > { %1222 = vst.msk [vmem:[#allocation2 + $0x1a1] sm:$0xff] %vm384_vm2, %v1205_v21  ;;  %v1208_v28 = vmax.f32 %v1166_v22, 0.0  ;;  %v1161_v29 = vadd.f32 %v13474_v48, %v1160_v25  ;;  %3192 = vrot.lane.b32.xlu0 %v3040_v18, %s12753_s30  ;;  %3547 = vrot.lane.b32.xlu1 %v3395_v26, %s12752_s24  ;;  %v1463_v30 = vmax.f32 %v1421_v24, 0.0  ;;  %v1416_v0 = vadd.f32 %v13474_v48, %v1415_v27  ;;  %v2686_v25 = vld [vmem:[#allocation2 + $0x151] ss:$2 sm:$0xff] }
 0x117   : > { %1477 = vst.msk [vmem:[#allocation2 + $0x241] sm:$0xff] %vm384_vm2, %v1460_v23  ;;  %v12042_v32 = vpop.f32.mrf.mxu0  ;;  %v12078_v33 = vpop.f32.mrf.mxu1 }
 0x118   : > { %1225 = vst.msk [vmem:[#allocation2 + $0x1c1] sm:$0xff] %vm384_vm2, %v1208_v28  ;;  %v1207_v1 = vmax.f32 %v1161_v29, 0.0  ;;  %v1176_v34 = vadd.f32 %v12042_v32, %v13474_v48  ;;  %1480 = vst.msk [vmem:[#allocation2 + $0x261] sm:$0xff] %vm384_vm2, %v1463_v30  ;;  %v1462_v35 = vmax.f32 %v1416_v0, 0.0  ;;  %v1431_v36 = vadd.f32 %v12078_v33, %v13474_v48  ;;  %v13748_v0 = vpop.permute.xlu0 %3557  ;;  %v13750_v32 = vpop.permute.xlu1 %3575 }
 0x119   : > { %v1170_v2 = vpop.f32.mrf.mxu0  ;;  %v1425_v3 = vpop.f32.mrf.mxu1  ;;  %v2537_v40 = vld [vmem:[#allocation2 + $0x190] ss:$2 sm:$0xff] }
 0x11a   : > { %1224 = vst.msk [vmem:[#allocation2 + $0x1b9] sm:$0xff] %vm384_vm2, %v1207_v1  ;;  %v1210_v41 = vmax.f32 %v1176_v34, 0.0  ;;  %v1171_v42 = vadd.f32 %v13474_v48, %v1170_v2  ;;  %3537 = vrot.lane.b32.xlu0 %v3385_v37, %s12752_s24  ;;  %3178 = vrot.lane.b32.xlu1 %v3026_v39, %s12753_s30  ;;  %1479 = vst.msk [vmem:[#allocation2 + $0x259] sm:$0xff] %vm384_vm2, %v1462_v35  ;;  %v1465_v43 = vmax.f32 %v1431_v36, 0.0  ;;  %v2549_v44 = vld [vmem:[#allocation2 + $0x230] ss:$2 sm:$0xff] }
 0x11b   : > { %v1426_v4 = vadd.f32 %v13474_v48, %v1425_v3  ;;  %2623 = vst.msk [vmem:[#allocation3 + $0x78] sm:$0xff] %vm384_vm2, %v2537_v40  ;;  %v12045_v45 = vpop.f32.mrf.mxu0  ;;  %v12081_v46 = vpop.f32.mrf.mxu1  ;;  %v2541_v5 = vld [vmem:[#allocation2 + $0x1b0] ss:$2 sm:$0x1]  ;;  %2629 = vst.msk [vmem:[#allocation3 + $0xa8] sm:$0xff] %vm384_vm2, %v2549_v44 }
 0x11c   : > { %v2553_v47 = vld [vmem:[#allocation2 + $0x250] ss:$2 sm:$0x1]  ;;  %1227 = vst.msk [vmem:[#allocation2 + $0x1d1] sm:$0xff] %vm384_vm2, %v1210_v41  ;;  %v1209_v49 = vmax.f32 %v1171_v42, 0.0  ;;  %v1186_v51 = vadd.f32 %v12045_v45, %v13474_v48  ;;  %1482 = vst.msk [vmem:[#allocation2 + $0x271] sm:$0xff] %vm384_vm2, %v1465_v43  ;;  %v1441_v53 = vadd.f32 %v12081_v46, %v13474_v48 }
 0x11d   : > { %v1464_v52 = vmax.f32 %v1426_v4, 0.0  ;;  %2625 = vst.msk [vmem:[#allocation3 + $0x88] sm:$0x1] %vm397_vm1, %v2541_v5  ;;  %2631 = vst.msk [vmem:[#allocation3 + $0xb8] sm:$0x1] %vm397_vm1, %v2553_v47  ;;  %v1180_v55 = vpop.f32.mrf.mxu0  ;;  %v1435_v57 = vpop.f32.mrf.mxu1 }
 0x11e   : > { %2984 = vst.msk [vmem:[#allocation3 + $0x88] sm:$0x1] %vm2968_vm5, %v13685_v7  ;;  %2990 = vst.msk [vmem:[#allocation3 + $0xb8] sm:$0x1] %vm2968_vm5, %v2859_v54  ;;  %v2539_v58 = vld [vmem:[#allocation2 + $0x1a0] ss:$2 sm:$0xff]  ;;  %v1181_v60 = vadd.f32 %v13474_v48, %v1180_v55  ;;  %3549 = vrot.lane.b32.xlu0 %v3397_v56, %s12752_s24  ;;  %3190 = vrot.lane.b32.xlu1 %v3038_v50, %s12753_s30  ;;  %v1436_v63 = vadd.f32 %v13474_v48, %v1435_v57  ;;  %v2865_v54 = vpop.permute.xlu1 %2864 }
 0x11f   : > { %1226 = vst.msk [vmem:[#allocation2 + $0x1c9] sm:$0xff] %vm384_vm2, %v1209_v49  ;;  %v1212_v59 = vmax.f32 %v1186_v51, 0.0  ;;  %1481 = vst.msk [vmem:[#allocation2 + $0x269] sm:$0xff] %vm384_vm2, %v1464_v52  ;;  %v1467_v62 = vmax.f32 %v1441_v53, 0.0  ;;  %v2551_v6 = vld [vmem:[#allocation2 + $0x240] ss:$2 sm:$0xff]  ;;  %v12048_v7 = vpop.f32.mrf.mxu0  ;;  %v12084_v9 = vpop.f32.mrf.mxu1 }
 0x120   : > { %2624 = vst.msk [vmem:[#allocation3 + $0x80] sm:$0xff] %vm384_vm2, %v2539_v58  ;;  %2630 = vst.msk [vmem:[#allocation3 + $0xb0] sm:$0xff] %vm384_vm2, %v2551_v6  ;;  %v1211_v11 = vmax.f32 %v1181_v60, 0.0  ;;  %v1196_v12 = vadd.f32 %v12048_v7, %v13474_v48  ;;  %v1466_v13 = vmax.f32 %v1436_v63, 0.0  ;;  %v1451_v14 = vadd.f32 %v12084_v9, %v13474_v48  ;;  %v2684_v1 = vld [vmem:[#allocation2 + $0x141] ss:$2 sm:$0xff]  ;;  %v2853_v53 = vpop.permute.xlu0 %2852 }
 0x121   : > { %1229 = vst.msk [vmem:[#allocation2 + $0x1e9] sm:$0xff] %vm384_vm2, %v1212_v59  ;;  %1484 = vst.msk [vmem:[#allocation2 + $0x289] sm:$0xff] %vm384_vm2, %v1467_v62  ;;  %v1190_v15 = vpop.f32.mrf.mxu0  ;;  %v1445_v18 = vpop.f32.mrf.mxu1  ;;  %v3401_v44 = vld [vmem:[#allocation2 + $0x169] ss:$2 sm:$0xff]  ;;  %v3042_v45 = vld [vmem:[#allocation2 + $0x168] ss:$2 sm:$0xff] }
 0x122   : > { %1228 = vst.msk [vmem:[#allocation2 + $0x1e1] sm:$0xff] %vm384_vm2, %v1211_v11  ;;  %v1214_v19 = vmax.f32 %v1196_v12, 0.0  ;;  %v1191_v21 = vadd.f32 %v13474_v48, %v1190_v15  ;;  %2824 = vrot.lane.b32.xlu0 %v2672_v17, %s12751_s22  ;;  %2826 = vrot.lane.b32.xlu1 %v2674_v8, %s12751_s22  ;;  %1483 = vst.msk [vmem:[#allocation2 + $0x281] sm:$0xff] %vm384_vm2, %v1466_v13  ;;  %v1469_v22 = vmax.f32 %v1451_v14, 0.0  ;;  %v3413_v7 = vld [vmem:[#allocation2 + $0x209] ss:$2 sm:$0xff] }
 0x123   : > { %v1446_v23 = vadd.f32 %v13474_v48, %v1445_v18  ;;  %v12099_v24 = vpop.f32.mrf.mxu0  ;;  %v12135_v26 = vpop.f32.mrf.mxu1  ;;  %v3054_v8 = vld [vmem:[#allocation2 + $0x208] ss:$2 sm:$0xff] }
 0x124   : > { %1231 = vst.msk [vmem:[#allocation2 + $0x1f9] sm:$0xff] %vm384_vm2, %v1214_v19  ;;  %v1213_v27 = vmax.f32 %v1191_v21, 0.0  ;;  %v1636_v28 = vadd.f32 %v12099_v24, %v13474_v48  ;;  %1486 = vst.msk [vmem:[#allocation2 + $0x299] sm:$0xff] %vm384_vm2, %v1469_v22  ;;  %v1891_v30 = vadd.f32 %v12135_v26, %v13474_v48  ;;  %v13790_v22 = vld [vmem:[%s18591_s2] ss:$0 sm:$0xff] }
 0x125   : > { %v1468_v29 = vmax.f32 %v1446_v23, 0.0  ;;  %v1630_v33 = vpop.f32.mrf.mxu0  ;;  %v1885_v34 = vpop.f32.mrf.mxu1 }
 0x126   : > { %1230 = vst.msk [vmem:[#allocation2 + $0x1f1] sm:$0xff] %vm384_vm2, %v1213_v27  ;;  %v1710_v35 = vmax.f32 %v1636_v28, 0.0  ;;  %v1631_v36 = vadd.f32 %v13474_v48, %v1630_v33  ;;  %2836 = vrot.lane.b32.xlu0 %v2684_v1, %s12751_s22  ;;  %2838 = vrot.lane.b32.xlu1 %v2686_v25, %s12751_s22  ;;  %v1965_v2 = vmax.f32 %v1891_v30, 0.0  ;;  %v1886_v37 = vadd.f32 %v13474_v48, %v1885_v34  ;;  %v13795_v25 = vpop.permute.xlu1 %2870  ;;  %v3044_v27 = vld [vmem:[#allocation2 + $0x178] ss:$2 sm:$0xff] }
 0x127   : > { %1485 = vst.msk [vmem:[#allocation2 + $0x291] sm:$0xff] %vm384_vm2, %v1468_v29  ;;  %v12102_v39 = vpop.f32.mrf.mxu0  ;;  %v12138_v3 = vpop.f32.mrf.mxu1  ;;  %v3046_v28 = vld [vmem:[#allocation2 + $0x188] ss:$2 sm:$0x1] }
 0x128   : > { %1727 = vst.msk [vmem:[#allocation2 + $0x2b1] sm:$0xff] %vm384_vm2, %v1710_v35  ;;  %v1709_v40 = vmax.f32 %v1631_v36, 0.0  ;;  %v1646_v41 = vadd.f32 %v12102_v39, %v13474_v48  ;;  %1982 = vst.msk [vmem:[#allocation2 + $0x351] sm:$0xff] %vm384_vm2, %v1965_v2  ;;  %v1964_v42 = vmax.f32 %v1886_v37, 0.0  ;;  %v1901_v43 = vadd.f32 %v12138_v3, %v13474_v48  ;;  %v13803_v35 = vpop.permute.xlu0 %3569 }
 0x129   : > { %v1640_v4 = vpop.f32.mrf.mxu0  ;;  %v1895_v46 = vpop.f32.mrf.mxu1  ;;  %v2543_v5 = vld [vmem:[#allocation2 + $0x1e0] ss:$2 sm:$0xff] }
 0x12a   : > { %1726 = vst.msk [vmem:[#allocation2 + $0x2a9] sm:$0xff] %vm384_vm2, %v1709_v40  ;;  %v1712_v47 = vmax.f32 %v1646_v41, 0.0  ;;  %v1641_v49 = vadd.f32 %v13474_v48, %v1640_v4  ;;  %3553 = vrot.lane.b32.xlu0 %v3401_v44, %s12752_s24  ;;  %3194 = vrot.lane.b32.xlu1 %v3042_v45, %s12753_s30  ;;  %1981 = vst.msk [vmem:[#allocation2 + $0x349] sm:$0xff] %vm384_vm2, %v1964_v42  ;;  %v1967_v51 = vmax.f32 %v1901_v43, 0.0  ;;  %v2555_v55 = vld [vmem:[#allocation2 + $0x280] ss:$2 sm:$0xff] }
 0x12b   : > { %v1896_v52 = vadd.f32 %v13474_v48, %v1895_v46  ;;  %2626 = vst.msk [vmem:[#allocation3 + $0x90] sm:$0xff] %vm384_vm2, %v2543_v5  ;;  %v12105_v56 = vpop.f32.mrf.mxu0  ;;  %v12141_v50 = vpop.f32.mrf.mxu1  ;;  %v2547_v57 = vld [vmem:[#allocation2 + $0x200] ss:$2 sm:$0x1]  ;;  %2632 = vst.msk [vmem:[#allocation3 + $0xc0] sm:$0xff] %vm384_vm2, %v2555_v55 }
 0x12c   : > { %v2559_v58 = vld [vmem:[#allocation2 + $0x2a0] ss:$2 sm:$0x1]  ;;  %1729 = vst.msk [vmem:[#allocation2 + $0x2c1] sm:$0xff] %vm384_vm2, %v1712_v47  ;;  %v1711_v59 = vmax.f32 %v1641_v49, 0.0  ;;  %v1656_v60 = vadd.f32 %v12105_v56, %v13474_v48  ;;  %1984 = vst.msk [vmem:[#allocation2 + $0x361] sm:$0xff] %vm384_vm2, %v1967_v51  ;;  %v1911_v63 = vadd.f32 %v12141_v50, %v13474_v48  ;;  %v13815_v47 = vpop.permute.xlu1 %3587  ;;  %v13821_v56 = vpop.permute.xlu0 %3581 }
 0x12d   : > { %v1966_v62 = vmax.f32 %v1896_v52, 0.0  ;;  %2628 = vst.msk [vmem:[#allocation3 + $0xa0] sm:$0x1] %vm397_vm1, %v2547_v57  ;;  %2634 = vst.msk [vmem:[#allocation3 + $0xd0] sm:$0x1] %vm397_vm1, %v2559_v58  ;;  %v1650_v6 = vpop.f32.mrf.mxu0  ;;  %v1905_v9 = vpop.f32.mrf.mxu1 }
 0x12e   : > { %2987 = vst.msk [vmem:[#allocation3 + $0xa0] sm:$0x1] %vm2968_vm5, %v2853_v53  ;;  %2993 = vst.msk [vmem:[#allocation3 + $0xd0] sm:$0x1] %vm2968_vm5, %v2865_v54  ;;  %v2545_v11 = vld [vmem:[#allocation2 + $0x1f0] ss:$2 sm:$0xff]  ;;  %v1651_v13 = vadd.f32 %v13474_v48, %v1650_v6  ;;  %3565 = vrot.lane.b32.xlu0 %v3413_v7, %s12752_s24  ;;  %3206 = vrot.lane.b32.xlu1 %v3054_v8, %s12753_s30  ;;  %v1906_v15 = vadd.f32 %v13474_v48, %v1905_v9 }
 0x12f   : > { %1728 = vst.msk [vmem:[#allocation2 + $0x2b9] sm:$0xff] %vm384_vm2, %v1711_v59  ;;  %v1714_v12 = vmax.f32 %v1656_v60, 0.0  ;;  %1983 = vst.msk [vmem:[#allocation2 + $0x359] sm:$0xff] %vm384_vm2, %v1966_v62  ;;  %v1969_v14 = vmax.f32 %v1911_v63, 0.0  ;;  %v2557_v17 = vld [vmem:[#allocation2 + $0x290] ss:$2 sm:$0xff]  ;;  %v12108_v18 = vpop.f32.mrf.mxu0  ;;  %v12144_v19 = vpop.f32.mrf.mxu1 }
 0x130   : > { %2627 = vst.msk [vmem:[#allocation3 + $0x98] sm:$0xff] %vm384_vm2, %v2545_v11  ;;  %2633 = vst.msk [vmem:[#allocation3 + $0xc8] sm:$0xff] %vm384_vm2, %v2557_v17  ;;  %v1713_v21 = vmax.f32 %v1651_v13, 0.0  ;;  %v1666_v23 = vadd.f32 %v13790_v22, %v12108_v18  ;;  %v1968_v48 = vmax.f32 %v1906_v15, 0.0  ;;  %v1921_v24 = vadd.f32 %v13790_v22, %v12144_v19  ;;  %v3056_v42 = vld [vmem:[#allocation2 + $0x218] ss:$2 sm:$0xff]  ;;  %v2883_v19 = vpop.permute.xlu1 %2882 }
 0x131   : > { %1731 = vst.msk [vmem:[#allocation2 + $0x2d9] sm:$0xff] %vm384_vm2, %v1714_v12  ;;  %1986 = vst.msk [vmem:[#allocation2 + $0x379] sm:$0xff] %vm384_vm2, %v1969_v14  ;;  %v1660_v26 = vpop.f32.mrf.mxu0  ;;  %v1915_v29 = vpop.f32.mrf.mxu1  ;;  %v3058_v43 = vld [vmem:[#allocation2 + $0x228] ss:$2 sm:$0x1] }
 0x132   : > { %1730 = vst.msk [vmem:[#allocation2 + $0x2d1] sm:$0xff] %vm384_vm2, %v1713_v21  ;;  %v1716_v30 = vmax.f32 %v1666_v23, 0.0  ;;  %v1661_v33 = vadd.f32 %v13790_v22, %v1660_v26  ;;  %3196 = vrot.lane.b32.xlu0 %v3044_v27, %s12753_s30  ;;  %3198 = vrot.lane.b32.xlu1 %v3046_v28, %s12753_s30  ;;  %1985 = vst.msk [vmem:[#allocation2 + $0x371] sm:$0xff] %vm384_vm2, %v1968_v48  ;;  %v1971_v1 = vmax.f32 %v1921_v24, 0.0  ;;  %v2692_v57 = vld [vmem:[#allocation2 + $0x1a1] ss:$2 sm:$0xff] }
 0x133   : > { %v1916_v34 = vadd.f32 %v13790_v22, %v1915_v29  ;;  %v12111_v36 = vpop.f32.mrf.mxu0  ;;  %v12147_v2 = vpop.f32.mrf.mxu1  ;;  %v3403_v58 = vld [vmem:[#allocation2 + $0x179] ss:$2 sm:$0xff] }
 0x134   : > { %1733 = vst.msk [vmem:[#allocation2 + $0x2e9] sm:$0xff] %vm384_vm2, %v1716_v30  ;;  %v1715_v37 = vmax.f32 %v1661_v33, 0.0  ;;  %v1676_v39 = vadd.f32 %v13790_v22, %v12111_v36  ;;  %1988 = vst.msk [vmem:[#allocation2 + $0x389] sm:$0xff] %vm384_vm2, %v1971_v1  ;;  %v1931_v40 = vadd.f32 %v13790_v22, %v12147_v2  ;;  %v2704_v23 = vld [vmem:[#allocation2 + $0x241] ss:$2 sm:$0xff]  ;;  %v13846_v33 = vpop.permute.xlu0 %2876 }
 0x135   : > { %v1970_v3 = vmax.f32 %v1916_v34, 0.0  ;;  %v1670_v41 = vpop.f32.mrf.mxu0  ;;  %v1925_v4 = vpop.f32.mrf.mxu1  ;;  %v3415_v48 = vld [vmem:[#allocation2 + $0x219] ss:$2 sm:$0xff] }
 0x136   : > { %1732 = vst.msk [vmem:[#allocation2 + $0x2e1] sm:$0xff] %vm384_vm2, %v1715_v37  ;;  %v1718_v44 = vmax.f32 %v1676_v39, 0.0  ;;  %v1671_v45 = vadd.f32 %v13790_v22, %v1670_v41  ;;  %3208 = vrot.lane.b32.xlu0 %v3056_v42, %s12753_s30  ;;  %3210 = vrot.lane.b32.xlu1 %v3058_v43, %s12753_s30  ;;  %v1973_v46 = vmax.f32 %v1931_v40, 0.0  ;;  %v1926_v5 = vadd.f32 %v13790_v22, %v1925_v4  ;;  %v3048_v40 = vld [vmem:[#allocation2 + $0x1b8] ss:$2 sm:$0xff] }
 0x137   : > { %1987 = vst.msk [vmem:[#allocation2 + $0x381] sm:$0xff] %vm384_vm2, %v1970_v3  ;;  %v12114_v49 = vpop.f32.mrf.mxu0  ;;  %v12150_v51 = vpop.f32.mrf.mxu1  ;;  %v2690_v41 = vld [vmem:[#allocation2 + $0x191] ss:$2 sm:$0xff] }
 0x138   : > { %1735 = vst.msk [vmem:[#allocation2 + $0x301] sm:$0xff] %vm384_vm2, %v1718_v44  ;;  %v1717_v52 = vmax.f32 %v1671_v45, 0.0  ;;  %v1686_v53 = vadd.f32 %v13790_v22, %v12114_v49  ;;  %1990 = vst.msk [vmem:[#allocation2 + $0x3a1] sm:$0xff] %vm384_vm2, %v1973_v46  ;;  %v1972_v54 = vmax.f32 %v1926_v5, 0.0  ;;  %v1941_v55 = vadd.f32 %v13790_v22, %v12150_v51  ;;  %v13863_v5 = vld [vmem:[%s18591_s2] ss:$0 sm:$0xff] }
 0x139   : > { %v1680_v50 = vpop.f32.mrf.mxu0  ;;  %v1935_v59 = vpop.f32.mrf.mxu1  ;;  %v2561_v60 = vld [vmem:[#allocation2 + $0x2d0] ss:$2 sm:$0xff] }
 0x13a   : > { %1734 = vst.msk [vmem:[#allocation2 + $0x2f9] sm:$0xff] %vm384_vm2, %v1717_v52  ;;  %v1720_v62 = vmax.f32 %v1686_v53, 0.0  ;;  %v1681_v63 = vadd.f32 %v13790_v22, %v1680_v50  ;;  %2844 = vrot.lane.b32.xlu0 %v2692_v57, %s12751_s22  ;;  %3555 = vrot.lane.b32.xlu1 %v3403_v58, %s12752_s24  ;;  %1989 = vst.msk [vmem:[#allocation2 + $0x399] sm:$0xff] %vm384_vm2, %v1972_v54  ;;  %v1975_v6 = vmax.f32 %v1941_v55, 0.0  ;;  %v2573_v8 = vld [vmem:[#allocation2 + $0x370] ss:$2 sm:$0xff]  ;;  %v13869_v55 = vpop.permute.xlu0 %3593 }
 0x13b   : > { %v1936_v7 = vadd.f32 %v13790_v22, %v1935_v59  ;;  %2635 = vst.msk [vmem:[#allocation3 + $0xd8] sm:$0xff] %vm384_vm2, %v2561_v60  ;;  %v12117_v9 = vpop.f32.mrf.mxu0  ;;  %v12153_v11 = vpop.f32.mrf.mxu1  ;;  %v2565_v12 = vld [vmem:[#allocation2 + $0x2f0] ss:$2 sm:$0x1]  ;;  %2641 = vst.msk [vmem:[#allocation3 + $0x108] sm:$0xff] %vm384_vm2, %v2573_v8 }
 0x13c   : > { %v2577_v13 = vld [vmem:[#allocation2 + $0x390] ss:$2 sm:$0x1]  ;;  %1737 = vst.msk [vmem:[#allocation2 + $0x311] sm:$0xff] %vm384_vm2, %v1720_v62  ;;  %v1719_v14 = vmax.f32 %v1681_v63, 0.0  ;;  %v1696_v15 = vadd.f32 %v13790_v22, %v12117_v9  ;;  %1992 = vst.msk [vmem:[#allocation2 + $0x3b1] sm:$0xff] %vm384_vm2, %v1975_v6  ;;  %v1951_v18 = vadd.f32 %v13790_v22, %v12153_v11 }
 0x13d   : > { %v1974_v17 = vmax.f32 %v1936_v7, 0.0  ;;  %2637 = vst.msk [vmem:[#allocation3 + $0xe8] sm:$0x1] %vm397_vm1, %v2565_v12  ;;  %2643 = vst.msk [vmem:[#allocation3 + $0x118] sm:$0x1] %vm397_vm1, %v2577_v13  ;;  %v1690_v21 = vpop.f32.mrf.mxu0  ;;  %v1945_v24 = vpop.f32.mrf.mxu1  ;;  %v13880_v6 = vld [vmem:[%s18592_s3 + $0x118] sm:$0xff] }
 0x13e   : > { %2996 = vst.msk [vmem:[#allocation3 + $0xe8] sm:$0x1] %vm2968_vm5, %v13795_v25  ;;  %3002 = vst.msk [vmem:[#allocation3 + $0x118] sm:$0x1] %vm2968_vm5, %v2883_v19  ;;  %v2563_v26 = vld [vmem:[#allocation2 + $0x2e0] ss:$2 sm:$0xff]  ;;  %v1691_v28 = vadd.f32 %v13790_v22, %v1690_v21  ;;  %2856 = vrot.lane.b32.xlu0 %v2704_v23, %s12751_s22  ;;  %3567 = vrot.lane.b32.xlu1 %v3415_v48, %s12752_s24  ;;  %v1946_v30 = vadd.f32 %v13790_v22, %v1945_v24 }
 0x13f   : > { %1736 = vst.msk [vmem:[#allocation2 + $0x309] sm:$0xff] %vm384_vm2, %v1719_v14  ;;  %v1722_v27 = vmax.f32 %v1696_v15, 0.0  ;;  %1991 = vst.msk [vmem:[#allocation2 + $0x3a9] sm:$0xff] %vm384_vm2, %v1974_v17  ;;  %v1977_v29 = vmax.f32 %v1951_v18, 0.0  ;;  %v2575_v25 = vld [vmem:[#allocation2 + $0x380] ss:$2 sm:$0xff]  ;;  %v12120_v1 = vpop.f32.mrf.mxu0  ;;  %v12156_v34 = vpop.f32.mrf.mxu1  ;;  %12325 = vmatprep.subr.mxu0 %v13880_v6 }
 0x140   : > { %2636 = vst.msk [vmem:[#allocation3 + $0xe0] sm:$0xff] %vm384_vm2, %v2563_v26  ;;  %2642 = vst.msk [vmem:[#allocation3 + $0x110] sm:$0xff] %vm384_vm2, %v2575_v25  ;;  %v1721_v36 = vmax.f32 %v1691_v28, 0.0  ;;  %v1706_v2 = vadd.f32 %v13790_v22, %v12120_v1  ;;  %v1976_v37 = vmax.f32 %v1946_v30, 0.0  ;;  %v1961_v39 = vadd.f32 %v13790_v22, %v12156_v34  ;;  %v3060_v50 = vld [vmem:[#allocation2 + $0x258] ss:$2 sm:$0xff]  ;;  %v13899_v28 = vpop.permute.xlu1 %3599 }
 0x141   : > { %1739 = vst.msk [vmem:[#allocation2 + $0x329] sm:$0xff] %vm384_vm2, %v1722_v27  ;;  %1994 = vst.msk [vmem:[#allocation2 + $0x3c9] sm:$0xff] %vm384_vm2, %v1977_v29  ;;  %v1700_v3 = vpop.f32.mrf.mxu0  ;;  %v1955_v42 = vpop.f32.mrf.mxu1  ;;  %v2702_v57 = vld [vmem:[#allocation2 + $0x231] ss:$2 sm:$0xff] }
 0x142   : > { %1738 = vst.msk [vmem:[#allocation2 + $0x321] sm:$0xff] %vm384_vm2, %v1721_v36  ;;  %v1724_v43 = vmax.f32 %v1706_v2, 0.0  ;;  %v1701_v4 = vadd.f32 %v13790_v22, %v1700_v3  ;;  %3200 = vrot.lane.b32.xlu0 %v3048_v40, %s12753_s30  ;;  %2842 = vrot.lane.b32.xlu1 %v2690_v41, %s12751_s22  ;;  %1993 = vst.msk [vmem:[#allocation2 + $0x3c1] sm:$0xff] %vm384_vm2, %v1976_v37  ;;  %v1979_v44 = vmax.f32 %v1961_v39, 0.0  ;;  %v13885_v7 = vld [vmem:[%s18592_s3 + $0x178] sm:$0xff]  ;;  %v2889_v29 = vpop.permute.xlu0 %2888 }
 0x143   : > { %v1956_v45 = vadd.f32 %v13790_v22, %v1955_v42  ;;  %v12171_v46 = vpop.f32.mrf.mxu0  ;;  %v12207_v49 = vpop.f32.mrf.mxu1  ;;  %v3052_v9 = vld [vmem:[#allocation2 + $0x1d8] ss:$2 sm:$0x1]  ;;  %12373 = vmatprep.subr.mxu1 %v13885_v7  ;;  %v3407_v14 = vld [vmem:[#allocation2 + $0x1b9] ss:$2 sm:$0xff] }
 0x144   : > { %1741 = vst.msk [vmem:[#allocation2 + $0x339] sm:$0xff] %vm384_vm2, %v1724_v43  ;;  %v1723_v51 = vmax.f32 %v1701_v4, 0.0  ;;  %v2146_v52 = vadd.f32 %v12171_v46, %v13863_v5  ;;  %1996 = vst.msk [vmem:[#allocation2 + $0x3d9] sm:$0xff] %vm384_vm2, %v1979_v44  ;;  %v2401_v54 = vadd.f32 %v12207_v49, %v13863_v5  ;;  %v3064_v19 = vld [vmem:[#allocation2 + $0x278] ss:$2 sm:$0x1] }
 0x145   : > { %v1978_v53 = vmax.f32 %v1956_v45, 0.0  ;;  %v2140_v22 = vpop.f32.mrf.mxu0  ;;  %v2395_v58 = vpop.f32.mrf.mxu1  ;;  %v3419_v41 = vld [vmem:[#allocation2 + $0x259] ss:$2 sm:$0xff] }
 0x146   : > { %1740 = vst.msk [vmem:[#allocation2 + $0x331] sm:$0xff] %vm384_vm2, %v1723_v51  ;;  %v2220_v59 = vmax.f32 %v2146_v52, 0.0  ;;  %v2141_v60 = vadd.f32 %v13863_v5, %v2140_v22  ;;  %3212 = vrot.lane.b32.xlu0 %v3060_v50, %s12753_s30  ;;  %2854 = vrot.lane.b32.xlu1 %v2702_v57, %s12751_s22  ;;  %v2475_v62 = vmax.f32 %v2401_v54, 0.0  ;;  %v2396_v63 = vadd.f32 %v13863_v5, %v2395_v58  ;;  %v13923_v22 = vpop.permute.xlu1 %2894  ;;  %v3409_v58 = vld [vmem:[#allocation2 + $0x1c9] ss:$2 sm:$0xff] }
 0x147   : > { %1995 = vst.msk [vmem:[#allocation2 + $0x3d1] sm:$0xff] %vm384_vm2, %v1978_v53  ;;  %v12174_v8 = vpop.f32.mrf.mxu0  ;;  %v12210_v11 = vpop.f32.mrf.mxu1 }
 0x148   : > { %2237 = vst.msk [vmem:[#allocation2 + $0x3f1] sm:$0xff] %vm384_vm2, %v2220_v59  ;;  %v2219_v12 = vmax.f32 %v2141_v60, 0.0  ;;  %v2156_v13 = vadd.f32 %v12174_v8, %v13863_v5  ;;  %2492 = vst.msk [vmem:[#allocation2 + $0x491] sm:$0xff] %vm384_vm2, %v2475_v62  ;;  %v2474_v15 = vmax.f32 %v2396_v63, 0.0  ;;  %v2411_v17 = vadd.f32 %v12210_v11, %v13863_v5  ;;  %v3050_v59 = vld [vmem:[#allocation2 + $0x1c8] ss:$2 sm:$0xff]  ;;  %v13931_v8 = vpop.permute.xlu0 %3605 }
 0x149   : > { %v2150_v18 = vpop.f32.mrf.mxu0  ;;  %v2405_v21 = vpop.f32.mrf.mxu1  ;;  %v2567_v23 = vld [vmem:[#allocation2 + $0x320] ss:$2 sm:$0xff] }
 0x14a   : > { %2236 = vst.msk [vmem:[#allocation2 + $0x3e9] sm:$0xff] %vm384_vm2, %v2219_v12  ;;  %v2222_v48 = vmax.f32 %v2156_v13, 0.0  ;;  %v2151_v24 = vadd.f32 %v13863_v5, %v2150_v18  ;;  %3204 = vrot.lane.b32.xlu0 %v3052_v9, %s12753_s30  ;;  %3559 = vrot.lane.b32.xlu1 %v3407_v14, %s12752_s24  ;;  %2491 = vst.msk [vmem:[#allocation2 + $0x489] sm:$0xff] %vm384_vm2, %v2474_v15  ;;  %v2477_v26 = vmax.f32 %v2411_v17, 0.0  ;;  %v2579_v30 = vld [vmem:[#allocation2 + $0x3c0] ss:$2 sm:$0xff] }
 0x14b   : > { %v2406_v27 = vadd.f32 %v13863_v5, %v2405_v21  ;;  %2638 = vst.msk [vmem:[#allocation3 + $0xf0] sm:$0xff] %vm384_vm2, %v2567_v23  ;;  %v12177_v25 = vpop.f32.mrf.mxu0  ;;  %v2571_v1 = vld [vmem:[#allocation2 + $0x340] ss:$2 sm:$0x1]  ;;  %v12213_v36 = vpop.f32.mrf.mxu1  ;;  %2644 = vst.msk [vmem:[#allocation3 + $0x120] sm:$0xff] %vm384_vm2, %v2579_v30 }
 0x14c   : > { %v2583_v34 = vld [vmem:[#allocation2 + $0x3e0] ss:$2 sm:$0x1]  ;;  %2239 = vst.msk [vmem:[#allocation2 + $0x401] sm:$0xff] %vm384_vm2, %v2222_v48  ;;  %v2221_v2 = vmax.f32 %v2151_v24, 0.0  ;;  %v2166_v37 = vadd.f32 %v12177_v25, %v13863_v5  ;;  %2494 = vst.msk [vmem:[#allocation2 + $0x4a1] sm:$0xff] %vm384_vm2, %v2477_v26  ;;  %v2421_v3 = vadd.f32 %v12213_v36, %v13863_v5 }
 0x14d   : > { %2640 = vst.msk [vmem:[#allocation3 + $0x100] sm:$0x1] %vm397_vm1, %v2571_v1  ;;  %v2476_v39 = vmax.f32 %v2406_v27, 0.0  ;;  %2646 = vst.msk [vmem:[#allocation3 + $0x130] sm:$0x1] %vm397_vm1, %v2583_v34  ;;  %v2160_v40 = vpop.f32.mrf.mxu0  ;;  %v2415_v42 = vpop.f32.mrf.mxu1 }
 0x14e   : > { %2999 = vst.msk [vmem:[#allocation3 + $0x100] sm:$0x1] %vm2968_vm5, %v13846_v33  ;;  %3005 = vst.msk [vmem:[#allocation3 + $0x130] sm:$0x1] %vm2968_vm5, %v2889_v29  ;;  %v2569_v43 = vld [vmem:[#allocation2 + $0x330] ss:$2 sm:$0xff]  ;;  %v2161_v44 = vadd.f32 %v13863_v5, %v2160_v40  ;;  %3216 = vrot.lane.b32.xlu0 %v3064_v19, %s12753_s30  ;;  %3571 = vrot.lane.b32.xlu1 %v3419_v41, %s12752_s24  ;;  %v2416_v33 = vadd.f32 %v13863_v5, %v2415_v42  ;;  %v13942_v27 = vpop.permute.xlu1 %3611 }
 0x14f   : > { %2238 = vst.msk [vmem:[#allocation2 + $0x3f9] sm:$0xff] %vm384_vm2, %v2221_v2  ;;  %v2224_v4 = vmax.f32 %v2166_v37, 0.0  ;;  %2493 = vst.msk [vmem:[#allocation2 + $0x499] sm:$0xff] %vm384_vm2, %v2476_v39  ;;  %v2479_v45 = vmax.f32 %v2421_v3, 0.0  ;;  %v2581_v46 = vld [vmem:[#allocation2 + $0x3d0] ss:$2 sm:$0xff]  ;;  %v12180_v49 = vpop.f32.mrf.mxu0  ;;  %v12216_v51 = vpop.f32.mrf.mxu1 }
 0x150   : > { %2639 = vst.msk [vmem:[#allocation3 + $0xf8] sm:$0xff] %vm384_vm2, %v2569_v43  ;;  %2645 = vst.msk [vmem:[#allocation3 + $0x128] sm:$0xff] %vm384_vm2, %v2581_v46  ;;  %v2223_v52 = vmax.f32 %v2161_v44, 0.0  ;;  %v2176_v53 = vadd.f32 %v12180_v49, %v13863_v5  ;;  %v2478_v54 = vmax.f32 %v2416_v33, 0.0  ;;  %v2431_v50 = vadd.f32 %v12216_v51, %v13863_v5  ;;  %v3421_v21 = vld [vmem:[#allocation2 + $0x269] ss:$2 sm:$0xff]  ;;  %v13948_v37 = vpop.permute.xlu0 %2900 }
 0x151   : > { %2241 = vst.msk [vmem:[#allocation2 + $0x419] sm:$0xff] %vm384_vm2, %v2224_v4  ;;  %2496 = vst.msk [vmem:[#allocation2 + $0x4b9] sm:$0xff] %vm384_vm2, %v2479_v45  ;;  %v2170_v57 = vpop.f32.mrf.mxu0  ;;  %v2425_v60 = vpop.f32.mrf.mxu1  ;;  %v3062_v23 = vld [vmem:[#allocation2 + $0x268] ss:$2 sm:$0xff]  ;;  %v2698_v1 = vld [vmem:[#allocation2 + $0x1f1] ss:$2 sm:$0xff] }
 0x152   : > { %2240 = vst.msk [vmem:[#allocation2 + $0x411] sm:$0xff] %vm384_vm2, %v2223_v52  ;;  %v2226_v62 = vmax.f32 %v2176_v53, 0.0  ;;  %v2171_v63 = vadd.f32 %v13863_v5, %v2170_v57  ;;  %3561 = vrot.lane.b32.xlu0 %v3409_v58, %s12752_s24  ;;  %3202 = vrot.lane.b32.xlu1 %v3050_v59, %s12753_s30  ;;  %2495 = vst.msk [vmem:[#allocation2 + $0x4b1] sm:$0xff] %vm384_vm2, %v2478_v54  ;;  %v2481_v9 = vmax.f32 %v2431_v50, 0.0  ;;  %v2696_v41 = vld [vmem:[#allocation2 + $0x1e1] ss:$2 sm:$0xff]  ;;  %v2907_v58 = vpop.permute.xlu1 %2906 }
 0x153   : > { %v2426_v11 = vadd.f32 %v13863_v5, %v2425_v60  ;;  %v12183_v12 = vpop.f32.mrf.mxu0  ;;  %v12219_v13 = vpop.f32.mrf.mxu1  ;;  %v2710_v45 = vld [vmem:[#allocation2 + $0x291] ss:$2 sm:$0xff] }
 0x154   : > { %2243 = vst.msk [vmem:[#allocation2 + $0x429] sm:$0xff] %vm384_vm2, %v2226_v62  ;;  %v2225_v14 = vmax.f32 %v2171_v63, 0.0  ;;  %v2186_v15 = vadd.f32 %v12183_v12, %v13863_v5  ;;  %2498 = vst.msk [vmem:[#allocation2 + $0x4c9] sm:$0xff] %vm384_vm2, %v2481_v9  ;;  %v2441_v18 = vadd.f32 %v12219_v13, %v13863_v5  ;;  %v2708_v63 = vld [vmem:[#allocation2 + $0x281] ss:$2 sm:$0xff] }
 0x155   : > { %v2480_v17 = vmax.f32 %v2426_v11, 0.0  ;;  %v2180_v19 = vpop.f32.mrf.mxu0  ;;  %v2435_v48 = vpop.f32.mrf.mxu1 }
 0x156   : > { %2242 = vst.msk [vmem:[#allocation2 + $0x421] sm:$0xff] %vm384_vm2, %v2225_v14  ;;  %v2228_v24 = vmax.f32 %v2186_v15, 0.0  ;;  %v2181_v26 = vadd.f32 %v13863_v5, %v2180_v19  ;;  %3573 = vrot.lane.b32.xlu0 %v3421_v21, %s12752_s24  ;;  %3214 = vrot.lane.b32.xlu1 %v3062_v23, %s12753_s30  ;;  %v2483_v29 = vmax.f32 %v2441_v18, 0.0  ;;  %v2436_v30 = vadd.f32 %v13863_v5, %v2435_v48  ;;  %v13973_v14 = vpop.permute.xlu0 %3617  ;;  %v3078_v19 = vld [vmem:[#allocation2 + $0x348] ss:$2 sm:$0xff] }
 0x157   : > { %2497 = vst.msk [vmem:[#allocation2 + $0x4c1] sm:$0xff] %vm384_vm2, %v2480_v17  ;;  %v12186_v25 = vpop.f32.mrf.mxu0  ;;  %v12222_v34 = vpop.f32.mrf.mxu1 }
 0x158   : > { %2245 = vst.msk [vmem:[#allocation2 + $0x441] sm:$0xff] %vm384_vm2, %v2228_v24  ;;  %v2227_v36 = vmax.f32 %v2181_v26, 0.0  ;;  %v2196_v2 = vadd.f32 %v12186_v25, %v13863_v5  ;;  %2500 = vst.msk [vmem:[#allocation2 + $0x4e1] sm:$0xff] %vm384_vm2, %v2483_v29  ;;  %v2482_v39 = vmax.f32 %v2436_v30, 0.0  ;;  %v2451_v3 = vadd.f32 %v12222_v34, %v13863_v5  ;;  %v3066_v29 = vld [vmem:[#allocation2 + $0x2a8] ss:$2 sm:$0xff] }
 0x159   : > { %v2190_v40 = vpop.f32.mrf.mxu0  ;;  %v2445_v42 = vpop.f32.mrf.mxu1  ;;  %v2585_v43 = vld [vmem:[#allocation2 + $0x410] ss:$2 sm:$0xff] }
 0x15a   : > { %2244 = vst.msk [vmem:[#allocation2 + $0x439] sm:$0xff] %vm384_vm2, %v2227_v36  ;;  %v2230_v4 = vmax.f32 %v2196_v2, 0.0  ;;  %v2191_v44 = vadd.f32 %v13863_v5, %v2190_v40  ;;  %2848 = vrot.lane.b32.xlu0 %v2696_v41, %s12751_s22  ;;  %2850 = vrot.lane.b32.xlu1 %v2698_v1, %s12751_s22  ;;  %2499 = vst.msk [vmem:[#allocation2 + $0x4d9] sm:$0xff] %vm384_vm2, %v2482_v39  ;;  %v2485_v33 = vmax.f32 %v2451_v3, 0.0  ;;  %v2597_v49 = vld [vmem:[#allocation2 + $0x4b0] ss:$2 sm:$0xff] }
 0x15b   : > { %v2446_v46 = vadd.f32 %v13863_v5, %v2445_v42  ;;  %2647 = vst.msk [vmem:[#allocation3 + $0x138] sm:$0xff] %vm384_vm2, %v2585_v43  ;;  %v2589_v51 = vld [vmem:[#allocation2 + $0x430] ss:$2 sm:$0x1]  ;;  %v12189_v52 = vpop.f32.mrf.mxu0  ;;  %v12225_v54 = vpop.f32.mrf.mxu1  ;;  %2653 = vst.msk [vmem:[#allocation3 + $0x168] sm:$0xff] %vm384_vm2, %v2597_v49 }
 0x15c   : > { %v2601_v53 = vld [vmem:[#allocation2 + $0x4d0] ss:$2 sm:$0x1]  ;;  %2247 = vst.msk [vmem:[#allocation2 + $0x451] sm:$0xff] %vm384_vm2, %v2230_v4  ;;  %v2229_v50 = vmax.f32 %v2191_v44, 0.0  ;;  %v2206_v57 = vadd.f32 %v12189_v52, %v13863_v5  ;;  %2502 = vst.msk [vmem:[#allocation2 + $0x4f1] sm:$0xff] %vm384_vm2, %v2485_v33  ;;  %v2461_v60 = vadd.f32 %v12225_v54, %v13863_v5 }
 0x15d   : > { %2649 = vst.msk [vmem:[#allocation3 + $0x148] sm:$0x1] %vm397_vm1, %v2589_v51  ;;  %2655 = vst.msk [vmem:[#allocation3 + $0x178] sm:$0x1] %vm397_vm1, %v2601_v53  ;;  %v2484_v59 = vmax.f32 %v2446_v46, 0.0  ;;  %v2200_v62 = vpop.f32.mrf.mxu0  ;;  %v2455_v9 = vpop.f32.mrf.mxu1 }
 0x15e   : > { %3008 = vst.msk [vmem:[#allocation3 + $0x148] sm:$0x1] %vm2968_vm5, %v13923_v22  ;;  %3014 = vst.msk [vmem:[#allocation3 + $0x178] sm:$0x1] %vm2968_vm5, %v2907_v58  ;;  %v2587_v11 = vld [vmem:[#allocation2 + $0x420] ss:$2 sm:$0xff]  ;;  %v2201_v13 = vadd.f32 %v13863_v5, %v2200_v62  ;;  %2860 = vrot.lane.b32.xlu0 %v2708_v63, %s12751_s22  ;;  %2862 = vrot.lane.b32.xlu1 %v2710_v45, %s12751_s22  ;;  %v2456_v15 = vadd.f32 %v13863_v5, %v2455_v9 }
 0x15f   : > { %2246 = vst.msk [vmem:[#allocation2 + $0x449] sm:$0xff] %vm384_vm2, %v2229_v50  ;;  %v2232_v12 = vmax.f32 %v2206_v57, 0.0  ;;  %2501 = vst.msk [vmem:[#allocation2 + $0x4e9] sm:$0xff] %vm384_vm2, %v2484_v59  ;;  %v2487_v22 = vmax.f32 %v2461_v60, 0.0  ;;  %v2599_v17 = vld [vmem:[#allocation2 + $0x4c0] ss:$2 sm:$0xff]  ;;  %v12192_v18 = vpop.f32.mrf.mxu0  ;;  %v12228_v21 = vpop.f32.mrf.mxu1 }
 0x160   : > { %2648 = vst.msk [vmem:[#allocation3 + $0x140] sm:$0xff] %vm384_vm2, %v2587_v11  ;;  %2654 = vst.msk [vmem:[#allocation3 + $0x170] sm:$0xff] %vm384_vm2, %v2599_v17  ;;  %v2231_v23 = vmax.f32 %v2201_v13, 0.0  ;;  %v2216_v48 = vadd.f32 %v12192_v18, %v13863_v5  ;;  %v2486_v24 = vmax.f32 %v2456_v15, 0.0  ;;  %v2471_v26 = vadd.f32 %v12228_v21, %v13863_v5  ;;  %v3425_v43 = vld [vmem:[#allocation2 + $0x2a9] ss:$2 sm:$0xff] }
 0x161   : > { %2249 = vst.msk [vmem:[#allocation2 + $0x469] sm:$0xff] %vm384_vm2, %v2232_v12  ;;  %2504 = vst.msk [vmem:[#allocation2 + $0x509] sm:$0xff] %vm384_vm2, %v2487_v22  ;;  %v2210_v30 = vpop.f32.mrf.mxu0  ;;  %v2465_v25 = vpop.f32.mrf.mxu1  ;;  %v3070_v39 = vld [vmem:[#allocation2 + $0x2c8] ss:$2 sm:$0x1] }
 0x162   : > { %2248 = vst.msk [vmem:[#allocation2 + $0x461] sm:$0xff] %vm384_vm2, %v2231_v23  ;;  %v2234_v1 = vmax.f32 %v2216_v48, 0.0  ;;  %3218 = vrot.lane.b32.xlu0 %v3066_v29, %s12753_s30  ;;  %3230 = vrot.lane.b32.xlu1 %v3078_v19, %s12753_s30  ;;  %v2211_v34 = vadd.f32 %v13863_v5, %v2210_v30  ;;  %2503 = vst.msk [vmem:[#allocation2 + $0x501] sm:$0xff] %vm384_vm2, %v2486_v24  ;;  %v2489_v36 = vmax.f32 %v2471_v26, 0.0  ;;  %v3437_v45 = vld [vmem:[#allocation2 + $0x349] ss:$2 sm:$0xff] }
 0x163   : > { %v2466_v2 = vadd.f32 %v13863_v5, %v2465_v25  ;;  %v3082_v5 = vld [vmem:[#allocation2 + $0x368] ss:$2 sm:$0x1]  ;;  %v3427_v52 = vld [vmem:[#allocation2 + $0x2b9] ss:$2 sm:$0xff]  ;;  %v10604_v23 = vld [vmem:[%s18592_s3 + $0x170] sm:$0xff] }
 0x164   : > { %2251 = vst.msk [vmem:[#allocation2 + $0x479] sm:$0xff] %vm384_vm2, %v2234_v1  ;;  %v3530_v3 = vpop.permute.xlu0 %3529  ;;  %v3171_v40 = vpop.permute.xlu1 %3170  ;;  %v2233_v41 = vmax.f32 %v2211_v34, 0.0  ;;  %2506 = vst.msk [vmem:[#allocation2 + $0x519] sm:$0xff] %vm384_vm2, %v2489_v36  ;;  %v3068_v53 = vld [vmem:[#allocation2 + $0x2b8] ss:$2 sm:$0xff]  ;;  %v10576_v48 = vld [vmem:[%s18592_s3 + $0x110] sm:$0xff] }
 0x165   : > { %v2488_v42 = vmax.f32 %v2466_v2, 0.0  ;;  %3324 = vst.msk [vmem:[#allocation3] sm:$0xff] %vm3323_vm7, %v3171_v40  ;;  %v3080_v59 = vld [vmem:[#allocation2 + $0x358] ss:$2 sm:$0xff]  ;;  %v3439_v60 = vld [vmem:[#allocation2 + $0x359] ss:$2 sm:$0xff] }
 0x166   : > { %3683 = vst.msk [vmem:[#allocation3] sm:$0xff] %vm3682_vm8, %v3530_v3  ;;  %3577 = vrot.lane.b32.xlu0 %v3425_v43, %s12752_s24  ;;  %3222 = vrot.lane.b32.xlu1 %v3070_v39, %s12753_s30  ;;  %v2716_v62 = vld [vmem:[#allocation2 + $0x2e1] ss:$2 sm:$0xff]  ;;  %v2714_v63 = vld [vmem:[#allocation2 + $0x2d1] ss:$2 sm:$0xff] }
 0x167   : > { %2250 = vst.msk [vmem:[#allocation2 + $0x471] sm:$0xff] %vm384_vm2, %v2233_v41  ;;  %2505 = vst.msk [vmem:[#allocation2 + $0x511] sm:$0xff] %vm384_vm2, %v2488_v42  ;;  %v2726_v12 = vld [vmem:[#allocation2 + $0x371] ss:$2 sm:$0xff]  ;;  %v3072_v19 = vld [vmem:[#allocation2 + $0x2f8] ss:$2 sm:$0xff] }
 0x168   : > { %v13997_v4 = vpop.permute.xlu0 %3541  ;;  %v13999_v44 = vpop.permute.xlu1 %3182  ;;  %v3431_v21 = vld [vmem:[#allocation2 + $0x2f9] ss:$2 sm:$0xff]  ;;  %v10603_v29 = vld [vmem:[%s18592_s3 + $0x168] sm:$0xff]  ;;  %v3084_v30 = vld [vmem:[#allocation2 + $0x398] ss:$2 sm:$0xff] }
 0x169   : > { %v2591_v33 = vld [vmem:[#allocation2 + $0x460] ss:$2 sm:$0xff]  ;;  %v3443_v25 = vld [vmem:[#allocation2 + $0x399] ss:$2 sm:$0xff] }
 0x16a   : > { %3589 = vrot.lane.b32.xlu0 %v3437_v45, %s12752_s24  ;;  %3234 = vrot.lane.b32.xlu1 %v3082_v5, %s12753_s30  ;;  %2650 = vst.msk [vmem:[#allocation3 + $0x150] sm:$0xff] %vm384_vm2, %v2591_v33  ;;  %v10575_v1 = vld [vmem:[%s18592_s3 + $0x108] sm:$0xff]  ;;  %v10574_v2 = vld [vmem:[%s18592_s3 + $0x100] sm:$0xff]  ;;  %v3088_v41 = vld [vmem:[#allocation2 + $0x3b8] ss:$2 sm:$0x1] }
 0x16b   : > { %v2595_v46 = vld [vmem:[#allocation2 + $0x480] ss:$2 sm:$0x1]  ;;  %v3074_v39 = vld [vmem:[#allocation2 + $0x308] ss:$2 sm:$0xff]  ;;  %v10601_v3 = vld [vmem:[%s18592_s3 + $0x158] sm:$0xff] }
 0x16c   : > { %v3173_v49 = vpop.permute.xlu0 %3172  ;;  %v3175_v51 = vpop.permute.xlu1 %3174  ;;  %2652 = vst.msk [vmem:[#allocation3 + $0x160] sm:$0x1] %vm397_vm1, %v2595_v46  ;;  %v10573_v40 = vld [vmem:[%s18592_s3 + $0xf8] sm:$0xff]  ;;  %v10600_v5 = vld [vmem:[%s18592_s3 + $0x150] sm:$0xff] }
 0x16d   : > { %3325 = vst.msk [vmem:[#allocation3 + $0x8] sm:$0xff] %vm3323_vm7, %v3173_v49  ;;  %v3780_v54 = vld [vmem:[#allocation3] sm:$0xff] }
 0x16e   : > { %3327 = vst.msk [vmem:[#allocation3 + $0x10] sm:$0x1] %vm3326_vm9, %v3175_v51  ;;  %3579 = vrot.lane.b32.xlu0 %v3427_v52, %s12752_s24  ;;  %3220 = vrot.lane.b32.xlu1 %v3068_v53, %s12753_s30  ;;  %v2593_v50 = vld [vmem:[#allocation2 + $0x470] ss:$2 sm:$0xff]  ;;  %v2722_v33 = vld [vmem:[#allocation2 + $0x331] ss:$2 sm:$0xff] }
 0x16f   : > { %3011 = vst.msk [vmem:[#allocation3 + $0x160] sm:$0x1] %vm2968_vm5, %v13948_v37  ;;  %12301 = vmatprep.mubr.msk.f32.mxu1 %vm3837_vm6, %v3780_v54  ;;  %v10572_v45 = vld [vmem:[%s18592_s3 + $0xf0] sm:$0xff]  ;;  %v10571_v52 = vld [vmem:[%s18592_s3 + $0xe8] sm:$0xff]  ;;  %v10570_v54 = vld [vmem:[%s18592_s3 + $0xe0] sm:$0xff] }
 0x170   : > { %3686 = vst.msk [vmem:[#allocation3 + $0x10] sm:$0x1] %vm3685_vm10, %v13581_v20  ;;  %v14014_v57 = vpop.permute.xlu0 %3184  ;;  %v3187_v58 = vpop.permute.xlu1 %3186  ;;  %v3433_v53 = vld [vmem:[#allocation2 + $0x309] ss:$2 sm:$0xff] }
 0x171   : > { %2651 = vst.msk [vmem:[#allocation3 + $0x158] sm:$0xff] %vm384_vm2, %v2593_v50  ;;  %v10598_v50 = vld [vmem:[%s18592_s3 + $0x140] sm:$0xff] }
 0x172   : > { %3333 = vst.msk [vmem:[#allocation3 + $0x40] sm:$0x1] %vm3326_vm9, %v3187_v58  ;;  %3232 = vrot.lane.b32.xlu0 %v3080_v59, %s12753_s30  ;;  %3591 = vrot.lane.b32.xlu1 %v3439_v60, %s12752_s24  ;;  %v2734_v58 = vld [vmem:[#allocation2 + $0x3d1] ss:$2 sm:$0xff] }
 0x173   : > { %3692 = vst.msk [vmem:[#allocation3 + $0x40] sm:$0x1] %vm3685_vm10, %v13642_v16  ;;  %v2728_v16 = vld [vmem:[#allocation2 + $0x381] ss:$2 sm:$0xff] }
 0x174   : > { %v2821_v20 = vpop.permute.xlu0 %2820  ;;  %v3532_v37 = vpop.permute.xlu1 %3531 }
 0x175   : > { %2971 = vst.msk [vmem:[#allocation3 + $0x20] sm:$0xff] %vm2965_vm4, %v2821_v20  ;;  %v3445_v20 = vld [vmem:[#allocation2 + $0x3a9] ss:$2 sm:$0xff] }
 0x176   : > { %3684 = vst.msk [vmem:[#allocation3 + $0x8] sm:$0xff] %vm3682_vm8, %v3532_v37  ;;  %2868 = vrot.lane.b32.xlu0 %v2716_v62, %s12751_s22  ;;  %2866 = vrot.lane.b32.xlu1 %v2714_v63, %s12751_s22  ;;  %v10569_v37 = vld [vmem:[%s18592_s3 + $0xd8] sm:$0xff]  ;;  %v3090_v63 = vld [vmem:[#allocation2 + $0x3e8] ss:$2 sm:$0xff] }
 0x177   : > { %v10597_v62 = vld [vmem:[%s18592_s3 + $0x138] sm:$0xff] }
 0x178   : > { %v2833_v9 = vpop.permute.xlu0 %2832  ;;  %v14026_v11 = vpop.permute.xlu1 %3543 }
 0x179   : > { %2977 = vst.msk [vmem:[#allocation3 + $0x50] sm:$0xff] %vm2965_vm4, %v2833_v9 }
 0x17a   : > { %2880 = vrot.lane.b32.xlu0 %v2728_v16, %s12751_s22  ;;  %2878 = vrot.lane.b32.xlu1 %v2726_v12, %s12751_s22  ;;  %v2720_v12 = vld [vmem:[#allocation2 + $0x321] ss:$2 sm:$0xff] }
 0x17c   : > { %v3177_v13 = vpop.permute.xlu0 %3176  ;;  %v2819_v22 = vpop.permute.xlu1 %2818 }
 0x17d   : > { %v3808_v15 = vld [vmem:[#allocation3 + $0x1] sm:$0xff]  ;;  %v3809_v18 = vld [vmem:[#allocation3 + $0x9] sm:$0xff]  ;;  %2970 = vst.msk [vmem:[#allocation3 + $0x18] sm:$0xff] %vm2965_vm4, %v2819_v22 }
 0x17e   : > { %v3781_v17 = vld [vmem:[#allocation3 + $0x8] sm:$0xff]  ;;  %12253 = vmatprep.mubr.msk.f32.mxu0 %vm3837_vm6, %v3808_v15  ;;  %3328 = vst.msk [vmem:[#allocation3 + $0x18] sm:$0xff] %vm3323_vm7, %v3177_v13  ;;  %3224 = vrot.lane.b32.xlu0 %v3072_v19, %s12753_s30  ;;  %v10568_v13 = vld [vmem:[%s18592_s3 + $0xd0] sm:$0xff] }
 0x17f   : > { %12302 = vmatmul.mubr.msk.f32.vlgmr.msra.gmra.mxu1 %vm3837_vm6, %v3781_v17  ;;  %3583 = vrot.lane.b32.xlu1 %v3431_v21, %s12752_s24  ;;  %v14156_v21 = vld [vmem:[%s18592_s3 + $0x128] sm:$0xff] }
 0x180   : > { %12254 = vmatmul.mubr.msk.f32.vlgmr.msra.gmra.mxu0 %vm3837_vm6, %v3809_v18  ;;  %12374 = vmatpush3.msra.mxu1 %v13885_v7  ;;  %v3189_v24 = vpop.permute.xlu0 %3188  ;;  %v2831_v26 = vpop.permute.xlu1 %2830  ;;  %v3076_v7 = vld [vmem:[#allocation2 + $0x318] ss:$2 sm:$0x1]  ;;  %v10596_v18 = vld [vmem:[%s18592_s3 + $0x130] sm:$0xff] }
 0x181   : > { %12326 = vmatpush3.msra.mxu0 %v13880_v6  ;;  %12375 = vmatprep.subr.mxu1 %v10604_v23  ;;  %2976 = vst.msk [vmem:[#allocation3 + $0x48] sm:$0xff] %vm2965_vm4, %v2831_v26  ;;  %v10602_v6 = vld [vmem:[%s18592_s3 + $0x160] sm:$0xff] }
 0x182   : > { %12327 = vmatprep.subr.mxu0 %v10576_v48  ;;  %12376 = vmatpush3.msra.mxu1 %v10604_v23  ;;  %3334 = vst.msk [vmem:[#allocation3 + $0x48] sm:$0xff] %vm3323_vm7, %v3189_v24  ;;  %v14163_v23 = vld [vmem:[%s18592_s3 + $0xc0] sm:$0xff] }
 0x183   : > { %3236 = vrot.lane.b32.xlu0 %v3084_v30, %s12753_s30  ;;  %3595 = vrot.lane.b32.xlu1 %v3443_v25, %s12752_s24 }
 0x184   : > { %12328 = vmatpush3.msra.mxu0 %v10576_v48  ;;  %12377 = vmatprep.subr.mxu1 %v10603_v29  ;;  %v3181_v34 = vpop.permute.xlu0 %3180  ;;  %v3536_v36 = vpop.permute.xlu1 %3535  ;;  %v3094_v48 = vld [vmem:[#allocation2 + $0x408] ss:$2 sm:$0x1] }
 0x185   : > { %12329 = vmatprep.subr.mxu0 %v10575_v1  ;;  %12378 = vmatpush3.msra.mxu1 %v10603_v29  ;;  %3330 = vst.msk [vmem:[#allocation3 + $0x28] sm:$0x1] %vm3326_vm9, %v3181_v34  ;;  %v3449_v29 = vld [vmem:[#allocation2 + $0x3e9] ss:$2 sm:$0xff] }
 0x186   : > { %3687 = vst.msk [vmem:[#allocation3 + $0x18] sm:$0xff] %vm3682_vm8, %v3536_v36  ;;  %12330 = vmatpush3.msra.mxu0 %v10575_v1  ;;  %12379 = vmatprep.subr.mxu1 %v10602_v6 }
 0x187   : > { %3689 = vst.msk [vmem:[#allocation3 + $0x28] sm:$0x1] %vm3685_vm10, %v13486_v61  ;;  %3228 = vrot.lane.b32.xlu0 %v3076_v7, %s12753_s30  ;;  %3226 = vrot.lane.b32.xlu1 %v3074_v39, %s12753_s30  ;;  %v3086_v61 = vld [vmem:[#allocation2 + $0x3a8] ss:$2 sm:$0xff] }
 0x188   : > { %12331 = vmatprep.subr.mxu0 %v10574_v2  ;;  %12380 = vmatpush3.msra.mxu1 %v10602_v6  ;;  %v3193_v42 = vpop.permute.xlu0 %3192  ;;  %v3548_v43 = vpop.permute.xlu1 %3547  ;;  %v3106_v7 = vld [vmem:[#allocation2 + $0x4a8] ss:$2 sm:$0x1] }
 0x189   : > { %12332 = vmatpush3.msra.mxu0 %v10574_v2  ;;  %12381 = vmatprep.subr.mxu1 %v10601_v3  ;;  %3336 = vst.msk [vmem:[#allocation3 + $0x58] sm:$0x1] %vm3326_vm9, %v3193_v42 }
 0x18a   : > { %3693 = vst.msk [vmem:[#allocation3 + $0x48] sm:$0xff] %vm3682_vm8, %v3548_v43  ;;  %12333 = vmatprep.subr.mxu0 %v10573_v40  ;;  %12382 = vmatpush3.msra.mxu1 %v10601_v3  ;;  %v14201_v3 = vld [vmem:[%s18592_s3 + $0x120] sm:$0xff] }
 0x18b   : > { %3695 = vst.msk [vmem:[#allocation3 + $0x58] sm:$0x1] %vm3685_vm10, %v13660_v38  ;;  %3240 = vrot.lane.b32.xlu0 %v3088_v41, %s12753_s30  ;;  %3238 = vrot.lane.b32.xlu1 %v3086_v61, %s12753_s30  ;;  %v10599_v38 = vld [vmem:[%s18592_s3 + $0x148] sm:$0xff]  ;;  %v14212_v41 = vld [vmem:[%s18592_s3 + $0xb8] sm:$0xff] }
 0x18c   : > { %12334 = vmatpush3.msra.mxu0 %v10573_v40  ;;  %12383 = vmatprep.subr.mxu1 %v10600_v5  ;;  %v3538_v46 = vpop.permute.xlu0 %3537  ;;  %v3179_v49 = vpop.permute.xlu1 %3178  ;;  %v3461_v40 = vld [vmem:[#allocation2 + $0x489] ss:$2 sm:$0xff] }
 0x18d   : > { %v14086_v51 = vld [vmem:[#allocation3 + $0x18] sm:$0xff]  ;;  %12335 = vmatprep.subr.mxu0 %v10572_v45  ;;  %12384 = vmatpush3.msra.mxu1 %v10600_v5  ;;  %3329 = vst.msk [vmem:[#allocation3 + $0x20] sm:$0xff] %vm3323_vm7, %v3179_v49 }
 0x18e   : > { %12304 = vmatprep.mubr.msk.f32.mxu1 %vm3837_vm6, %v14086_v51  ;;  %12336 = vmatpush3.msra.mxu0 %v10572_v45  ;;  %3688 = vst.msk [vmem:[#allocation3 + $0x20] sm:$0xff] %vm3682_vm8, %v3538_v46  ;;  %v14227_v45 = vld [vmem:[%s18592_s3 + $0x58] sm:$0xff] }
 0x18f   : > { %3585 = vrot.lane.b32.xlu0 %v3433_v53, %s12752_s24  ;;  %2874 = vrot.lane.b32.xlu1 %v2722_v33, %s12751_s22  ;;  %v3092_v33 = vld [vmem:[#allocation2 + $0x3f8] ss:$2 sm:$0xff]  ;;  %v3451_v46 = vld [vmem:[#allocation2 + $0x3f9] ss:$2 sm:$0xff] }
 0x190   : > { %12337 = vmatprep.subr.mxu0 %v10571_v52  ;;  %12385 = vmatprep.subr.mxu1 %v10599_v38  ;;  %v3550_v59 = vpop.permute.xlu0 %3549  ;;  %v3191_v60 = vpop.permute.xlu1 %3190  ;;  %v3104_v53 = vld [vmem:[#allocation2 + $0x498] ss:$2 sm:$0xff] }
 0x191   : > { %12338 = vmatpush3.msra.mxu0 %v10571_v52  ;;  %12386 = vmatpush3.msra.mxu1 %v10599_v38  ;;  %3335 = vst.msk [vmem:[#allocation3 + $0x50] sm:$0xff] %vm3323_vm7, %v3191_v60  ;;  %v14196_v39 = vld [vmem:[#allocation3 + $0x48] sm:$0xff] }
 0x192   : > { %12339 = vmatprep.subr.mxu0 %v10570_v54  ;;  %12387 = vmatprep.subr.mxu1 %v10598_v50  ;;  %3694 = vst.msk [vmem:[#allocation3 + $0x50] sm:$0xff] %vm3682_vm8, %v3550_v59  ;;  %v2738_v59 = vld [vmem:[#allocation2 + $0x411] ss:$2 sm:$0xff] }
 0x193   : > { %3597 = vrot.lane.b32.xlu0 %v3445_v20, %s12752_s24  ;;  %2886 = vrot.lane.b32.xlu1 %v2734_v58, %s12751_s22  ;;  %v2740_v58 = vld [vmem:[#allocation2 + $0x421] ss:$2 sm:$0xff] }
 0x194   : > { %12340 = vmatpush3.msra.mxu0 %v10570_v54  ;;  %12388 = vmatpush3.msra.mxu1 %v10598_v50  ;;  %v2825_v9 = vpop.permute.xlu0 %2824  ;;  %v2827_v16 = vpop.permute.xlu1 %2826  ;;  %v3463_v54 = vld [vmem:[#allocation2 + $0x499] ss:$2 sm:$0xff] }
 0x195   : > { %12341 = vmatprep.subr.mxu0 %v10569_v37  ;;  %12389 = vmatprep.subr.mxu1 %v10597_v62  ;;  %2973 = vst.msk [vmem:[#allocation3 + $0x30] sm:$0xff] %vm2965_vm4, %v2825_v9  ;;  %2974 = vst.msk [vmem:[#allocation3 + $0x38] sm:$0xff] %vm2965_vm4, %v2827_v16  ;;  %v14121_v22 = vld [vmem:[#allocation3 + $0x19] sm:$0xff]  ;;  %v14125_v17 = vld [vmem:[#allocation3 + $0x21] sm:$0xff] }
 0x196   : > { %v14123_v15 = vld [vmem:[#allocation3 + $0x20] sm:$0xff]  ;;  %12342 = vmatpush3.msra.mxu0 %v10569_v37  ;;  %12390 = vmatpush3.msra.mxu1 %v10597_v62  ;;  %3331 = vst.msk [vmem:[#allocation3 + $0x30] sm:$0xff] %vm3323_vm7, %v13999_v44  ;;  %3332 = vst.msk [vmem:[#allocation3 + $0x38] sm:$0xff] %vm3323_vm7, %v14014_v57 }
 0x197   : > { %2872 = vrot.lane.b32.xlu0 %v2720_v12, %s12751_s22  ;;  %3242 = vrot.lane.b32.xlu1 %v3090_v63, %s12753_s30  ;;  %3690 = vst.msk [vmem:[#allocation3 + $0x30] sm:$0xff] %vm3682_vm8, %v13997_v4  ;;  %3691 = vst.msk [vmem:[#allocation3 + $0x38] sm:$0xff] %vm3682_vm8, %v14026_v11  ;;  %v3102_v44 = vld [vmem:[#allocation2 + $0x488] ss:$2 sm:$0xff]  ;;  %v2732_v11 = vld [vmem:[#allocation2 + $0x3c1] ss:$2 sm:$0xff] }
 0x198   : > { %12256 = vmatprep.mubr.msk.f32.mxu0 %vm3837_vm6, %v14121_v22  ;;  %12305 = vmatmul.mubr.msk.f32.gmra.mxu1 %vm3837_vm6, %v14123_v15  ;;  %v2837_v57 = vpop.permute.xlu0 %2836  ;;  %v2839_v19 = vpop.permute.xlu1 %2838  ;;  %v14149_v4 = vld [vmem:[%s18592_s3 + $0xc8] sm:$0xff]  ;;  %v2750_v37 = vld [vmem:[#allocation2 + $0x4b1] ss:$2 sm:$0xff] }
 0x199   : > { %12257 = vmatmul.mubr.msk.f32.gmra.mxu0 %vm3837_vm6, %v14125_v17  ;;  %12343 = vmatprep.subr.mxu0 %v10568_v13  ;;  %2979 = vst.msk [vmem:[#allocation3 + $0x60] sm:$0xff] %vm2965_vm4, %v2837_v57  ;;  %2980 = vst.msk [vmem:[#allocation3 + $0x68] sm:$0xff] %vm2965_vm4, %v2839_v19  ;;  %v14194_v2 = vld [vmem:[#allocation3 + $0x49] sm:$0xff]  ;;  %v14214_v42 = vld [vmem:[#allocation3 + $0x51] sm:$0xff] }
 0x19a   : > { %12391 = vmatprep.subr.mxu1 %v10596_v18  ;;  %12344 = vmatpush3.msra.mxu0 %v10568_v13  ;;  %v14216_v43 = vld [vmem:[#allocation3 + $0x50] sm:$0xff] }
 0x19b   : > { %2884 = vrot.lane.b32.xlu0 %v2732_v11, %s12751_s22  ;;  %3254 = vrot.lane.b32.xlu1 %v3102_v44, %s12753_s30  ;;  %v3096_v13 = vld [vmem:[#allocation2 + $0x438] ss:$2 sm:$0xff]  ;;  %v3098_v11 = vld [vmem:[#allocation2 + $0x448] ss:$2 sm:$0xff] }
 0x19c   : > { %12392 = vmatpush3.msra.mxu1 %v10596_v18  ;;  %12345 = vmatprep.subr.mxu0 %v14149_v4  ;;  %v3554_v24 = vpop.permute.xlu0 %3553  ;;  %v3195_v26 = vpop.permute.xlu1 %3194  ;;  %v3455_v18 = vld [vmem:[#allocation2 + $0x439] ss:$2 sm:$0xff]  ;;  %v3108_v19 = vld [vmem:[#allocation2 + $0x4d8] ss:$2 sm:$0xff] }
 0x19d   : > { %12393 = vmatprep.subr.mxu1 %v14156_v21  ;;  %12346 = vmatpush3.msra.mxu0 %v14149_v4  ;;  %3337 = vst.msk [vmem:[#allocation3 + $0x60] sm:$0xff] %vm3323_vm7, %v3195_v26 }
 0x19e   : > { %12394 = vmatpush3.msra.mxu1 %v14156_v21  ;;  %12347 = vmatprep.subr.mxu0 %v14163_v23  ;;  %3696 = vst.msk [vmem:[#allocation3 + $0x60] sm:$0xff] %vm3682_vm8, %v3554_v24  ;;  %v14174_v30 = vld [vmem:[#allocation3 + $0x31] sm:$0xff]  ;;  %v14178_v1 = vld [vmem:[#allocation3 + $0x39] sm:$0xff] }
 0x19f   : > { %3601 = vrot.lane.b32.xlu0 %v3449_v29, %s12752_s24  ;;  %3246 = vrot.lane.b32.xlu1 %v3094_v48, %s12753_s30  ;;  %v14176_v25 = vld [vmem:[#allocation3 + $0x30] sm:$0xff]  ;;  %v14184_v6 = vld [vmem:[#allocation3 + $0x38] sm:$0xff]  ;;  %v3100_v48 = vld [vmem:[#allocation2 + $0x458] ss:$2 sm:$0x1] }
 0x1a0   : > { %12259 = vmatprep.mubr.msk.f32.mxu0 %vm3837_vm6, %v14174_v30  ;;  %12307 = vmatprep.mubr.msk.f32.mxu1 %vm3837_vm6, %v14176_v25  ;;  %v14186_v34 = vpop.permute.xlu0 %3565  ;;  %v14192_v36 = vpop.permute.xlu1 %3206  ;;  %v3110_v29 = vld [vmem:[#allocation2 + $0x4e8] ss:$2 sm:$0xff] }
 0x1a1   : > { %12260 = vmatmul.mubr.msk.f32.gmra.mxu0 %vm3837_vm6, %v14178_v1  ;;  %12308 = vmatmul.mubr.msk.f32.gmra.mxu1 %vm3837_vm6, %v14184_v6 }
 0x1a2   : > { %12262 = vmatprep.mubr.msk.f32.mxu0 %vm3837_vm6, %v14194_v2  ;;  %12310 = vmatprep.mubr.msk.f32.mxu1 %vm3837_vm6, %v14196_v39 }
 0x1a3   : > { %3613 = vrot.lane.b32.xlu0 %v3461_v40, %s12752_s24  ;;  %3258 = vrot.lane.b32.xlu1 %v3106_v7, %s12753_s30  ;;  %v2746_v7 = vld [vmem:[#allocation2 + $0x471] ss:$2 sm:$0xff] }
 0x1a4   : > { %12395 = vmatprep.subr.mxu1 %v14201_v3  ;;  %12348 = vmatpush3.msra.mxu0 %v14163_v23  ;;  %v3197_v5 = vpop.permute.xlu0 %3196  ;;  %v3199_v61 = vpop.permute.xlu1 %3198 }
 0x1a5   : > { %12263 = vmatmul.mubr.msk.f32.gmra.mxu0 %vm3837_vm6, %v14214_v42  ;;  %12311 = vmatmul.mubr.msk.f32.gmra.mxu1 %vm3837_vm6, %v14216_v43  ;;  %3338 = vst.msk [vmem:[#allocation3 + $0x68] sm:$0xff] %vm3323_vm7, %v3197_v5  ;;  %v14231_v49 = vld [vmem:[#allocation3 + $0x60] sm:$0xff] }
 0x1a6   : > { %3339 = vst.msk [vmem:[#allocation3 + $0x70] sm:$0x1] %vm3326_vm9, %v3199_v61  ;;  %12396 = vmatpush3.msra.mxu1 %v14201_v3  ;;  %12421 = vmatprep.subr.mxu0 %v14212_v41  ;;  %v3457_v61 = vld [vmem:[#allocation2 + $0x449] ss:$2 sm:$0xff] }
 0x1a7   : > { %3698 = vst.msk [vmem:[#allocation3 + $0x70] sm:$0x1] %vm3685_vm10, %v13748_v0  ;;  %3244 = vrot.lane.b32.xlu0 %v3092_v33, %s12753_s30  ;;  %3603 = vrot.lane.b32.xlu1 %v3451_v46, %s12752_s24 }
 0x1a8   : > { %12313 = vmatprep.mubr.msk.f32.mxu1 %vm3837_vm6, %v14231_v49  ;;  %12469 = vmatprep.subr.mxu1 %v14227_v45  ;;  %v14242_v52 = vpop.permute.xlu0 %3208  ;;  %v3211_v38 = vpop.permute.xlu1 %3210 }
 0x1a9   : > { %3345 = vst.msk [vmem:[#allocation3 + $0xa0] sm:$0x1] %vm3326_vm9, %v3211_v38  ;;  %v2744_v38 = vld [vmem:[#allocation2 + $0x461] ss:$2 sm:$0xff] }
 0x1aa   : > { %3704 = vst.msk [vmem:[#allocation3 + $0xa0] sm:$0x1] %vm3685_vm10, %v13803_v35  ;;  %v2752_v35 = vld [vmem:[#allocation2 + $0x4c1] ss:$2 sm:$0xff] }
 0x1ab   : > { %3256 = vrot.lane.b32.xlu0 %v3104_v53, %s12753_s30  ;;  %3615 = vrot.lane.b32.xlu1 %v3463_v54, %s12752_s24  ;;  %v3467_v53 = vld [vmem:[#allocation2 + $0x4d9] ss:$2 sm:$0xff] }
 0x1ac   : > { %v2845_v0 = vpop.permute.xlu0 %2844  ;;  %v3556_v50 = vpop.permute.xlu1 %3555 }
 0x1ad   : > { %2983 = vst.msk [vmem:[#allocation3 + $0x80] sm:$0xff] %vm2965_vm4, %v2845_v0 }
 0x1ae   : > { %3697 = vst.msk [vmem:[#allocation3 + $0x68] sm:$0xff] %vm3682_vm8, %v3556_v50  ;;  %v3112_v50 = vld [vmem:[#allocation2 + $0x4f8] ss:$2 sm:$0x1] }
 0x1af   : > { %2892 = vrot.lane.b32.xlu0 %v2740_v58, %s12751_s22  ;;  %2890 = vrot.lane.b32.xlu1 %v2738_v59, %s12751_s22 }
 0x1b0   : > { %v2857_v60 = vpop.permute.xlu0 %2856  ;;  %v14253_v20 = vpop.permute.xlu1 %3567 }
 0x1b1   : > { %2989 = vst.msk [vmem:[#allocation3 + $0xb0] sm:$0xff] %vm2965_vm4, %v2857_v60  ;;  %v3469_v60 = vld [vmem:[#allocation2 + $0x4e9] ss:$2 sm:$0xff] }
 0x1b3   : > { %2904 = vrot.lane.b32.xlu0 %v2752_v35, %s12751_s22  ;;  %2902 = vrot.lane.b32.xlu1 %v2750_v37, %s12751_s22  ;;  %v3116_v35 = vld [vmem:[#allocation2 + $0x538] ss:$2 sm:$0xff] }
 0x1b4   : > { %v3201_v62 = vpop.permute.xlu0 %3200  ;;  %v2843_v63 = vpop.permute.xlu1 %2842 }
 0x1b5   : > { %v14258_v9 = vld [vmem:[#allocation3 + $0x61] sm:$0xff]  ;;  %v14262_v12 = vld [vmem:[#allocation3 + $0x69] sm:$0xff]  ;;  %2982 = vst.msk [vmem:[#allocation3 + $0x78] sm:$0xff] %vm2965_vm4, %v2843_v63 }
 0x1b6   : > { %v14260_v16 = vld [vmem:[#allocation3 + $0x68] sm:$0xff]  ;;  %12265 = vmatprep.mubr.msk.f32.mxu0 %vm3837_vm6, %v14258_v9  ;;  %3340 = vst.msk [vmem:[#allocation3 + $0x78] sm:$0xff] %vm3323_vm7, %v3201_v62 }
 0x1b7   : > { %12314 = vmatmul.mubr.msk.f32.gmra.mxu1 %vm3837_vm6, %v14260_v16  ;;  %3248 = vrot.lane.b32.xlu0 %v3096_v13, %s12753_s30 }
 0x1b8   : > { %3607 = vrot.lane.b32.xlu1 %v3455_v18, %s12752_s24  ;;  %12266 = vmatmul.mubr.msk.f32.gmra.mxu0 %vm3837_vm6, %v14262_v12  ;;  %v3213_v44 = vpop.permute.xlu0 %3212  ;;  %v2855_v57 = vpop.permute.xlu1 %2854  ;;  %v2760_v18 = vld [vmem:[#allocation2 + $0x521] ss:$2 sm:$0x1] }
 0x1b9   : > { %2988 = vst.msk [vmem:[#allocation3 + $0xa8] sm:$0xff] %vm2965_vm4, %v2855_v57 }
 0x1ba   : > { %3346 = vst.msk [vmem:[#allocation3 + $0xa8] sm:$0xff] %vm3323_vm7, %v3213_v44 }
 0x1bb   : > { %3260 = vrot.lane.b32.xlu0 %v3108_v19, %s12753_s30 }
 0x1bc   : > { %3250 = vrot.lane.b32.xlu1 %v3098_v11, %s12753_s30  ;;  %v3205_v24 = vpop.permute.xlu0 %3204  ;;  %v3560_v26 = vpop.permute.xlu1 %3559 }
 0x1bd   : > { %3342 = vst.msk [vmem:[#allocation3 + $0x88] sm:$0x1] %vm3326_vm9, %v3205_v24 }
 0x1be   : > { %3699 = vst.msk [vmem:[#allocation3 + $0x78] sm:$0xff] %vm3682_vm8, %v3560_v26  ;;  %v3473_v26 = vld [vmem:[#allocation2 + $0x529] ss:$2 sm:$0xff] }
 0x1bf   : > { %3701 = vst.msk [vmem:[#allocation3 + $0x88] sm:$0x1] %vm3685_vm10, %v13703_v31  ;;  %3252 = vrot.lane.b32.xlu0 %v3100_v48, %s12753_s30 }
 0x1c0   : > { %3262 = vrot.lane.b32.xlu1 %v3110_v29, %s12753_s30  ;;  %v3217_v40 = vpop.permute.xlu0 %3216  ;;  %v3572_v5 = vpop.permute.xlu1 %3571  ;;  %v2758_v29 = vld [vmem:[#allocation2 + $0x511] ss:$2 sm:$0xff] }
 0x1c1   : > { %3348 = vst.msk [vmem:[#allocation3 + $0xb8] sm:$0x1] %vm3326_vm9, %v3217_v40 }
 0x1c2   : > { %3705 = vst.msk [vmem:[#allocation3 + $0xa8] sm:$0xff] %vm3682_vm8, %v3572_v5 }
 0x1c3   : > { %3707 = vst.msk [vmem:[#allocation3 + $0xb8] sm:$0x1] %vm3685_vm10, %v13750_v32  ;;  %3609 = vrot.lane.b32.xlu0 %v3457_v61, %s12752_s24  ;;  %v3471_v32 = vld [vmem:[#allocation2 + $0x4f9] ss:$2 sm:$0x1] }
 0x1c4   : > { %2898 = vrot.lane.b32.xlu1 %v2746_v7, %s12751_s22  ;;  %v3562_v31 = vpop.permute.xlu0 %3561  ;;  %v3203_v33 = vpop.permute.xlu1 %3202 }
 0x1c5   : > { %v14290_v46 = vld [vmem:[#allocation3 + $0x78] sm:$0xff]  ;;  %3341 = vst.msk [vmem:[#allocation3 + $0x80] sm:$0xff] %vm3323_vm7, %v3203_v33 }
 0x1c6   : > { %12316 = vmatprep.mubr.msk.f32.mxu1 %vm3837_vm6, %v14290_v46  ;;  %3700 = vst.msk [vmem:[#allocation3 + $0x80] sm:$0xff] %vm3682_vm8, %v3562_v31  ;;  %v3475_v31 = vld [vmem:[#allocation2 + $0x539] ss:$2 sm:$0xff]  ;;  %v3118_v33 = vld [vmem:[#allocation2 + $0x548] ss:$2 sm:$0x1] }
 0x1c7   : > { %2896 = vrot.lane.b32.xlu0 %v2744_v38, %s12751_s22 }
 0x1c8   : > { %3619 = vrot.lane.b32.xlu1 %v3467_v53, %s12752_s24  ;;  %v3574_v54 = vpop.permute.xlu0 %3573  ;;  %v3215_v0 = vpop.permute.xlu1 %3214 }
 0x1c9   : > { %3347 = vst.msk [vmem:[#allocation3 + $0xb0] sm:$0xff] %vm3323_vm7, %v3215_v0  ;;  %v14353_v61 = vld [vmem:[#allocation3 + $0xa8] sm:$0xff] }
 0x1ca   : > { %3706 = vst.msk [vmem:[#allocation3 + $0xb0] sm:$0xff] %vm3682_vm8, %v3574_v54  ;;  %v2605_v0 = vld [vmem:[#allocation2 + $0x510] ss:$2 sm:$0xff] }
 0x1cb   : > { %3264 = vrot.lane.b32.xlu0 %v3112_v50, %s12753_s30  ;;  %2657 = vst.msk [vmem:[#allocation3 + $0x188] sm:$0xff] %vm384_vm2, %v2605_v0 }
 0x1cc   : > { %3623 = vrot.lane.b32.xlu1 %v3471_v32, %s12752_s24  ;;  %v2849_v58 = vpop.permute.xlu0 %2848  ;;  %v2851_v59 = vpop.permute.xlu1 %2850  ;;  %v2607_v32 = vld [vmem:[#allocation2 + $0x520] ss:$2 sm:$0x1] }
 0x1cd   : > { %2985 = vst.msk [vmem:[#allocation3 + $0x90] sm:$0xff] %vm2965_vm4, %v2849_v58  ;;  %2986 = vst.msk [vmem:[#allocation3 + $0x98] sm:$0xff] %vm2965_vm4, %v2851_v59  ;;  %v14304_v37 = vld [vmem:[#allocation3 + $0x79] sm:$0xff]  ;;  %v14308_v63 = vld [vmem:[#allocation3 + $0x81] sm:$0xff] }
 0x1ce   : > { %v14306_v62 = vld [vmem:[#allocation3 + $0x80] sm:$0xff]  ;;  %3343 = vst.msk [vmem:[#allocation3 + $0x90] sm:$0xff] %vm3323_vm7, %v14192_v36  ;;  %3344 = vst.msk [vmem:[#allocation3 + $0x98] sm:$0xff] %vm3323_vm7, %v14242_v52  ;;  %12268 = vmatprep.mubr.msk.f32.mxu0 %vm3837_vm6, %v14304_v37  ;;  %v2756_v36 = vld [vmem:[#allocation2 + $0x501] ss:$2 sm:$0xff] }
 0x1cf   : > { %3621 = vrot.lane.b32.xlu0 %v3469_v60, %s12752_s24  ;;  %3702 = vst.msk [vmem:[#allocation3 + $0x90] sm:$0xff] %vm3682_vm8, %v14186_v34  ;;  %3703 = vst.msk [vmem:[#allocation3 + $0x98] sm:$0xff] %vm3682_vm8, %v14253_v20  ;;  %12317 = vmatmul.mubr.msk.f32.gmra.mxu1 %vm3837_vm6, %v14306_v62  ;;  %v2603_v34 = vld [vmem:[#allocation2 + $0x500] ss:$2 sm:$0xff] }
 0x1d0   : > { %12269 = vmatmul.mubr.msk.f32.gmra.mxu0 %vm3837_vm6, %v14308_v63  ;;  %v2861_v13 = vpop.permute.xlu0 %2860  ;;  %v2863_v52 = vpop.permute.xlu1 %2862  ;;  %3268 = vrot.lane.b32.xlu1 %v3116_v35, %s12753_s30  ;;  %v3114_v20 = vld [vmem:[#allocation2 + $0x528] ss:$2 sm:$0xff]  ;;  %2656 = vst.msk [vmem:[#allocation3 + $0x180] sm:$0xff] %vm384_vm2, %v2603_v34  ;;  %vm6169_vm2 = vcmask 516224  }
 0x1d1   : > { %2991 = vst.msk [vmem:[#allocation3 + $0xc0] sm:$0xff] %vm2965_vm4, %v2861_v13  ;;  %2992 = vst.msk [vmem:[#allocation3 + $0xc8] sm:$0xff] %vm2965_vm4, %v2863_v52  ;;  %v14351_v5 = vld [vmem:[#allocation3 + $0xa9] sm:$0xff]  ;;  %v14365_v38 = vld [vmem:[#allocation3 + $0xb1] sm:$0xff] }
 0x1d2   : > { %v14367_v53 = vld [vmem:[#allocation3 + $0xb0] sm:$0xff]  ;;  %2658 = vst.msk [vmem:[#allocation3 + $0x190] sm:$0x1] %vm397_vm1, %v2607_v32  ;;  %v10628_v58 = vld [vmem:[%s18592_s3 + $0x88] sm:$0xff]  ;;  %v10626_v13 = vld [vmem:[%s18592_s3 + $0x78] sm:$0xff]  ;;  %vm6025_vm1 = vcmask 122880  }
 0x1d3   : > { %2908 = vrot.lane.b32.xlu0 %v2756_v36, %s12751_s22  ;;  %v4779_v60 = vld [vmem:[%s18592_s3 + $0x28] sm:$0xff]  ;;  %v4777_v52 = vld [vmem:[%s18592_s3 + $0x18] sm:$0xff] }
 0x1d4   : > { %v3219_v44 = vpop.permute.xlu0 %3218  ;;  %v14330_v57 = vpop.permute.xlu1 %3230  ;;  %2912 = vrot.lane.b32.xlu1 %v2760_v18, %s12751_s22  ;;  %v10625_v18 = vld [vmem:[%s18592_s3 + $0x70] sm:$0xff] }
 0x1d5   : > { %3349 = vst.msk [vmem:[#allocation3 + $0xc0] sm:$0xff] %vm3323_vm7, %v3219_v44 }
 0x1d6   : > { %v14334_v19 = vld [vmem:[#allocation3 + $0x91] sm:$0xff]  ;;  %v14338_v48 = vld [vmem:[#allocation3 + $0x99] sm:$0xff] }
 0x1d7   : > { %v14336_v11 = vld [vmem:[#allocation3 + $0x90] sm:$0xff]  ;;  %3266 = vrot.lane.b32.xlu0 %v3114_v20, %s12753_s30  ;;  %12271 = vmatprep.mubr.msk.f32.mxu0 %vm3837_vm6, %v14334_v19  ;;  %v14345_v24 = vld [vmem:[#allocation3 + $0x98] sm:$0xff] }
 0x1d8   : > { %12319 = vmatprep.mubr.msk.f32.mxu1 %vm3837_vm6, %v14336_v11  ;;  %v3578_v7 = vpop.permute.xlu0 %3577  ;;  %12272 = vmatmul.mubr.msk.f32.gmra.mxu0 %vm3837_vm6, %v14338_v48  ;;  %v3223_v40 = vpop.permute.xlu1 %3222 }
 0x1d9   : > { %12320 = vmatmul.mubr.msk.f32.gmra.mxu1 %vm3837_vm6, %v14345_v24  ;;  %3708 = vst.msk [vmem:[#allocation3 + $0xc0] sm:$0xff] %vm3682_vm8, %v3578_v7  ;;  %12274 = vmatprep.mubr.msk.f32.mxu0 %vm3837_vm6, %v14351_v5 }
 0x1da   : > { %3351 = vst.msk [vmem:[#allocation3 + $0xd0] sm:$0x1] %vm3326_vm9, %v3223_v40  ;;  %12322 = vmatprep.mubr.msk.f32.mxu1 %vm3837_vm6, %v14353_v61  ;;  %2910 = vrot.lane.b32.xlu1 %v2758_v29, %s12751_s22  ;;  %v4774_v40 = vld [vmem:[%s18592_s3] sm:$0xff] }
 0x1db   : > { %3710 = vst.msk [vmem:[#allocation3 + $0xd0] sm:$0x1] %vm3685_vm10, %v13821_v56  ;;  %3625 = vrot.lane.b32.xlu0 %v3473_v26, %s12752_s24 }
 0x1dc   : > { %v14369_v54 = vpop.permute.xlu0 %3589  ;;  %12275 = vmatmul.mubr.msk.f32.gmra.mxu0 %vm3837_vm6, %v14365_v38  ;;  %v3235_v56 = vpop.permute.xlu1 %3234 }
 0x1dd   : > { %12323 = vmatmul.mubr.msk.f32.gmra.mxu1 %vm3837_vm6, %v14367_v53  ;;  %3357 = vst.msk [vmem:[#allocation3 + $0x100] sm:$0x1] %vm3326_vm9, %v3235_v56  ;;  %12349 = vmatprep.mubr.msk.f32.mxu0 %vm3837_vm6, %v14086_v51  ;;  %v12666_v56 = vld [vmem:[%s18592_s3 + $0x118] sm:$0xff] }
 0x1de   : > { %12397 = vmatprep.mubr.msk.f32.mxu1 %vm3837_vm6, %v14121_v22  ;;  %3716 = vst.msk [vmem:[#allocation3 + $0x100] sm:$0x1] %vm3685_vm10, %v13869_v55  ;;  %3270 = vrot.lane.b32.xlu1 %v3118_v33, %s12753_s30  ;;  %v10633_v22 = vld [vmem:[%s18592_s3 + $0xb0] sm:$0xff] }
 0x1df   : > { %3627 = vrot.lane.b32.xlu0 %v3475_v31, %s12752_s24  ;;  %v4784_v55 = vld [vmem:[%s18592_s3 + $0x50] sm:$0xff] }
 0x1e0   : > { %v3580_v50 = vpop.permute.xlu0 %3579  ;;  %12350 = vmatmul.mubr.msk.f32.vlgmr.msra.gmra.mxu0 %vm3837_vm6, %v14123_v15  ;;  %v3221_v51 = vpop.permute.xlu1 %3220 }
 0x1e1   : > { %12398 = vmatmul.mubr.msk.f32.vlgmr.msra.gmra.mxu1 %vm3837_vm6, %v14125_v17  ;;  %3350 = vst.msk [vmem:[#allocation3 + $0xc8] sm:$0xff] %vm3323_vm7, %v3221_v51  ;;  %12352 = vmatprep.mubr.msk.f32.mxu0 %vm3837_vm6, %v14176_v25  ;;  %v4783_v25 = vld [vmem:[%s18592_s3 + $0x48] sm:$0xff]  ;;  %v12668_v51 = vld [vmem:[%s18592_s3 + $0x110] sm:$0xff] }
 0x1e2   : > { %12400 = vmatprep.mubr.msk.f32.mxu1 %vm3837_vm6, %v14174_v30  ;;  %3709 = vst.msk [vmem:[#allocation3 + $0xc8] sm:$0xff] %vm3682_vm8, %v3580_v50  ;;  %12422 = vmatpush3.msra.mxu0 %v14212_v41  ;;  %v10632_v30 = vld [vmem:[%s18592_s3 + $0xa8] sm:$0xff]  ;;  %v10631_v41 = vld [vmem:[%s18592_s3 + $0xa0] sm:$0xff]  ;;  %v12667_v50 = vld [vmem:[%s18592_s3 + $0x178] sm:$0xff] }
 0x1e3   : > { %12470 = vmatpush3.msra.mxu1 %v14227_v45  ;;  %12423 = vmatprep.subr.mxu0 %v10633_v22  ;;  %v4781_v45 = vld [vmem:[%s18592_s3 + $0x38] sm:$0xff] }
 0x1e4   : > { %12471 = vmatprep.subr.mxu1 %v4784_v55  ;;  %v14404_v15 = vpop.permute.xlu0 %3232  ;;  %12353 = vmatmul.mubr.msk.f32.gmra.mxu0 %vm3837_vm6, %v14184_v6  ;;  %v14410_v17 = vpop.permute.xlu1 %3591 }
 0x1e5   : > { %12401 = vmatmul.mubr.msk.f32.gmra.mxu1 %vm3837_vm6, %v14178_v1  ;;  %12355 = vmatprep.mubr.msk.f32.mxu0 %vm3837_vm6, %v14196_v39 }
 0x1e6   : > { %12403 = vmatprep.mubr.msk.f32.mxu1 %vm3837_vm6, %v14194_v2  ;;  %12424 = vmatpush3.msra.mxu0 %v10633_v22  ;;  %v4782_v2 = vld [vmem:[%s18592_s3 + $0x40] sm:$0xff] }
 0x1e7   : > { %12472 = vmatpush3.msra.mxu1 %v4784_v55  ;;  %12425 = vmatprep.subr.mxu0 %v10632_v30  ;;  %v12670_v55 = vld [vmem:[%s18592_s3 + $0x170] sm:$0xff] }
 0x1e8   : > { %12473 = vmatprep.subr.mxu1 %v4783_v25  ;;  %v2869_v1 = vpop.permute.xlu0 %2868  ;;  %12356 = vmatmul.mubr.msk.f32.gmra.mxu0 %vm3837_vm6, %v14216_v43  ;;  %v2867_v6 = vpop.permute.xlu1 %2866  ;;  %v10630_v43 = vld [vmem:[%s18592_s3 + $0x98] sm:$0xff] }
 0x1e9   : > { %12404 = vmatmul.mubr.msk.f32.gmra.mxu1 %vm3837_vm6, %v14214_v42  ;;  %2995 = vst.msk [vmem:[#allocation3 + $0xe0] sm:$0xff] %vm2965_vm4, %v2869_v1  ;;  %2994 = vst.msk [vmem:[#allocation3 + $0xd8] sm:$0xff] %vm2965_vm4, %v2867_v6  ;;  %12358 = vmatprep.mubr.msk.f32.mxu0 %vm3837_vm6, %v14231_v49  ;;  %v3477_v49 = vld [vmem:[#allocation2 + $0x549] ss:$2 sm:$0x1]  ;;  %v4477_v44 = vld [vmem:[#allocation3 + $0xc1] sm:$0xff] }
 0x1ea   : > { %12406 = vmatprep.mubr.msk.f32.mxu1 %vm3837_vm6, %v14258_v9  ;;  %12426 = vmatpush3.msra.mxu0 %v10632_v30  ;;  %v4478_v7 = vld [vmem:[#allocation3 + $0xc9] sm:$0xff] }
 0x1eb   : > { %12474 = vmatpush3.msra.mxu1 %v4783_v25  ;;  %12427 = vmatprep.subr.mxu0 %v10631_v41  ;;  %v12672_v25 = vld [vmem:[%s18592_s3 + $0x168] sm:$0xff]  ;;  %v12673_v1 = vld [vmem:[%s18592_s3 + $0xf8] sm:$0xff] }
 0x1ec   : > { %12475 = vmatprep.subr.mxu1 %v4782_v2  ;;  %v2881_v39 = vpop.permute.xlu0 %2880  ;;  %12359 = vmatmul.mubr.msk.f32.gmra.mxu0 %vm3837_vm6, %v14260_v16  ;;  %v2879_v42 = vpop.permute.xlu1 %2878 }
 0x1ed   : > { %12407 = vmatmul.mubr.msk.f32.gmra.mxu1 %vm3837_vm6, %v14262_v12  ;;  %3001 = vst.msk [vmem:[#allocation3 + $0x110] sm:$0xff] %vm2965_vm4, %v2881_v39  ;;  %3000 = vst.msk [vmem:[#allocation3 + $0x108] sm:$0xff] %vm2965_vm4, %v2879_v42  ;;  %12361 = vmatprep.mubr.msk.f32.mxu0 %vm3837_vm6, %v14290_v46  ;;  %v10629_v12 = vld [vmem:[%s18592_s3 + $0x90] sm:$0xff] }
 0x1ee   : > { %12409 = vmatprep.mubr.msk.f32.mxu1 %vm3837_vm6, %v14304_v37  ;;  %12428 = vmatpush3.msra.mxu0 %v10631_v41  ;;  %v4780_v46 = vld [vmem:[%s18592_s3 + $0x30] sm:$0xff]  ;;  %v10627_v37 = vld [vmem:[%s18592_s3 + $0x80] sm:$0xff] }
 0x1ef   : > { %12476 = vmatpush3.msra.mxu1 %v4782_v2  ;;  %12429 = vmatprep.subr.mxu0 %v10630_v43  ;;  %v12674_v2 = vld [vmem:[%s18592_s3 + $0x160] sm:$0xff] }
 0x1f0   : > { %12477 = vmatprep.subr.mxu1 %v4781_v45  ;;  %v3225_v9 = vpop.permute.xlu0 %3224  ;;  %12362 = vmatmul.mubr.msk.f32.gmra.mxu0 %vm3837_vm6, %v14306_v62  ;;  %v4778_v62 = vld [vmem:[%s18592_s3 + $0x20] sm:$0xff] }
 0x1f1   : > { %12410 = vmatmul.mubr.msk.f32.gmra.mxu1 %vm3837_vm6, %v14308_v63  ;;  %v3584_v16 = vpop.permute.xlu1 %3583  ;;  %3352 = vst.msk [vmem:[#allocation3 + $0xd8] sm:$0xff] %vm3323_vm7, %v3225_v9  ;;  %3629 = vrot.lane.b32.xlu0 %v3477_v49, %s12752_s24  ;;  %v12675_v9 = vld [vmem:[%s18592_s3 + $0xf0] sm:$0xff]  ;;  %s12759_s24 = smov [#allocation9]  }
 0x1f2   : > { %12364 = vmatprep.mubr.msk.f32.mxu0 %vm3837_vm6, %v14336_v11  ;;  %3711 = vst.msk [vmem:[#allocation3 + $0xd8] sm:$0xff] %vm3682_vm8, %v3584_v16  ;;  %12412 = vmatprep.mubr.msk.f32.mxu1 %vm3837_vm6, %v14334_v19  ;;  %v4776_v19 = vld [vmem:[%s18592_s3 + $0x10] sm:$0xff]  ;;  %v10624_v11 = vld [vmem:[%s18592_s3 + $0x68] sm:$0xff]  ;;  %s12692_s0 = sshll.u32 %s12759_s24, 4  ;;  %s12693_s0 = int_to_ptr.vmem [resolvable:$false] %s12692_s0 }
 0x1f3   : > { %12430 = vmatpush3.msra.mxu0 %v10630_v43  ;;  %12478 = vmatpush3.msra.mxu1 %v4781_v45 }
 0x1f4   : > { %12431 = vmatprep.subr.mxu0 %v10629_v12  ;;  %12479 = vmatprep.subr.mxu1 %v4780_v46 }
 0x1f5   : > { %12432 = vmatpush3.msra.mxu0 %v10629_v12  ;;  %v3237_v59 = vpop.permute.xlu0 %3236  ;;  %v3596_v35 = vpop.permute.xlu1 %3595  ;;  %12480 = vmatpush3.msra.mxu1 %v4780_v46  ;;  %v12676_v46 = vld [vmem:[%s18592_s3 + $0x158] sm:$0xff] }
 0x1f6   : > { %3358 = vst.msk [vmem:[#allocation3 + $0x108] sm:$0xff] %vm3323_vm7, %v3237_v59  ;;  %12365 = vmatmul.mubr.msk.f32.gmra.mxu0 %vm3837_vm6, %v14345_v24  ;;  %12413 = vmatmul.mubr.msk.f32.gmra.mxu1 %vm3837_vm6, %v14338_v48  ;;  %v4240_v48 = vld [vmem:[#allocation3 + $0xc8] sm:$0xff]  ;;  %v4775_v24 = vld [vmem:[%s18592_s3 + $0x8] sm:$0xff] }
 0x1f7   : > { %12433 = vmatprep.subr.mxu0 %v10628_v58  ;;  %3717 = vst.msk [vmem:[#allocation3 + $0x108] sm:$0xff] %vm3682_vm8, %v3596_v35  ;;  %12481 = vmatprep.subr.mxu1 %v4779_v60  ;;  %v12678_v35 = vld [vmem:[%s18592_s3 + $0x150] sm:$0xff] }
 0x1f8   : > { %12367 = vmatprep.mubr.msk.f32.mxu0 %vm3837_vm6, %v14353_v61  ;;  %12415 = vmatprep.mubr.msk.f32.mxu1 %vm3837_vm6, %v14351_v5 }
 0x1f9   : > { %12434 = vmatpush3.msra.mxu0 %v10628_v58  ;;  %v3229_v63 = vpop.permute.xlu0 %3228  ;;  %v3227_v36 = vpop.permute.xlu1 %3226  ;;  %12482 = vmatpush3.msra.mxu1 %v4779_v60  ;;  %v14619_v31 = vld [vmem:[#allocation3 + $0xd8] sm:$0xff] }
 0x1fa   : > { %12435 = vmatprep.subr.mxu0 %v10627_v37  ;;  %3354 = vst.msk [vmem:[#allocation3 + $0xe8] sm:$0x1] %vm3326_vm9, %v3229_v63  ;;  %12483 = vmatprep.subr.mxu1 %v4778_v62  ;;  %v12677_v60 = vld [vmem:[%s18592_s3 + $0xe8] sm:$0xff] }
 0x1fb   : > { %3353 = vst.msk [vmem:[#allocation3 + $0xe0] sm:$0xff] %vm3323_vm7, %v3227_v36  ;;  %12436 = vmatpush3.msra.mxu0 %v10627_v37  ;;  %12484 = vmatpush3.msra.mxu1 %v4778_v62  ;;  %v12679_v63 = vld [vmem:[%s18592_s3 + $0x148] sm:$0xff]  ;;  %v12680_v36 = vld [vmem:[%s18592_s3 + $0xe0] sm:$0xff] }
 0x1fc   : > { %3713 = vst.msk [vmem:[#allocation3 + $0xe8] sm:$0x1] %vm3685_vm10, %v13815_v47  ;;  %12368 = vmatmul.mubr.msk.f32.gmra.mxu0 %vm3837_vm6, %v14367_v53  ;;  %12416 = vmatmul.mubr.msk.f32.gmra.mxu1 %vm3837_vm6, %v14365_v38  ;;  %v4239_v47 = vld [vmem:[#allocation3 + $0xc0] sm:$0xff] }
 0x1fd   : > { %12437 = vmatprep.subr.mxu0 %v10626_v13  ;;  %v3241_v34 = vpop.permute.xlu0 %3240  ;;  %v3239_v20 = vpop.permute.xlu1 %3238  ;;  %12485 = vmatprep.subr.mxu1 %v4777_v52 }
 0x1fe   : > { %12370 = vmatprep.mubr.msk.f32.mxu0 %vm3837_vm6, %v4239_v47  ;;  %3360 = vst.msk [vmem:[#allocation3 + $0x118] sm:$0x1] %vm3326_vm9, %v3241_v34  ;;  %12418 = vmatprep.mubr.msk.f32.mxu1 %vm3837_vm6, %v4477_v44  ;;  %v14695_v49 = vld [vmem:[#allocation3 + $0x108] sm:$0xff]  ;;  %v12683_v34 = vld [vmem:[%s18592_s3 + $0xd0] sm:$0xff] }
 0x1ff   : > { %3359 = vst.msk [vmem:[#allocation3 + $0x110] sm:$0xff] %vm3323_vm7, %v3239_v20  ;;  %12438 = vmatpush3.msra.mxu0 %v10626_v13  ;;  %12486 = vmatpush3.msra.mxu1 %v4777_v52  ;;  %v12681_v13 = vld [vmem:[%s18592_s3 + $0x140] sm:$0xff]  ;;  %v12682_v52 = vld [vmem:[%s18592_s3 + $0xd8] sm:$0xff] }
 0x200   : > { %3719 = vst.msk [vmem:[#allocation3 + $0x118] sm:$0x1] %vm3685_vm10, %v13899_v28  ;;  %12439 = vmatprep.subr.mxu0 %v10625_v18  ;;  %12487 = vmatprep.subr.mxu1 %v4776_v19  ;;  %v10623_v28 = vld [vmem:[%s18592_s3 + $0x60] sm:$0xff]  ;;  %v12684_v20 = vld [vmem:[%s18592_s3 + $0x138] sm:$0xff] }
 0x201   : > { %12440 = vmatpush3.msra.mxu0 %v10625_v18  ;;  %v3586_v26 = vpop.permute.xlu0 %3585  ;;  %v2875_v29 = vpop.permute.xlu1 %2874  ;;  %12488 = vmatpush3.msra.mxu1 %v4776_v19 }
 0x202   : > { %12371 = vmatmul.mubr.msk.f32.gmra.mxu0 %vm3837_vm6, %v4240_v48  ;;  %3712 = vst.msk [vmem:[#allocation3 + $0xe0] sm:$0xff] %vm3682_vm8, %v3586_v26  ;;  %12419 = vmatmul.mubr.msk.f32.gmra.mxu1 %vm3837_vm6, %v4478_v7 }
 0x203   : > { %2998 = vst.msk [vmem:[#allocation3 + $0xf8] sm:$0xff] %vm2965_vm4, %v2875_v29  ;;  %12441 = vmatprep.subr.mxu0 %v10624_v11  ;;  %12489 = vmatprep.subr.mxu1 %v4775_v24  ;;  %v12686_v29 = vld [vmem:[%s18592_s3 + $0xc8] sm:$0xff] }
 0x204   : > { %3356 = vst.msk [vmem:[#allocation3 + $0xf8] sm:$0xff] %vm3323_vm7, %v14404_v15  ;;  %12442 = vmatpush3.msra.mxu0 %v10624_v11  ;;  %12445 = vmatprep.mubr.msk.f32.mxu0 %vm3837_vm6, %v4477_v44  ;;  %v12671_v15 = vld [vmem:[%s18592_s3 + $0x100] sm:$0xff] }
 0x205   : > { %3715 = vst.msk [vmem:[#allocation3 + $0xf8] sm:$0xff] %vm3682_vm8, %v14410_v17  ;;  %12490 = vmatpush3.msra.mxu1 %v4775_v24  ;;  %v3598_v5 = vpop.permute.xlu0 %3597  ;;  %v2887_v61 = vpop.permute.xlu1 %2886  ;;  %12493 = vmatprep.mubr.msk.f32.mxu1 %vm3837_vm6, %v4239_v47 }
 0x206   : > { %12443 = vmatprep.subr.mxu0 %v10623_v28  ;;  %3718 = vst.msk [vmem:[#allocation3 + $0x110] sm:$0xff] %vm3682_vm8, %v3598_v5  ;;  %12491 = vmatprep.subr.mxu1 %v4774_v40 }
 0x207   : > { %3004 = vst.msk [vmem:[#allocation3 + $0x128] sm:$0xff] %vm2965_vm4, %v2887_v61  ;;  %12444 = vmatpush3.msra.mxu0 %v10623_v28  ;;  %12492 = vmatpush3.msra.mxu1 %v4774_v40  ;;  %v6062_v40 = vld [vmem:[#allocation4 + $0x29] ss:$2 sm:$0x1] }
 0x208   : > { %12446 = vmatmul.mubr.msk.f32.vlgmr.msra.gmra.mxu0 %vm3837_vm6, %v4478_v7  ;;  %12494 = vmatmul.mubr.msk.f32.vlgmr.msra.gmra.mxu1 %vm3837_vm6, %v4240_v48  ;;  %v12685_v48 = vld [vmem:[%s18592_s3 + $0x130] sm:$0xff]  ;;  %v5787_v7 = vld [vmem:[#allocation4 + $0x11] ss:$2 sm:$0x1] }
 0x209   : > { %v2873_v33 = vpop.permute.xlu0 %2872  ;;  %v3243_v38 = vpop.permute.xlu1 %3242  ;;  %v14621_v53 = vld [vmem:[#allocation3 + $0xd9] sm:$0xff]  ;;  %v14623_v32 = vld [vmem:[#allocation3 + $0xe1] sm:$0xff]  ;;  %12517 = vmatprep.subr.mxu0 %v12666_v56  ;;  %12496 = vmatprep.mubr.msk.f32.mxu1 %vm3837_vm6, %v14619_v31 }
 0x20a   : > { %2997 = vst.msk [vmem:[#allocation3 + $0xf0] sm:$0xff] %vm2965_vm4, %v2873_v33  ;;  %12448 = vmatprep.mubr.msk.f32.mxu0 %vm3837_vm6, %v14621_v53  ;;  %v14633_v0 = vld [vmem:[#allocation3 + $0xe0] sm:$0xff]  ;;  %12518 = vmatpush3.msra.mxu0 %v12666_v56 }
 0x20b   : > { %3355 = vst.msk [vmem:[#allocation3 + $0xf0] sm:$0xff] %vm3323_vm7, %v14330_v57  ;;  %12565 = vmatprep.subr.mxu1 %v12667_v50  ;;  %12519 = vmatprep.subr.mxu0 %v12668_v51 }
 0x20c   : > { %3714 = vst.msk [vmem:[#allocation3 + $0xf0] sm:$0xff] %vm3682_vm8, %v14369_v54  ;;  %12449 = vmatmul.mubr.msk.f32.gmra.mxu0 %vm3837_vm6, %v14623_v32  ;;  %12497 = vmatmul.mubr.msk.f32.gmra.mxu1 %vm3837_vm6, %v14633_v0  ;;  %v12669_v54 = vld [vmem:[%s18592_s3 + $0x108] sm:$0xff] }
 0x20d   : > { %v2885_v57 = vpop.permute.xlu0 %2884  ;;  %v14649_v22 = vpop.permute.xlu1 %3254  ;;  %12520 = vmatpush3.msra.mxu0 %v12668_v51  ;;  %12566 = vmatpush3.msra.mxu1 %v12667_v50  ;;  %v14683_v39 = vld [vmem:[#allocation3 + $0xf9] sm:$0xff]  ;;  %v14693_v45 = vld [vmem:[#allocation3 + $0x109] sm:$0xff]  ;;  %v14707_v16 = vld [vmem:[#allocation3 + $0x111] sm:$0xff] }
 0x20e   : > { %3003 = vst.msk [vmem:[#allocation3 + $0x120] sm:$0xff] %vm2965_vm4, %v2885_v57  ;;  %12521 = vmatprep.subr.mxu0 %v12669_v54  ;;  %12567 = vmatprep.subr.mxu1 %v12670_v55  ;;  %v14685_v42 = vld [vmem:[#allocation3 + $0xf8] sm:$0xff]  ;;  %v14709_v12 = vld [vmem:[#allocation3 + $0x110] sm:$0xff]  ;;  %v5795_v51 = vld [vmem:[#allocation4 + $0x71] ss:$2 sm:$0x1] }
 0x20f   : > { %3361 = vst.msk [vmem:[#allocation3 + $0x120] sm:$0xff] %vm3323_vm7, %v3243_v38  ;;  %12522 = vmatpush3.msra.mxu0 %v12669_v54  ;;  %12568 = vmatpush3.msra.mxu1 %v12670_v55  ;;  %v6066_v38 = vld [vmem:[#allocation4 + $0x59] ss:$2 sm:$0x1]  ;;  %v5785_v57 = vld [vmem:[#allocation4 + $0x1] ss:$2 sm:$0xff] }
 0x210   : > { %12523 = vmatprep.subr.mxu0 %v12671_v15  ;;  %12569 = vmatprep.subr.mxu1 %v12672_v25  ;;  %v6070_v55 = vld [vmem:[#allocation4 + $0x89] ss:$2 sm:$0x1] }
 0x211   : > { %v3602_v17 = vpop.permute.xlu0 %3601  ;;  %v3247_v30 = vpop.permute.xlu1 %3246  ;;  %12524 = vmatpush3.msra.mxu0 %v12671_v15  ;;  %12570 = vmatpush3.msra.mxu1 %v12672_v25 }
 0x212   : > { %3720 = vst.msk [vmem:[#allocation3 + $0x120] sm:$0xff] %vm3682_vm8, %v3602_v17  ;;  %12525 = vmatprep.subr.mxu0 %v12673_v1  ;;  %12571 = vmatprep.subr.mxu1 %v12674_v2 }
 0x213   : > { %3363 = vst.msk [vmem:[#allocation3 + $0x130] sm:$0x1] %vm3326_vm9, %v3247_v30  ;;  %v14672_v6 = vld [vmem:[#allocation3 + $0xf1] sm:$0xff]  ;;  %12526 = vmatpush3.msra.mxu0 %v12673_v1  ;;  %12572 = vmatpush3.msra.mxu1 %v12674_v2 }
 0x214   : > { %3722 = vst.msk [vmem:[#allocation3 + $0x130] sm:$0x1] %vm3685_vm10, %v13931_v8  ;;  %v14674_v41 = vld [vmem:[#allocation3 + $0xf0] sm:$0xff]  ;;  %12451 = vmatprep.mubr.msk.f32.mxu0 %vm3837_vm6, %v14672_v6  ;;  %12527 = vmatprep.subr.mxu0 %v12675_v9 }
 0x215   : > { %12499 = vmatprep.mubr.msk.f32.mxu1 %vm3837_vm6, %v14674_v41  ;;  %v14687_v8 = vpop.permute.xlu0 %3613  ;;  %12452 = vmatmul.mubr.msk.f32.gmra.mxu0 %vm3837_vm6, %v14683_v39  ;;  %v3259_v43 = vpop.permute.xlu1 %3258 }
 0x216   : > { %12500 = vmatmul.mubr.msk.f32.gmra.mxu1 %vm3837_vm6, %v14685_v42  ;;  %3369 = vst.msk [vmem:[#allocation3 + $0x160] sm:$0x1] %vm3326_vm9, %v3259_v43  ;;  %12454 = vmatprep.mubr.msk.f32.mxu0 %vm3837_vm6, %v14693_v45 }
 0x217   : > { %12502 = vmatprep.mubr.msk.f32.mxu1 %vm3837_vm6, %v14695_v49  ;;  %3728 = vst.msk [vmem:[#allocation3 + $0x160] sm:$0x1] %vm3685_vm10, %v13973_v14  ;;  %12573 = vmatprep.subr.mxu1 %v12676_v46 }
 0x218   : > { %12528 = vmatpush3.msra.mxu0 %v12675_v9  ;;  %12574 = vmatpush3.msra.mxu1 %v12676_v46  ;;  %v6074_v46 = vld [vmem:[#allocation4 + $0xb9] ss:$2 sm:$0x1] }
 0x219   : > { %v3245_v58 = vpop.permute.xlu0 %3244  ;;  %12455 = vmatmul.mubr.msk.f32.gmra.mxu0 %vm3837_vm6, %v14707_v16  ;;  %v3604_v14 = vpop.permute.xlu1 %3603  ;;  %v14718_v59 = vld [vmem:[#allocation3 + $0x120] sm:$0xff]  ;;  %12529 = vmatprep.subr.mxu0 %v12677_v60 }
 0x21a   : > { %12503 = vmatmul.mubr.msk.f32.gmra.mxu1 %vm3837_vm6, %v14709_v12  ;;  %3362 = vst.msk [vmem:[#allocation3 + $0x128] sm:$0xff] %vm3323_vm7, %v3245_v58  ;;  %12575 = vmatprep.subr.mxu1 %v12678_v35 }
 0x21b   : > { %12505 = vmatprep.mubr.msk.f32.mxu1 %vm3837_vm6, %v14718_v59  ;;  %3721 = vst.msk [vmem:[#allocation3 + $0x128] sm:$0xff] %vm3682_vm8, %v3604_v14  ;;  %12530 = vmatpush3.msra.mxu0 %v12677_v60 }
 0x21c   : > { %12576 = vmatpush3.msra.mxu1 %v12678_v35  ;;  %12531 = vmatprep.subr.mxu0 %v12680_v36 }
 0x21d   : > { %v14730_v37 = vpop.permute.xlu0 %3256  ;;  %v14732_v62 = vpop.permute.xlu1 %3615  ;;  %12577 = vmatprep.subr.mxu1 %v12679_v63  ;;  %12532 = vmatpush3.msra.mxu0 %v12680_v36 }
 0x21e   : > { %12578 = vmatpush3.msra.mxu1 %v12679_v63  ;;  %12533 = vmatprep.subr.mxu0 %v12682_v52 }
 0x21f   : > { %12579 = vmatprep.subr.mxu1 %v12681_v13  ;;  %12534 = vmatpush3.msra.mxu0 %v12682_v52 }
 0x220   : > { %12580 = vmatpush3.msra.mxu1 %v12681_v13  ;;  %12535 = vmatprep.subr.mxu0 %v12683_v34 }
 0x221   : > { %v2893_v47 = vpop.permute.xlu0 %2892  ;;  %v2891_v18 = vpop.permute.xlu1 %2890  ;;  %12581 = vmatprep.subr.mxu1 %v12684_v20  ;;  %12536 = vmatpush3.msra.mxu0 %v12683_v34  ;;  %v6078_v34 = vld [vmem:[#allocation4 + $0xe9] ss:$2 sm:$0x1] }
 0x222   : > { %3007 = vst.msk [vmem:[#allocation3 + $0x140] sm:$0xff] %vm2965_vm4, %v2893_v47  ;;  %3006 = vst.msk [vmem:[#allocation3 + $0x138] sm:$0xff] %vm2965_vm4, %v2891_v18  ;;  %v14754_v44 = vld [vmem:[#allocation3 + $0x121] sm:$0xff]  ;;  %v14758_v11 = vld [vmem:[#allocation3 + $0x129] sm:$0xff]  ;;  %12582 = vmatpush3.msra.mxu1 %v12684_v20  ;;  %12537 = vmatprep.subr.mxu0 %v14149_v4 }
 0x223   : > { %v14756_v19 = vld [vmem:[#allocation3 + $0x128] sm:$0xff]  ;;  %12457 = vmatprep.mubr.msk.f32.mxu0 %vm3837_vm6, %v14754_v44  ;;  %12583 = vmatprep.subr.mxu1 %v12685_v48 }
 0x224   : > { %12506 = vmatmul.mubr.msk.f32.gmra.mxu1 %vm3837_vm6, %v14756_v19  ;;  %12458 = vmatmul.mubr.msk.f32.gmra.mxu0 %vm3837_vm6, %v14758_v11 }
 0x225   : > { %v2905_v24 = vpop.permute.xlu0 %2904  ;;  %v2903_v26 = vpop.permute.xlu1 %2902  ;;  %12584 = vmatpush3.msra.mxu1 %v12685_v48  ;;  %12538 = vmatpush3.msra.mxu0 %v12686_v29 }
 0x226   : > { %3013 = vst.msk [vmem:[#allocation3 + $0x170] sm:$0xff] %vm2965_vm4, %v2905_v24  ;;  %3012 = vst.msk [vmem:[#allocation3 + $0x168] sm:$0xff] %vm2965_vm4, %v2903_v26  ;;  %12585 = vmatprep.subr.mxu1 %v14156_v21  ;;  %12539 = vmatprep.subr.mxu0 %v14163_v23 }
 0x227   : > { %12586 = vmatpush3.msra.mxu1 %v14156_v21  ;;  %12540 = vmatpush3.msra.mxu0 %v14163_v23  ;;  %v5791_v23 = vld [vmem:[#allocation4 + $0x41] ss:$2 sm:$0x1] }
 0x228   : > { %12587 = vmatprep.subr.mxu1 %v14201_v3  ;;  %5840 = vrot.lane.b32.xlu0 %v5787_v7, %s12753_s30 }
 0x229   : > { %v3249_v4 = vpop.permute.xlu0 %3248  ;;  %12588 = vmatpush3.msra.mxu1 %v14201_v3  ;;  %6417 = vmatprep.subr.mxu0 %v12750_v10 }
 0x22a   : > { %v3608_v28 = vpop.permute.xlu1 %3607  ;;  %3364 = vst.msk [vmem:[#allocation3 + $0x138] sm:$0xff] %vm3323_vm7, %v3249_v4  ;;  %6546 = vmatprep.subr.mxu1 %v12750_v10  ;;  %5838 = vrot.lane.b32.xlu1 %v5785_v57, %s12753_s30  ;;  %v6245_v4 = vld [vmem:[%s18594_s5 + $0x78] sm:$0xff] }
 0x22b   : > { %3723 = vst.msk [vmem:[#allocation3 + $0x138] sm:$0xff] %vm3682_vm8, %v3608_v28  ;;  %v6241_v57 = vld [vmem:[%s18594_s5 + $0x58] sm:$0xff] }
 0x22c   : > { %6115 = vrot.lane.b32.xlu0 %v6062_v40, %s12754_s13 }
 0x22d   : > { %v3261_v21 = vpop.permute.xlu0 %3260 }
 0x22e   : > { %v3251_v5 = vpop.permute.xlu1 %3250  ;;  %3370 = vst.msk [vmem:[#allocation3 + $0x168] sm:$0xff] %vm3323_vm7, %v3261_v21  ;;  %v6244_v21 = vld [vmem:[%s18594_s5 + $0x70] sm:$0xff] }
 0x22f   : > { %3365 = vst.msk [vmem:[#allocation3 + $0x140] sm:$0xff] %vm3323_vm7, %v3251_v5  ;;  %v10739_v5 = vld [vmem:[%s18594_s5 + $0x138] sm:$0xff] }
 0x230   : > { %5844 = vrot.lane.b32.xlu0 %v5791_v23, %s12753_s30  ;;  %v6243_v23 = vld [vmem:[%s18594_s5 + $0x68] sm:$0xff] }
 0x231   : > { %v3253_v3 = vpop.permute.xlu0 %3252 }
 0x232   : > { %v3263_v61 = vpop.permute.xlu1 %3262  ;;  %3366 = vst.msk [vmem:[#allocation3 + $0x148] sm:$0x1] %vm3326_vm9, %v3253_v3  ;;  %v14792_v33 = vld [vmem:[#allocation3 + $0x138] sm:$0xff]  ;;  %v10738_v3 = vld [vmem:[%s18594_s5 + $0x130] sm:$0xff] }
 0x233   : > { %3371 = vst.msk [vmem:[#allocation3 + $0x170] sm:$0xff] %vm3323_vm7, %v3263_v61  ;;  %12508 = vmatprep.mubr.msk.f32.mxu1 %vm3837_vm6, %v14792_v33 }
 0x234   : > { %3725 = vst.msk [vmem:[#allocation3 + $0x148] sm:$0x1] %vm3685_vm10, %v13942_v27  ;;  %6119 = vrot.lane.b32.xlu0 %v6066_v38, %s12754_s13  ;;  %v6242_v38 = vld [vmem:[%s18594_s5 + $0x60] sm:$0xff] }
 0x235   : > { %v3610_v56 = vpop.permute.xlu0 %3609 }
 0x236   : > { %v2899_v50 = vpop.permute.xlu1 %2898  ;;  %3724 = vst.msk [vmem:[#allocation3 + $0x140] sm:$0xff] %vm3682_vm8, %v3610_v56  ;;  %v10737_v56 = vld [vmem:[%s18594_s5 + $0x128] sm:$0xff] }
 0x237   : > { %3010 = vst.msk [vmem:[#allocation3 + $0x158] sm:$0xff] %vm2965_vm4, %v2899_v50 }
 0x238   : > { %3368 = vst.msk [vmem:[#allocation3 + $0x158] sm:$0xff] %vm3323_vm7, %v14730_v37  ;;  %5848 = vrot.lane.b32.xlu0 %v5795_v51, %s12753_s30 }
 0x239   : > { %3727 = vst.msk [vmem:[#allocation3 + $0x158] sm:$0xff] %vm3682_vm8, %v14732_v62  ;;  %v2897_v27 = vpop.permute.xlu0 %2896  ;;  %v5803_v62 = vld [vmem:[#allocation4 + $0xd1] ss:$2 sm:$0x1] }
 0x23a   : > { %v3620_v54 = vpop.permute.xlu1 %3619  ;;  %3009 = vst.msk [vmem:[#allocation3 + $0x150] sm:$0xff] %vm2965_vm4, %v2897_v27  ;;  %v10736_v27 = vld [vmem:[%s18594_s5 + $0x120] sm:$0xff] }
 0x23b   : > { %3729 = vst.msk [vmem:[#allocation3 + $0x168] sm:$0xff] %vm3682_vm8, %v3620_v54 }
 0x23c   : > { %3367 = vst.msk [vmem:[#allocation3 + $0x150] sm:$0xff] %vm3323_vm7, %v14649_v22  ;;  %6123 = vrot.lane.b32.xlu0 %v6070_v55, %s12754_s13  ;;  %v5799_v22 = vld [vmem:[#allocation4 + $0xa1] ss:$2 sm:$0x1] }
 0x23d   : > { %3726 = vst.msk [vmem:[#allocation3 + $0x150] sm:$0xff] %vm3682_vm8, %v14687_v8  ;;  %v3265_v15 = vpop.permute.xlu0 %3264  ;;  %v14813_v17 = vld [vmem:[#allocation3 + $0x139] sm:$0xff]  ;;  %v14817_v25 = vld [vmem:[#allocation3 + $0x141] sm:$0xff] }
 0x23e   : > { %v14815_v30 = vld [vmem:[#allocation3 + $0x140] sm:$0xff]  ;;  %v3624_v1 = vpop.permute.xlu1 %3623  ;;  %3372 = vst.msk [vmem:[#allocation3 + $0x178] sm:$0x1] %vm3326_vm9, %v3265_v15  ;;  %12460 = vmatprep.mubr.msk.f32.mxu0 %vm3837_vm6, %v14813_v17 }
 0x23f   : > { %12509 = vmatmul.mubr.msk.f32.gmra.mxu1 %vm3837_vm6, %v14815_v30  ;;  %12461 = vmatmul.mubr.msk.f32.gmra.mxu0 %vm3837_vm6, %v14817_v25  ;;  %3731 = vst.msk [vmem:[#allocation3 + $0x178] sm:$0x1] %vm3685_vm10, %v3624_v1 }
 0x240   : > { %5852 = vrot.lane.b32.xlu0 %v5799_v22, %s12753_s30  ;;  %v4799_v58 = vld [vmem:[#allocation3 + $0x159] sm:$0xff]  ;;  %v10735_v22 = vld [vmem:[%s18594_s5 + $0x118] sm:$0xff] }
 0x241   : > { %v3622_v2 = vpop.permute.xlu0 %3621  ;;  %v4771_v14 = vld [vmem:[#allocation3 + $0x158] sm:$0xff] }
 0x242   : > { %3730 = vst.msk [vmem:[#allocation3 + $0x170] sm:$0xff] %vm3682_vm8, %v3622_v2  ;;  %v3269_v9 = vpop.permute.xlu1 %3268  ;;  %v4772_v60 = vld [vmem:[#allocation3 + $0x168] sm:$0xff]  ;;  %v6239_v2 = vld [vmem:[%s18594_s5 + $0x48] sm:$0xff] }
 0x244   : > { %v4798_v8 = vld [vmem:[#allocation3 + $0x151] sm:$0xff]  ;;  %6127 = vrot.lane.b32.xlu0 %v6074_v46, %s12754_s13 }
 0x245   : > { %v4770_v43 = vld [vmem:[#allocation3 + $0x150] sm:$0xff]  ;;  %12463 = vmatprep.mubr.msk.f32.mxu0 %vm3837_vm6, %v4798_v8  ;;  %v2909_v35 = vpop.permute.xlu0 %2908 }
 0x246   : > { %12511 = vmatprep.mubr.msk.f32.mxu1 %vm3837_vm6, %v4770_v43  ;;  %12464 = vmatmul.mubr.msk.f32.gmra.mxu0 %vm3837_vm6, %v4799_v58  ;;  %3015 = vst.msk [vmem:[#allocation3 + $0x180] sm:$0xff] %vm2965_vm4, %v2909_v35  ;;  %v2913_v37 = vpop.permute.xlu1 %2912  ;;  %v6238_v46 = vld [vmem:[%s18594_s5 + $0x40] sm:$0xff] }
 0x247   : > { %12512 = vmatmul.mubr.msk.f32.gmra.mxu1 %vm3837_vm6, %v4771_v14  ;;  %3017 = vst.msk [vmem:[#allocation3 + $0x190] sm:$0x1] %vm2968_vm5, %v2913_v37  ;;  %v6237_v37 = vld [vmem:[%s18594_s5 + $0x38] sm:$0xff]  ;;  %vm6167_vm5 = vcmask 523392  }
 0x248   : > { %12514 = vmatprep.mubr.msk.f32.mxu1 %vm3837_vm6, %v4772_v60  ;;  %5856 = vrot.lane.b32.xlu0 %v5803_v62, %s12753_s30 }
 0x249   : > { %v4800_v63 = vld [vmem:[#allocation3 + $0x169] sm:$0xff]  ;;  %v4801_v13 = vld [vmem:[#allocation3 + $0x171] sm:$0xff]  ;;  %v3267_v52 = vpop.permute.xlu0 %3266 }
 0x24a   : > { %v4773_v36 = vld [vmem:[#allocation3 + $0x170] sm:$0xff]  ;;  %12466 = vmatprep.mubr.msk.f32.mxu0 %vm3837_vm6, %v4800_v63  ;;  %3373 = vst.msk [vmem:[#allocation3 + $0x180] sm:$0xff] %vm3323_vm7, %v3267_v52 }
 0x24b   : > { %12515 = vmatmul.mubr.msk.f32.gmra.mxu1 %vm3837_vm6, %v4773_v36  ;;  %12467 = vmatmul.mubr.msk.f32.gmra.mxu0 %vm3837_vm6, %v4801_v13 }
 0x24c   : > { %12589 = vmatprep.mubr.msk.f32.mxu1 %vm3837_vm6, %v14621_v53  ;;  %12541 = vmatprep.mubr.msk.f32.mxu0 %vm3837_vm6, %v14619_v31  ;;  %v2911_v18 = vpop.permute.xlu1 %2910 }
 0x24d   : > { %v3626_v47 = vpop.permute.xlu0 %3625  ;;  %3016 = vst.msk [vmem:[#allocation3 + $0x188] sm:$0xff] %vm2965_vm4, %v2911_v18  ;;  %6131 = vrot.lane.b32.xlu0 %v6078_v34, %s12754_s13  ;;  %v10731_v18 = vld [vmem:[%s18594_s5 + $0xf8] sm:$0xff]  ;;  %vm6021_vm4 = vcmask 130048  }
 0x24e   : > { %3732 = vst.msk [vmem:[#allocation3 + $0x180] sm:$0xff] %vm3682_vm8, %v3626_v47 }
 0x24f   : > { %12590 = vmatmul.mubr.msk.f32.vlgmr.msra.gmra.mxu1 %vm3837_vm6, %v14623_v32  ;;  %12542 = vmatmul.mubr.msk.f32.vlgmr.msra.gmra.mxu0 %vm3837_vm6, %v14633_v0  ;;  %3374 = vst.msk [vmem:[#allocation3 + $0x188] sm:$0xff] %vm3323_vm7, %v3269_v9  ;;  %v5807_v32 = vld [vmem:[#allocation4 + $0x101] ss:$2 sm:$0x1]  ;;  %v10734_v9 = vld [vmem:[%s18594_s5 + $0x110] sm:$0xff]  ;;  %vm6400_vm7 = vcmask 523264  }
 0x250   : > { %12592 = vmatprep.mubr.msk.f32.mxu1 %vm3837_vm6, %v14672_v6  ;;  %12544 = vmatprep.mubr.msk.f32.mxu0 %vm3837_vm6, %v14674_v41  ;;  %v3271_v53 = vpop.permute.xlu1 %3270  ;;  %v6082_v0 = vld [vmem:[#allocation4 + $0x119] ss:$2 sm:$0x1] }
 0x251   : > { %v3628_v31 = vpop.permute.xlu0 %3627  ;;  %3375 = vst.msk [vmem:[#allocation3 + $0x190] sm:$0x1] %vm3326_vm9, %v3271_v53  ;;  %5860 = vrot.lane.b32.xlu0 %v5807_v32, %s12753_s30  ;;  %6547 = vmatpush1.msra.mxu1 %v6245_v4  ;;  %v6233_v4 = vld [vmem:[%s18594_s5 + $0x18] sm:$0xff]  ;;  %vm6188_vm9 = vcmask 779264  }
 0x252   : > { %3733 = vst.msk [vmem:[#allocation3 + $0x188] sm:$0xff] %vm3682_vm8, %v3628_v31  ;;  %6548 = vmatprep.subr.mxu1 %v12750_v10  ;;  %6418 = vmatpush1.msra.mxu0 %v10739_v5  ;;  %v6235_v31 = vld [vmem:[%s18594_s5 + $0x28] sm:$0xff]  ;;  %vm6318_vm8 = vcmask 1046528  }
 0x253   : > { %12593 = vmatmul.mubr.msk.f32.gmra.mxu1 %vm3837_vm6, %v14683_v39  ;;  %12545 = vmatmul.mubr.msk.f32.gmra.mxu0 %vm3837_vm6, %v14685_v42  ;;  %v5733_v42 = vld [vmem:[#allocation4 + $0x10] ss:$2 sm:$0x1]  ;;  %6189 = vst.msk [vmem:[#allocation6 + $0x8] sm:$0x3] %vm6188_vm9, %v12750_v10 }
 0x254   : > { %12595 = vmatprep.mubr.msk.f32.mxu1 %vm3837_vm6, %v14693_v45  ;;  %12547 = vmatprep.mubr.msk.f32.mxu0 %vm3837_vm6, %v14695_v49  ;;  %5767 = vst.msk [vmem:[#allocation5 + $0x10] sm:$0x1] %vm3743_vm12, %v5733_v42  ;;  %v15063_v42 = vld [vmem:[%s18593_s4] ss:$0 sm:$0xff] }
 0x255   : > { %6135 = vrot.lane.b32.xlu0 %v6082_v0, %s12754_s13  ;;  %v5215_v39 = vld [vmem:[#allocation3 + $0x180] sm:$0xff]  ;;  %6549 = vmatpush1.msra.mxu1 %v6244_v21  ;;  %6192 = vst.msk [vmem:[#allocation6 + $0x98] sm:$0x3] %vm6188_vm9, %v12750_v10 }
 0x256   : > { %6550 = vmatprep.subr.mxu1 %v12750_v10  ;;  %6419 = vmatprep.subr.mxu0 %v12750_v10  ;;  %v10730_v0 = vld [vmem:[%s18594_s5 + $0xf0] sm:$0xff] }
 0x257   : > { %12596 = vmatmul.mubr.msk.f32.gmra.mxu1 %vm3837_vm6, %v14707_v16  ;;  %12548 = vmatmul.mubr.msk.f32.gmra.mxu0 %vm3837_vm6, %v14709_v12  ;;  %v14905_v16 = vpop.f32.mrf.mxu1  ;;  %v14907_v12 = vpop.f32.mrf.mxu0 }
 0x258   : > { %12598 = vmatprep.mubr.msk.f32.mxu1 %vm3837_vm6, %v14754_v44  ;;  %12550 = vmatprep.mubr.msk.f32.mxu0 %vm3837_vm6, %v14718_v59  ;;  %v4151_v34 = vadd.f32 %v14905_v16, %v14907_v12  ;;  %v10729_v16 = vld [vmem:[%s18594_s5 + $0xe8] sm:$0xff] }
 0x259   : > { %v5452_v41 = vld [vmem:[#allocation3 + $0x181] sm:$0xff]  ;;  %v14909_v59 = vpop.f32.mrf.mxu1  ;;  %v14911_v20 = vpop.f32.mrf.mxu0  ;;  %6551 = vmatpush1.msra.mxu1 %v6243_v23  ;;  %6420 = vmatpush1.msra.mxu0 %v10738_v3 }
 0x25a   : > { %v5216_v45 = vld [vmem:[#allocation3 + $0x188] sm:$0xff]  ;;  %6552 = vmatprep.subr.mxu1 %v12750_v10  ;;  %6421 = vmatprep.subr.mxu0 %v12750_v10 }
 0x25b   : > { %12599 = vmatmul.mubr.msk.f32.gmra.mxu1 %vm3837_vm6, %v14758_v11  ;;  %12551 = vmatmul.mubr.msk.f32.gmra.mxu0 %vm3837_vm6, %v14756_v19  ;;  %v14913_v44 = vpop.f32.mrf.mxu1  ;;  %v14915_v19 = vpop.f32.mrf.mxu0 }
 0x25c   : > { %12601 = vmatprep.mubr.msk.f32.mxu1 %vm3837_vm6, %v14813_v17  ;;  %12553 = vmatprep.mubr.msk.f32.mxu0 %vm3837_vm6, %v14792_v33  ;;  %v4161_v12 = vadd.f32 %v14913_v44, %v14915_v19  ;;  %v10728_v44 = vld [vmem:[%s18594_s5 + $0xe0] sm:$0xff] }
 0x25d   : > { %v14917_v11 = vpop.f32.mrf.mxu1  ;;  %v14919_v48 = vpop.f32.mrf.mxu0  ;;  %6553 = vmatpush1.msra.mxu1 %v6242_v38  ;;  %6422 = vmatpush1.msra.mxu0 %v10737_v56 }
 0x25e   : > { %6554 = vmatprep.subr.mxu1 %v12750_v10  ;;  %6423 = vmatprep.subr.mxu0 %v12750_v10  ;;  %v4156_v21 = vadd.f32 %v14917_v11, %v14919_v48  ;;  %v6232_v11 = vld [vmem:[%s18594_s5 + $0x10] sm:$0xff] }
 0x25f   : > { %12602 = vmatmul.mubr.msk.f32.gmra.mxu1 %vm3837_vm6, %v14817_v25  ;;  %12554 = vmatmul.mubr.msk.f32.gmra.mxu0 %vm3837_vm6, %v14815_v30  ;;  %v6240_v30 = vld [vmem:[%s18594_s5 + $0x50] sm:$0xff] }
 0x260   : > { %12604 = vmatprep.mubr.msk.f32.mxu1 %vm3837_vm6, %v4798_v8  ;;  %12556 = vmatprep.mubr.msk.f32.mxu0 %vm3837_vm6, %v4770_v43 }
 0x261   : > { %v14921_v24 = vpop.f32.mrf.mxu0  ;;  %v14923_v26 = vpop.f32.mrf.mxu1  ;;  %6555 = vmatpush1.msra.mxu1 %v6241_v57  ;;  %6424 = vmatpush1.msra.mxu0 %v10736_v27  ;;  %v10727_v27 = vld [vmem:[%s18594_s5 + $0xd8] sm:$0xff] }
 0x262   : > { %6556 = vmatprep.subr.mxu1 %v12750_v10  ;;  %6425 = vmatprep.subr.mxu0 %v12750_v10  ;;  %v4171_v48 = vadd.f32 %v14923_v26, %v14921_v24  ;;  %v6231_v24 = vld [vmem:[%s18594_s5 + $0x8] sm:$0xff] }
 0x263   : > { %12605 = vmatmul.mubr.msk.f32.gmra.mxu1 %vm3837_vm6, %v4799_v58  ;;  %12557 = vmatmul.mubr.msk.f32.gmra.mxu0 %vm3837_vm6, %v4771_v14  ;;  %v3630_v6 = vpop.permute.xlu0 %3629  ;;  %v14925_v29 = vpop.f32.mrf.mxu0 }
 0x264   : > { %12607 = vmatprep.mubr.msk.f32.mxu1 %vm3837_vm6, %v4800_v63  ;;  %12559 = vmatprep.mubr.msk.f32.mxu0 %vm3837_vm6, %v4772_v60  ;;  %3734 = vst.msk [vmem:[#allocation3 + $0x190] sm:$0x1] %vm3685_vm10, %v3630_v6  ;;  %v14927_v7 = vpop.f32.mrf.mxu1  ;;  %v10733_v60 = vld [vmem:[%s18594_s5 + $0x108] sm:$0xff]  ;;  %v4146_v6 = vadd.f32 %v14909_v59, %v14911_v20  ;;  %vm7145_vm10 = vcmask 782336  }
 0x265   : > { %v14932_v28 = vpop.f32.mrf.mxu0  ;;  %6557 = vmatpush1.msra.mxu1 %v6240_v30  ;;  %6426 = vmatpush1.msra.mxu0 %v10735_v22  ;;  %v4166_v26 = vadd.f32 %v14927_v7, %v14925_v29  ;;  %v5731_v29 = vld [vmem:[#allocation4] ss:$2 sm:$0xff] }
 0x266   : > { %v14934_v40 = vpop.f32.mrf.mxu1  ;;  %6558 = vmatprep.subr.mxu1 %v12750_v10  ;;  %6427 = vmatprep.subr.mxu0 %v12750_v10  ;;  %5766 = vst.msk [vmem:[#allocation5] sm:$0xff] %vm495_vm0, %v5731_v29 }
 0x267   : > { %12608 = vmatmul.mubr.msk.f32.gmra.mxu1 %vm3837_vm6, %v4801_v13  ;;  %12560 = vmatmul.mubr.msk.f32.gmra.mxu0 %vm3837_vm6, %v4773_v36  ;;  %v14951_v61 = vpop.f32.mrf.mxu0  ;;  %v10732_v36 = vld [vmem:[%s18594_s5 + $0x100] sm:$0xff]  ;;  %v6236_v13 = vld [vmem:[%s18594_s5 + $0x30] sm:$0xff] }
 0x268   : > { %12610 = vmatprep.mubr.msk.f32.mxu1 %vm3837_vm6, %v5452_v41  ;;  %12562 = vmatprep.mubr.msk.f32.mxu0 %vm3837_vm6, %v5215_v39  ;;  %v14953_v33 = vpop.f32.mrf.mxu1  ;;  %v6234_v39 = vld [vmem:[%s18594_s5 + $0x20] sm:$0xff] }
 0x269   : > { %6559 = vmatpush1.msra.mxu1 %v6239_v2  ;;  %6428 = vmatpush1.msra.mxu0 %v10734_v9 }
 0x26a   : > { %6560 = vmatprep.subr.mxu1 %v12750_v10  ;;  %6429 = vmatprep.subr.mxu0 %v12750_v10 }
 0x26b   : > { %12563 = vmatmul.mubr.msk.f32.gmra.mxu0 %vm3837_vm6, %v5216_v45  ;;  %v5453_v49 = vld [vmem:[#allocation3 + $0x189] sm:$0xff]  ;;  %6561 = vmatpush1.msra.mxu1 %v6238_v46 }
 0x26c   : > { %12611 = vmatmul.mubr.msk.f32.gmra.mxu1 %vm3837_vm6, %v5453_v49  ;;  %6430 = vmatpush1.msra.mxu0 %v10733_v60 }
 0x26d   : > { %6562 = vmatprep.subr.mxu1 %v12750_v10  ;;  %6431 = vmatprep.subr.mxu0 %v12750_v10 }
 0x26e   : > { %6563 = vmatpush1.msra.mxu1 %v6237_v37  ;;  %6432 = vmatpush1.msra.mxu0 %v10732_v36  ;;  %v10726_v37 = vld [vmem:[%s18594_s5 + $0xd0] sm:$0xff] }
 0x26f   : > { %6564 = vmatprep.subr.mxu1 %v12750_v10  ;;  %6433 = vmatprep.subr.mxu0 %v12750_v10 }
 0x270   : > { %6565 = vmatpush1.msra.mxu1 %v6236_v13  ;;  %6434 = vmatpush1.msra.mxu0 %v10731_v18 }
 0x271   : > { %6566 = vmatprep.subr.mxu1 %v12750_v10  ;;  %6435 = vmatprep.subr.mxu0 %v12750_v10 }
 0x272   : > { %6567 = vmatpush1.msra.mxu1 %v6235_v31  ;;  %6436 = vmatpush1.msra.mxu0 %v10730_v0  ;;  %v6230_v31 = vld [vmem:[%s18594_s5] sm:$0xff] }
 0x273   : > { %6568 = vmatprep.subr.mxu1 %v12750_v10  ;;  %6437 = vmatprep.subr.mxu0 %v12750_v10 }
 0x274   : > { %6569 = vmatpush1.msra.mxu1 %v6234_v39  ;;  %6438 = vmatpush1.msra.mxu0 %v10729_v16 }
 0x275   : > { %6570 = vmatprep.subr.mxu1 %v12750_v10  ;;  %6439 = vmatprep.subr.mxu0 %v12750_v10 }
 0x276   : > { %6571 = vmatpush1.msra.mxu1 %v6233_v4  ;;  %6440 = vmatpush1.msra.mxu0 %v10728_v44 }
 0x277   : > { %v14963_v50 = vpop.f32.mrf.mxu1  ;;  %6572 = vmatprep.subr.mxu1 %v12750_v10  ;;  %6441 = vmatprep.subr.mxu0 %v12750_v10 }
 0x278   : > { %v14965_v51 = vpop.f32.mrf.mxu0  ;;  %6573 = vmatpush1.msra.mxu1 %v6232_v11  ;;  %6442 = vmatpush1.msra.mxu0 %v10727_v27 }
 0x279   : > { %v14977_v54 = vpop.f32.mrf.mxu1  ;;  %6574 = vmatprep.subr.mxu1 %v12750_v10  ;;  %6443 = vmatprep.subr.mxu0 %v12750_v10 }
 0x27a   : > { %v14979_v55 = vpop.f32.mrf.mxu0  ;;  %6575 = vmatpush1.msra.mxu1 %v6231_v24  ;;  %6444 = vmatpush1.msra.mxu0 %v10726_v37 }
 0x27b   : > { %6576 = vmatprep.subr.mxu1 %v12750_v10  ;;  %6445 = vmatprep.subr.mxu0 %v12750_v10 }
 0x27c   : > { %6577 = vmatpush1.msra.mxu1 %v6230_v31  ;;  %v10744_v31 = vld [vmem:[%s18594_s5 + $0x160] sm:$0xff] }
 0x27d   : > { %6594 = vmatprep.subr.mxu1 %v12750_v10 }
 0x28f   : > { %v14981_v15 = vpop.f32.mrf.mxu1 }
 0x290   : > { %v14983_v17 = vpop.f32.mrf.mxu0 }
 0x291   : > { %v14988_v25 = vpop.f32.mrf.mxu1 }
 0x292   : > { %v14990_v1 = vpop.f32.mrf.mxu0 }
 0x298   : > { %v14999_v8 = vpop.f32.mrf.mxu0 }
 0x299   : > { %v15001_v43 = vpop.f32.mrf.mxu1 }
 0x29a   : > { %v15011_v58 = vpop.f32.mrf.mxu0  ;;  %v5841_v35 = vpop.permute.xlu0 %5840 }
 0x29b   : > { %v15013_v14 = vpop.f32.mrf.mxu1  ;;  %5895 = vst.msk [vmem:[#allocation5 + $0x10] sm:$0x1] %vm5894_vm13, %v5841_v35 }
 0x29c   : > { %v15023_v62 = vpop.f32.mrf.mxu0  ;;  %v5839_v7 = vpop.permute.xlu1 %5838 }
 0x29d   : > { %v15025_v63 = vpop.f32.mrf.mxu1  ;;  %5893 = vst.msk [vmem:[#allocation5] sm:$0xff] %vm5892_vm14, %v5839_v7  ;;  %v6249_v7 = vld [vmem:[%s18594_s5 + $0x98] sm:$0xff] }
 0x29e   : > { %v15036_v52 = vpop.f32.mrf.mxu0  ;;  %v15093_v46 = vpop.permute.xlu0 %6115 }
 0x29f   : > { %v15038_v47 = vpop.f32.mrf.mxu1 }
 0x2a0   : > { %v12351_v53 = vpop.f32.mrf.mxu0 }
 0x2a1   : > { %v12399_v32 = vpop.f32.mrf.mxu1  ;;  %v4448_v41 = vadd.f32 %v12351_v53, %v4151_v34  ;;  %v4181_v53 = vadd.f32 %v14934_v40, %v14932_v28  ;;  %v6253_v28 = vld [vmem:[%s18594_s5 + $0xb8] sm:$0xff]  ;;  %v4176_v40 = vadd.f32 %v14953_v33, %v14951_v61  ;;  %v6252_v61 = vld [vmem:[%s18594_s5 + $0xb0] sm:$0xff]  ;;  %v4191_v33 = vadd.f32 %v14963_v50, %v14965_v51  ;;  %v6251_v50 = vld [vmem:[%s18594_s5 + $0xa8] sm:$0xff] }
 0x2a2   : > { %v4368_v45 = vpop.f32.mrf.mxu0  ;;  %6595 = vmatpush2.msra.mxu1 %v6253_v28  ;;  %v4186_v51 = vadd.f32 %v14977_v54, %v14979_v55  ;;  %v6250_v54 = vld [vmem:[%s18594_s5 + $0xa0] sm:$0xff]  ;;  %v10745_v55 = vld [vmem:[%s18594_s5 + $0x168] sm:$0xff] }
 0x2a3   : > { %v4606_v49 = vpop.f32.mrf.mxu1  ;;  %v4686_v59 = vadd.f32 %v12399_v32, %v4448_v41  ;;  %v4447_v20 = vadd.f32 %v4368_v45, %v4146_v6  ;;  %v10725_v6 = vld [vmem:[%s18594_s5 + $0xc8] sm:$0xff]  ;;  %6596 = vmatprep.subr.mxu1 %v12750_v10 }
 0x2a4   : > { %v12354_v5 = vpop.f32.mrf.mxu0  ;;  %6446 = vmatpush1.msra.mxu0 %v10725_v6  ;;  %6597 = vmatpush2.msra.mxu1 %v6252_v61 }
 0x2a5   : > { %v12402_v23 = vpop.f32.mrf.mxu1  ;;  %v4709_v19 = vadd.f32 %v15063_v42, %v4686_v59  ;;  %v4685_v3 = vadd.f32 %v4606_v49, %v4447_v20  ;;  %v4450_v38 = vadd.f32 %v12354_v5, %v4161_v12  ;;  %6447 = vmatprep.subr.mxu0 %v12750_v10  ;;  %v10724_v59 = vld [vmem:[%s18594_s5 + $0xc0] sm:$0xff]  ;;  %6598 = vmatprep.subr.mxu1 %v12750_v10 }
 0x2a6   : > { %v4378_v56 = vpop.f32.mrf.mxu0  ;;  %6448 = vmatpush1.msra.mxu0 %v10724_v59  ;;  %6599 = vmatpush2.msra.mxu1 %v6251_v50  ;;  %v10743_v59 = vld [vmem:[%s18594_s5 + $0x158] sm:$0xff]  ;;  %v4206_v50 = vadd.f32 %v15013_v14, %v15011_v58  ;;  %v10740_v58 = vld [vmem:[%s18594_s5 + $0x140] sm:$0xff] }
 0x2a7   : > { %v4616_v57 = vpop.f32.mrf.mxu1  ;;  %v4725_v30 = vmax.f32 %v4709_v19, 0.0  ;;  %v4708_v22 = vadd.f32 %v15063_v42, %v4685_v3  ;;  %v4688_v2 = vadd.f32 %v12402_v23, %v4450_v38  ;;  %v4449_v9 = vadd.f32 %v4378_v56, %v4156_v21  ;;  %v15133_v23 = vpop.permute.xlu0 %5844  ;;  %6465 = vmatprep.subr.mxu0 %v12750_v10  ;;  %v10747_v3 = vld [vmem:[%s18594_s5 + $0x178] sm:$0xff]  ;;  %6600 = vmatprep.subr.mxu1 %v12750_v10 }
 0x2a8   : > { %v12357_v60 = vpop.f32.mrf.mxu0  ;;  %6466 = vmatpush2.msra.mxu0 %v10747_v3  ;;  %6601 = vmatpush2.msra.mxu1 %v6250_v54 }
 0x2a9   : > { %v12405_v35 = vpop.f32.mrf.mxu1  ;;  %4742 = vst.msk [vmem:[#allocation4 + $0x21] sm:$0xff] %vm495_vm0, %v4725_v30  ;;  %v4724_v36 = vmax.f32 %v4708_v22, 0.0  ;;  %v4711_v13 = vadd.f32 %v15063_v42, %v4688_v2  ;;  %v4687_v18 = vadd.f32 %v4616_v57, %v4449_v9  ;;  %v4452_v34 = vadd.f32 %v12357_v60, %v4171_v48  ;;  %6467 = vmatprep.subr.mxu0 %v12750_v10  ;;  %v10746_v22 = vld [vmem:[%s18594_s5 + $0x170] sm:$0xff] }
 0x2aa   : > { %v4388_v32 = vpop.f32.mrf.mxu0  ;;  %6468 = vmatpush2.msra.mxu0 %v10746_v22  ;;  %6602 = vmatprep.subr.mxu1 %v12750_v10 }
 0x2ab   : > { %v4626_v0 = vpop.f32.mrf.mxu1  ;;  %4741 = vst.msk [vmem:[#allocation4 + $0x19] sm:$0xff] %vm495_vm0, %v4724_v36  ;;  %v4727_v41 = vmax.f32 %v4711_v13, 0.0  ;;  %v4710_v39 = vadd.f32 %v15063_v42, %v4687_v18  ;;  %v4690_v45 = vadd.f32 %v12405_v35, %v4452_v34  ;;  %v4451_v49 = vadd.f32 %v4388_v32, %v4166_v26  ;;  %v5811_v36 = vld [vmem:[#allocation4 + $0x131] ss:$2 sm:$0x1]  ;;  %6469 = vmatprep.subr.mxu0 %v12750_v10 }
 0x2ac   : > { %v12360_v16 = vpop.f32.mrf.mxu0  ;;  %6470 = vmatpush2.msra.mxu0 %v10745_v55  ;;  %6603 = vmatpush2.msra.mxu1 %v6249_v7 }
 0x2ad   : > { %v12408_v12 = vpop.f32.mrf.mxu1  ;;  %4744 = vst.msk [vmem:[#allocation4 + $0x39] sm:$0xff] %vm495_vm0, %v4727_v41  ;;  %v4726_v20 = vmax.f32 %v4710_v39, 0.0  ;;  %v4713_v4 = vadd.f32 %v15063_v42, %v4690_v45  ;;  %v4689_v21 = vadd.f32 %v4626_v0, %v4451_v49  ;;  %v4454_v5 = vadd.f32 %v12360_v16, %v4181_v53  ;;  %v15179_v0 = vpop.permute.xlu0 %6119  ;;  %v6086_v49 = vld [vmem:[#allocation4 + $0x149] ss:$2 sm:$0x1]  ;;  %6471 = vmatprep.subr.mxu0 %v12750_v10 }
 0x2ae   : > { %v4398_v44 = vpop.f32.mrf.mxu0  ;;  %v4201_v53 = vadd.f32 %v14981_v15, %v14983_v17  ;;  %v6248_v15 = vld [vmem:[%s18594_s5 + $0x90] sm:$0xff]  ;;  %v4196_v17 = vadd.f32 %v14988_v25, %v14990_v1  ;;  %6472 = vmatpush2.msra.mxu0 %v10744_v31  ;;  %6604 = vmatprep.subr.mxu1 %v12750_v10 }
 0x2af   : > { %v4636_v19 = vpop.f32.mrf.mxu1  ;;  %4743 = vst.msk [vmem:[#allocation4 + $0x31] sm:$0xff] %vm495_vm0, %v4726_v20  ;;  %v4729_v38 = vmax.f32 %v4713_v4, 0.0  ;;  %v4712_v11 = vadd.f32 %v15063_v42, %v4689_v21  ;;  %v4692_v48 = vadd.f32 %v12408_v12, %v4454_v5  ;;  %v4453_v56 = vadd.f32 %v4398_v44, %v4176_v40  ;;  %6473 = vmatprep.subr.mxu0 %v12750_v10 }
 0x2b0   : > { %v12363_v57 = vpop.f32.mrf.mxu0  ;;  %v5914_v30 = vld [vmem:[#allocation4 + $0x28] ss:$2 sm:$0x1]  ;;  %6605 = vmatpush2.msra.mxu1 %v6248_v15  ;;  %6474 = vmatpush2.msra.mxu0 %v10743_v59  ;;  %v4211_v44 = vadd.f32 %v15001_v43, %v14999_v8  ;;  %v6246_v8 = vld [vmem:[%s18594_s5 + $0x80] sm:$0xff]  ;;  %v10741_v43 = vld [vmem:[%s18594_s5 + $0x148] sm:$0xff] }
 0x2b1   : > { %v12411_v27 = vpop.f32.mrf.mxu1  ;;  %4746 = vst.msk [vmem:[#allocation4 + $0x51] sm:$0xff] %vm495_vm0, %v4729_v38  ;;  %v4728_v2 = vmax.f32 %v4712_v11, 0.0  ;;  %v4715_v9 = vadd.f32 %v15063_v42, %v4692_v48  ;;  %v4691_v24 = vadd.f32 %v4636_v19, %v4453_v56  ;;  %v4456_v26 = vadd.f32 %v12363_v57, %v4191_v33  ;;  %5967 = vrot.lane.b32.xlu0 %v5914_v30, %s18601_s25  ;;  %v10742_v33 = vld [vmem:[%s18594_s5 + $0x150] sm:$0xff]  ;;  %v5815_v11 = vld [vmem:[#allocation4 + $0x161] ss:$2 sm:$0x1]  ;;  %v5849_v48 = vpop.permute.xlu0 %5848 }
 0x2b2   : > { %v4408_v60 = vpop.f32.mrf.mxu0  ;;  %v5912_v37 = vld [vmem:[#allocation4 + $0x18] ss:$2 sm:$0xff]  ;;  %v6060_v16 = vld [vmem:[#allocation4 + $0x19] ss:$2 sm:$0xff]  ;;  %6606 = vmatprep.subr.mxu1 %v12750_v10  ;;  %6475 = vmatprep.subr.mxu0 %v12750_v10 }
 0x2b3   : > { %v4646_v35 = vpop.f32.mrf.mxu1  ;;  %4745 = vst.msk [vmem:[#allocation4 + $0x49] sm:$0xff] %vm495_vm0, %v4728_v2  ;;  %v4731_v13 = vmax.f32 %v4715_v9, 0.0  ;;  %v4714_v18 = vadd.f32 %v15063_v42, %v4691_v24  ;;  %v4694_v34 = vadd.f32 %v12411_v27, %v4456_v26  ;;  %v4455_v29 = vadd.f32 %v4408_v60, %v4186_v51  ;;  %5965 = vrot.lane.b32.xlu1 %v5912_v37, %s18601_s25 }
 0x2b4   : > { %v5737_v32 = vld [vmem:[#allocation4 + $0x40] ss:$2 sm:$0x1]  ;;  %6476 = vmatpush2.msra.mxu0 %v10742_v33  ;;  %v4221_v60 = vadd.f32 %v15025_v63, %v15023_v62 }
 0x2b5   : > { %4748 = vst.msk [vmem:[#allocation4 + $0x69] sm:$0xff] %vm495_vm0, %v4731_v13  ;;  %v4730_v6 = vmax.f32 %v4714_v18, 0.0  ;;  %v4717_v41 = vadd.f32 %v15063_v42, %v4694_v34  ;;  %v4693_v39 = vadd.f32 %v4646_v35, %v4455_v29  ;;  %5864 = vrot.lane.b32.xlu0 %v5811_v36, %s12753_s30  ;;  %6477 = vmatprep.subr.mxu0 %v12750_v10  ;;  %v15243_v13 = vpop.permute.xlu0 %6123 }
 0x2b6   : > { %v12366_v45 = vpop.f32.mrf.mxu0  ;;  %5769 = vst.msk [vmem:[#allocation5 + $0x30] sm:$0x1] %vm3743_vm12, %v5737_v32  ;;  %v12414_v40 = vpop.f32.mrf.mxu1  ;;  %v5735_v12 = vld [vmem:[#allocation4 + $0x30] ss:$2 sm:$0xff]  ;;  %v5789_v38 = vld [vmem:[#allocation4 + $0x31] ss:$2 sm:$0xff]  ;;  %6478 = vmatpush2.msra.mxu0 %v10741_v43  ;;  %v4216_v34 = vadd.f32 %v15038_v47, %v15036_v52 }
 0x2b7   : > { %v4458_v28 = vadd.f32 %v12366_v45, %v4201_v53  ;;  %5897 = vst.msk [vmem:[#allocation5 + $0x30] sm:$0x1] %vm5894_vm13, %v15133_v23  ;;  %v4733_v20 = vmax.f32 %v4717_v41, 0.0  ;;  %v4716_v4 = vadd.f32 %v15063_v42, %v4693_v39  ;;  %6113 = vrot.lane.b32.xlu1 %v6060_v16, %s12754_s13  ;;  %v6247_v23 = vld [vmem:[%s18594_s5 + $0x88] sm:$0xff]  ;;  %6479 = vmatprep.subr.mxu0 %v12750_v10 }
 0x2b8   : > { %4747 = vst.msk [vmem:[#allocation4 + $0x61] sm:$0xff] %vm495_vm0, %v4730_v6  ;;  %v4418_v21 = vpop.f32.mrf.mxu0  ;;  %5768 = vst.msk [vmem:[#allocation5 + $0x20] sm:$0xff] %vm495_vm0, %v5735_v12  ;;  %v4656_v5 = vpop.f32.mrf.mxu1  ;;  %6607 = vmatpush2.msra.mxu1 %v6247_v23  ;;  %v5918_v36 = vld [vmem:[#allocation4 + $0x58] ss:$2 sm:$0x1]  ;;  %6480 = vmatpush2.msra.mxu0 %v10740_v58 }
 0x2b9   : > { %v4696_v25 = vadd.f32 %v12414_v40, %v4458_v28  ;;  %v4457_v1 = vadd.f32 %v4418_v21, %v4196_v17  ;;  %4750 = vst.msk [vmem:[#allocation4 + $0x81] sm:$0xff] %vm495_vm0, %v4733_v20  ;;  %v4732_v61 = vmax.f32 %v4716_v4, 0.0  ;;  %6139 = vrot.lane.b32.xlu0 %v6086_v49, %s12754_s13  ;;  %6608 = vmatprep.subr.mxu1 %v12750_v10  ;;  %v5853_v17 = vpop.permute.xlu0 %5852 }
 0x2ba   : > { %v5916_v54 = vld [vmem:[#allocation4 + $0x48] ss:$2 sm:$0xff]  ;;  %6609 = vmatpush2.msra.mxu1 %v6246_v8  ;;  %6717 = vmatprep.subr.mxu0 %v12750_v10  ;;  %v6064_v31 = vld [vmem:[#allocation4 + $0x49] ss:$2 sm:$0xff] }
 0x2bb   : > { %v4719_v19 = vadd.f32 %v15063_v42, %v4696_v25  ;;  %v4695_v3 = vadd.f32 %v4656_v5, %v4457_v1  ;;  %4749 = vst.msk [vmem:[#allocation4 + $0x79] sm:$0xff] %vm495_vm0, %v4732_v61  ;;  %5842 = vrot.lane.b32.xlu1 %v5789_v38, %s12753_s30  ;;  %6991 = vmatprep.subr.mxu1 %v12750_v10 }
 0x2bc   : > { %v12369_v56 = vpop.f32.mrf.mxu0  ;;  %v12417_v30 = vpop.f32.mrf.mxu1  ;;  %v5741_v22 = vld [vmem:[#allocation4 + $0x70] ss:$2 sm:$0x1] }
 0x2bd   : > { %v4735_v51 = vmax.f32 %v4719_v19, 0.0  ;;  %v4718_v57 = vadd.f32 %v15063_v42, %v4695_v3  ;;  %v4460_v27 = vadd.f32 %v12369_v56, %v4211_v44  ;;  %5868 = vrot.lane.b32.xlu0 %v5815_v11, %s12753_s30  ;;  %5771 = vst.msk [vmem:[#allocation5 + $0x50] sm:$0x1] %vm3743_vm12, %v5741_v22  ;;  %v15265_v4 = vpop.permute.xlu0 %6127 }
 0x2be   : > { %v4428_v2 = vpop.f32.mrf.mxu0  ;;  %v4666_v26 = vpop.f32.mrf.mxu1  ;;  %5899 = vst.msk [vmem:[#allocation5 + $0x50] sm:$0x1] %vm5894_vm13, %v5849_v48 }
 0x2bf   : > { %4752 = vst.msk [vmem:[#allocation4 + $0x99] sm:$0xff] %vm495_vm0, %v4735_v51  ;;  %v4734_v14 = vmax.f32 %v4718_v57, 0.0  ;;  %v4698_v9 = vadd.f32 %v12417_v30, %v4460_v27  ;;  %v4459_v24 = vadd.f32 %v4428_v2, %v4206_v50  ;;  %v5739_v55 = vld [vmem:[#allocation4 + $0x60] ss:$2 sm:$0xff]  ;;  %5969 = vrot.lane.b32.xlu1 %v5916_v54, %s18601_s25  ;;  %v5793_v15 = vld [vmem:[#allocation4 + $0x61] ss:$2 sm:$0xff] }
 0x2c0   : > { %5770 = vst.msk [vmem:[#allocation5 + $0x40] sm:$0xff] %vm495_vm0, %v5739_v55  ;;  %v5922_v39 = vld [vmem:[#allocation4 + $0x88] ss:$2 sm:$0x1] }
 0x2c1   : > { %4751 = vst.msk [vmem:[#allocation4 + $0x91] sm:$0xff] %vm495_vm0, %v4734_v14  ;;  %v4721_v35 = vadd.f32 %v15063_v42, %v4698_v9  ;;  %v4697_v37 = vadd.f32 %v4666_v26, %v4459_v24  ;;  %5971 = vrot.lane.b32.xlu0 %v5918_v36, %s18601_s25  ;;  %v5857_v5 = vpop.permute.xlu0 %5856 }
 0x2c2   : > { %v12372_v18 = vpop.f32.mrf.mxu0  ;;  %v12420_v7 = vpop.f32.mrf.mxu1  ;;  %v5920_v59 = vld [vmem:[#allocation4 + $0x78] ss:$2 sm:$0xff]  ;;  %v6068_v21 = vld [vmem:[#allocation4 + $0x79] ss:$2 sm:$0xff] }
 0x2c3   : > { %v4737_v62 = vmax.f32 %v4721_v35, 0.0  ;;  %v4720_v63 = vadd.f32 %v15063_v42, %v4697_v37  ;;  %v4462_v29 = vadd.f32 %v12372_v18, %v4221_v60  ;;  %6117 = vrot.lane.b32.xlu1 %v6064_v31, %s12754_s13 }
 0x2c4   : > { %v4438_v53 = vpop.f32.mrf.mxu0  ;;  %v4676_v45 = vpop.f32.mrf.mxu1 }
 0x2c5   : > { %4754 = vst.msk [vmem:[#allocation4 + $0xb1] sm:$0xff] %vm495_vm0, %v4737_v62  ;;  %v4736_v32 = vmax.f32 %v4720_v63, 0.0  ;;  %v4700_v6 = vadd.f32 %v12420_v7, %v4462_v29  ;;  %v4461_v41 = vadd.f32 %v4438_v53, %v4216_v34  ;;  %5975 = vrot.lane.b32.xlu0 %v5922_v39, %s18601_s25 }
 0x2c6   : > { %v5745_v49 = vld [vmem:[#allocation4 + $0xa0] ss:$2 sm:$0x1] }
 0x2c7   : > { %4753 = vst.msk [vmem:[#allocation4 + $0xa9] sm:$0xff] %vm495_vm0, %v4736_v32  ;;  %v4723_v52 = vadd.f32 %v15063_v42, %v4700_v6  ;;  %v4699_v47 = vadd.f32 %v4676_v45, %v4461_v41  ;;  %5846 = vrot.lane.b32.xlu1 %v5793_v15, %s12753_s30 }
 0x2c8   : > { %5773 = vst.msk [vmem:[#allocation5 + $0x70] sm:$0x1] %vm3743_vm12, %v5745_v49  ;;  %v5743_v28 = vld [vmem:[#allocation4 + $0x90] ss:$2 sm:$0xff]  ;;  %v5797_v1 = vld [vmem:[#allocation4 + $0x91] ss:$2 sm:$0xff]  ;;  %v12447_v44 = vpop.f32.mrf.mxu0  ;;  %v12495_v19 = vpop.f32.mrf.mxu1 }
 0x2c9   : > { %5901 = vst.msk [vmem:[#allocation5 + $0x70] sm:$0x1] %vm5894_vm13, %v5853_v17  ;;  %v4739_v40 = vmax.f32 %v4723_v52, 0.0  ;;  %v4722_v16 = vadd.f32 %v15063_v42, %v4699_v47  ;;  %v5127_v31 = vadd.f32 %v12495_v19, %v12447_v44  ;;  %v15307_v17 = vpop.permute.xlu0 %6131 }
 0x2ca   : > { %5772 = vst.msk [vmem:[#allocation5 + $0x60] sm:$0xff] %vm495_vm0, %v5743_v28  ;;  %v4928_v38 = vpop.f32.mrf.mxu0  ;;  %v5121_v11 = vpop.f32.mrf.mxu1 }
 0x2cb   : > { %4756 = vst.msk [vmem:[#allocation4 + $0xc9] sm:$0xff] %vm495_vm0, %v4739_v40  ;;  %v4738_v12 = vmax.f32 %v4722_v16, 0.0  ;;  %5973 = vrot.lane.b32.xlu1 %v5920_v59, %s18601_s25  ;;  %v5122_v6 = vadd.f32 %v5121_v11, %v4928_v38 }
 0x2cc   : > { %v5926_v20 = vld [vmem:[#allocation4 + $0xb8] ss:$2 sm:$0x1]  ;;  %v12498_v48 = vpop.f32.mrf.mxu1  ;;  %v12450_v56 = vpop.f32.mrf.mxu0 }
 0x2cd   : > { %4755 = vst.msk [vmem:[#allocation4 + $0xc1] sm:$0xff] %vm495_vm0, %v4738_v12  ;;  %5979 = vrot.lane.b32.xlu0 %v5926_v20, %s18601_s25  ;;  %v5137_v49 = vadd.f32 %v12498_v48, %v12450_v56 }
 0x2ce   : > { %v5924_v61 = vld [vmem:[#allocation4 + $0xa8] ss:$2 sm:$0xff]  ;;  %v6072_v33 = vld [vmem:[#allocation4 + $0xa9] ss:$2 sm:$0xff]  ;;  %v5131_v8 = vpop.f32.mrf.mxu1  ;;  %v4938_v43 = vpop.f32.mrf.mxu0 }
 0x2cf   : > { %6121 = vrot.lane.b32.xlu1 %v6068_v21, %s12754_s13  ;;  %v5132_v40 = vadd.f32 %v5131_v8, %v4938_v43  ;;  %v15313_v8 = vpop.permute.xlu0 %5860 }
 0x2d2   : > { %v5749_v25 = vld [vmem:[#allocation4 + $0xd0] ss:$2 sm:$0x1] }
 0x2d3   : > { %5775 = vst.msk [vmem:[#allocation5 + $0x90] sm:$0x1] %vm3743_vm12, %v5749_v25  ;;  %5850 = vrot.lane.b32.xlu1 %v5797_v1, %s12753_s30 }
 0x2d4   : > { %5903 = vst.msk [vmem:[#allocation5 + $0x90] sm:$0x1] %vm5894_vm13, %v5857_v5  ;;  %v5747_v23 = vld [vmem:[#allocation4 + $0xc0] ss:$2 sm:$0xff]  ;;  %v5801_v3 = vld [vmem:[#allocation4 + $0xc1] ss:$2 sm:$0xff] }
 0x2d5   : > { %5774 = vst.msk [vmem:[#allocation5 + $0x80] sm:$0xff] %vm495_vm0, %v5747_v23  ;;  %v12453_v50 = vpop.f32.mrf.mxu0 }
 0x2d6   : > { %v12501_v51 = vpop.f32.mrf.mxu1 }
 0x2d7   : > { %5977 = vrot.lane.b32.xlu1 %v5924_v61, %s18601_s25  ;;  %v4948_v57 = vpop.f32.mrf.mxu0  ;;  %v5147_v21 = vadd.f32 %v12501_v51, %v12453_v50 }
 0x2d8   : > { %v5141_v27 = vpop.f32.mrf.mxu1 }
 0x2d9   : > { %v12456_v30 = vpop.f32.mrf.mxu0  ;;  %v5142_v44 = vadd.f32 %v5141_v27, %v4948_v57 }
 0x2da   : > { %v12504_v22 = vpop.f32.mrf.mxu1 }
 0x2db   : > { %6125 = vrot.lane.b32.xlu1 %v6072_v33, %s12754_s13  ;;  %v4958_v2 = vpop.f32.mrf.mxu0  ;;  %v5157_v43 = vadd.f32 %v12504_v22, %v12456_v30 }
 0x2dc   : > { %v5151_v58 = vpop.f32.mrf.mxu1 }
 0x2df   : > { %5854 = vrot.lane.b32.xlu1 %v5801_v3, %s12753_s30 }
 0x2e4   : > { %v15275_v14 = vpop.f32.mrf.mxu1  ;;  %v15277_v9 = vpop.f32.mrf.mxu0 }
 0x2e5   : > { %v5167_v30 = vadd.f32 %v15275_v14, %v15277_v9 }
 0x2e6   : > { %v15279_v24 = vpop.f32.mrf.mxu1  ;;  %v15281_v26 = vpop.f32.mrf.mxu0 }
 0x2ff   : > { %v15283_v54 = vpop.f32.mrf.mxu1  ;;  %v15285_v55 = vpop.f32.mrf.mxu0 }
 0x301   : > { %v15287_v60 = vpop.f32.mrf.mxu1  ;;  %v15289_v35 = vpop.f32.mrf.mxu0 }
 0x306   : > { %v15291_v37 = vpop.f32.mrf.mxu0 }
 0x307   : > { %v15293_v36 = vpop.f32.mrf.mxu1 }
 0x308   : > { %v15297_v34 = vpop.f32.mrf.mxu0 }
 0x309   : > { %v15295_v18 = vpop.f32.mrf.mxu1 }
 0x30b   : > { %v15299_v62 = vpop.f32.mrf.mxu1  ;;  %v15301_v63 = vpop.f32.mrf.mxu0 }
 0x30d   : > { %v15303_v29 = vpop.f32.mrf.mxu1  ;;  %v15305_v7 = vpop.f32.mrf.mxu0 }
 0x30f   : > { %v12591_v53 = vpop.f32.mrf.mxu1  ;;  %v12543_v32 = vpop.f32.mrf.mxu0 }
 0x310   : > { %v5423_v41 = vadd.f32 %v12543_v32, %v5127_v31  ;;  %v5152_v32 = vadd.f32 %v5151_v58, %v4958_v2 }
 0x311   : > { %v5580_v39 = vpop.f32.mrf.mxu1  ;;  %v5343_v45 = vpop.f32.mrf.mxu0 }
 0x312   : > { %v5660_v52 = vadd.f32 %v12591_v53, %v5423_v41  ;;  %v5422_v47 = vadd.f32 %v5343_v45, %v5122_v6 }
 0x313   : > { %v12594_v15 = vpop.f32.mrf.mxu1  ;;  %v12546_v28 = vpop.f32.mrf.mxu0 }
 0x314   : > { %v5683_v16 = vadd.f32 %v15063_v42, %v5660_v52  ;;  %v5659_v12 = vadd.f32 %v5580_v39, %v5422_v47  ;;  %v5425_v59 = vadd.f32 %v12546_v28, %v5137_v49 }
 0x315   : > { %v5590_v20 = vpop.f32.mrf.mxu1  ;;  %v5353_v25 = vpop.f32.mrf.mxu0 }
 0x316   : > { %v5699_v1 = vmax.f32 %v5683_v16, 0.0  ;;  %v5682_v5 = vadd.f32 %v15063_v42, %v5659_v12  ;;  %v5662_v23 = vadd.f32 %v12594_v15, %v5425_v59  ;;  %v5424_v61 = vadd.f32 %v5353_v25, %v5132_v40  ;;  %v15323_v40 = vpop.permute.xlu0 %6135 }
 0x317   : > { %v12597_v33 = vpop.f32.mrf.mxu1  ;;  %v12549_v19 = vpop.f32.mrf.mxu0  ;;  %v5162_v16 = vadd.f32 %v15279_v24, %v15281_v26 }
 0x318   : > { %5716 = vst.msk [vmem:[#allocation4 + $0xe1] sm:$0xff] %vm495_vm0, %v5699_v1  ;;  %v5698_v3 = vmax.f32 %v5682_v5, 0.0  ;;  %v5685_v38 = vadd.f32 %v15063_v42, %v5662_v23  ;;  %v5661_v11 = vadd.f32 %v5590_v20, %v5424_v61  ;;  %v5427_v48 = vadd.f32 %v12549_v19, %v5147_v21 }
 0x319   : > { %v5600_v56 = vpop.f32.mrf.mxu1  ;;  %v5363_v50 = vpop.f32.mrf.mxu0  ;;  %v5177_v1 = vadd.f32 %v15283_v54, %v15285_v55  ;;  %v5172_v19 = vadd.f32 %v15287_v60, %v15289_v35 }
 0x31a   : > { %5715 = vst.msk [vmem:[#allocation4 + $0xd9] sm:$0xff] %vm495_vm0, %v5698_v3  ;;  %v5701_v51 = vmax.f32 %v5685_v38, 0.0  ;;  %v5684_v31 = vadd.f32 %v15063_v42, %v5661_v11  ;;  %v5664_v53 = vadd.f32 %v12597_v33, %v5427_v48  ;;  %v5426_v57 = vadd.f32 %v5363_v50, %v5142_v44 }
 0x31b   : > { %v12600_v27 = vpop.f32.mrf.mxu1  ;;  %v12552_v6 = vpop.f32.mrf.mxu0  ;;  %v5187_v50 = vadd.f32 %v15293_v36, %v15291_v37 }
 0x31c   : > { %5718 = vst.msk [vmem:[#allocation4 + $0xf9] sm:$0xff] %vm495_vm0, %v5701_v51  ;;  %v5700_v41 = vmax.f32 %v5684_v31, 0.0  ;;  %v5687_v39 = vadd.f32 %v15063_v42, %v5664_v53  ;;  %v5663_v45 = vadd.f32 %v5600_v56, %v5426_v57  ;;  %v5429_v49 = vadd.f32 %v12552_v6, %v5157_v43 }
 0x31d   : > { %v5610_v52 = vpop.f32.mrf.mxu1  ;;  %v5373_v22 = vpop.f32.mrf.mxu0 }
 0x31e   : > { %5717 = vst.msk [vmem:[#allocation4 + $0xf1] sm:$0xff] %vm495_vm0, %v5700_v41  ;;  %v5703_v47 = vmax.f32 %v5687_v39, 0.0  ;;  %v5686_v15 = vadd.f32 %v15063_v42, %v5663_v45  ;;  %v5666_v28 = vadd.f32 %v12600_v27, %v5429_v49  ;;  %v5428_v2 = vadd.f32 %v5373_v22, %v5152_v32 }
 0x31f   : > { %v12603_v58 = vpop.f32.mrf.mxu1  ;;  %v12555_v12 = vpop.f32.mrf.mxu0  ;;  %v5930_v59 = vld [vmem:[#allocation4 + $0xe8] ss:$2 sm:$0x1] }
 0x320   : > { %5720 = vst.msk [vmem:[#allocation4 + $0x111] sm:$0xff] %vm495_vm0, %v5703_v47  ;;  %v5702_v20 = vmax.f32 %v5686_v15, 0.0  ;;  %v5689_v14 = vadd.f32 %v15063_v42, %v5666_v28  ;;  %v5665_v9 = vadd.f32 %v5610_v52, %v5428_v2  ;;  %v5431_v21 = vadd.f32 %v12555_v12, %v5167_v30  ;;  %5983 = vrot.lane.b32.xlu0 %v5930_v59, %s18601_s25 }
 0x321   : > { %v5620_v25 = vpop.f32.mrf.mxu1  ;;  %v5383_v5 = vpop.f32.mrf.mxu0  ;;  %v5928_v23 = vld [vmem:[#allocation4 + $0xd8] ss:$2 sm:$0xff]  ;;  %v6076_v35 = vld [vmem:[#allocation4 + $0xd9] ss:$2 sm:$0xff]  ;;  %v5192_v2 = vadd.f32 %v15303_v29, %v15305_v7 }
 0x322   : > { %5719 = vst.msk [vmem:[#allocation4 + $0x109] sm:$0xff] %vm495_vm0, %v5702_v20  ;;  %v5705_v24 = vmax.f32 %v5689_v14, 0.0  ;;  %v5688_v26 = vadd.f32 %v15063_v42, %v5665_v9  ;;  %v5668_v61 = vadd.f32 %v12603_v58, %v5431_v21  ;;  %v5430_v33 = vadd.f32 %v5383_v5, %v5162_v16  ;;  %5981 = vrot.lane.b32.xlu1 %v5928_v23, %s18601_s25 }
 0x323   : > { %v12606_v44 = vpop.f32.mrf.mxu1  ;;  %v5753_v3 = vld [vmem:[#allocation4 + $0x100] ss:$2 sm:$0x1]  ;;  %v12558_v38 = vpop.f32.mrf.mxu0 }
 0x324   : > { %5722 = vst.msk [vmem:[#allocation4 + $0x129] sm:$0xff] %vm495_vm0, %v5705_v24  ;;  %v5704_v54 = vmax.f32 %v5688_v26, 0.0  ;;  %v5691_v55 = vadd.f32 %v15063_v42, %v5668_v61  ;;  %v5667_v11 = vadd.f32 %v5620_v25, %v5430_v33  ;;  %v5433_v48 = vadd.f32 %v12558_v38, %v5177_v1  ;;  %v5968_v56 = vpop.permute.xlu0 %5967 }
 0x325   : > { %5777 = vst.msk [vmem:[#allocation5 + $0xb0] sm:$0x1] %vm3743_vm12, %v5753_v3  ;;  %v5630_v43 = vpop.f32.mrf.mxu1  ;;  %v5393_v60 = vpop.f32.mrf.mxu0  ;;  %v5751_v51 = vld [vmem:[#allocation4 + $0xf0] ss:$2 sm:$0xff]  ;;  %v5805_v52 = vld [vmem:[#allocation4 + $0xf1] ss:$2 sm:$0xff] }
 0x326   : > { %5905 = vst.msk [vmem:[#allocation5 + $0xb0] sm:$0x1] %vm5894_vm13, %v15313_v8  ;;  %v5707_v31 = vmax.f32 %v5691_v55, 0.0  ;;  %v5690_v53 = vadd.f32 %v15063_v42, %v5667_v11  ;;  %v5670_v57 = vadd.f32 %v12606_v44, %v5433_v48  ;;  %v5432_v37 = vadd.f32 %v5393_v60, %v5172_v19  ;;  %6129 = vrot.lane.b32.xlu1 %v6076_v35, %s12754_s13  ;;  %v5966_v36 = vpop.permute.xlu1 %5965 }
 0x327   : > { %6024 = vst.msk [vmem:[#allocation5 + $0x10] sm:$0x1] %vm6023_vm15, %v5968_v56  ;;  %v5182_v8 = vadd.f32 %v15295_v18, %v15297_v34  ;;  %v12609_v27 = vpop.f32.mrf.mxu1  ;;  %v12561_v32 = vpop.f32.mrf.mxu0  ;;  %v5934_v6 = vld [vmem:[#allocation4 + $0x118] ss:$2 sm:$0x1]  ;;  %v5197_v18 = vadd.f32 %v15299_v62, %v15301_v63 }
 0x328   : > { %6026 = vst.msk [vmem:[#allocation5 + $0x18] sm:$0x1] %vm6025_vm1, %v5968_v56  ;;  %v5693_v41 = vadd.f32 %v15063_v42, %v5670_v57  ;;  %v5669_v39 = vadd.f32 %v5630_v43, %v5432_v37  ;;  %v5435_v45 = vadd.f32 %v12561_v32, %v5187_v50  ;;  %v5865_v49 = vpop.permute.xlu0 %5864  ;;  %5987 = vrot.lane.b32.xlu0 %v5934_v6, %s18601_s25  ;;  %v10810_v6 = vld [vmem:[%s18594_s5 + $0x2b0] sm:$0xff] }
 0x329   : > { %5721 = vst.msk [vmem:[#allocation4 + $0x121] sm:$0xff] %vm495_vm0, %v5704_v54  ;;  %5776 = vst.msk [vmem:[#allocation5 + $0xa0] sm:$0xff] %vm495_vm0, %v5751_v51  ;;  %v5403_v34 = vpop.f32.mrf.mxu0  ;;  %v5640_v16 = vpop.f32.mrf.mxu1  ;;  %v5932_v7 = vld [vmem:[#allocation4 + $0x108] ss:$2 sm:$0xff]  ;;  %v6080_v55 = vld [vmem:[#allocation4 + $0x109] ss:$2 sm:$0xff] }
 0x32a   : > { %6170 = vst.msk [vmem:[#allocation5 + $0x18] sm:$0x1] %vm6169_vm2, %v15093_v46  ;;  %v5706_v46 = vmax.f32 %v5690_v53, 0.0  ;;  %v5709_v30 = vmax.f32 %v5693_v41, 0.0  ;;  %v5692_v22 = vadd.f32 %v15063_v42, %v5669_v39  ;;  %v5672_v47 = vadd.f32 %v12609_v27, %v5435_v45  ;;  %5858 = vrot.lane.b32.xlu1 %v5805_v52, %s12753_s30  ;;  %v6114_v28 = vpop.permute.xlu1 %6113  ;;  %v10779_v45 = vld [vmem:[%s18594_s5 + $0x1f8] sm:$0xff] }
 0x32b   : > { %6020 = vst.msk [vmem:[#allocation5] sm:$0xff] %vm6019_vm3, %v5966_v36  ;;  %v5434_v15 = vadd.f32 %v5403_v34, %v5182_v8  ;;  %v5757_v58 = vld [vmem:[#allocation4 + $0x130] ss:$2 sm:$0x1]  ;;  %v12564_v62 = vpop.f32.mrf.mxu0  ;;  %v10778_v34 = vld [vmem:[%s18594_s5 + $0x1f0] sm:$0xff] }
 0x32c   : > { %6022 = vst.msk [vmem:[#allocation5 + $0x8] sm:$0xff] %vm6021_vm4, %v5966_v36  ;;  %v5708_v63 = vmax.f32 %v5692_v22, 0.0  ;;  %v5695_v12 = vadd.f32 %v15063_v42, %v5672_v47  ;;  %v5437_v20 = vadd.f32 %v12564_v62, %v5197_v18  ;;  %v15370_v14 = vpop.permute.xlu0 %6139  ;;  %v12612_v29 = vpop.f32.mrf.mxu1  ;;  %v10809_v18 = vld [vmem:[%s18594_s5 + $0x2a8] sm:$0xff]  ;;  %v10808_v47 = vld [vmem:[%s18594_s5 + $0x2a0] sm:$0xff] }
 0x32d   : > { %5724 = vst.msk [vmem:[#allocation4 + $0x141] sm:$0xff] %vm495_vm0, %v5707_v31  ;;  %5723 = vst.msk [vmem:[#allocation4 + $0x139] sm:$0xff] %vm495_vm0, %v5706_v46  ;;  %v5671_v59 = vadd.f32 %v5640_v16, %v5434_v15  ;;  %v5413_v9 = vpop.f32.mrf.mxu0  ;;  %v10811_v31 = vld [vmem:[%s18594_s5 + $0x2b8] sm:$0xff]  ;;  %v10777_v15 = vld [vmem:[%s18594_s5 + $0x1e8] sm:$0xff] }
 0x32e   : > { %6168 = vst.msk [vmem:[#allocation5 + $0x8] sm:$0xff] %vm6167_vm5, %v6114_v28  ;;  %v5711_v21 = vmax.f32 %v5695_v12, 0.0  ;;  %v5436_v1 = vadd.f32 %v5413_v9, %v5192_v2  ;;  %v5674_v5 = vadd.f32 %v12612_v29, %v5437_v20  ;;  %5985 = vrot.lane.b32.xlu1 %v5932_v7, %s18601_s25  ;;  %v5843_v23 = vpop.permute.xlu1 %5842  ;;  %v5650_v61 = vpop.f32.mrf.mxu1  ;;  %v6256_v48 = vld [vmem:[#allocation5 + $0x10] sm:$0x1]  ;;  %v10807_v9 = vld [vmem:[%s18594_s5 + $0x298] sm:$0xff] }
 0x32f   : > { %5726 = vst.msk [vmem:[#allocation4 + $0x159] sm:$0xff] %vm495_vm0, %v5709_v30  ;;  %5725 = vst.msk [vmem:[#allocation4 + $0x151] sm:$0xff] %vm495_vm0, %v5708_v63  ;;  %v5694_v25 = vadd.f32 %v15063_v42, %v5671_v59  ;;  %v6320_v8 = vrot.slane %v6256_v48, 1  ;;  %v6090_v30 = vld [vmem:[#allocation4 + $0x179] ss:$2 sm:$0x1] }
 0x330   : > { %5779 = vst.msk [vmem:[#allocation5 + $0xd0] sm:$0x1] %vm3743_vm12, %v5757_v58  ;;  %v5755_v26 = vld [vmem:[#allocation4 + $0x120] ss:$2 sm:$0xff]  ;;  %v5697_v3 = vadd.f32 %v15063_v42, %v5674_v5  ;;  %v5673_v38 = vadd.f32 %v5650_v61, %v5436_v1  ;;  %v5869_v54 = vpop.permute.xlu0 %5868  ;;  %v5809_v27 = vld [vmem:[#allocation4 + $0x121] ss:$2 sm:$0xff] }
 0x331   : > { %5907 = vst.msk [vmem:[#allocation5 + $0xd0] sm:$0x1] %vm5894_vm13, %v5865_v49  ;;  %v6257_v24 = vld [vmem:[#allocation5 + $0x18] sm:$0x1]  ;;  %v5710_v19 = vmax.f32 %v5694_v25, 0.0 }
 0x332   : > { %5896 = vst.msk [vmem:[#allocation5 + $0x20] sm:$0xff] %vm5892_vm14, %v5843_v23  ;;  %v6254_v44 = vld [vmem:[#allocation5] sm:$0xfe]  ;;  %v6323_v11 = vrot.slane %v6257_v24, 1  ;;  %v5713_v56 = vmax.f32 %v5697_v3, 0.0  ;;  %v5696_v43 = vadd.f32 %v15063_v42, %v5673_v38  ;;  %6133 = vrot.lane.b32.xlu1 %v6080_v55, %s12754_s13  ;;  %v5970_v50 = vpop.permute.xlu1 %5969  ;;  %v10774_v48 = vld [vmem:[%s18594_s5 + $0x1d0] sm:$0xff] }
 0x333   : > { %5778 = vst.msk [vmem:[#allocation5 + $0xc0] sm:$0xff] %vm495_vm0, %v5755_v26  ;;  %5728 = vst.msk [vmem:[#allocation4 + $0x171] sm:$0xff] %vm495_vm0, %v5711_v21  ;;  %v6319_v51 = vrot.slane %v6254_v44, 1  ;;  %v6214_v57 = vld [vmem:[#allocation5] sm:$0xff]  ;;  %v10776_v26 = vld [vmem:[%s18594_s5 + $0x1e0] sm:$0xff] }
 0x334   : > { %v5938_v33 = vld [vmem:[#allocation4 + $0x148] ss:$2 sm:$0x1]  ;;  %5727 = vst.msk [vmem:[#allocation4 + $0x169] sm:$0xff] %vm495_vm0, %v5710_v19  ;;  %5730 = vst.msk [vmem:[#allocation4 + $0x189] sm:$0xff] %vm495_vm0, %v5713_v56  ;;  %v5712_v37 = vmax.f32 %v5696_v43, 0.0  ;;  %v5972_v36 = vpop.permute.xlu0 %5971 }
 0x335   : > { %5991 = vrot.lane.b32.xlu0 %v5938_v33, %s18601_s25  ;;  %v6215_v60 = vld [vmem:[#allocation5 + $0x8] sm:$0xff]  ;;  %6027 = vst.msk [vmem:[#allocation5 + $0x20] sm:$0xff] %vm6019_vm3, %v5970_v50  ;;  %v6321_v39 = vsel %vm6318_vm8, %v6319_v51, %v6320_v8  ;;  %v5819_v24 = vld [vmem:[#allocation4 + $0x191] ss:$2 sm:$0x1]  ;;  %v10773_v51 = vld [vmem:[%s18594_s5 + $0x1c8] sm:$0xff] }
 0x336   : > { %v6255_v35 = vld [vmem:[#allocation5 + $0x8] sm:$0xfe]  ;;  %v5761_v53 = vld [vmem:[#allocation4 + $0x160] ss:$2 sm:$0x1]  ;;  %6028 = vst.msk [vmem:[#allocation5 + $0x28] sm:$0xff] %vm6021_vm4, %v5970_v50  ;;  %10756 = vmatprep.mubr.msk.f32.mxu1 %vm6400_vm7, %v6215_v60  ;;  %5862 = vrot.lane.b32.xlu1 %v5809_v27, %s12753_s30  ;;  %v6118_v41 = vpop.permute.xlu1 %6117 }
 0x337   : > { %v6322_v42 = vrot.slane %v6255_v35, 1  ;;  %5781 = vst.msk [vmem:[#allocation5 + $0xf0] sm:$0x1] %vm3743_vm12, %v5761_v53  ;;  %6611 = vmatmul.mubr.f32.vlgmr.msra.gmra.mxu1 %v6214_v57  ;;  %v5759_v46 = vld [vmem:[#allocation4 + $0x150] ss:$2 sm:$0xff] }
 0x338   : > { %5909 = vst.msk [vmem:[#allocation5 + $0xf0] sm:$0x1] %vm5894_vm13, %v5869_v54  ;;  %6992 = vmatpush1.msra.mxu1 %v10811_v31  ;;  %v5936_v52 = vld [vmem:[#allocation4 + $0x138] ss:$2 sm:$0xff]  ;;  %v6084_v2 = vld [vmem:[#allocation4 + $0x139] ss:$2 sm:$0xff] }
 0x339   : > { %6029 = vst.msk [vmem:[#allocation5 + $0x30] sm:$0x1] %vm6023_vm15, %v5972_v36  ;;  %v6324_v32 = vsel %vm6318_vm8, %v6322_v42, %v6323_v11  ;;  %6993 = vmatprep.subr.mxu1 %v12750_v10  ;;  %v5813_v5 = vld [vmem:[#allocation4 + $0x151] ss:$2 sm:$0xff]  ;;  %v10805_v54 = vld [vmem:[%s18594_s5 + $0x288] sm:$0xff] }
 0x33a   : > { %6030 = vst.msk [vmem:[#allocation5 + $0x38] sm:$0x1] %vm6025_vm1, %v5972_v36  ;;  %10748 = vmatprep.mubr.msk.f32.mxu0 %vm6400_vm7, %v6324_v32  ;;  %v5942_v49 = vld [vmem:[#allocation4 + $0x178] ss:$2 sm:$0x1]  ;;  %6994 = vmatpush1.msra.mxu1 %v10810_v6  ;;  %v5847_v22 = vpop.permute.xlu1 %5846  ;;  %v10775_v44 = vld [vmem:[%s18594_s5 + $0x1d8] sm:$0xff] }
 0x33b   : > { %5729 = vst.msk [vmem:[#allocation4 + $0x181] sm:$0xff] %vm495_vm0, %v5712_v37  ;;  %5780 = vst.msk [vmem:[#allocation5 + $0xe0] sm:$0xff] %vm495_vm0, %v5759_v46  ;;  %6482 = vmatmul.mubr.f32.vlgmr.msra.gmra.mxu0 %v6321_v39  ;;  %5995 = vrot.lane.b32.xlu0 %v5942_v49, %s18601_s25  ;;  %v5765_v19 = vld [vmem:[#allocation4 + $0x190] ss:$2 sm:$0x1]  ;;  %v10804_v43 = vld [vmem:[%s18594_s5 + $0x280] sm:$0xff] }
 0x33c   : > { %6172 = vst.msk [vmem:[#allocation5 + $0x38] sm:$0x1] %vm6169_vm2, %v15179_v0  ;;  %v5976_v0 = vpop.permute.xlu0 %5975  ;;  %6718 = vmatpush1.msra.mxu0 %v10779_v45  ;;  %6995 = vmatprep.subr.mxu1 %v12750_v10  ;;  %v6258_v16 = vld [vmem:[#allocation5 + $0x20] sm:$0xfe]  ;;  %v5944_v36 = vld [vmem:[#allocation4 + $0x198] ss:$2 sm:$0xff] }
 0x33d   : > { %6171 = vst.msk [vmem:[#allocation5 + $0x28] sm:$0xff] %vm6167_vm5, %v6118_v41  ;;  %5989 = vrot.lane.b32.xlu1 %v5936_v52, %s18601_s25  ;;  %6719 = vmatprep.subr.mxu0 %v12750_v10  ;;  %v15445_v7 = vld [vmem:[#allocation5 + $0x20] sm:$0xff]  ;;  %v6325_v1 = vrot.slane %v6258_v16, 1  ;;  %v6094_v38 = vld [vmem:[#allocation4 + $0x1a9] ss:$2 sm:$0x1] }
 0x33e   : > { %6033 = vst.msk [vmem:[#allocation5 + $0x50] sm:$0x1] %vm6023_vm15, %v5976_v0  ;;  %6996 = vmatpush1.msra.mxu1 %v10809_v18  ;;  %6720 = vmatpush1.msra.mxu0 %v10778_v34  ;;  %v5974_v62 = vpop.permute.xlu1 %5973  ;;  %v5940_v3 = vld [vmem:[#allocation4 + $0x168] ss:$2 sm:$0xff]  ;;  %v6088_v50 = vld [vmem:[#allocation4 + $0x169] ss:$2 sm:$0xff] }
 0x33f   : > { %6034 = vst.msk [vmem:[#allocation5 + $0x58] sm:$0x1] %vm6025_vm1, %v5976_v0  ;;  %6143 = vrot.lane.b32.xlu0 %v6090_v30, %s12754_s13  ;;  %6997 = vmatprep.subr.mxu1 %v12750_v10  ;;  %v10803_v32 = vld [vmem:[%s18594_s5 + $0x278] sm:$0xff]  ;;  %v10772_v46 = vld [vmem:[%s18594_s5 + $0x1c0] sm:$0xff]  ;;  %v10802_v45 = vld [vmem:[%s18594_s5 + $0x270] sm:$0xff] }
 0x340   : > { %6174 = vst.msk [vmem:[#allocation5 + $0x58] sm:$0x1] %vm6169_vm2, %v15243_v13  ;;  %v6260_v28 = vld [vmem:[#allocation5 + $0x30] sm:$0x1]  ;;  %6721 = vmatprep.subr.mxu0 %v12750_v10  ;;  %6998 = vmatpush1.msra.mxu1 %v10808_v47  ;;  %v5980_v29 = vpop.permute.xlu0 %5979  ;;  %v10771_v49 = vld [vmem:[%s18594_s5 + $0x1b8] sm:$0xff]  ;;  %v10770_v34 = vld [vmem:[%s18594_s5 + $0x1b0] sm:$0xff] }
 0x341   : > { %5898 = vst.msk [vmem:[#allocation5 + $0x40] sm:$0xff] %vm5892_vm14, %v5847_v22  ;;  %v5946_v13 = vld [vmem:[#allocation4 + $0x1a8] ss:$2 sm:$0x1]  ;;  %6137 = vrot.lane.b32.xlu1 %v6084_v2, %s12754_s13  ;;  %v6326_v20 = vrot.slane %v6260_v28, 1  ;;  %6722 = vmatpush1.msra.mxu0 %v10777_v15  ;;  %v10801_v18 = vld [vmem:[%s18594_s5 + $0x268] sm:$0xff] }
 0x342   : > { %6031 = vst.msk [vmem:[#allocation5 + $0x40] sm:$0xff] %vm6019_vm3, %v5974_v62  ;;  %6999 = vmatprep.subr.mxu1 %v12750_v10  ;;  %v5763_v25 = vld [vmem:[#allocation4 + $0x180] ss:$2 sm:$0xff]  ;;  %6723 = vmatprep.subr.mxu0 %v12750_v10  ;;  %v6122_v61 = vpop.permute.xlu1 %6121  ;;  %v5817_v0 = vld [vmem:[#allocation4 + $0x181] ss:$2 sm:$0xff]  ;;  %v10800_v15 = vld [vmem:[%s18594_s5 + $0x260] sm:$0xff] }
 0x343   : > { %v6261_v58 = vld [vmem:[#allocation5 + $0x38] sm:$0x1]  ;;  %6032 = vst.msk [vmem:[#allocation5 + $0x48] sm:$0xff] %vm6021_vm4, %v5974_v62  ;;  %5999 = vrot.lane.b32.xlu0 %v5946_v13, %s18601_s25  ;;  %7000 = vmatpush1.msra.mxu1 %v10807_v9  ;;  %v6327_v33 = vsel %vm6318_vm8, %v6325_v1, %v6326_v20  ;;  %v6092_v47 = vld [vmem:[#allocation4 + $0x199] ss:$2 sm:$0xff] }
 0x344   : > { %v15436_v63 = vld [vmem:[#allocation5 + $0x28] sm:$0xff]  ;;  %v6329_v59 = vrot.slane %v6261_v58, 1  ;;  %6037 = vst.msk [vmem:[#allocation5 + $0x70] sm:$0x1] %vm6023_vm15, %v5980_v29  ;;  %7001 = vmatprep.subr.mxu1 %v12750_v10  ;;  %6724 = vmatpush1.msra.mxu0 %v10776_v26  ;;  %v10769_v28 = vld [vmem:[%s18594_s5 + $0x1a8] sm:$0xff] }
 0x345   : > { %v6259_v12 = vld [vmem:[#allocation5 + $0x28] sm:$0xfe]  ;;  %10757 = vmatprep.mubr.msk.f32.mxu1 %vm6400_vm7, %v15436_v63  ;;  %6038 = vst.msk [vmem:[#allocation5 + $0x78] sm:$0x1] %vm6025_vm1, %v5980_v29  ;;  %5866 = vrot.lane.b32.xlu1 %v5813_v5, %s12753_s30  ;;  %v6264_v35 = vld [vmem:[#allocation5 + $0x50] sm:$0x1] }
 0x346   : > { %v6328_v21 = vrot.slane %v6259_v12, 1  ;;  %6616 = vmatmul.mubr.f32.gmra.mxu1 %v15445_v7  ;;  %5782 = vst.msk [vmem:[#allocation5 + $0x100] sm:$0xff] %vm495_vm0, %v5763_v25  ;;  %6725 = vmatprep.subr.mxu0 %v12750_v10  ;;  %v5851_v55 = vpop.permute.xlu1 %5850  ;;  %v6332_v27 = vrot.slane %v6264_v35, 1  ;;  %v10799_v12 = vld [vmem:[%s18594_s5 + $0x258] sm:$0xff]  ;;  %v10768_v9 = vld [vmem:[%s18594_s5 + $0x1a0] sm:$0xff]  ;;  %v10798_v25 = vld [vmem:[%s18594_s5 + $0x250] sm:$0xff] }
 0x347   : > { %6176 = vst.msk [vmem:[#allocation5 + $0x78] sm:$0x1] %vm6169_vm2, %v15265_v4  ;;  %v10806_v4 = vld [vmem:[%s18594_s5 + $0x290] sm:$0xff]  ;;  %5872 = vrot.lane.b32.xlu0 %v5819_v24, %s12753_s30  ;;  %6726 = vmatpush1.msra.mxu0 %v10775_v44  ;;  %v10767_v5 = vld [vmem:[%s18594_s5 + $0x198] sm:$0xff]  ;;  %v10796_v26 = vld [vmem:[%s18594_s5 + $0x240] sm:$0xff]  ;;  %vm6193_vm0 = vcmask 778240  }
 0x348   : > { %v6330_v23 = vsel %vm6318_vm8, %v6328_v21, %v6329_v59  ;;  %6173 = vst.msk [vmem:[#allocation5 + $0x48] sm:$0xff] %vm6167_vm5, %v6122_v61  ;;  %7002 = vmatpush1.msra.mxu1 %v10806_v4  ;;  %v6265_v11 = vld [vmem:[#allocation5 + $0x58] sm:$0x1]  ;;  %6727 = vmatprep.subr.mxu0 %v12750_v10  ;;  %v10765_v61 = vld [vmem:[%s18594_s5 + $0x188] sm:$0xff]  ;;  %v10764_v4 = vld [vmem:[%s18594_s5 + $0x180] sm:$0xff] }
 0x349   : > { %10749 = vmatprep.mubr.msk.f32.mxu0 %vm6400_vm7, %v6330_v23  ;;  %5783 = vst.msk [vmem:[#allocation5 + $0x110] sm:$0x1] %vm3743_vm12, %v5765_v19  ;;  %5993 = vrot.lane.b32.xlu1 %v5940_v3, %s18601_s25  ;;  %v6262_v56 = vld [vmem:[#allocation5 + $0x40] sm:$0xfe]  ;;  %v6335_v60 = vrot.slane %v6265_v11, 1  ;;  %v10797_v23 = vld [vmem:[%s18594_s5 + $0x248] sm:$0xff] }
 0x34a   : > { %6487 = vmatmul.mubr.f32.gmra.mxu0 %v6327_v33  ;;  %5900 = vst.msk [vmem:[#allocation5 + $0x60] sm:$0xff] %vm5892_vm14, %v5851_v55  ;;  %7003 = vmatprep.subr.mxu1 %v12750_v10  ;;  %v5978_v31 = vpop.permute.xlu1 %5977  ;;  %v6331_v42 = vrot.slane %v6262_v56, 1  ;;  %v15500_v37 = vld [vmem:[#allocation5 + $0x40] sm:$0xff]  ;;  %v10766_v24 = vld [vmem:[%s18594_s5 + $0x190] sm:$0xff]  ;;  %v10817_v3 = vld [vmem:[%s18594_s5 + $0x2e8] sm:$0xff]  ;;  %vm7181_vm12 = vcmask 1045248  }
 0x34b   : > { %6147 = vrot.lane.b32.xlu0 %v6094_v38, %s12754_s13  ;;  %7004 = vmatpush1.msra.mxu1 %v10805_v54  ;;  %6035 = vst.msk [vmem:[#allocation5 + $0x60] sm:$0xff] %vm6019_vm3, %v5978_v31  ;;  %v6268_v2 = vld [vmem:[#allocation5 + $0x70] sm:$0x1]  ;;  %v10819_v33 = vld [vmem:[%s18594_s5 + $0x2f8] sm:$0xff]  ;;  %v10818_v44 = vld [vmem:[%s18594_s5 + $0x2f0] sm:$0xff] }
 0x34c   : > { %6728 = vmatpush1.msra.mxu0 %v10774_v48  ;;  %7005 = vmatprep.subr.mxu1 %v12750_v10  ;;  %6036 = vst.msk [vmem:[#allocation5 + $0x68] sm:$0xff] %vm6021_vm4, %v5978_v31  ;;  %v6333_v39 = vsel %vm6318_vm8, %v6331_v42, %v6332_v27  ;;  %v6338_v29 = vrot.slane %v6268_v2, 1  ;;  %v10787_v19 = vld [vmem:[%s18594_s5 + $0x238] sm:$0xff]  ;;  %v10786_v38 = vld [vmem:[%s18594_s5 + $0x230] sm:$0xff]  ;;  %v10816_v54 = vld [vmem:[%s18594_s5 + $0x2e0] sm:$0xff] }
 0x34d   : > { %6141 = vrot.lane.b32.xlu1 %v6088_v50, %s12754_s13  ;;  %6729 = vmatprep.subr.mxu0 %v12750_v10  ;;  %v10785_v55 = vld [vmem:[%s18594_s5 + $0x228] sm:$0xff]  ;;  %v10815_v11 = vld [vmem:[%s18594_s5 + $0x2d8] sm:$0xff]  ;;  %v10784_v48 = vld [vmem:[%s18594_s5 + $0x220] sm:$0xff]  ;;  %6205 = vst.msk [vmem:[#allocation6 + $0x19] sm:$0x1] %vm6193_vm0, %v12750_v10 }
 0x34e   : > { %7006 = vmatpush1.msra.mxu1 %v10804_v43  ;;  %6730 = vmatpush1.msra.mxu0 %v10773_v51  ;;  %v6126_v41 = vpop.permute.xlu1 %6125  ;;  %v6269_v30 = vld [vmem:[#allocation5 + $0x78] sm:$0x1]  ;;  %v10783_v43 = vld [vmem:[%s18594_s5 + $0x218] sm:$0xff]  ;;  %v10813_v50 = vld [vmem:[%s18594_s5 + $0x2c8] sm:$0xff]  ;;  %6194 = vst.msk [vmem:[#allocation6] sm:$0x1] %vm6193_vm0, %v12750_v10 }
 0x34f   : > { %v15493_v53 = vld [vmem:[#allocation5 + $0x48] sm:$0xff]  ;;  %7007 = vmatprep.subr.mxu1 %v12750_v10  ;;  %6731 = vmatprep.subr.mxu0 %v12750_v10  ;;  %6175 = vst.msk [vmem:[#allocation5 + $0x68] sm:$0xff] %vm6167_vm5, %v6126_v41  ;;  %v6341_v13 = vrot.slane %v6269_v30, 1  ;;  %v10814_v56 = vld [vmem:[%s18594_s5 + $0x2d0] sm:$0xff]  ;;  %v10781_v51 = vld [vmem:[%s18594_s5 + $0x208] sm:$0xff] }
 0x350   : > { %v6263_v57 = vld [vmem:[#allocation5 + $0x48] sm:$0xfe]  ;;  %10758 = vmatprep.mubr.msk.f32.mxu1 %vm6400_vm7, %v15493_v53  ;;  %7008 = vmatpush1.msra.mxu1 %v10803_v32  ;;  %6195 = vst.msk [vmem:[#allocation6 + $0x10] sm:$0x1] %vm6193_vm0, %v12750_v10  ;;  %6196 = vst.msk [vmem:[#allocation6 + $0x20] sm:$0x1] %vm6193_vm0, %v12750_v10 }
 0x351   : > { %v6334_v8 = vrot.slane %v6263_v57, 1  ;;  %6621 = vmatmul.mubr.f32.gmra.mxu1 %v15500_v37  ;;  %5997 = vrot.lane.b32.xlu1 %v5944_v36, %s18601_s25  ;;  %v10812_v35 = vld [vmem:[%s18594_s5 + $0x2c0] sm:$0xff]  ;;  %6197 = vst.msk [vmem:[#allocation6 + $0x30] sm:$0x1] %vm6193_vm0, %v12750_v10  ;;  %6198 = vst.msk [vmem:[#allocation6 + $0x40] sm:$0x1] %vm6193_vm0, %v12750_v10 }
 0x352   : > { %6732 = vmatpush1.msra.mxu0 %v10772_v46  ;;  %7009 = vmatprep.subr.mxu1 %v12750_v10  ;;  %v5855_v52 = vpop.permute.xlu1 %5854  ;;  %v6266_v22 = vld [vmem:[#allocation5 + $0x60] sm:$0xfe]  ;;  %v10780_v31 = vld [vmem:[%s18594_s5 + $0x200] sm:$0xff]  ;;  %6199 = vst.msk [vmem:[#allocation6 + $0x50] sm:$0x1] %vm6193_vm0, %v12750_v10  ;;  %s12756_s25 = smov 32  }
 0x353   : > { %v6336_v6 = vsel %vm6318_vm8, %v6334_v8, %v6335_v60  ;;  %6733 = vmatprep.subr.mxu0 %v12750_v10  ;;  %7010 = vmatpush1.msra.mxu1 %v10802_v45  ;;  %5902 = vst.msk [vmem:[#allocation5 + $0x80] sm:$0xff] %vm5892_vm14, %v5855_v52  ;;  %v6337_v62 = vrot.slane %v6266_v22, 1  ;;  %v15550_v59 = vld [vmem:[#allocation5 + $0x60] sm:$0xff]  ;;  %v10782_v60 = vld [vmem:[%s18594_s5 + $0x210] sm:$0xff] }
 0x354   : > { %10750 = vmatprep.mubr.msk.f32.mxu0 %vm6400_vm7, %v6336_v6  ;;  %6734 = vmatpush1.msra.mxu0 %v10771_v49  ;;  %6200 = vst.msk [vmem:[#allocation6 + $0x60] sm:$0x1] %vm6193_vm0, %v12750_v10  ;;  %6201 = vst.msk [vmem:[#allocation6 + $0x70] sm:$0x1] %vm6193_vm0, %v12750_v10 }
 0x355   : > { %6492 = vmatmul.mubr.f32.gmra.mxu0 %v6333_v39  ;;  %5870 = vrot.lane.b32.xlu1 %v5817_v0, %s12753_s30  ;;  %v6339_v1 = vsel %vm6318_vm8, %v6337_v62, %v6338_v29  ;;  %6202 = vst.msk [vmem:[#allocation6 + $0x80] sm:$0x1] %vm6193_vm0, %v12750_v10  ;;  %6203 = vst.msk [vmem:[#allocation6 + $0x90] sm:$0x1] %vm6193_vm0, %v12750_v10 }
 0x356   : > { %7011 = vmatprep.subr.mxu1 %v12750_v10  ;;  %6735 = vmatprep.subr.mxu0 %v12750_v10  ;;  %v15542_v58 = vld [vmem:[#allocation5 + $0x68] sm:$0xff]  ;;  %6206 = vst.msk [vmem:[#allocation6 + $0x29] sm:$0x1] %vm6193_vm0, %v12750_v10  ;;  %6207 = vst.msk [vmem:[#allocation6 + $0x39] sm:$0x1] %vm6193_vm0, %v12750_v10 }
 0x357   : > { %7012 = vmatpush1.msra.mxu1 %v10801_v18  ;;  %6736 = vmatpush1.msra.mxu0 %v10770_v34  ;;  %v6267_v16 = vld [vmem:[#allocation5 + $0x68] sm:$0xfe]  ;;  %6208 = vst.msk [vmem:[#allocation6 + $0x49] sm:$0x1] %vm6193_vm0, %v12750_v10  ;;  %6209 = vst.msk [vmem:[#allocation6 + $0x59] sm:$0x1] %vm6193_vm0, %v12750_v10 }
 0x358   : > { %7013 = vmatprep.subr.mxu1 %v12750_v10  ;;  %6737 = vmatprep.subr.mxu0 %v12750_v10  ;;  %v6340_v20 = vrot.slane %v6267_v16, 1  ;;  %6210 = vst.msk [vmem:[#allocation6 + $0x69] sm:$0x1] %vm6193_vm0, %v12750_v10  ;;  %6211 = vst.msk [vmem:[#allocation6 + $0x79] sm:$0x1] %vm6193_vm0, %v12750_v10 }
 0x359   : > { %6145 = vrot.lane.b32.xlu1 %v6092_v47, %s12754_s13  ;;  %7014 = vmatpush1.msra.mxu1 %v10800_v15  ;;  %6212 = vst.msk [vmem:[#allocation6 + $0x89] sm:$0x1] %vm6193_vm0, %v12750_v10  ;;  %6204 = vst.msk [vmem:[#allocation6 + $0x9] sm:$0x1] %vm6193_vm0, %v12750_v10  ;;  %s18603_s13 = smov 64  }
 0x35a   : > { %10759 = vmatprep.mubr.msk.f32.mxu1 %vm6400_vm7, %v15542_v58  ;;  %6738 = vmatpush1.msra.mxu0 %v10769_v28  ;;  %v6342_v21 = vsel %vm6318_vm8, %v6340_v20, %v6341_v13  ;;  %6213 = vst.msk [vmem:[#allocation6 + $0x99] sm:$0x1] %vm6193_vm0, %v12750_v10 }
 0x35b   : > { %6626 = vmatmul.mubr.f32.gmra.mxu1 %v15550_v59  ;;  %7015 = vmatprep.subr.mxu1 %v12750_v10 }
 0x35c   : > { %6739 = vmatprep.subr.mxu0 %v12750_v10  ;;  %7016 = vmatpush1.msra.mxu1 %v10799_v12 }
 0x35d   : > { %10751 = vmatprep.mubr.msk.f32.mxu0 %vm6400_vm7, %v6342_v21  ;;  %6740 = vmatpush1.msra.mxu0 %v10768_v9 }
 0x35e   : > { %6497 = vmatmul.mubr.f32.gmra.mxu0 %v6339_v1  ;;  %7017 = vmatprep.subr.mxu1 %v12750_v10 }
 0x35f   : > { %6741 = vmatprep.subr.mxu0 %v12750_v10  ;;  %7018 = vmatpush1.msra.mxu1 %v10798_v25 }
 0x360   : > { %6742 = vmatpush1.msra.mxu0 %v10767_v5  ;;  %7019 = vmatprep.subr.mxu1 %v12750_v10 }
 0x361   : > { %6743 = vmatprep.subr.mxu0 %v12750_v10  ;;  %7020 = vmatpush1.msra.mxu1 %v10797_v23 }
 0x362   : > { %6744 = vmatpush1.msra.mxu0 %v10766_v24  ;;  %7021 = vmatprep.subr.mxu1 %v12750_v10 }
 0x363   : > { %6745 = vmatprep.subr.mxu0 %v12750_v10  ;;  %7022 = vmatpush1.msra.mxu1 %v10796_v26 }
 0x364   : > { %6746 = vmatpush1.msra.mxu0 %v10765_v61  ;;  %7039 = vmatprep.subr.mxu1 %v12750_v10 }
 0x365   : > { %6747 = vmatprep.subr.mxu0 %v12750_v10  ;;  %7040 = vmatpush2.msra.mxu1 %v10819_v33 }
 0x366   : > { %6748 = vmatpush1.msra.mxu0 %v10764_v4  ;;  %7041 = vmatprep.subr.mxu1 %v12750_v10 }
 0x367   : > { %6765 = vmatprep.subr.mxu0 %v12750_v10  ;;  %7042 = vmatpush2.msra.mxu1 %v10818_v44 }
 0x368   : > { %6766 = vmatpush2.msra.mxu0 %v10787_v19  ;;  %7043 = vmatprep.subr.mxu1 %v12750_v10 }
 0x369   : > { %6767 = vmatprep.subr.mxu0 %v12750_v10  ;;  %7044 = vmatpush2.msra.mxu1 %v10817_v3 }
 0x36a   : > { %6768 = vmatpush2.msra.mxu0 %v10786_v38  ;;  %7045 = vmatprep.subr.mxu1 %v12750_v10 }
 0x36b   : > { %6769 = vmatprep.subr.mxu0 %v12750_v10  ;;  %7046 = vmatpush2.msra.mxu1 %v10816_v54 }
 0x36c   : > { %6770 = vmatpush2.msra.mxu0 %v10785_v55  ;;  %7047 = vmatprep.subr.mxu1 %v12750_v10 }
 0x36d   : > { %6771 = vmatprep.subr.mxu0 %v12750_v10  ;;  %7048 = vmatpush2.msra.mxu1 %v10815_v11 }
 0x36e   : > { %6772 = vmatpush2.msra.mxu0 %v10784_v48  ;;  %7049 = vmatprep.subr.mxu1 %v12750_v10 }
 0x36f   : > { %6773 = vmatprep.subr.mxu0 %v12750_v10  ;;  %7050 = vmatpush2.msra.mxu1 %v10814_v56 }
 0x370   : > { %6774 = vmatpush2.msra.mxu0 %v10783_v43  ;;  %7051 = vmatprep.subr.mxu1 %v12750_v10 }
 0x371   : > { %6775 = vmatprep.subr.mxu0 %v12750_v10  ;;  %7052 = vmatpush2.msra.mxu1 %v10813_v50 }
 0x372   : > { %6776 = vmatpush2.msra.mxu0 %v10782_v60  ;;  %7053 = vmatprep.subr.mxu1 %v12750_v10 }
 0x373   : > { %6777 = vmatprep.subr.mxu0 %v12750_v10  ;;  %7054 = vmatpush2.msra.mxu1 %v10812_v35 }
 0x374   : > { %6778 = vmatpush2.msra.mxu0 %v10781_v51  ;;  %v6831_v51 = vld [vmem:[#allocation5 + $0x28] sm:$0xfe] }
 0x375   : > { %6779 = vmatprep.subr.mxu0 %v12750_v10 }
 0x376   : > { %6780 = vmatpush2.msra.mxu0 %v10780_v31  ;;  %v6833_v31 = vld [vmem:[#allocation5 + $0x38] sm:$0x1] }
 0x392   : > { %v5984_v57 = vpop.permute.xlu0 %5983 }
 0x393   : > { %6041 = vst.msk [vmem:[#allocation5 + $0x90] sm:$0x1] %vm6023_vm15, %v5984_v57 }
 0x394   : > { %6042 = vst.msk [vmem:[#allocation5 + $0x98] sm:$0x1] %vm6025_vm1, %v5984_v57  ;;  %v5982_v42 = vpop.permute.xlu1 %5981 }
 0x395   : > { %6178 = vst.msk [vmem:[#allocation5 + $0x98] sm:$0x1] %vm6169_vm2, %v15307_v17 }
 0x396   : > { %6039 = vst.msk [vmem:[#allocation5 + $0x80] sm:$0xff] %vm6019_vm3, %v5982_v42 }
 0x397   : > { %6040 = vst.msk [vmem:[#allocation5 + $0x88] sm:$0xff] %vm6021_vm4, %v5982_v42 }
 0x398   : > { %v6130_v36 = vpop.permute.xlu1 %6129 }
 0x399   : > { %6177 = vst.msk [vmem:[#allocation5 + $0x88] sm:$0xff] %vm6167_vm5, %v6130_v36 }
 0x39a   : > { %v5988_v8 = vpop.permute.xlu0 %5987  ;;  %v6272_v6 = vld [vmem:[#allocation5 + $0x90] sm:$0x1] }
 0x39b   : > { %6045 = vst.msk [vmem:[#allocation5 + $0xb0] sm:$0x1] %vm6023_vm15, %v5988_v8  ;;  %v6344_v34 = vrot.slane %v6272_v6, 1 }
 0x39c   : > { %6046 = vst.msk [vmem:[#allocation5 + $0xb8] sm:$0x1] %vm6025_vm1, %v5988_v8  ;;  %v5859_v27 = vpop.permute.xlu1 %5858  ;;  %v6273_v32 = vld [vmem:[#allocation5 + $0x98] sm:$0x1]  ;;  %v6897_v8 = vrot.slane %v6831_v51, 1 }
 0x39d   : > { %6180 = vst.msk [vmem:[#allocation5 + $0xb8] sm:$0x1] %vm6169_vm2, %v15323_v40  ;;  %v6270_v17 = vld [vmem:[#allocation5 + $0x80] sm:$0xfe]  ;;  %v6347_v0 = vrot.slane %v6273_v32, 1 }
 0x39e   : > { %5904 = vst.msk [vmem:[#allocation5 + $0xa0] sm:$0xff] %vm5892_vm14, %v5859_v27  ;;  %v6343_v45 = vrot.slane %v6270_v17, 1  ;;  %v15671_v49 = vld [vmem:[#allocation5 + $0x80] sm:$0xff]  ;;  %v6898_v27 = vrot.slane %v6833_v31, 1  ;;  %v6832_v17 = vld [vmem:[#allocation5 + $0x30] sm:$0x1] }
 0x39f   : > { %v6837_v32 = vld [vmem:[#allocation5 + $0x58] sm:$0x1] }
 0x3a0   : > { %v5986_v46 = vpop.permute.xlu1 %5985  ;;  %v15665_v41 = vld [vmem:[#allocation5 + $0x88] sm:$0xff]  ;;  %v6345_v22 = vsel %vm6318_vm8, %v6343_v45, %v6344_v34  ;;  %v6830_v34 = vld [vmem:[#allocation5 + $0x20] sm:$0xfe] }
 0x3a1   : > { %v6271_v39 = vld [vmem:[#allocation5 + $0x88] sm:$0xfe]  ;;  %6043 = vst.msk [vmem:[#allocation5 + $0xa0] sm:$0xff] %vm6019_vm3, %v5986_v46  ;;  %10760 = vmatprep.mubr.msk.f32.mxu1 %vm6400_vm7, %v15665_v41 }
 0x3a2   : > { %6044 = vst.msk [vmem:[#allocation5 + $0xa8] sm:$0xff] %vm6021_vm4, %v5986_v46  ;;  %v6346_v40 = vrot.slane %v6271_v39, 1  ;;  %6631 = vmatmul.mubr.f32.gmra.mxu1 %v15671_v49  ;;  %v6276_v2 = vld [vmem:[#allocation5 + $0xb0] sm:$0x1]  ;;  %v6835_v39 = vld [vmem:[#allocation5 + $0x48] sm:$0xfe] }
 0x3a3   : > { %v6350_v21 = vrot.slane %v6276_v2, 1  ;;  %v6834_v2 = vld [vmem:[#allocation5 + $0x40] sm:$0xfe] }
 0x3a4   : > { %v6348_v52 = vsel %vm6318_vm8, %v6346_v40, %v6347_v0  ;;  %v6134_v30 = vpop.permute.xlu1 %6133  ;;  %v6277_v13 = vld [vmem:[#allocation5 + $0xb8] sm:$0x1] }
 0x3a5   : > { %10752 = vmatprep.mubr.msk.f32.mxu0 %vm6400_vm7, %v6348_v52  ;;  %6179 = vst.msk [vmem:[#allocation5 + $0xa8] sm:$0xff] %vm6167_vm5, %v6134_v30  ;;  %v6353_v29 = vrot.slane %v6277_v13, 1  ;;  %v6904_v13 = vrot.slane %v6837_v32, 1  ;;  %v6849_v51 = vld [vmem:[#allocation5 + $0xb8] sm:$0x1] }
 0x3a6   : > { %6502 = vmatmul.mubr.f32.gmra.mxu0 %v6345_v22  ;;  %v6895_v22 = vrot.slane %v6832_v17, 1 }
 0x3a7   : > { %v5992_v18 = vpop.permute.xlu0 %5991 }
 0x3a8   : > { %6049 = vst.msk [vmem:[#allocation5 + $0xd0] sm:$0x1] %vm6023_vm15, %v5992_v18  ;;  %v5863_v47 = vpop.permute.xlu1 %5862  ;;  %v6274_v15 = vld [vmem:[#allocation5 + $0xa0] sm:$0xfe] }
 0x3a9   : > { %6050 = vst.msk [vmem:[#allocation5 + $0xd8] sm:$0x1] %vm6025_vm1, %v5992_v18  ;;  %v6349_v12 = vrot.slane %v6274_v15, 1  ;;  %v15691_v20 = vld [vmem:[#allocation5 + $0xa0] sm:$0xff] }
 0x3aa   : > { %6182 = vst.msk [vmem:[#allocation5 + $0xd8] sm:$0x1] %vm6169_vm2, %v15370_v14 }
 0x3ab   : > { %5906 = vst.msk [vmem:[#allocation5 + $0xc0] sm:$0xff] %vm5892_vm14, %v5863_v47  ;;  %v6351_v23 = vsel %vm6318_vm8, %v6349_v12, %v6350_v21  ;;  %v6899_v47 = vsel %vm6318_vm8, %v6897_v8, %v6898_v27  ;;  %v6839_v12 = vld [vmem:[#allocation5 + $0x68] sm:$0xfe]  ;;  %v6836_v21 = vld [vmem:[#allocation5 + $0x50] sm:$0x1]  ;;  %v6922_v8 = vrot.slane %v6849_v51, 1 }
 0x3ac   : > { %v15685_v16 = vld [vmem:[#allocation5 + $0xa8] sm:$0xff]  ;;  %v6848_v27 = vld [vmem:[#allocation5 + $0xb0] sm:$0x1] }
 0x3ad   : > { %v5996_v28 = vpop.permute.xlu0 %5995  ;;  %v6275_v62 = vld [vmem:[#allocation5 + $0xa8] sm:$0xfe]  ;;  %10761 = vmatprep.mubr.msk.f32.mxu1 %vm6400_vm7, %v15685_v16 }
 0x3ae   : > { %6053 = vst.msk [vmem:[#allocation5 + $0xf0] sm:$0x1] %vm6023_vm15, %v5996_v28  ;;  %v6352_v9 = vrot.slane %v6275_v62, 1  ;;  %6636 = vmatmul.mubr.f32.gmra.mxu1 %v15691_v20  ;;  %v6894_v62 = vrot.slane %v6830_v34, 1 }
 0x3af   : > { %6054 = vst.msk [vmem:[#allocation5 + $0xf8] sm:$0x1] %vm6025_vm1, %v5996_v28  ;;  %v5990_v14 = vpop.permute.xlu1 %5989  ;;  %v6280_v44 = vld [vmem:[#allocation5 + $0xd0] sm:$0x1]  ;;  %v6903_v28 = vrot.slane %v6835_v39, 1  ;;  %v6919_v39 = vrot.slane %v6848_v27, 1 }
 0x3b0   : > { %6047 = vst.msk [vmem:[#allocation5 + $0xc0] sm:$0xff] %vm6019_vm3, %v5990_v14  ;;  %v6354_v1 = vsel %vm6318_vm8, %v6352_v9, %v6353_v29  ;;  %v6356_v56 = vrot.slane %v6280_v44, 1  ;;  %v6841_v9 = vld [vmem:[#allocation5 + $0x78] sm:$0x1]  ;;  %v6840_v44 = vld [vmem:[#allocation5 + $0x70] sm:$0x1] }
 0x3b1   : > { %6048 = vst.msk [vmem:[#allocation5 + $0xc8] sm:$0xff] %vm6021_vm4, %v5990_v14  ;;  %v6144_v25 = vpop.permute.xlu0 %6143  ;;  %10753 = vmatprep.mubr.msk.f32.mxu0 %vm6400_vm7, %v6354_v1  ;;  %v6281_v33 = vld [vmem:[#allocation5 + $0xd8] sm:$0x1]  ;;  %v6896_v1 = vsel %vm6318_vm8, %v6894_v62, %v6895_v22  ;;  %v6852_v34 = vld [vmem:[#allocation5 + $0xd0] sm:$0x1] }
 0x3b2   : > { %6184 = vst.msk [vmem:[#allocation5 + $0xf8] sm:$0x1] %vm6169_vm2, %v6144_v25  ;;  %6507 = vmatmul.mubr.f32.gmra.mxu0 %v6351_v23  ;;  %v6359_v48 = vrot.slane %v6281_v33, 1  ;;  %v6905_v23 = vsel %vm6318_vm8, %v6903_v28, %v6904_v13  ;;  %v6901_v33 = vrot.slane %v6836_v21, 1  ;;  %v6853_v32 = vld [vmem:[#allocation5 + $0xd8] sm:$0x1] }
 0x3b3   : > { %v6138_v5 = vpop.permute.xlu1 %6137  ;;  %v10854_v27 = vld [vmem:[%s18596_s7 + $0x3c8] sm:$0xff] }
 0x3b4   : > { %6181 = vst.msk [vmem:[#allocation5 + $0xc8] sm:$0xff] %vm6167_vm5, %v6138_v5  ;;  %v6900_v5 = vrot.slane %v6834_v2, 1  ;;  %v6925_v2 = vrot.slane %v6852_v34, 1  ;;  %v10921_v34 = vld [vmem:[%s18596_s7 + $0x5e0] sm:$0xff] }
 0x3b5   : > { %v6000_v24 = vpop.permute.xlu0 %5999  ;;  %v6284_v46 = vld [vmem:[#allocation5 + $0xf0] sm:$0x1] }
 0x3b6   : > { %6058 = vst.msk [vmem:[#allocation5 + $0x118] sm:$0x1] %vm6025_vm1, %v6000_v24  ;;  %v6362_v15 = vrot.slane %v6284_v46, 1 }
 0x3b7   : > { %v5867_v26 = vpop.permute.xlu1 %5866  ;;  %v6278_v61 = vld [vmem:[#allocation5 + $0xc0] sm:$0xfe] }
 0x3b8   : > { %5908 = vst.msk [vmem:[#allocation5 + $0xe0] sm:$0xff] %vm5892_vm14, %v5867_v26  ;;  %v6355_v54 = vrot.slane %v6278_v61, 1  ;;  %v15709_v55 = vld [vmem:[#allocation5 + $0xc0] sm:$0xff]  ;;  %v6910_v26 = vrot.slane %v6841_v9, 1 }
 0x3b9   : > { %v5873_v4 = vpop.permute.xlu0 %5872  ;;  %v6285_v42 = vld [vmem:[#allocation5 + $0xf8] sm:$0x1]  ;;  %v6838_v61 = vld [vmem:[#allocation5 + $0x60] sm:$0xfe] }
 0x3ba   : > { %5911 = vst.msk [vmem:[#allocation5 + $0x110] sm:$0x1] %vm5894_vm13, %v5873_v4  ;;  %v6357_v35 = vsel %vm6318_vm8, %v6355_v54, %v6356_v56  ;;  %v6365_v6 = vrot.slane %v6285_v42, 1  ;;  %v6843_v4 = vld [vmem:[#allocation5 + $0x88] sm:$0xfe]  ;;  %v6907_v56 = vrot.slane %v6840_v44, 1 }
 0x3bb   : > { %v5994_v19 = vpop.permute.xlu1 %5993  ;;  %v15702_v3 = vld [vmem:[#allocation5 + $0xc8] sm:$0xff]  ;;  %6057 = vst.msk [vmem:[#allocation5 + $0x110] sm:$0x1] %vm6023_vm15, %v6000_v24  ;;  %v6909_v24 = vrot.slane %v6839_v12, 1  ;;  %v6845_v54 = vld [vmem:[#allocation5 + $0x98] sm:$0x1] }
 0x3bc   : > { %v6279_v38 = vld [vmem:[#allocation5 + $0xc8] sm:$0xfe]  ;;  %6051 = vst.msk [vmem:[#allocation5 + $0xe0] sm:$0xff] %vm6019_vm3, %v5994_v19  ;;  %10762 = vmatprep.mubr.msk.f32.mxu1 %vm6400_vm7, %v15702_v3  ;;  %v6850_v46 = vld [vmem:[#allocation5 + $0xc0] sm:$0xfe]  ;;  %vm7183_vm13 = vcmask 520192  }
 0x3bd   : > { %6052 = vst.msk [vmem:[#allocation5 + $0xe8] sm:$0xff] %vm6021_vm4, %v5994_v19  ;;  %v6358_v11 = vrot.slane %v6279_v38, 1  ;;  %6641 = vmatmul.mubr.f32.gmra.mxu1 %v15709_v55  ;;  %v6148_v43 = vpop.permute.xlu0 %6147  ;;  %v6902_v19 = vsel %vm6318_vm8, %v6900_v5, %v6901_v33  ;;  %v6906_v38 = vrot.slane %v6838_v61, 1 }
 0x3be   : > { %6186 = vst.msk [vmem:[#allocation5 + $0x118] sm:$0x1] %vm6169_vm2, %v6148_v43  ;;  %v6847_v43 = vld [vmem:[#allocation5 + $0xa8] sm:$0xfe] }
 0x3bf   : > { %v6360_v50 = vsel %vm6318_vm8, %v6358_v11, %v6359_v48  ;;  %v6142_v60 = vpop.permute.xlu1 %6141  ;;  %v6915_v11 = vrot.slane %v6843_v4, 1  ;;  %v6842_v48 = vld [vmem:[#allocation5 + $0x80] sm:$0xfe]  ;;  %v6921_v31 = vrot.slane %v6847_v43, 1 }
 0x3c0   : > { %10754 = vmatprep.mubr.msk.f32.mxu0 %vm6400_vm7, %v6360_v50  ;;  %6183 = vst.msk [vmem:[#allocation5 + $0xe8] sm:$0xff] %vm6167_vm5, %v6142_v60  ;;  %v6916_v50 = vrot.slane %v6845_v54, 1  ;;  %v6844_v60 = vld [vmem:[#allocation5 + $0x90] sm:$0x1] }
 0x3c1   : > { %6512 = vmatmul.mubr.f32.gmra.mxu0 %v6357_v35  ;;  %v6912_v35 = vrot.slane %v6842_v48, 1  ;;  %v6913_v42 = vrot.slane %v6844_v60, 1 }
 0x3c2   : > { %v6860_v9 = vld [vmem:[#allocation5 + $0x110] sm:$0x1] }
 0x3c3   : > { %v5998_v57 = vpop.permute.xlu1 %5997  ;;  %v6282_v36 = vld [vmem:[#allocation5 + $0xe0] sm:$0xfe]  ;;  %v6937_v5 = vrot.slane %v6860_v9, 1 }
 0x3c4   : > { %6056 = vst.msk [vmem:[#allocation5 + $0x108] sm:$0xff] %vm6021_vm4, %v5998_v57  ;;  %v6361_v18 = vrot.slane %v6282_v36, 1  ;;  %v15723_v52 = vld [vmem:[#allocation5 + $0xe0] sm:$0xff]  ;;  %v6851_v36 = vld [vmem:[#allocation5 + $0xc8] sm:$0xfe] }
 0x3c5   : > { %v6854_v13 = vld [vmem:[#allocation5 + $0xe0] sm:$0xfe] }
 0x3c6   : > { %v6363_v29 = vsel %vm6318_vm8, %v6361_v18, %v6362_v15  ;;  %v6928_v18 = vrot.slane %v6853_v32, 1  ;;  %v6930_v21 = vrot.slane %v6854_v13, 1  ;;  %v10851_v32 = vld [vmem:[%s18596_s7 + $0x3b0] sm:$0xff]  ;;  %v10840_v9 = vld [vmem:[%s18596_s7 + $0x358] sm:$0xff] }
 0x3c7   : > { %v5871_v45 = vpop.permute.xlu1 %5870  ;;  %v15718_v40 = vld [vmem:[#allocation5 + $0xe8] sm:$0xff]  ;;  %v10843_v13 = vld [vmem:[%s18596_s7 + $0x370] sm:$0xff] }
 0x3c8   : > { %v6283_v0 = vld [vmem:[#allocation5 + $0xe8] sm:$0xfe]  ;;  %5910 = vst.msk [vmem:[#allocation5 + $0x100] sm:$0xff] %vm5892_vm14, %v5871_v45  ;;  %10763 = vmatprep.mubr.msk.f32.mxu1 %vm6400_vm7, %v15718_v40  ;;  %vm7222_vm14 = vcmask 1044992  }
 0x3c9   : > { %v6364_v30 = vrot.slane %v6283_v0, 1  ;;  %6055 = vst.msk [vmem:[#allocation5 + $0x100] sm:$0xff] %vm6019_vm3, %v5998_v57  ;;  %6646 = vmatmul.mubr.f32.gmra.mxu1 %v15723_v52  ;;  %v6846_v57 = vld [vmem:[#allocation5 + $0xa0] sm:$0xfe]  ;;  %v6855_v45 = vld [vmem:[#allocation5 + $0xe8] sm:$0xfe] }
 0x3ca   : > { %10820 = vmatprep.mubr.msk.f32.mxu1 %vm6400_vm7, %v6899_v47  ;;  %v6918_v17 = vrot.slane %v6846_v57, 1  ;;  %v6857_v0 = vld [vmem:[#allocation5 + $0xf8] sm:$0x1]  ;;  %v6933_v15 = vrot.slane %v6855_v45, 1  ;;  %v10858_v57 = vld [vmem:[%s18596_s7 + $0x3e8] sm:$0xff] }
 0x3cb   : > { %v6366_v14 = vsel %vm6318_vm8, %v6364_v30, %v6365_v6  ;;  %v6146_v25 = vpop.permute.xlu1 %6145  ;;  %v6927_v6 = vrot.slane %v6851_v36, 1  ;;  %v6924_v30 = vrot.slane %v6850_v46, 1  ;;  %v6861_v47 = vld [vmem:[#allocation5 + $0x118] sm:$0x1]  ;;  %v6934_v28 = vrot.slane %v6857_v0, 1  ;;  %v10856_v36 = vld [vmem:[%s18596_s7 + $0x3d8] sm:$0xff] }
 0x3cc   : > { %10755 = vmatprep.mubr.msk.f32.mxu0 %vm6400_vm7, %v6366_v14  ;;  %6185 = vst.msk [vmem:[#allocation5 + $0x108] sm:$0xff] %vm6167_vm5, %v6146_v25  ;;  %v6856_v14 = vld [vmem:[#allocation5 + $0xf0] sm:$0x1]  ;;  %v10924_v46 = vld [vmem:[%s18596_s7 + $0x5f8] sm:$0xff]  ;;  %v10923_v45 = vld [vmem:[%s18596_s7 + $0x5f0] sm:$0xff] }
 0x3cd   : > { %6517 = vmatmul.mubr.f32.gmra.mxu0 %v6363_v29  ;;  %7056 = vmatmul.mubr.f32.vlgmr.msra.gmra.mxu1 %v6896_v1  ;;  %v6926_v29 = vsel %vm6318_vm8, %v6924_v30, %v6925_v2  ;;  %v6931_v25 = vrot.slane %v6856_v14, 1  ;;  %v10922_v0 = vld [vmem:[%s18596_s7 + $0x5e8] sm:$0xff]  ;;  %v10920_v30 = vld [vmem:[%s18596_s7 + $0x5d8] sm:$0xff] }
 0x3ce   : > { %10788 = vmatprep.mubr.msk.f32.mxu0 %vm6400_vm7, %v15436_v63  ;;  %10821 = vmatprep.mubr.msk.f32.mxu1 %vm6400_vm7, %v6905_v23  ;;  %v6911_v63 = vsel %vm6318_vm8, %v6909_v24, %v6910_v26  ;;  %v10916_v2 = vld [vmem:[%s18596_s7 + $0x5b8] sm:$0xff]  ;;  %v10842_v14 = vld [vmem:[%s18596_s7 + $0x368] sm:$0xff] }
 0x3cf   : > { %7660 = vmatprep.subr.mxu1 %v10924_v46 }
 0x3d0   : > { %v6858_v12 = vld [vmem:[#allocation5 + $0x100] sm:$0xfe]  ;;  %7661 = vmatpush1.msra.mxu1 %v10923_v45 }
 0x3d1   : > { %6782 = vmatmul.mubr.f32.vlgmr.msra.gmra.mxu0 %v15445_v7  ;;  %7061 = vmatmul.mubr.f32.gmra.mxu1 %v6902_v19  ;;  %v6908_v7 = vsel %vm6318_vm8, %v6906_v38, %v6907_v56  ;;  %v6936_v1 = vrot.slane %v6858_v12, 1  ;;  %v6666_v26 = vld [vmem:[#allocation5 + $0x100] sm:$0xff]  ;;  %v10914_v12 = vld [vmem:[%s18596_s7 + $0x5a8] sm:$0xff] }
 0x3d2   : > { %10789 = vmatprep.mubr.msk.f32.mxu0 %vm6400_vm7, %v15493_v53  ;;  %10822 = vmatprep.mubr.msk.f32.mxu1 %vm6400_vm7, %v6911_v63  ;;  %v6917_v53 = vsel %vm6318_vm8, %v6915_v11, %v6916_v50 }
 0x3d3   : > { %v6859_v22 = vld [vmem:[#allocation5 + $0x108] sm:$0xfe]  ;;  %7662 = vmatprep.subr.mxu1 %v10922_v0 }
 0x3d4   : > { %v6939_v62 = vrot.slane %v6859_v22, 1  ;;  %v6667_v24 = vld [vmem:[#allocation5 + $0x108] sm:$0xff]  ;;  %v10919_v22 = vld [vmem:[%s18596_s7 + $0x5d0] sm:$0xff]  ;;  %7663 = vmatpush1.msra.mxu1 %v10921_v34 }
 0x3d5   : > { %6787 = vmatmul.mubr.f32.gmra.mxu0 %v15500_v37  ;;  %7066 = vmatmul.mubr.f32.gmra.mxu1 %v6908_v7  ;;  %v6914_v37 = vsel %vm6318_vm8, %v6912_v35, %v6913_v42  ;;  %v10857_v42 = vld [vmem:[%s18596_s7 + $0x3e0] sm:$0xff] }
 0x3d6   : > { %10790 = vmatprep.mubr.msk.f32.mxu0 %vm6400_vm7, %v15542_v58  ;;  %10823 = vmatprep.mubr.msk.f32.mxu1 %vm6400_vm7, %v6917_v53  ;;  %v6923_v58 = vsel %vm6318_vm8, %v6921_v31, %v6922_v8  ;;  %v10860_v53 = vld [vmem:[%s18596_s7 + $0x3f8] sm:$0xff]  ;;  %v10859_v31 = vld [vmem:[%s18596_s7 + $0x3f0] sm:$0xff] }
 0x3d7   : > { %7571 = vmatprep.subr.mxu0 %v10860_v53  ;;  %v10855_v8 = vld [vmem:[%s18596_s7 + $0x3d0] sm:$0xff]  ;;  %7664 = vmatprep.subr.mxu1 %v10920_v30  ;;  %v10886_v53 = vld [vmem:[%s18596_s7 + $0x4c8] sm:$0xff] }
 0x3d8   : > { %7572 = vmatpush1.msra.mxu0 %v10859_v31  ;;  %7665 = vmatpush1.msra.mxu1 %v10919_v22  ;;  %v10885_v31 = vld [vmem:[%s18596_s7 + $0x4c0] sm:$0xff] }
 0x3d9   : > { %6792 = vmatmul.mubr.f32.gmra.mxu0 %v15550_v59  ;;  %7071 = vmatmul.mubr.f32.gmra.mxu1 %v6914_v37  ;;  %v6920_v59 = vsel %vm6318_vm8, %v6918_v17, %v6919_v39  ;;  %v10853_v37 = vld [vmem:[%s18596_s7 + $0x3c0] sm:$0xff]  ;;  %v10852_v17 = vld [vmem:[%s18596_s7 + $0x3b8] sm:$0xff] }
 0x3da   : > { %10791 = vmatprep.mubr.msk.f32.mxu0 %vm6400_vm7, %v15665_v41  ;;  %10824 = vmatprep.mubr.msk.f32.mxu1 %vm6400_vm7, %v6923_v58  ;;  %v6929_v41 = vsel %vm6318_vm8, %v6927_v6, %v6928_v18  ;;  %v10850_v58 = vld [vmem:[%s18596_s7 + $0x3a8] sm:$0xff]  ;;  %v10849_v6 = vld [vmem:[%s18596_s7 + $0x3a0] sm:$0xff]  ;;  %v10848_v39 = vld [vmem:[%s18596_s7 + $0x398] sm:$0xff] }
 0x3db   : > { %7573 = vmatprep.subr.mxu0 %v10858_v57  ;;  %v10847_v18 = vld [vmem:[%s18596_s7 + $0x390] sm:$0xff]  ;;  %v10884_v57 = vld [vmem:[%s18596_s7 + $0x4b8] sm:$0xff] }
 0x3dc   : > { %7574 = vmatpush1.msra.mxu0 %v10857_v42  ;;  %v10883_v42 = vld [vmem:[%s18596_s7 + $0x4b0] sm:$0xff] }
 0x3dd   : > { %6797 = vmatmul.mubr.f32.gmra.mxu0 %v15671_v49  ;;  %7076 = vmatmul.mubr.f32.gmra.mxu1 %v6920_v59  ;;  %v6940_v49 = vrot.slane %v6861_v47, 1  ;;  %v10846_v59 = vld [vmem:[%s18596_s7 + $0x388] sm:$0xff]  ;;  %v10845_v47 = vld [vmem:[%s18596_s7 + $0x380] sm:$0xff] }
 0x3de   : > { %10792 = vmatprep.mubr.msk.f32.mxu0 %vm6400_vm7, %v15685_v16  ;;  %10825 = vmatprep.mubr.msk.f32.mxu1 %vm6400_vm7, %v6929_v41  ;;  %v6935_v16 = vsel %vm6318_vm8, %v6933_v15, %v6934_v28  ;;  %v10918_v41 = vld [vmem:[%s18596_s7 + $0x5c8] sm:$0xff]  ;;  %v10844_v15 = vld [vmem:[%s18596_s7 + $0x378] sm:$0xff]  ;;  %v10917_v28 = vld [vmem:[%s18596_s7 + $0x5c0] sm:$0xff] }
 0x3df   : > { %v6941_v23 = vsel %vm6318_vm8, %v6939_v62, %v6940_v49  ;;  %7575 = vmatprep.subr.mxu0 %v10856_v36  ;;  %7666 = vmatprep.subr.mxu1 %v10918_v41  ;;  %v10915_v62 = vld [vmem:[%s18596_s7 + $0x5b0] sm:$0xff]  ;;  %v10841_v49 = vld [vmem:[%s18596_s7 + $0x360] sm:$0xff] }
 0x3e0   : > { %7576 = vmatpush1.msra.mxu0 %v10855_v8  ;;  %7667 = vmatpush1.msra.mxu1 %v10917_v28  ;;  %v10882_v8 = vld [vmem:[%s18596_s7 + $0x4a8] sm:$0xff] }
 0x3e1   : > { %6802 = vmatmul.mubr.f32.gmra.mxu0 %v15691_v20  ;;  %7081 = vmatmul.mubr.f32.gmra.mxu1 %v6926_v29  ;;  %v6932_v20 = vsel %vm6318_vm8, %v6930_v21, %v6931_v25  ;;  %v10913_v29 = vld [vmem:[%s18596_s7 + $0x5a0] sm:$0xff]  ;;  %v10839_v21 = vld [vmem:[%s18596_s7 + $0x350] sm:$0xff]  ;;  %v10838_v25 = vld [vmem:[%s18596_s7 + $0x348] sm:$0xff] }
 0x3e2   : > { %10793 = vmatprep.mubr.msk.f32.mxu0 %vm6400_vm7, %v15702_v3  ;;  %10826 = vmatprep.mubr.msk.f32.mxu1 %vm6400_vm7, %v6935_v16  ;;  %v6938_v3 = vsel %vm6318_vm8, %v6936_v1, %v6937_v5  ;;  %v10912_v16 = vld [vmem:[%s18596_s7 + $0x598] sm:$0xff]  ;;  %v10911_v1 = vld [vmem:[%s18596_s7 + $0x590] sm:$0xff]  ;;  %v10837_v5 = vld [vmem:[%s18596_s7 + $0x340] sm:$0xff] }
 0x3e3   : > { %7577 = vmatprep.subr.mxu0 %v10854_v27  ;;  %7668 = vmatprep.subr.mxu1 %v10916_v2  ;;  %v10881_v27 = vld [vmem:[%s18596_s7 + $0x4a0] sm:$0xff] }
 0x3e4   : > { %7578 = vmatpush1.msra.mxu0 %v10853_v37  ;;  %7669 = vmatpush1.msra.mxu1 %v10915_v62 }
 0x3e5   : > { %6807 = vmatmul.mubr.f32.gmra.mxu0 %v15709_v55  ;;  %7086 = vmatmul.mubr.f32.gmra.mxu1 %v6932_v20  ;;  %v10836_v20 = vld [vmem:[%s18596_s7 + $0x338] sm:$0xff] }
 0x3e6   : > { %10794 = vmatprep.mubr.msk.f32.mxu0 %vm6400_vm7, %v15718_v40  ;;  %10827 = vmatprep.mubr.msk.f32.mxu1 %vm6400_vm7, %v6941_v23  ;;  %v10910_v23 = vld [vmem:[%s18596_s7 + $0x588] sm:$0xff] }
 0x3e7   : > { %7579 = vmatprep.subr.mxu0 %v10852_v17  ;;  %7670 = vmatprep.subr.mxu1 %v10914_v12  ;;  %v10880_v17 = vld [vmem:[%s18596_s7 + $0x498] sm:$0xff] }
 0x3e8   : > { %7580 = vmatpush1.msra.mxu0 %v10851_v32  ;;  %7671 = vmatpush1.msra.mxu1 %v10913_v29 }
 0x3e9   : > { %6812 = vmatmul.mubr.f32.gmra.mxu0 %v15723_v52  ;;  %7091 = vmatmul.mubr.f32.gmra.mxu1 %v6938_v3  ;;  %v10835_v3 = vld [vmem:[%s18596_s7 + $0x330] sm:$0xff] }
 0x3ea   : > { %10795 = vmatprep.mubr.msk.f32.mxu0 %vm6400_vm7, %v6667_v24  ;;  %7724 = vmatprep.mubr.f32.mxu1 %v12750_v10  ;;  %v10909_v24 = vld [vmem:[%s18596_s7 + $0x580] sm:$0xff] }
 0x3eb   : > { %7581 = vmatprep.subr.mxu0 %v10850_v58  ;;  %7672 = vmatprep.subr.mxu1 %v10912_v16  ;;  %v10879_v58 = vld [vmem:[%s18596_s7 + $0x490] sm:$0xff] }
 0x3ec   : > { %7582 = vmatpush1.msra.mxu0 %v10849_v6  ;;  %7673 = vmatpush1.msra.mxu1 %v10911_v1  ;;  %v10878_v6 = vld [vmem:[%s18596_s7 + $0x488] sm:$0xff] }
 0x3ed   : > { %6817 = vmatmul.mubr.f32.gmra.mxu0 %v6666_v26  ;;  %7583 = vmatprep.subr.mxu0 %v10848_v39  ;;  %v10908_v26 = vld [vmem:[%s18596_s7 + $0x578] sm:$0xff]  ;;  %v10877_v39 = vld [vmem:[%s18596_s7 + $0x480] sm:$0xff] }
 0x3ee   : > { %7584 = vmatpush1.msra.mxu0 %v10847_v18  ;;  %7674 = vmatprep.subr.mxu1 %v10910_v23 }
 0x3ef   : > { %7585 = vmatprep.subr.mxu0 %v10846_v59  ;;  %7675 = vmatpush1.msra.mxu1 %v10909_v24  ;;  %v10875_v24 = vld [vmem:[%s18596_s7 + $0x470] sm:$0xff] }
 0x3f0   : > { %7586 = vmatpush1.msra.mxu0 %v10845_v47  ;;  %7676 = vmatprep.subr.mxu1 %v10908_v26  ;;  %v10874_v26 = vld [vmem:[%s18596_s7 + $0x468] sm:$0xff] }
 0x3f1   : > { %7587 = vmatprep.subr.mxu0 %v10844_v15 }
 0x3f2   : > { %7588 = vmatpush1.msra.mxu0 %v10843_v13 }
 0x3f3   : > { %7589 = vmatprep.subr.mxu0 %v10842_v14 }
 0x3f4   : > { %7590 = vmatpush1.msra.mxu0 %v10841_v49 }
 0x3f5   : > { %7591 = vmatprep.subr.mxu0 %v10840_v9  ;;  %v16055_v9 = vld [vmem:[%s18595_s6] ss:$0 sm:$0xff] }
 0x3f6   : > { %7592 = vmatpush1.msra.mxu0 %v10839_v21 }
 0x3f7   : > { %v6612_v55 = vpop.f32.mrf.mxu1  ;;  %7593 = vmatprep.subr.mxu0 %v10838_v25 }
 0x3f8   : > { %7594 = vmatpush1.msra.mxu0 %v10837_v5 }
 0x3f9   : > { %v6614_v61 = vpop.f32.mrf.mxu1  ;;  %7595 = vmatprep.subr.mxu0 %v10836_v20  ;;  %v10876_v20 = vld [vmem:[%s18596_s7 + $0x478] sm:$0xff] }
 0x3fa   : > { %v10907_v61 = vld [vmem:[%s18596_s7 + $0x570] sm:$0xff]  ;;  %7596 = vmatpush1.msra.mxu0 %v10835_v3 }
 0x3fb   : > { %v6483_v33 = vpop.f32.mrf.mxu0  ;;  %7677 = vmatpush1.msra.mxu1 %v10907_v61 }
 0x3fc   : > { %v15778_v4 = vadd.f32 %v6612_v55, %v6483_v33  ;;  %v10834_v55 = vld [vmem:[%s18596_s7 + $0x328] sm:$0xff]  ;;  %v10833_v33 = vld [vmem:[%s18596_s7 + $0x320] sm:$0xff] }
 0x3fd   : > { %v6485_v40 = vpop.f32.mrf.mxu0  ;;  %7597 = vmatprep.subr.mxu0 %v10834_v55  ;;  %v10901_v55 = vld [vmem:[%s18596_s7 + $0x540] sm:$0xff] }
 0x3fe   : > { %v10906_v40 = vld [vmem:[%s18596_s7 + $0x568] sm:$0xff]  ;;  %7598 = vmatpush1.msra.mxu0 %v10833_v33 }
 0x3ff   : > { %7678 = vmatprep.subr.mxu1 %v10906_v40 }
 0x406   : > { %v6617_v44 = vpop.f32.mrf.mxu1 }
 0x408   : > { %v6619_v19 = vpop.f32.mrf.mxu1 }
 0x409   : > { %v10905_v19 = vld [vmem:[%s18596_s7 + $0x560] sm:$0xff] }
 0x40a   : > { %v6488_v38 = vpop.f32.mrf.mxu0  ;;  %7679 = vmatpush1.msra.mxu1 %v10905_v19  ;;  %v10900_v19 = vld [vmem:[%s18596_s7 + $0x538] sm:$0xff] }
 0x40b   : > { %v15780_v54 = vadd.f32 %v6617_v44, %v6488_v38  ;;  %v10832_v44 = vld [vmem:[%s18596_s7 + $0x318] sm:$0xff]  ;;  %v10831_v38 = vld [vmem:[%s18596_s7 + $0x310] sm:$0xff] }
 0x40c   : > { %v6490_v63 = vpop.f32.mrf.mxu0  ;;  %7599 = vmatprep.subr.mxu0 %v10832_v44  ;;  %v10873_v44 = vld [vmem:[%s18596_s7 + $0x460] sm:$0xff] }
 0x40d   : > { %v10904_v63 = vld [vmem:[%s18596_s7 + $0x558] sm:$0xff]  ;;  %7600 = vmatpush1.msra.mxu0 %v10831_v38 }
 0x40e   : > { %7680 = vmatprep.subr.mxu1 %v10904_v63  ;;  %v7136_v63 = vld [vmem:[#allocation6] ss:$2 sm:$0x1f] }
 0x40f   : > { %7146 = vst.msk [vmem:[#allocation7] sm:$0x1f] %vm7145_vm10, %v7136_v63 }
 0x411   : > { %v6622_v52 = vpop.f32.mrf.mxu1 }
 0x413   : > { %v6624_v11 = vpop.f32.mrf.mxu1 }
 0x414   : > { %v10829_v11 = vld [vmem:[%s18596_s7 + $0x300] sm:$0xff] }
 0x415   : > { %v6493_v48 = vpop.f32.mrf.mxu0 }
 0x416   : > { %v15782_v56 = vadd.f32 %v6622_v52, %v6493_v48  ;;  %v10830_v52 = vld [vmem:[%s18596_s7 + $0x308] sm:$0xff]  ;;  %v10892_v48 = vld [vmem:[%s18596_s7 + $0x4f8] sm:$0xff] }
 0x417   : > { %v6495_v43 = vpop.f32.mrf.mxu0  ;;  %7601 = vmatprep.subr.mxu0 %v10830_v52 }
 0x418   : > { %v10891_v43 = vld [vmem:[%s18596_s7 + $0x4f0] sm:$0xff]  ;;  %7602 = vmatpush1.msra.mxu0 %v10829_v11 }
 0x419   : > { %7603 = vmatprep.subr.mxu0 %v10892_v48 }
 0x41a   : > { %7604 = vmatpush2.msra.mxu0 %v10891_v43  ;;  %v10872_v43 = vld [vmem:[%s18596_s7 + $0x458] sm:$0xff] }
 0x41b   : > { %v6627_v50 = vpop.f32.mrf.mxu1 }
 0x41d   : > { %v6629_v60 = vpop.f32.mrf.mxu1 }
 0x41e   : > { %v6498_v7 = vpop.f32.mrf.mxu0  ;;  %v10889_v60 = vld [vmem:[%s18596_s7 + $0x4e0] sm:$0xff] }
 0x41f   : > { %v15784_v35 = vadd.f32 %v6627_v50, %v6498_v7  ;;  %v10890_v50 = vld [vmem:[%s18596_s7 + $0x4e8] sm:$0xff]  ;;  %v10888_v7 = vld [vmem:[%s18596_s7 + $0x4d8] sm:$0xff] }
 0x420   : > { %v6500_v51 = vpop.f32.mrf.mxu0  ;;  %7605 = vmatprep.subr.mxu0 %v10890_v50  ;;  %v10899_v50 = vld [vmem:[%s18596_s7 + $0x530] sm:$0xff] }
 0x421   : > { %v10887_v51 = vld [vmem:[%s18596_s7 + $0x4d0] sm:$0xff]  ;;  %7606 = vmatpush2.msra.mxu0 %v10889_v60 }
 0x422   : > { %7607 = vmatprep.subr.mxu0 %v10888_v7  ;;  %v10871_v60 = vld [vmem:[%s18596_s7 + $0x450] sm:$0xff] }
 0x423   : > { %7608 = vmatpush2.msra.mxu0 %v10887_v51  ;;  %v10870_v51 = vld [vmem:[%s18596_s7 + $0x448] sm:$0xff] }
 0x424   : > { %7609 = vmatprep.subr.mxu0 %v10886_v53  ;;  %v10897_v53 = vld [vmem:[%s18596_s7 + $0x520] sm:$0xff] }
 0x425   : > { %7610 = vmatpush2.msra.mxu0 %v10885_v31 }
 0x426   : > { %7611 = vmatprep.subr.mxu0 %v10884_v57 }
 0x427   : > { %7612 = vmatpush2.msra.mxu0 %v10883_v42 }
 0x428   : > { %7613 = vmatprep.subr.mxu0 %v10882_v8  ;;  %v10869_v8 = vld [vmem:[%s18596_s7 + $0x440] sm:$0xff] }
 0x429   : > { %7614 = vmatpush2.msra.mxu0 %v10881_v27  ;;  %v10896_v27 = vld [vmem:[%s18596_s7 + $0x518] sm:$0xff] }
 0x42a   : > { %7615 = vmatprep.subr.mxu0 %v10880_v17 }
 0x42b   : > { %7616 = vmatpush2.msra.mxu0 %v10879_v58 }
 0x42c   : > { %7617 = vmatprep.subr.mxu0 %v10878_v6 }
 0x42d   : > { %7618 = vmatpush2.msra.mxu0 %v10877_v39  ;;  %v10895_v39 = vld [vmem:[%s18596_s7 + $0x510] sm:$0xff] }
 0x42e   : > { %7619 = vmatprep.subr.mxu0 %v10876_v20 }
 0x42f   : > { %7620 = vmatpush2.msra.mxu0 %v10875_v24 }
 0x430   : > { %7621 = vmatprep.subr.mxu0 %v10874_v26  ;;  %v10861_v26 = vld [vmem:[%s18596_s7 + $0x400] sm:$0xff] }
 0x431   : > { %7622 = vmatpush2.msra.mxu0 %v10873_v44 }
 0x432   : > { %7623 = vmatprep.subr.mxu0 %v10872_v43 }
 0x433   : > { %7624 = vmatpush2.msra.mxu0 %v10871_v60 }
 0x434   : > { %7625 = vmatprep.subr.mxu0 %v10870_v51 }
 0x435   : > { %7626 = vmatpush2.msra.mxu0 %v10869_v8 }
 0x462   : > { %v16017_v36 = vpop.f32.mrf.mxu1 }
 0x464   : > { %v6634_v37 = vpop.f32.mrf.mxu1 }
 0x466   : > { %v16028_v32 = vpop.f32.mrf.mxu0 }
 0x468   : > { %v6505_v46 = vpop.f32.mrf.mxu0 }
 0x469   : > { %v10868_v46 = vld [vmem:[%s18596_s7 + $0x438] sm:$0xff] }
 0x46a   : > { %7627 = vmatprep.subr.mxu0 %v10868_v46 }
 0x46e   : > { %v16039_v45 = vpop.f32.mrf.mxu1 }
 0x470   : > { %v6639_v0 = vpop.f32.mrf.mxu1 }
 0x471   : > { %v10867_v0 = vld [vmem:[%s18596_s7 + $0x430] sm:$0xff] }
 0x472   : > { %v16041_v18 = vpop.f32.mrf.mxu0  ;;  %7628 = vmatpush2.msra.mxu0 %v10867_v0 }
 0x473   : > { %v6638_v20 = vadd.f32 %v16039_v45, %v16041_v18 }
 0x474   : > { %v6510_v34 = vpop.f32.mrf.mxu0 }
 0x47d   : > { %v16043_v59 = vpop.f32.mrf.mxu1 }
 0x47f   : > { %v6644_v30 = vpop.f32.mrf.mxu1 }
 0x480   : > { %v10866_v30 = vld [vmem:[%s18596_s7 + $0x428] sm:$0xff] }
 0x481   : > { %v16045_v22 = vpop.f32.mrf.mxu0  ;;  %7629 = vmatprep.subr.mxu0 %v10866_v30 }
 0x483   : > { %v6515_v47 = vpop.f32.mrf.mxu0 }
 0x484   : > { %v10893_v47 = vld [vmem:[%s18596_s7 + $0x500] sm:$0xff] }
 0x489   : > { %v16047_v41 = vpop.f32.mrf.mxu1 }
 0x48b   : > { %v6649_v15 = vpop.f32.mrf.mxu1 }
 0x48c   : > { %v6633_v15 = vadd.f32 %v16017_v36, %v16028_v32 }
 0x48d   : > { %v16049_v28 = vpop.f32.mrf.mxu0  ;;  %v7057_v13 = vpop.f32.mrf.mxu1 }
 0x48f   : > { %v6520_v2 = vpop.f32.mrf.mxu0  ;;  %v7059_v14 = vpop.f32.mrf.mxu1 }
 0x491   : > { %v6783_v62 = vpop.f32.mrf.mxu0  ;;  %v7062_v12 = vpop.f32.mrf.mxu1 }
 0x492   : > { %v6822_v49 = vadd.f32 %v6783_v62, %v15778_v4  ;;  %v10903_v4 = vld [vmem:[%s18596_s7 + $0x550] sm:$0xff]  ;;  %v10865_v62 = vld [vmem:[%s18596_s7 + $0x420] sm:$0xff] }
 0x493   : > { %v6785_v29 = vpop.f32.mrf.mxu0  ;;  %v7064_v16 = vpop.f32.mrf.mxu1  ;;  %7681 = vmatpush1.msra.mxu1 %v10903_v4  ;;  %7630 = vmatpush2.msra.mxu0 %v10865_v62 }
 0x494   : > { %v7096_v21 = vadd.f32 %v7057_v13, %v6822_v49  ;;  %v7313_v49 = vld [vmem:[%s18596_s7 + $0xf8] sm:$0xff] }
 0x495   : > { %v6788_v25 = vpop.f32.mrf.mxu0  ;;  %v7067_v23 = vpop.f32.mrf.mxu1 }
 0x496   : > { %v7111_v1 = vadd.f32 %v16055_v9, %v7096_v21  ;;  %v6823_v5 = vadd.f32 %v6788_v25, %v15780_v54  ;;  %v10902_v54 = vld [vmem:[%s18596_s7 + $0x548] sm:$0xff]  ;;  %v10864_v25 = vld [vmem:[%s18596_s7 + $0x418] sm:$0xff] }
 0x497   : > { %v6790_v3 = vpop.f32.mrf.mxu0  ;;  %v7069_v40 = vpop.f32.mrf.mxu1  ;;  %7682 = vmatprep.subr.mxu1 %v10902_v54  ;;  %7631 = vmatprep.subr.mxu0 %v10864_v25  ;;  %v10862_v54 = vld [vmem:[%s18596_s7 + $0x408] sm:$0xff] }
 0x498   : > { %v7119_v61 = vmax.f32 %v7111_v1, 0.0  ;;  %v7097_v33 = vadd.f32 %v7062_v12, %v6823_v5  ;;  %7683 = vmatpush1.msra.mxu1 %v10901_v55  ;;  %v7152_v5 = vld [vmem:[#allocation6 + $0x1] ss:$2 sm:$0x1f] }
 0x499   : > { %v6793_v38 = vpop.f32.mrf.mxu0  ;;  %v7072_v48 = vpop.f32.mrf.mxu1  ;;  %7684 = vmatprep.subr.mxu1 %v10900_v19  ;;  %v7377_v19 = vld [vmem:[%s18596_s7 + $0x2f8] sm:$0xff] }
 0x49a   : > { %7128 = vst.msk [vmem:[#allocation6 + $0x11] sm:$0xff] %vm3837_vm6, %v7119_v61  ;;  %v7112_v52 = vadd.f32 %v16055_v9, %v7097_v33  ;;  %v6824_v11 = vadd.f32 %v6793_v38, %v15782_v56  ;;  %7685 = vmatpush1.msra.mxu1 %v10899_v50  ;;  %v10898_v56 = vld [vmem:[%s18596_s7 + $0x528] sm:$0xff]  ;;  %v6643_v38 = vadd.f32 %v16043_v59, %v16045_v22 }
 0x49b   : > { %v6795_v7 = vpop.f32.mrf.mxu0  ;;  %v7074_v42 = vpop.f32.mrf.mxu1  ;;  %7686 = vmatprep.subr.mxu1 %v10898_v56  ;;  %v6648_v59 = vadd.f32 %v16047_v41, %v16049_v28 }
 0x49c   : > { %v7120_v31 = vmax.f32 %v7112_v52, 0.0  ;;  %v7098_v57 = vadd.f32 %v7067_v23, %v6824_v11  ;;  %7687 = vmatpush1.msra.mxu1 %v10897_v53  ;;  %v10863_v23 = vld [vmem:[%s18596_s7 + $0x410] sm:$0xff] }
 0x49d   : > { %v6798_v37 = vpop.f32.mrf.mxu0  ;;  %v7077_v6 = vpop.f32.mrf.mxu1  ;;  %7688 = vmatprep.subr.mxu1 %v10896_v27  ;;  %7632 = vmatpush2.msra.mxu0 %v10863_v23  ;;  %v7311_v23 = vld [vmem:[%s18596_s7 + $0xe8] sm:$0xff] }
 0x49e   : > { %7129 = vst.msk [vmem:[#allocation6 + $0x21] sm:$0xff] %vm3837_vm6, %v7120_v31  ;;  %v7113_v17 = vadd.f32 %v16055_v9, %v7098_v57  ;;  %v6825_v58 = vadd.f32 %v6798_v37, %v15784_v35  ;;  %7689 = vmatpush1.msra.mxu1 %v10895_v39  ;;  %v10894_v35 = vld [vmem:[%s18596_s7 + $0x508] sm:$0xff]  ;;  %7633 = vmatprep.subr.mxu0 %v10862_v54 }
 0x49f   : > { %v6800_v34 = vpop.f32.mrf.mxu0  ;;  %v7079_v14 = vpop.f32.mrf.mxu1  ;;  %7690 = vmatprep.subr.mxu1 %v10894_v35  ;;  %7634 = vmatpush2.msra.mxu0 %v10861_v26  ;;  %v7388_v26 = vld [vmem:[#allocation7 + $0x50] sm:$0x1] }
 0x4a0   : > { %v7121_v13 = vmax.f32 %v7113_v17, 0.0  ;;  %v7099_v2 = vadd.f32 %v7072_v48, %v6825_v58  ;;  %7691 = vmatpush1.msra.mxu1 %v10893_v47  ;;  %7838 = vmatprep.subr.mxu0 %v7377_v19 }
 0x4a1   : > { %v6803_v12 = vpop.f32.mrf.mxu0  ;;  %v7235_v29 = vld [vmem:[#allocation6 + $0x11] ss:$2 sm:$0x1f]  ;;  %v7193_v21 = vld [vmem:[#allocation6 + $0x10] ss:$2 sm:$0x1f]  ;;  %v7082_v16 = vpop.f32.mrf.mxu1  ;;  %7749 = vmatprep.subr.mxu1 %v7313_v49 }
 0x4a2   : > { %7130 = vst.msk [vmem:[#allocation6 + $0x31] sm:$0xff] %vm3837_vm6, %v7121_v13  ;;  %v7114_v36 = vadd.f32 %v16055_v9, %v7099_v2  ;;  %v6826_v32 = vadd.f32 %v6803_v12, %v6633_v15  ;;  %7249 = vrot.lane.b32.xlu0 %v7235_v29, %s12756_s25  ;;  %7207 = vrot.lane.b32.xlu1 %v7193_v21, %s18603_s13  ;;  %v7243_v13 = vld [vmem:[#allocation6 + $0x91] ss:$2 sm:$0x1f]  ;;  %v7383_v12 = vld [vmem:[#allocation7 + $0x28] sm:$0x1] }
 0x4a3   : > { %v6805_v1 = vpop.f32.mrf.mxu0  ;;  %v7084_v3 = vpop.f32.mrf.mxu1 }
 0x4a4   : > { %v7122_v4 = vmax.f32 %v7114_v36, 0.0  ;;  %v7100_v24 = vadd.f32 %v7077_v6, %v6826_v32  ;;  %v7433_v36 = vrot.slane %v7383_v12, 1  ;;  %v7382_v32 = vld [vmem:[#allocation7 + $0x20] sm:$0x1] }
 0x4a5   : > { %v6808_v55 = vpop.f32.mrf.mxu0  ;;  %v7154_v61 = vld [vmem:[#allocation6 + $0x21] ss:$2 sm:$0x1f]  ;;  %v7138_v33 = vld [vmem:[#allocation6 + $0x20] ss:$2 sm:$0x1f]  ;;  %v7087_v40 = vpop.f32.mrf.mxu1 }
 0x4a6   : > { %7131 = vst.msk [vmem:[#allocation6 + $0x41] sm:$0xff] %vm3837_vm6, %v7122_v4  ;;  %v7115_v45 = vadd.f32 %v16055_v9, %v7100_v24  ;;  %v6827_v18 = vadd.f32 %v6808_v55, %v6638_v20  ;;  %7166 = vrot.lane.b32.xlu1 %v7152_v5, %s18609_s12  ;;  %7168 = vrot.lane.b32.xlu0 %v7154_v61, %s18609_s12  ;;  %v7312_v5 = vld [vmem:[%s18596_s7 + $0xf0] sm:$0xff]  ;;  %v7430_v20 = vrot.slane %v7382_v32, 1  ;;  %v7310_v61 = vld [vmem:[%s18596_s7 + $0xe0] sm:$0xff] }
 0x4a7   : > { %7147 = vst.msk [vmem:[#allocation7 + $0x30] sm:$0x1f] %vm7145_vm10, %v7138_v33  ;;  %v6810_v44 = vpop.f32.mrf.mxu0  ;;  %v7089_v11 = vpop.f32.mrf.mxu1  ;;  %v7389_v55 = vld [vmem:[#allocation7 + $0x58] sm:$0x1] }
 0x4a8   : > { %v7123_v63 = vmax.f32 %v7115_v45, 0.0  ;;  %v7101_v52 = vadd.f32 %v7082_v16, %v6827_v18  ;;  %v7381_v16 = vld [vmem:[#allocation7 + $0x18] sm:$0x1]  ;;  %v7309_v18 = vld [vmem:[%s18596_s7 + $0xd8] sm:$0xff]  ;;  %v7442_v11 = vrot.slane %v7389_v55, 1  ;;  %v7366_v55 = vld [vmem:[%s18596_s7 + $0x2a0] sm:$0xff] }
 0x4a9   : > { %v6813_v48 = vpop.f32.mrf.mxu0  ;;  %v7237_v43 = vld [vmem:[#allocation6 + $0x31] ss:$2 sm:$0x1f]  ;;  %v7195_v50 = vld [vmem:[#allocation6 + $0x30] ss:$2 sm:$0x1f]  ;;  %v7092_v56 = vpop.f32.mrf.mxu1 }
 0x4aa   : > { %7132 = vst.msk [vmem:[#allocation6 + $0x51] sm:$0xff] %vm3837_vm6, %v7123_v63  ;;  %v7116_v60 = vadd.f32 %v16055_v9, %v7101_v52  ;;  %v6828_v7 = vadd.f32 %v6813_v48, %v6643_v38  ;;  %7251 = vrot.lane.b32.xlu0 %v7237_v43, %s12756_s25  ;;  %7209 = vrot.lane.b32.xlu1 %v7195_v50, %s18603_s13  ;;  %v7427_v4 = vrot.slane %v7381_v16, 1  ;;  %v7308_v44 = vld [vmem:[%s18596_s7 + $0xd0] sm:$0xff]  ;;  %v7307_v38 = vld [vmem:[%s18596_s7 + $0xc8] sm:$0xff]  ;;  %v7439_v52 = vrot.slane %v7388_v26, 1 }
 0x4ab   : > { %v6815_v51 = vpop.f32.mrf.mxu0  ;;  %v7094_v31 = vpop.f32.mrf.mxu1  ;;  %v7376_v63 = vld [vmem:[%s18596_s7 + $0x2f0] sm:$0xff] }
 0x4ac   : > { %v7124_v22 = vmax.f32 %v7116_v60, 0.0  ;;  %v7102_v53 = vadd.f32 %v7087_v40, %v6828_v7  ;;  %v7306_v51 = vld [vmem:[%s18596_s7 + $0xc0] sm:$0xff]  ;;  %v7305_v31 = vld [vmem:[%s18596_s7 + $0xb8] sm:$0xff] }
 0x4ad   : > { %v6818_v57 = vpop.f32.mrf.mxu0  ;;  %v7156_v42 = vld [vmem:[#allocation6 + $0x41] ss:$2 sm:$0x1f]  ;;  %v7140_v8 = vld [vmem:[#allocation6 + $0x40] ss:$2 sm:$0x1f] }
 0x4ae   : > { %7133 = vst.msk [vmem:[#allocation6 + $0x61] sm:$0xff] %vm3837_vm6, %v7124_v22  ;;  %v7117_v27 = vadd.f32 %v16055_v9, %v7102_v53  ;;  %v6829_v37 = vadd.f32 %v6818_v57, %v6648_v59  ;;  %7170 = vrot.lane.b32.xlu1 %v7156_v42, %s18609_s12  ;;  %v7375_v59 = vld [vmem:[%s18596_s7 + $0x2e8] sm:$0xff] }
 0x4af   : > { %7148 = vst.msk [vmem:[#allocation7 + $0x60] sm:$0x1f] %vm7145_vm10, %v7140_v8  ;;  %v6820_v17 = vpop.f32.mrf.mxu0  ;;  %v7374_v8 = vld [vmem:[%s18596_s7 + $0x2e0] sm:$0xff] }
 0x4b0   : > { %v7125_v58 = vmax.f32 %v7117_v27, 0.0  ;;  %v7103_v6 = vadd.f32 %v7092_v56, %v6829_v37  ;;  %v7387_v56 = vld [vmem:[#allocation7 + $0x48] sm:$0x1] }
 0x4b1   : > { %v7239_v46 = vld [vmem:[#allocation6 + $0x51] ss:$2 sm:$0x1f]  ;;  %v7197_v41 = vld [vmem:[#allocation6 + $0x50] ss:$2 sm:$0x1f] }
 0x4b2   : > { %7134 = vst.msk [vmem:[#allocation6 + $0x71] sm:$0xff] %vm3837_vm6, %v7125_v58  ;;  %v7118_v28 = vadd.f32 %v16055_v9, %v7103_v6  ;;  %7253 = vrot.lane.b32.xlu1 %v7239_v46, %s12756_s25  ;;  %7211 = vrot.lane.b32.xlu0 %v7197_v41, %s18603_s13  ;;  %v7201_v9 = vld [vmem:[#allocation6 + $0x90] ss:$2 sm:$0x1f]  ;;  %v7436_v37 = vrot.slane %v7387_v56, 1  ;;  %v7373_v46 = vld [vmem:[%s18596_s7 + $0x2d8] sm:$0xff] }
 0x4b3   : > { %v7304_v6 = vld [vmem:[%s18596_s7 + $0xb0] sm:$0xff]  ;;  %v7394_v41 = vld [vmem:[#allocation7 + $0x80] sm:$0x1]  ;;  %v7362_v56 = vld [vmem:[%s18596_s7 + $0x280] sm:$0xff] }
 0x4b4   : > { %v7126_v39 = vmax.f32 %v7118_v28, 0.0  ;;  %v7303_v28 = vld [vmem:[%s18596_s7 + $0xa8] sm:$0xff] }
 0x4b5   : > { %v7158_v0 = vld [vmem:[#allocation6 + $0x61] ss:$2 sm:$0x1f]  ;;  %v7142_v34 = vld [vmem:[#allocation6 + $0x60] ss:$2 sm:$0x1f] }
 0x4b6   : > { %7135 = vst.msk [vmem:[#allocation6 + $0x81] sm:$0xff] %vm3837_vm6, %v7126_v39  ;;  %7172 = vrot.lane.b32.xlu0 %v7158_v0, %s18609_s12  ;;  %vm7224_vm6 = vcmask 258048   ;;  %v7372_v39 = vld [vmem:[%s18596_s7 + $0x2d0] sm:$0xff]  ;;  %v7302_v0 = vld [vmem:[%s18596_s7 + $0xa0] sm:$0xff] }
 0x4b7   : > { %7149 = vst.msk [vmem:[#allocation7 + $0x90] sm:$0x1f] %vm7145_vm10, %v7142_v34  ;;  %v7371_v34 = vld [vmem:[%s18596_s7 + $0x2c8] sm:$0xff] }
 0x4b9   : > { %v7241_v35 = vld [vmem:[#allocation6 + $0x71] ss:$2 sm:$0x1f]  ;;  %v7199_v30 = vld [vmem:[#allocation6 + $0x70] ss:$2 sm:$0x1f] }
 0x4ba   : > { %7255 = vrot.lane.b32.xlu0 %v7241_v35, %s12756_s25  ;;  %7213 = vrot.lane.b32.xlu1 %v7199_v30, %s18603_s13  ;;  %v7301_v35 = vld [vmem:[%s18596_s7 + $0x98] sm:$0xff]  ;;  %v7395_v30 = vld [vmem:[#allocation7 + $0x88] sm:$0x1] }
 0x4bb   : > { %v7451_v16 = vrot.slane %v7395_v30, 1  ;;  %v7356_v30 = vld [vmem:[%s18596_s7 + $0x250] sm:$0xff] }
 0x4bd   : > { %v7160_v47 = vld [vmem:[#allocation6 + $0x81] ss:$2 sm:$0x1f]  ;;  %v7144_v15 = vld [vmem:[#allocation6 + $0x80] ss:$2 sm:$0x1f] }
 0x4be   : > { %7174 = vrot.lane.b32.xlu1 %v7160_v47, %s18609_s12  ;;  %7215 = vrot.lane.b32.xlu0 %v7201_v9, %s18603_s13  ;;  %7150 = vst.msk [vmem:[#allocation7 + $0xc0] sm:$0x1f] %vm7145_vm10, %v7144_v15  ;;  %v7370_v47 = vld [vmem:[%s18596_s7 + $0x2c0] sm:$0xff]  ;;  %v7300_v15 = vld [vmem:[%s18596_s7 + $0x90] sm:$0xff] }
 0x4c2   : > { %7257 = vrot.lane.b32.xlu1 %v7243_v13, %s12756_s25  ;;  %v7369_v13 = vld [vmem:[%s18596_s7 + $0x2b8] sm:$0xff]  ;;  %s11117_s25 = sshll.u32 %s12841_s21, 4  ;;  %s12694_s21 = scalar_lea.vmem %s12693_s0, 32 }
 0x4c3   : > { %s18553_s13 = scalar_lea.hbm %s18600_s11, %s11117_s25 }
 0x514   : > { %v7250_v2 = vpop.permute.xlu0 %7249  ;;  %v7208_v14 = vpop.permute.xlu1 %7207 }
 0x515   : > { %7225 = vst.msk [vmem:[#allocation7 + $0x10] sm:$0x1f] %vm7224_vm6, %v7208_v14 }
 0x516   : > { %7265 = vst.msk [vmem:[#allocation7 + $0x10] sm:$0x1f] %vm7264_vm11, %v7250_v2  ;;  %v7448_v2 = vrot.slane %v7394_v41, 1  ;;  %v7358_v41 = vld [vmem:[%s18596_s7 + $0x260] sm:$0xff] }
 0x518   : > { %v7169_v62 = vpop.permute.xlu0 %7168  ;;  %v7167_v49 = vpop.permute.xlu1 %7166 }
 0x519   : > { %7185 = vst.msk [vmem:[#allocation7 + $0x30] sm:$0x1f] %vm7181_vm12, %v7169_v62  ;;  %7182 = vst.msk [vmem:[#allocation7] sm:$0x1f] %vm7181_vm12, %v7167_v49 }
 0x51a   : > { %7186 = vst.msk [vmem:[#allocation7 + $0x38] sm:$0x1f] %vm7183_vm13, %v7169_v62  ;;  %7184 = vst.msk [vmem:[#allocation7 + $0x8] sm:$0x1f] %vm7183_vm13, %v7167_v49  ;;  %v7299_v49 = vld [vmem:[%s18596_s7 + $0x88] sm:$0xff] }
 0x51b   : > { %7223 = vst.msk [vmem:[#allocation7 + $0x8] sm:$0x1f] %vm7222_vm14, %v7208_v14 }
 0x51c   : > { %v7252_v29 = vpop.permute.xlu0 %7251  ;;  %v7210_v21 = vpop.permute.xlu1 %7209 }
 0x51d   : > { %7226 = vst.msk [vmem:[#allocation7 + $0x38] sm:$0x1f] %vm7222_vm14, %v7210_v21  ;;  %v7380_v25 = vld [vmem:[#allocation7 + $0x10] sm:$0xfe] }
 0x51e   : > { %7227 = vst.msk [vmem:[#allocation7 + $0x40] sm:$0x1f] %vm7224_vm6, %v7210_v21  ;;  %v7432_v1 = vrot.slane %v7380_v25, 1  ;;  %v7368_v25 = vld [vmem:[%s18596_s7 + $0x2b0] sm:$0xff] }
 0x51f   : > { %7266 = vst.msk [vmem:[#allocation7 + $0x40] sm:$0x1f] %vm7264_vm11, %v7252_v29  ;;  %v7393_v29 = vld [vmem:[#allocation7 + $0x78] sm:$0x1] }
 0x520   : > { %v7171_v24 = vpop.permute.xlu1 %7170  ;;  %v7434_v3 = vsel %vm6318_vm8, %v7432_v1, %v7433_v36  ;;  %v7378_v54 = vld [vmem:[#allocation7] sm:$0xfe]  ;;  %v7384_v7 = vld [vmem:[#allocation7 + $0x30] sm:$0xfe]  ;;  %v7298_v1 = vld [vmem:[%s18596_s7 + $0x80] sm:$0xff] }
 0x521   : > { %7187 = vst.msk [vmem:[#allocation7 + $0x60] sm:$0x1f] %vm7181_vm12, %v7171_v24  ;;  %7725 = vmatmul.mubr.f32.vlgmr.msra.gmra.mxu1 %v7434_v3  ;;  %v7426_v45 = vrot.slane %v7378_v54, 1  ;;  %v7435_v27 = vrot.slane %v7384_v7, 1  ;;  %v7445_v54 = vrot.slane %v7393_v29, 1  ;;  %v7282_v29 = vld [vmem:[%s18596_s7] sm:$0xff] }
 0x522   : > { %7188 = vst.msk [vmem:[#allocation7 + $0x68] sm:$0x1f] %vm7183_vm13, %v7171_v24  ;;  %v7379_v33 = vld [vmem:[#allocation7 + $0x8] sm:$0xfe]  ;;  %7750 = vmatpush1.msra.mxu1 %v7312_v5  ;;  %7730 = vmatprep.mubr.f32.mxu1 %v12750_v10 }
 0x523   : > { %v7429_v40 = vrot.slane %v7379_v33, 1  ;;  %7751 = vmatprep.subr.mxu1 %v7311_v23  ;;  %v7428_v19 = vsel %vm6318_vm8, %v7426_v45, %v7427_v4  ;;  %v7437_v9 = vsel %vm6318_vm8, %v7435_v27, %v7436_v37  ;;  %v7367_v23 = vld [vmem:[%s18596_s7 + $0x2a8] sm:$0xff]  ;;  %v7297_v4 = vld [vmem:[%s18596_s7 + $0x78] sm:$0xff]  ;;  %v7296_v33 = vld [vmem:[%s18596_s7 + $0x70] sm:$0xff] }
 0x524   : > { %7752 = vmatpush1.msra.mxu1 %v7310_v61  ;;  %v7212_v48 = vpop.permute.xlu0 %7211  ;;  %v7254_v43 = vpop.permute.xlu1 %7253  ;;  %v7385_v60 = vld [vmem:[#allocation7 + $0x38] sm:$0xfe]  ;;  %v7400_v45 = vld [vmem:[#allocation7 + $0xb0] sm:$0x1]  ;;  %v7290_v27 = vld [vmem:[%s18596_s7 + $0x40] sm:$0xff] }
 0x525   : > { %v7431_v50 = vsel %vm6318_vm8, %v7429_v40, %v7430_v20  ;;  %7228 = vst.msk [vmem:[#allocation7 + $0x68] sm:$0x1f] %vm7222_vm14, %v7212_v48  ;;  %7753 = vmatprep.subr.mxu1 %v7309_v18  ;;  %v7438_v22 = vrot.slane %v7385_v60, 1  ;;  %v7365_v18 = vld [vmem:[%s18596_s7 + $0x298] sm:$0xff]  ;;  %v7295_v40 = vld [vmem:[%s18596_s7 + $0x68] sm:$0xff]  ;;  %v7457_v60 = vrot.slane %v7400_v45, 1 }
 0x526   : > { %7229 = vst.msk [vmem:[#allocation7 + $0x70] sm:$0x1f] %vm7224_vm6, %v7212_v48  ;;  %7635 = vmatprep.mubr.f32.mxu0 %v7431_v50  ;;  %v7386_v53 = vld [vmem:[#allocation7 + $0x40] sm:$0xfe]  ;;  %7754 = vmatpush1.msra.mxu1 %v7308_v44  ;;  %v7364_v44 = vld [vmem:[%s18596_s7 + $0x290] sm:$0xff]  ;;  %v7363_v48 = vld [vmem:[%s18596_s7 + $0x288] sm:$0xff] }
 0x527   : > { %7267 = vst.msk [vmem:[#allocation7 + $0x70] sm:$0x1f] %vm7264_vm11, %v7254_v43  ;;  %7636 = vmatmul.mubr.f32.vlgmr.msra.gmra.mxu0 %v7428_v19  ;;  %v7441_v57 = vrot.slane %v7386_v53, 1  ;;  %7755 = vmatprep.subr.mxu1 %v7307_v38  ;;  %v7440_v42 = vsel %vm6318_vm8, %v7438_v22, %v7439_v52  ;;  %v7294_v38 = vld [vmem:[%s18596_s7 + $0x60] sm:$0xff]  ;;  %v7401_v52 = vld [vmem:[#allocation7 + $0xb8] sm:$0x1] }
 0x528   : > { %7839 = vmatpush1.msra.mxu0 %v7376_v63  ;;  %7756 = vmatpush1.msra.mxu1 %v7306_v51  ;;  %v7173_v17 = vpop.permute.xlu0 %7172  ;;  %v7390_v36 = vld [vmem:[#allocation7 + $0x60] sm:$0xfe]  ;;  %v7292_v51 = vld [vmem:[%s18596_s7 + $0x50] sm:$0xff]  ;;  %v7291_v53 = vld [vmem:[%s18596_s7 + $0x48] sm:$0xff] }
 0x529   : > { %7840 = vmatprep.subr.mxu0 %v7375_v59  ;;  %v7443_v58 = vsel %vm6318_vm8, %v7441_v57, %v7442_v11  ;;  %7189 = vst.msk [vmem:[#allocation7 + $0x90] sm:$0x1f] %vm7181_vm12, %v7173_v17  ;;  %7641 = vmatprep.mubr.f32.mxu0 %v7440_v42  ;;  %v7444_v3 = vrot.slane %v7390_v36, 1  ;;  %v7293_v43 = vld [vmem:[%s18596_s7 + $0x58] sm:$0xff]  ;;  %v7399_v59 = vld [vmem:[#allocation7 + $0xa8] sm:$0x1] }
 0x52a   : > { %7190 = vst.msk [vmem:[#allocation7 + $0x98] sm:$0x1f] %vm7183_vm13, %v7173_v17  ;;  %7757 = vmatprep.subr.mxu1 %v7305_v31  ;;  %7841 = vmatpush1.msra.mxu0 %v7374_v8  ;;  %v7361_v22 = vld [vmem:[%s18596_s7 + $0x278] sm:$0xff]  ;;  %v7460_v42 = vrot.slane %v7401_v52, 1  ;;  %v7360_v8 = vld [vmem:[%s18596_s7 + $0x270] sm:$0xff]  ;;  %v7359_v37 = vld [vmem:[%s18596_s7 + $0x268] sm:$0xff] }
 0x52b   : > { %7731 = vmatmul.mubr.f32.gmra.mxu1 %v7443_v58  ;;  %7842 = vmatprep.subr.mxu0 %v7373_v46  ;;  %v7446_v19 = vsel %vm6318_vm8, %v7444_v3, %v7445_v54  ;;  %v7289_v58 = vld [vmem:[%s18596_s7 + $0x38] sm:$0xff]  ;;  %v7454_v46 = vrot.slane %v7399_v59, 1  ;;  %v7340_v3 = vld [vmem:[%s18596_s7 + $0x1d0] sm:$0xff]  ;;  %v10954_v45 = vld [vmem:[%s18596_s7 + $0x6e8] sm:$0xff] }
 0x52c   : > { %7758 = vmatpush1.msra.mxu1 %v7304_v6  ;;  %7642 = vmatmul.mubr.f32.gmra.mxu0 %v7437_v9  ;;  %v7256_v14 = vpop.permute.xlu0 %7255  ;;  %v7214_v62 = vpop.permute.xlu1 %7213  ;;  %v7391_v12 = vld [vmem:[#allocation7 + $0x68] sm:$0xfe]  ;;  %v7345_v36 = vld [vmem:[%s18596_s7 + $0x1f8] sm:$0xff] }
 0x52d   : > { %7759 = vmatprep.subr.mxu1 %v7303_v28  ;;  %7843 = vmatpush1.msra.mxu0 %v7372_v39  ;;  %7230 = vst.msk [vmem:[#allocation7 + $0x98] sm:$0x1f] %vm7222_vm14, %v7214_v62  ;;  %v7447_v21 = vrot.slane %v7391_v12, 1  ;;  %v7288_v39 = vld [vmem:[%s18596_s7 + $0x30] sm:$0xff]  ;;  %v7286_v9 = vld [vmem:[%s18596_s7 + $0x20] sm:$0xff]  ;;  %v10956_v54 = vld [vmem:[%s18596_s7 + $0x6f8] sm:$0xff] }
 0x52e   : > { %7760 = vmatpush1.msra.mxu1 %v7302_v0  ;;  %7231 = vst.msk [vmem:[#allocation7 + $0xa0] sm:$0x1f] %vm7224_vm6, %v7214_v62  ;;  %v7392_v32 = vld [vmem:[#allocation7 + $0x70] sm:$0xfe]  ;;  %7844 = vmatprep.subr.mxu0 %v7371_v34  ;;  %v7357_v0 = vld [vmem:[%s18596_s7 + $0x258] sm:$0xff]  ;;  %v7352_v12 = vld [vmem:[%s18596_s7 + $0x230] sm:$0xff] }
 0x52f   : > { %7761 = vmatprep.subr.mxu1 %v7301_v35  ;;  %7268 = vst.msk [vmem:[#allocation7 + $0xa0] sm:$0x1f] %vm7264_vm11, %v7256_v14  ;;  %v7450_v5 = vrot.slane %v7392_v32, 1  ;;  %7845 = vmatpush1.msra.mxu0 %v7370_v47  ;;  %v7449_v20 = vsel %vm6318_vm8, %v7447_v21, %v7448_v2  ;;  %v7287_v34 = vld [vmem:[%s18596_s7 + $0x28] sm:$0xff]  ;;  %v7354_v2 = vld [vmem:[%s18596_s7 + $0x240] sm:$0xff]  ;;  %v7284_v14 = vld [vmem:[%s18596_s7 + $0x10] sm:$0xff] }
 0x530   : > { %7762 = vmatpush1.msra.mxu1 %v7300_v15  ;;  %7846 = vmatprep.subr.mxu0 %v7369_v13  ;;  %v7175_v24 = vpop.permute.xlu1 %7174  ;;  %v7216_v26 = vpop.permute.xlu0 %7215  ;;  %v7396_v31 = vld [vmem:[#allocation7 + $0x90] sm:$0xfe]  ;;  %v7271_v15 = vld [vmem:[#allocation7 + $0x8] sm:$0xff]  ;;  %v7285_v13 = vld [vmem:[%s18596_s7 + $0x18] sm:$0xff] }
 0x531   : > { %7763 = vmatprep.subr.mxu1 %v7299_v49  ;;  %7847 = vmatpush1.msra.mxu0 %v7368_v25  ;;  %7191 = vst.msk [vmem:[#allocation7 + $0xc0] sm:$0x1f] %vm7181_vm12, %v7175_v24  ;;  %v7452_v61 = vsel %vm6318_vm8, %v7450_v5, %v7451_v16  ;;  %v7453_v6 = vrot.slane %v7396_v31, 1  ;;  %v7355_v47 = vld [vmem:[%s18596_s7 + $0x248] sm:$0xff]  ;;  %v7353_v62 = vld [vmem:[%s18596_s7 + $0x238] sm:$0xff]  ;;  %v7350_v32 = vld [vmem:[%s18596_s7 + $0x220] sm:$0xff] }
 0x532   : > { %7764 = vmatpush1.msra.mxu1 %v7298_v1  ;;  %7192 = vst.msk [vmem:[#allocation7 + $0xc8] sm:$0x1f] %vm7183_vm13, %v7175_v24  ;;  %7848 = vmatprep.subr.mxu0 %v7367_v23  ;;  %v7283_v49 = vld [vmem:[%s18596_s7 + $0x8] sm:$0xff]  ;;  %v7344_v16 = vld [vmem:[%s18596_s7 + $0x1f0] sm:$0xff]  ;;  %v7349_v25 = vld [vmem:[%s18596_s7 + $0x218] sm:$0xff] }
 0x533   : > { %7233 = vst.msk [vmem:[#allocation7 + $0xd0] sm:$0x1f] %vm7224_vm6, %v7216_v26  ;;  %7647 = vmatprep.mubr.f32.mxu0 %v7449_v20  ;;  %7736 = vmatprep.mubr.f32.mxu1 %v12750_v10  ;;  %v7455_v35 = vsel %vm6318_vm8, %v7453_v6, %v7454_v46  ;;  %v7351_v21 = vld [vmem:[%s18596_s7 + $0x228] sm:$0xff]  ;;  %v7348_v5 = vld [vmem:[%s18596_s7 + $0x210] sm:$0xff]  ;;  %v7342_v23 = vld [vmem:[%s18596_s7 + $0x1e0] sm:$0xff] }
 0x534   : > { %7232 = vst.msk [vmem:[#allocation7 + $0xc8] sm:$0x1f] %vm7222_vm14, %v7216_v26  ;;  %7765 = vmatprep.subr.mxu1 %v7297_v4  ;;  %7849 = vmatpush1.msra.mxu0 %v7366_v55  ;;  %v7397_v63 = vld [vmem:[#allocation7 + $0x98] sm:$0xfe]  ;;  %v7258_v11 = vpop.permute.xlu1 %7257  ;;  %v7343_v1 = vld [vmem:[%s18596_s7 + $0x1e8] sm:$0xff]  ;;  %v7341_v4 = vld [vmem:[%s18596_s7 + $0x1d8] sm:$0xff] }
 0x535   : > { %7737 = vmatmul.mubr.f32.gmra.mxu1 %v7452_v61  ;;  %7648 = vmatmul.mubr.f32.gmra.mxu0 %v7446_v19  ;;  %v7456_v50 = vrot.slane %v7397_v63, 1  ;;  %7269 = vst.msk [vmem:[#allocation7 + $0xd0] sm:$0x1f] %vm7264_vm11, %v7258_v11  ;;  %v7347_v20 = vld [vmem:[%s18596_s7 + $0x208] sm:$0xff]  ;;  %v7346_v24 = vld [vmem:[%s18596_s7 + $0x200] sm:$0xff]  ;;  %v10955_v55 = vld [vmem:[%s18596_s7 + $0x6f0] sm:$0xff] }
 0x536   : > { %7766 = vmatpush1.msra.mxu1 %v7296_v33  ;;  %v7398_v7 = vld [vmem:[#allocation7 + $0xa0] sm:$0xfe]  ;;  %7850 = vmatprep.subr.mxu0 %v7365_v18  ;;  %v7339_v26 = vld [vmem:[%s18596_s7 + $0x1c8] sm:$0xff]  ;;  %v7338_v33 = vld [vmem:[%s18596_s7 + $0x1c0] sm:$0xff] }
 0x537   : > { %7767 = vmatprep.subr.mxu1 %v7295_v40  ;;  %7851 = vmatpush1.msra.mxu0 %v7364_v44  ;;  %v7459_v57 = vrot.slane %v7398_v7, 1  ;;  %v7458_v17 = vsel %vm6318_vm8, %v7456_v50, %v7457_v60  ;;  %v7272_v61 = vld [vmem:[#allocation7 + $0x10] sm:$0xff]  ;;  %v7337_v18 = vld [vmem:[%s18596_s7 + $0x1b8] sm:$0xff]  ;;  %v10953_v40 = vld [vmem:[%s18596_s7 + $0x6e0] sm:$0xff] }
 0x538   : > { %7768 = vmatpush1.msra.mxu1 %v7294_v38  ;;  %7852 = vmatprep.subr.mxu0 %v7363_v48  ;;  %v7336_v44 = vld [vmem:[%s18596_s7 + $0x1b0] sm:$0xff]  ;;  %v10952_v19 = vld [vmem:[%s18596_s7 + $0x6d8] sm:$0xff]  ;;  %v7335_v38 = vld [vmem:[%s18596_s7 + $0x1a8] sm:$0xff] }
 0x539   : > { %7769 = vmatprep.subr.mxu1 %v7293_v43  ;;  %7853 = vmatpush1.msra.mxu0 %v7362_v56  ;;  %v7461_v28 = vsel %vm6318_vm8, %v7459_v57, %v7460_v42  ;;  %v10951_v63 = vld [vmem:[%s18596_s7 + $0x6d0] sm:$0xff]  ;;  %v16470_v52 = vld [vmem:[#allocation7 + $0x40] sm:$0xff]  ;;  %v7334_v11 = vld [vmem:[%s18596_s7 + $0x1a0] sm:$0xff] }
 0x53a   : > { %7770 = vmatpush1.msra.mxu1 %v7292_v51  ;;  %7854 = vmatprep.subr.mxu0 %v7361_v22  ;;  %v10950_v48 = vld [vmem:[%s18596_s7 + $0x6c8] sm:$0xff]  ;;  %v7333_v43 = vld [vmem:[%s18596_s7 + $0x198] sm:$0xff]  ;;  %v10949_v50 = vld [vmem:[%s18596_s7 + $0x6c0] sm:$0xff] }
 0x53b   : > { %7771 = vmatprep.subr.mxu1 %v7291_v53  ;;  %7855 = vmatpush1.msra.mxu0 %v7360_v8  ;;  %v7332_v60 = vld [vmem:[%s18596_s7 + $0x190] sm:$0xff]  ;;  %v10948_v7 = vld [vmem:[%s18596_s7 + $0x6b8] sm:$0xff]  ;;  %v7331_v56 = vld [vmem:[%s18596_s7 + $0x188] sm:$0xff] }
 0x53c   : > { %7772 = vmatpush1.msra.mxu1 %v7290_v27  ;;  %7856 = vmatprep.subr.mxu0 %v7359_v37  ;;  %v10947_v51 = vld [vmem:[%s18596_s7 + $0x6b0] sm:$0xff]  ;;  %v16498_v59 = vld [vmem:[#allocation7 + $0x70] sm:$0xff]  ;;  %v7330_v22 = vld [vmem:[%s18596_s7 + $0x180] sm:$0xff] }
 0x53d   : > { %7653 = vmatprep.mubr.f32.mxu0 %v7458_v17  ;;  %7742 = vmatprep.mubr.f32.mxu1 %v12750_v10  ;;  %v10946_v53 = vld [vmem:[%s18596_s7 + $0x6a8] sm:$0xff]  ;;  %v7329_v31 = vld [vmem:[%s18596_s7 + $0x178] sm:$0xff]  ;;  %v10945_v57 = vld [vmem:[%s18596_s7 + $0x6a0] sm:$0xff] }
 0x53e   : > { %7773 = vmatprep.subr.mxu1 %v7289_v58  ;;  %7857 = vmatpush1.msra.mxu0 %v7358_v41  ;;  %v7328_v42 = vld [vmem:[%s18596_s7 + $0x170] sm:$0xff]  ;;  %v10944_v8 = vld [vmem:[%s18596_s7 + $0x698] sm:$0xff]  ;;  %v7327_v27 = vld [vmem:[%s18596_s7 + $0x168] sm:$0xff] }
 0x53f   : > { %7743 = vmatmul.mubr.f32.gmra.mxu1 %v7461_v28  ;;  %7654 = vmatmul.mubr.f32.gmra.mxu0 %v7455_v35  ;;  %v10943_v37 = vld [vmem:[%s18596_s7 + $0x690] sm:$0xff]  ;;  %v16526_v17 = vld [vmem:[#allocation7 + $0xa0] sm:$0xff]  ;;  %v7326_v58 = vld [vmem:[%s18596_s7 + $0x160] sm:$0xff] }
 0x540   : > { %7774 = vmatpush1.msra.mxu1 %v7288_v39  ;;  %7858 = vmatprep.subr.mxu0 %v7357_v0  ;;  %v10942_v6 = vld [vmem:[%s18596_s7 + $0x688] sm:$0xff]  ;;  %v7325_v46 = vld [vmem:[%s18596_s7 + $0x158] sm:$0xff]  ;;  %v7929_v41 = vld [vmem:[#allocation7 + $0x38] sm:$0xff] }
 0x541   : > { %7775 = vmatprep.subr.mxu1 %v7287_v34  ;;  %7813 = vmatprep.mubr.f32.mxu1 %v7271_v15  ;;  %v10941_v28 = vld [vmem:[%s18596_s7 + $0x680] sm:$0xff]  ;;  %v7324_v39 = vld [vmem:[%s18596_s7 + $0x150] sm:$0xff]  ;;  %v10940_v0 = vld [vmem:[%s18596_s7 + $0x678] sm:$0xff] }
 0x542   : > { %7859 = vmatpush1.msra.mxu0 %v7356_v30  ;;  %7776 = vmatpush1.msra.mxu1 %v7286_v9  ;;  %v7323_v34 = vld [vmem:[%s18596_s7 + $0x148] sm:$0xff]  ;;  %v10939_v35 = vld [vmem:[%s18596_s7 + $0x670] sm:$0xff]  ;;  %v7322_v30 = vld [vmem:[%s18596_s7 + $0x140] sm:$0xff] }
 0x543   : > { %7860 = vmatprep.subr.mxu0 %v7355_v47  ;;  %7777 = vmatprep.subr.mxu1 %v7285_v13  ;;  %v10938_v9 = vld [vmem:[%s18596_s7 + $0x668] sm:$0xff]  ;;  %v7321_v47 = vld [vmem:[%s18596_s7 + $0x138] sm:$0xff]  ;;  %v10937_v15 = vld [vmem:[%s18596_s7 + $0x660] sm:$0xff] }
 0x544   : > { %7861 = vmatpush1.msra.mxu0 %v7354_v2  ;;  %7778 = vmatpush1.msra.mxu1 %v7284_v14  ;;  %v7320_v13 = vld [vmem:[%s18596_s7 + $0x130] sm:$0xff]  ;;  %v10936_v2 = vld [vmem:[%s18596_s7 + $0x658] sm:$0xff]  ;;  %v7319_v14 = vld [vmem:[%s18596_s7 + $0x128] sm:$0xff] }
 0x545   : > { %7862 = vmatprep.subr.mxu0 %v7353_v62  ;;  %7779 = vmatprep.subr.mxu1 %v7283_v49  ;;  %v10935_v62 = vld [vmem:[%s18596_s7 + $0x650] sm:$0xff]  ;;  %v7318_v49 = vld [vmem:[%s18596_s7 + $0x120] sm:$0xff] }
 0x546   : > { %7863 = vmatpush1.msra.mxu0 %v7352_v12  ;;  %7780 = vmatpush1.msra.mxu1 %v7282_v29  ;;  %v10934_v12 = vld [vmem:[%s18596_s7 + $0x648] sm:$0xff]  ;;  %v7317_v29 = vld [vmem:[%s18596_s7 + $0x118] sm:$0xff] }
 0x547   : > { %7864 = vmatprep.subr.mxu0 %v7351_v21  ;;  %7781 = vmatprep.subr.mxu1 %v7345_v36  ;;  %v10933_v21 = vld [vmem:[%s18596_s7 + $0x640] sm:$0xff]  ;;  %v7316_v36 = vld [vmem:[%s18596_s7 + $0x110] sm:$0xff] }
 0x548   : > { %7865 = vmatpush1.msra.mxu0 %v7350_v32  ;;  %7782 = vmatpush2.msra.mxu1 %v7344_v16  ;;  %v10932_v32 = vld [vmem:[%s18596_s7 + $0x638] sm:$0xff]  ;;  %v7315_v16 = vld [vmem:[%s18596_s7 + $0x108] sm:$0xff] }
 0x549   : > { %7866 = vmatprep.subr.mxu0 %v7349_v25  ;;  %7783 = vmatprep.subr.mxu1 %v7343_v1  ;;  %v10931_v25 = vld [vmem:[%s18596_s7 + $0x630] sm:$0xff]  ;;  %v7314_v1 = vld [vmem:[%s18596_s7 + $0x100] sm:$0xff] }
 0x54a   : > { %7867 = vmatpush1.msra.mxu0 %v7348_v5  ;;  %7784 = vmatpush2.msra.mxu1 %v7342_v23  ;;  %v10930_v5 = vld [vmem:[%s18596_s7 + $0x628] sm:$0xff]  ;;  %v10929_v23 = vld [vmem:[%s18596_s7 + $0x620] sm:$0xff] }
 0x54b   : > { %7868 = vmatprep.subr.mxu0 %v7347_v20  ;;  %7785 = vmatprep.subr.mxu1 %v7341_v4  ;;  %v11020_v20 = vld [vmem:[%s18596_s7 + $0x8f8] sm:$0xff] }
 0x54c   : > { %7869 = vmatpush1.msra.mxu0 %v7346_v24  ;;  %7902 = vmatprep.mubr.f32.mxu0 %v12750_v10  ;;  %v7270_v4 = vld [vmem:[#allocation7] sm:$0xff] }
 0x54d   : > { %7786 = vmatpush2.msra.mxu1 %v7340_v3  ;;  %7903 = vmatmul.mubr.f32.vlgmr.msra.gmra.mxu0 %v7272_v61  ;;  %v10928_v24 = vld [vmem:[%s18596_s7 + $0x618] sm:$0xff]  ;;  %v11019_v3 = vld [vmem:[%s18596_s7 + $0x8f0] sm:$0xff]  ;;  %v11017_v61 = vld [vmem:[%s18596_s7 + $0x8e0] sm:$0xff] }
 0x54e   : > { %8037 = vmatprep.subr.mxu0 %v10956_v54  ;;  %7787 = vmatprep.subr.mxu1 %v7339_v26  ;;  %v10927_v54 = vld [vmem:[%s18596_s7 + $0x610] sm:$0xff]  ;;  %v11018_v26 = vld [vmem:[%s18596_s7 + $0x8e8] sm:$0xff] }
 0x54f   : > { %8038 = vmatpush1.msra.mxu0 %v10955_v55  ;;  %7788 = vmatpush2.msra.mxu1 %v7338_v33  ;;  %v10926_v55 = vld [vmem:[%s18596_s7 + $0x608] sm:$0xff]  ;;  %v10925_v33 = vld [vmem:[%s18596_s7 + $0x600] sm:$0xff] }
 0x550   : > { %8039 = vmatprep.subr.mxu0 %v10954_v45  ;;  %7789 = vmatprep.subr.mxu1 %v7337_v18  ;;  %v11016_v45 = vld [vmem:[%s18596_s7 + $0x8d8] sm:$0xff] }
 0x551   : > { %7908 = vmatprep.mubr.f32.mxu0 %v12750_v10  ;;  %8040 = vmatpush1.msra.mxu0 %v10953_v40  ;;  %v10988_v18 = vld [vmem:[%s18596_s7 + $0x7f8] sm:$0xff]  ;;  %v16640_v40 = vld [vmem:[#allocation7 + $0x30] sm:$0xff] }
 0x552   : > { %7790 = vmatpush2.msra.mxu1 %v7336_v44  ;;  %7909 = vmatmul.mubr.f32.gmra.mxu0 %v16470_v52  ;;  %v11015_v44 = vld [vmem:[%s18596_s7 + $0x8d0] sm:$0xff] }
 0x553   : > { %8041 = vmatprep.subr.mxu0 %v10952_v19  ;;  %7791 = vmatprep.subr.mxu1 %v7335_v38  ;;  %v10987_v19 = vld [vmem:[%s18596_s7 + $0x7f0] sm:$0xff]  ;;  %v16649_v38 = vld [vmem:[#allocation7 + $0x68] sm:$0xff] }
 0x554   : > { %8042 = vmatpush1.msra.mxu0 %v10951_v63  ;;  %7792 = vmatpush2.msra.mxu1 %v7334_v11  ;;  %v11014_v63 = vld [vmem:[%s18596_s7 + $0x8c8] sm:$0xff] }
 0x555   : > { %8043 = vmatprep.subr.mxu0 %v10950_v48  ;;  %7793 = vmatprep.subr.mxu1 %v7333_v43  ;;  %v10986_v11 = vld [vmem:[%s18596_s7 + $0x7e8] sm:$0xff]  ;;  %v11013_v48 = vld [vmem:[%s18596_s7 + $0x8c0] sm:$0xff] }
 0x556   : > { %7914 = vmatprep.mubr.f32.mxu0 %v12750_v10  ;;  %8044 = vmatpush1.msra.mxu0 %v10949_v50  ;;  %v10985_v43 = vld [vmem:[%s18596_s7 + $0x7e0] sm:$0xff]  ;;  %v11012_v50 = vld [vmem:[%s18596_s7 + $0x8b8] sm:$0xff] }
 0x557   : > { %7794 = vmatpush2.msra.mxu1 %v7332_v60  ;;  %7915 = vmatmul.mubr.f32.gmra.mxu0 %v16498_v59  ;;  %v10984_v60 = vld [vmem:[%s18596_s7 + $0x7d8] sm:$0xff] }
 0x558   : > { %8045 = vmatprep.subr.mxu0 %v10948_v7  ;;  %7795 = vmatprep.subr.mxu1 %v7331_v56  ;;  %v16670_v7 = vld [vmem:[#allocation7 + $0x60] sm:$0xff]  ;;  %v11011_v56 = vld [vmem:[%s18596_s7 + $0x8b0] sm:$0xff] }
 0x559   : > { %8046 = vmatpush1.msra.mxu0 %v10947_v51  ;;  %7796 = vmatpush2.msra.mxu1 %v7330_v22  ;;  %v10983_v51 = vld [vmem:[%s18596_s7 + $0x7d0] sm:$0xff] }
 0x55a   : > { %8047 = vmatprep.subr.mxu0 %v10946_v53  ;;  %7797 = vmatprep.subr.mxu1 %v7329_v31  ;;  %v16679_v22 = vld [vmem:[#allocation7 + $0x98] sm:$0xff]  ;;  %v11010_v53 = vld [vmem:[%s18596_s7 + $0x8a8] sm:$0xff] }
 0x55b   : > { %7920 = vmatprep.mubr.f32.mxu0 %v12750_v10  ;;  %8048 = vmatpush1.msra.mxu0 %v10945_v57  ;;  %v10982_v31 = vld [vmem:[%s18596_s7 + $0x7c8] sm:$0xff]  ;;  %v11009_v57 = vld [vmem:[%s18596_s7 + $0x8a0] sm:$0xff] }
 0x55c   : > { %7798 = vmatpush2.msra.mxu1 %v7328_v42  ;;  %7921 = vmatmul.mubr.f32.gmra.mxu0 %v16526_v17  ;;  %v10981_v42 = vld [vmem:[%s18596_s7 + $0x7c0] sm:$0xff] }
 0x55d   : > { %8049 = vmatprep.subr.mxu0 %v10944_v8  ;;  %7799 = vmatprep.subr.mxu1 %v7327_v27  ;;  %v11008_v8 = vld [vmem:[%s18596_s7 + $0x898] sm:$0xff] }
 0x55e   : > { %8050 = vmatpush1.msra.mxu0 %v10943_v37  ;;  %8101 = vmatprep.mubr.f32.mxu0 %v7929_v41  ;;  %v10980_v27 = vld [vmem:[%s18596_s7 + $0x7b8] sm:$0xff]  ;;  %v11007_v37 = vld [vmem:[%s18596_s7 + $0x890] sm:$0xff] }
 0x55f   : > { %7800 = vmatpush2.msra.mxu1 %v7326_v58  ;;  %8051 = vmatprep.subr.mxu0 %v10942_v6  ;;  %v16703_v58 = vld [vmem:[#allocation7 + $0x90] sm:$0xff]  ;;  %v10979_v6 = vld [vmem:[%s18596_s7 + $0x7b0] sm:$0xff] }
 0x560   : > { %7801 = vmatprep.subr.mxu1 %v7325_v46  ;;  %8052 = vmatpush1.msra.mxu0 %v10941_v28  ;;  %v11006_v46 = vld [vmem:[%s18596_s7 + $0x888] sm:$0xff]  ;;  %v11005_v28 = vld [vmem:[%s18596_s7 + $0x880] sm:$0xff] }
 0x561   : > { %7802 = vmatpush2.msra.mxu1 %v7324_v39  ;;  %8053 = vmatprep.subr.mxu0 %v10940_v0  ;;  %v10977_v39 = vld [vmem:[%s18596_s7 + $0x7a0] sm:$0xff]  ;;  %v11004_v0 = vld [vmem:[%s18596_s7 + $0x878] sm:$0xff] }
 0x562   : > { %7803 = vmatprep.subr.mxu1 %v7323_v34  ;;  %8054 = vmatpush1.msra.mxu0 %v10939_v35  ;;  %v10976_v34 = vld [vmem:[%s18596_s7 + $0x798] sm:$0xff]  ;;  %v11003_v35 = vld [vmem:[%s18596_s7 + $0x870] sm:$0xff] }
 0x563   : > { %7804 = vmatpush2.msra.mxu1 %v7322_v30  ;;  %8055 = vmatprep.subr.mxu0 %v10938_v9  ;;  %v10975_v30 = vld [vmem:[%s18596_s7 + $0x790] sm:$0xff]  ;;  %v11002_v9 = vld [vmem:[%s18596_s7 + $0x868] sm:$0xff] }
 0x564   : > { %7805 = vmatprep.subr.mxu1 %v7321_v47  ;;  %8056 = vmatpush1.msra.mxu0 %v10937_v15  ;;  %v10974_v47 = vld [vmem:[%s18596_s7 + $0x788] sm:$0xff]  ;;  %v11001_v15 = vld [vmem:[%s18596_s7 + $0x860] sm:$0xff] }
 0x565   : > { %7806 = vmatpush2.msra.mxu1 %v7320_v13  ;;  %8057 = vmatprep.subr.mxu0 %v10936_v2  ;;  %v10973_v13 = vld [vmem:[%s18596_s7 + $0x780] sm:$0xff]  ;;  %v11000_v2 = vld [vmem:[%s18596_s7 + $0x858] sm:$0xff] }
 0x566   : > { %7807 = vmatprep.subr.mxu1 %v7319_v14  ;;  %8058 = vmatpush1.msra.mxu0 %v10935_v62  ;;  %v10972_v14 = vld [vmem:[%s18596_s7 + $0x778] sm:$0xff]  ;;  %v10999_v62 = vld [vmem:[%s18596_s7 + $0x850] sm:$0xff] }
 0x567   : > { %7808 = vmatpush2.msra.mxu1 %v7318_v49  ;;  %8059 = vmatprep.subr.mxu0 %v10934_v12  ;;  %v10971_v49 = vld [vmem:[%s18596_s7 + $0x770] sm:$0xff]  ;;  %v10998_v12 = vld [vmem:[%s18596_s7 + $0x848] sm:$0xff] }
 0x568   : > { %7809 = vmatprep.subr.mxu1 %v7317_v29  ;;  %8060 = vmatpush1.msra.mxu0 %v10933_v21  ;;  %v10970_v29 = vld [vmem:[%s18596_s7 + $0x768] sm:$0xff]  ;;  %v10997_v21 = vld [vmem:[%s18596_s7 + $0x840] sm:$0xff] }
 0x569   : > { %7810 = vmatpush2.msra.mxu1 %v7316_v36  ;;  %8061 = vmatprep.subr.mxu0 %v10932_v32  ;;  %v10969_v36 = vld [vmem:[%s18596_s7 + $0x760] sm:$0xff]  ;;  %v10996_v32 = vld [vmem:[%s18596_s7 + $0x838] sm:$0xff] }
 0x56a   : > { %7811 = vmatprep.subr.mxu1 %v7315_v16  ;;  %8062 = vmatpush1.msra.mxu0 %v10931_v25  ;;  %v10968_v16 = vld [vmem:[%s18596_s7 + $0x758] sm:$0xff]  ;;  %v10995_v25 = vld [vmem:[%s18596_s7 + $0x830] sm:$0xff] }
 0x56b   : > { %7812 = vmatpush2.msra.mxu1 %v7314_v1  ;;  %8063 = vmatprep.subr.mxu0 %v10930_v5  ;;  %v10967_v1 = vld [vmem:[%s18596_s7 + $0x750] sm:$0xff]  ;;  %v10994_v5 = vld [vmem:[%s18596_s7 + $0x828] sm:$0xff] }
 0x56c   : > { %7814 = vmatmul.mubr.f32.vlgmr.msra.gmra.mxu1 %v7270_v4  ;;  %8064 = vmatpush1.msra.mxu0 %v10929_v23  ;;  %v10966_v23 = vld [vmem:[%s18596_s7 + $0x748] sm:$0xff]  ;;  %v10965_v4 = vld [vmem:[%s18596_s7 + $0x740] sm:$0xff] }
 0x56d   : > { %8126 = vmatprep.subr.mxu1 %v11020_v20  ;;  %7819 = vmatprep.mubr.f32.mxu1 %v7929_v41  ;;  %v10978_v41 = vld [vmem:[%s18596_s7 + $0x7a8] sm:$0xff]  ;;  %v10993_v20 = vld [vmem:[%s18596_s7 + $0x820] sm:$0xff] }
 0x56e   : > { %8065 = vmatprep.subr.mxu0 %v10928_v24  ;;  %8127 = vmatpush1.msra.mxu1 %v11019_v3  ;;  %v10992_v24 = vld [vmem:[%s18596_s7 + $0x818] sm:$0xff] }
 0x56f   : > { %8066 = vmatpush1.msra.mxu0 %v10927_v54  ;;  %8128 = vmatprep.subr.mxu1 %v11018_v26  ;;  %v10964_v3 = vld [vmem:[%s18596_s7 + $0x738] sm:$0xff]  ;;  %v10991_v54 = vld [vmem:[%s18596_s7 + $0x810] sm:$0xff] }
 0x570   : > { %8067 = vmatprep.subr.mxu0 %v10926_v55  ;;  %8129 = vmatpush1.msra.mxu1 %v11017_v61  ;;  %v10963_v26 = vld [vmem:[%s18596_s7 + $0x730] sm:$0xff]  ;;  %v10990_v55 = vld [vmem:[%s18596_s7 + $0x808] sm:$0xff] }
 0x571   : > { %8068 = vmatpush1.msra.mxu0 %v10925_v33  ;;  %7820 = vmatmul.mubr.f32.gmra.mxu1 %v16640_v40  ;;  %v10962_v61 = vld [vmem:[%s18596_s7 + $0x728] sm:$0xff]  ;;  %v10989_v33 = vld [vmem:[%s18596_s7 + $0x800] sm:$0xff] }
 0x572   : > { %8130 = vmatprep.subr.mxu1 %v11016_v45  ;;  %7825 = vmatprep.mubr.f32.mxu1 %v16649_v38  ;;  %v10961_v45 = vld [vmem:[%s18596_s7 + $0x720] sm:$0xff] }
 0x573   : > { %8069 = vmatprep.subr.mxu0 %v10988_v18  ;;  %8131 = vmatpush1.msra.mxu1 %v11015_v44  ;;  %v11052_v18 = vld [vmem:[%s18596_s7 + $0x9f8] sm:$0xff] }
 0x574   : > { %8070 = vmatpush2.msra.mxu0 %v10987_v19  ;;  %8132 = vmatprep.subr.mxu1 %v11014_v63  ;;  %v10960_v44 = vld [vmem:[%s18596_s7 + $0x718] sm:$0xff]  ;;  %v11051_v19 = vld [vmem:[%s18596_s7 + $0x9f0] sm:$0xff] }
 0x575   : > { %8071 = vmatprep.subr.mxu0 %v10986_v11  ;;  %8133 = vmatpush1.msra.mxu1 %v11013_v48  ;;  %v10959_v63 = vld [vmem:[%s18596_s7 + $0x710] sm:$0xff]  ;;  %v11050_v11 = vld [vmem:[%s18596_s7 + $0x9e8] sm:$0xff] }
 0x576   : > { %8072 = vmatpush2.msra.mxu0 %v10985_v43  ;;  %7826 = vmatmul.mubr.f32.gmra.mxu1 %v16670_v7  ;;  %v10958_v48 = vld [vmem:[%s18596_s7 + $0x708] sm:$0xff]  ;;  %v11049_v43 = vld [vmem:[%s18596_s7 + $0x9e0] sm:$0xff] }
 0x577   : > { %8134 = vmatprep.subr.mxu1 %v11012_v50  ;;  %7831 = vmatprep.mubr.f32.mxu1 %v16679_v22  ;;  %v10957_v50 = vld [vmem:[%s18596_s7 + $0x700] sm:$0xff] }
 0x578   : > { %8073 = vmatprep.subr.mxu0 %v10984_v60  ;;  %8135 = vmatpush1.msra.mxu1 %v11011_v56  ;;  %v11047_v60 = vld [vmem:[%s18596_s7 + $0x9d0] sm:$0xff]  ;;  %v11116_v56 = vld [vmem:[%s18596_s7 + $0xbf8] sm:$0xff] }
 0x579   : > { %8074 = vmatpush2.msra.mxu0 %v10983_v51  ;;  %8136 = vmatprep.subr.mxu1 %v11010_v53  ;;  %v11046_v51 = vld [vmem:[%s18596_s7 + $0x9c8] sm:$0xff]  ;;  %v11115_v53 = vld [vmem:[%s18596_s7 + $0xbf0] sm:$0xff] }
 0x57a   : > { %8075 = vmatprep.subr.mxu0 %v10982_v31  ;;  %8137 = vmatpush1.msra.mxu1 %v11009_v57  ;;  %v11045_v31 = vld [vmem:[%s18596_s7 + $0x9c0] sm:$0xff]  ;;  %v11044_v57 = vld [vmem:[%s18596_s7 + $0x9b8] sm:$0xff] }
 0x57b   : > { %8076 = vmatpush2.msra.mxu0 %v10981_v42  ;;  %7832 = vmatmul.mubr.f32.gmra.mxu1 %v16703_v58  ;;  %v11112_v42 = vld [vmem:[%s18596_s7 + $0xbd8] sm:$0xff] }
 0x57c   : > { %8138 = vmatprep.subr.mxu1 %v11008_v8  ;;  %8077 = vmatprep.subr.mxu0 %v10980_v27  ;;  %v8227_v8 = vld [vmem:[#allocation7 + $0x50] sm:$0x1] }
 0x57d   : > { %8139 = vmatpush1.msra.mxu1 %v11007_v37  ;;  %8078 = vmatpush2.msra.mxu0 %v10979_v6  ;;  %v11042_v27 = vld [vmem:[%s18596_s7 + $0x9a8] sm:$0xff]  ;;  %v11111_v37 = vld [vmem:[%s18596_s7 + $0xbd0] sm:$0xff] }
 0x57e   : > { %8140 = vmatprep.subr.mxu1 %v11006_v46  ;;  %8079 = vmatprep.subr.mxu0 %v10978_v41  ;;  %v8224_v6 = vld [vmem:[#allocation7 + $0x38] sm:$0xfe]  ;;  %v11110_v46 = vld [vmem:[%s18596_s7 + $0xbc8] sm:$0xff] }
 0x57f   : > { %8141 = vmatpush1.msra.mxu1 %v11005_v28  ;;  %8080 = vmatpush2.msra.mxu0 %v10977_v39  ;;  %v7939_v41 = vld [vmem:[#allocation7 + $0xd0] sm:$0xff]  ;;  %v11040_v28 = vld [vmem:[%s18596_s7 + $0x998] sm:$0xff]  ;;  %v8274_v39 = vrot.slane %v8224_v6, 1  ;;  %v11079_v6 = vld [vmem:[%s18596_s7 + $0xad0] sm:$0xff] }
 0x580   : > { %8142 = vmatprep.subr.mxu1 %v11004_v0  ;;  %8081 = vmatprep.subr.mxu0 %v10976_v34  ;;  %v8275_v0 = vrot.slane %v8227_v8, 1  ;;  %v11108_v34 = vld [vmem:[%s18596_s7 + $0xbb8] sm:$0xff]  ;;  %v11085_v8 = vld [vmem:[%s18596_s7 + $0xb00] sm:$0xff] }
 0x581   : > { %8143 = vmatpush1.msra.mxu1 %v11003_v35  ;;  %8082 = vmatpush2.msra.mxu0 %v10975_v30  ;;  %v11038_v35 = vld [vmem:[%s18596_s7 + $0x988] sm:$0xff]  ;;  %v11107_v30 = vld [vmem:[%s18596_s7 + $0xbb0] sm:$0xff] }
 0x582   : > { %8144 = vmatprep.subr.mxu1 %v11002_v9  ;;  %8083 = vmatprep.subr.mxu0 %v10974_v47  ;;  %v8276_v9 = vsel %vm6318_vm8, %v8274_v39, %v8275_v0  ;;  %v11037_v47 = vld [vmem:[%s18596_s7 + $0x980] sm:$0xff]  ;;  %v11076_v39 = vld [vmem:[%s18596_s7 + $0xab8] sm:$0xff] }
 0x583   : > { %8145 = vmatpush1.msra.mxu1 %v11001_v15  ;;  %8084 = vmatpush2.msra.mxu0 %v10973_v13  ;;  %v11106_v15 = vld [vmem:[%s18596_s7 + $0xba8] sm:$0xff]  ;;  %v7938_v13 = vld [vmem:[#allocation7 + $0xc8] sm:$0xff] }
 0x584   : > { %8146 = vmatprep.subr.mxu1 %v11000_v2  ;;  %8085 = vmatprep.subr.mxu0 %v10972_v14  ;;  %v11036_v2 = vld [vmem:[%s18596_s7 + $0x978] sm:$0xff]  ;;  %v11035_v14 = vld [vmem:[%s18596_s7 + $0x970] sm:$0xff] }
 0x585   : > { %8147 = vmatpush1.msra.mxu1 %v10999_v62  ;;  %8086 = vmatpush2.msra.mxu0 %v10971_v49  ;;  %v11104_v62 = vld [vmem:[%s18596_s7 + $0xb98] sm:$0xff]  ;;  %v11034_v49 = vld [vmem:[%s18596_s7 + $0x968] sm:$0xff] }
 0x586   : > { %8148 = vmatprep.subr.mxu1 %v10998_v12  ;;  %8087 = vmatprep.subr.mxu0 %v10970_v29  ;;  %v11103_v12 = vld [vmem:[%s18596_s7 + $0xb90] sm:$0xff]  ;;  %v7937_v29 = vld [vmem:[#allocation7 + $0xc0] sm:$0xff] }
 0x587   : > { %8149 = vmatpush1.msra.mxu1 %v10997_v21  ;;  %8088 = vmatpush2.msra.mxu0 %v10969_v36  ;;  %v11033_v21 = vld [vmem:[%s18596_s7 + $0x960] sm:$0xff]  ;;  %v11102_v36 = vld [vmem:[%s18596_s7 + $0xb88] sm:$0xff] }
 0x588   : > { %8150 = vmatprep.subr.mxu1 %v10996_v32  ;;  %8089 = vmatprep.subr.mxu0 %v10968_v16  ;;  %v11032_v32 = vld [vmem:[%s18596_s7 + $0x958] sm:$0xff]  ;;  %v11101_v16 = vld [vmem:[%s18596_s7 + $0xb80] sm:$0xff] }
 0x589   : > { %8151 = vmatpush1.msra.mxu1 %v10995_v25  ;;  %8090 = vmatpush2.msra.mxu0 %v10967_v1  ;;  %v11031_v25 = vld [vmem:[%s18596_s7 + $0x950] sm:$0xff]  ;;  %v11100_v1 = vld [vmem:[%s18596_s7 + $0xb78] sm:$0xff] }
 0x58a   : > { %8152 = vmatprep.subr.mxu1 %v10994_v5  ;;  %8091 = vmatprep.subr.mxu0 %v10966_v23  ;;  %v11030_v5 = vld [vmem:[%s18596_s7 + $0x948] sm:$0xff]  ;;  %v11099_v23 = vld [vmem:[%s18596_s7 + $0xb70] sm:$0xff] }
 0x58b   : > { %8153 = vmatpush1.msra.mxu1 %v10993_v20  ;;  %8092 = vmatpush2.msra.mxu0 %v10965_v4  ;;  %v11029_v20 = vld [vmem:[%s18596_s7 + $0x940] sm:$0xff]  ;;  %v11098_v4 = vld [vmem:[%s18596_s7 + $0xb68] sm:$0xff] }
 0x58c   : > { %8154 = vmatprep.subr.mxu1 %v10992_v24  ;;  %8093 = vmatprep.subr.mxu0 %v10964_v3  ;;  %v11028_v24 = vld [vmem:[%s18596_s7 + $0x938] sm:$0xff]  ;;  %v11097_v3 = vld [vmem:[%s18596_s7 + $0xb60] sm:$0xff] }
 0x58d   : > { %8155 = vmatpush1.msra.mxu1 %v10991_v54  ;;  %8094 = vmatpush2.msra.mxu0 %v10963_v26  ;;  %v11027_v54 = vld [vmem:[%s18596_s7 + $0x930] sm:$0xff]  ;;  %v11096_v26 = vld [vmem:[%s18596_s7 + $0xb58] sm:$0xff] }
 0x58e   : > { %8156 = vmatprep.subr.mxu1 %v10990_v55  ;;  %8095 = vmatprep.subr.mxu0 %v10962_v61  ;;  %v11026_v55 = vld [vmem:[%s18596_s7 + $0x928] sm:$0xff]  ;;  %v11095_v61 = vld [vmem:[%s18596_s7 + $0xb50] sm:$0xff] }
 0x58f   : > { %8157 = vmatpush1.msra.mxu1 %v10989_v33  ;;  %8190 = vmatprep.mubr.f32.mxu1 %v12750_v10  ;;  %v11025_v33 = vld [vmem:[%s18596_s7 + $0x920] sm:$0xff] }
 0x590   : > { %8096 = vmatpush2.msra.mxu0 %v10961_v45  ;;  %8191 = vmatmul.mubr.f32.vlgmr.msra.gmra.mxu1 %v16470_v52  ;;  %v11048_v52 = vld [vmem:[%s18596_s7 + $0x9d8] sm:$0xff]  ;;  %v11094_v45 = vld [vmem:[%s18596_s7 + $0xb48] sm:$0xff] }
 0x591   : > { %8416 = vmatprep.subr.mxu1 %v11052_v18  ;;  %8097 = vmatprep.subr.mxu0 %v10960_v44  ;;  %v11024_v18 = vld [vmem:[%s18596_s7 + $0x918] sm:$0xff]  ;;  %v11093_v44 = vld [vmem:[%s18596_s7 + $0xb40] sm:$0xff] }
 0x592   : > { %8417 = vmatpush1.msra.mxu1 %v11051_v19  ;;  %8098 = vmatpush2.msra.mxu0 %v10959_v63  ;;  %v11023_v19 = vld [vmem:[%s18596_s7 + $0x910] sm:$0xff]  ;;  %v11092_v63 = vld [vmem:[%s18596_s7 + $0xb38] sm:$0xff] }
 0x593   : > { %8418 = vmatprep.subr.mxu1 %v11050_v11  ;;  %8099 = vmatprep.subr.mxu0 %v10958_v48  ;;  %v11022_v11 = vld [vmem:[%s18596_s7 + $0x908] sm:$0xff]  ;;  %v11091_v48 = vld [vmem:[%s18596_s7 + $0xb30] sm:$0xff] }
 0x594   : > { %8196 = vmatprep.mubr.f32.mxu1 %v12750_v10  ;;  %8419 = vmatpush1.msra.mxu1 %v11049_v43  ;;  %v11021_v43 = vld [vmem:[%s18596_s7 + $0x900] sm:$0xff] }
 0x595   : > { %8100 = vmatpush2.msra.mxu0 %v10957_v50  ;;  %8197 = vmatmul.mubr.f32.gmra.mxu1 %v16498_v59  ;;  %v11114_v59 = vld [vmem:[%s18596_s7 + $0xbe8] sm:$0xff] }
 0x596   : > { %8420 = vmatprep.subr.mxu1 %v11048_v52  ;;  %8102 = vmatmul.mubr.f32.vlgmr.msra.gmra.mxu0 %v16640_v40  ;;  %v11113_v40 = vld [vmem:[%s18596_s7 + $0xbe0] sm:$0xff]  ;;  %v11090_v50 = vld [vmem:[%s18596_s7 + $0xb28] sm:$0xff]  ;;  %v11084_v52 = vld [vmem:[%s18596_s7 + $0xaf8] sm:$0xff] }
 0x597   : > { %8421 = vmatpush1.msra.mxu1 %v11047_v60  ;;  %8505 = vmatprep.subr.mxu0 %v11116_v56  ;;  %v11089_v60 = vld [vmem:[%s18596_s7 + $0xb20] sm:$0xff]  ;;  %v8228_v56 = vld [vmem:[#allocation7 + $0x58] sm:$0x1] }
 0x598   : > { %8107 = vmatprep.mubr.f32.mxu0 %v16649_v38  ;;  %8422 = vmatprep.subr.mxu1 %v11046_v51  ;;  %v11043_v38 = vld [vmem:[%s18596_s7 + $0x9b0] sm:$0xff] }
 0x599   : > { %8506 = vmatpush1.msra.mxu0 %v11115_v53  ;;  %8202 = vmatprep.mubr.f32.mxu1 %v12750_v10  ;;  %v11083_v51 = vld [vmem:[%s18596_s7 + $0xaf0] sm:$0xff]  ;;  %v11088_v53 = vld [vmem:[%s18596_s7 + $0xb18] sm:$0xff] }
 0x59a   : > { %8423 = vmatpush1.msra.mxu1 %v11045_v31  ;;  %8507 = vmatprep.subr.mxu0 %v11114_v59  ;;  %v8225_v31 = vld [vmem:[#allocation7 + $0x40] sm:$0xfe]  ;;  %v11082_v59 = vld [vmem:[%s18596_s7 + $0xae8] sm:$0xff] }
 0x59b   : > { %8203 = vmatmul.mubr.f32.gmra.mxu1 %v16526_v17  ;;  %8424 = vmatprep.subr.mxu1 %v11044_v57  ;;  %v11041_v17 = vld [vmem:[%s18596_s7 + $0x9a0] sm:$0xff]  ;;  %v11087_v57 = vld [vmem:[%s18596_s7 + $0xb10] sm:$0xff] }
 0x59c   : > { %8508 = vmatpush1.msra.mxu0 %v11113_v40  ;;  %8425 = vmatpush1.msra.mxu1 %v11043_v38  ;;  %v11081_v40 = vld [vmem:[%s18596_s7 + $0xae0] sm:$0xff]  ;;  %v11086_v38 = vld [vmem:[%s18596_s7 + $0xb08] sm:$0xff] }
 0x59d   : > { %8108 = vmatmul.mubr.f32.gmra.mxu0 %v16670_v7  ;;  %8509 = vmatprep.subr.mxu0 %v11112_v42  ;;  %v11109_v7 = vld [vmem:[%s18596_s7 + $0xbc0] sm:$0xff]  ;;  %v11080_v42 = vld [vmem:[%s18596_s7 + $0xad8] sm:$0xff] }
 0x59e   : > { %8113 = vmatprep.mubr.f32.mxu0 %v16679_v22  ;;  %8426 = vmatprep.subr.mxu1 %v11042_v27  ;;  %v11039_v22 = vld [vmem:[%s18596_s7 + $0x990] sm:$0xff]  ;;  %v8277_v27 = vrot.slane %v8225_v31, 1 }
 0x59f   : > { %8510 = vmatpush1.msra.mxu0 %v11111_v37  ;;  %8208 = vmatprep.mubr.f32.mxu1 %v12750_v10  ;;  %v8278_v37 = vrot.slane %v8228_v56, 1  ;;  %v8229_v56 = vld [vmem:[#allocation7 + $0x60] sm:$0xfe] }
 0x5a0   : > { %8427 = vmatpush1.msra.mxu1 %v11041_v17  ;;  %8511 = vmatprep.subr.mxu0 %v11110_v46  ;;  %v8231_v17 = vld [vmem:[#allocation7 + $0x70] sm:$0xfe]  ;;  %v8234_v46 = vld [vmem:[#allocation7 + $0x88] sm:$0x1] }
 0x5a1   : > { %8209 = vmatmul.mubr.f32.gmra.mxu1 %v7939_v41  ;;  %8428 = vmatprep.subr.mxu1 %v11040_v28  ;;  %v11078_v41 = vld [vmem:[%s18596_s7 + $0xac8] sm:$0xff]  ;;  %v11077_v28 = vld [vmem:[%s18596_s7 + $0xac0] sm:$0xff]  ;;  %v8286_v0 = vrot.slane %v8231_v17, 1 }
 0x5a2   : > { %8512 = vmatpush1.msra.mxu0 %v11109_v7  ;;  %8429 = vmatpush1.msra.mxu1 %v11039_v22  ;;  %v8279_v7 = vsel %vm6318_vm8, %v8277_v27, %v8278_v37  ;;  %v8287_v22 = vrot.slane %v8234_v46, 1  ;;  %v8238_v27 = vld [vmem:[#allocation7 + $0xa8] sm:$0x1]  ;;  %v8242_v37 = vld [vmem:[#allocation7 + $0xc8] sm:$0xfe] }
 0x5a3   : > { %8114 = vmatmul.mubr.f32.gmra.mxu0 %v16703_v58  ;;  %8480 = vmatprep.mubr.f32.mxu1 %v8276_v9  ;;  %v11105_v58 = vld [vmem:[%s18596_s7 + $0xba0] sm:$0xff]  ;;  %v11074_v9 = vld [vmem:[%s18596_s7 + $0xaa8] sm:$0xff] }
 0x5a4   : > { %8513 = vmatprep.subr.mxu0 %v11108_v34  ;;  %8430 = vmatprep.subr.mxu1 %v11038_v35  ;;  %v11075_v34 = vld [vmem:[%s18596_s7 + $0xab0] sm:$0xff]  ;;  %v8237_v35 = vld [vmem:[#allocation7 + $0xa0] sm:$0xfe] }
 0x5a5   : > { %8514 = vmatpush1.msra.mxu0 %v11107_v30  ;;  %8431 = vmatpush1.msra.mxu1 %v11037_v47  ;;  %v8240_v30 = vld [vmem:[#allocation7 + $0xb8] sm:$0x1]  ;;  %v11073_v47 = vld [vmem:[%s18596_s7 + $0xaa0] sm:$0xff] }
 0x5a6   : > { %8515 = vmatprep.subr.mxu0 %v11106_v15  ;;  %8119 = vmatprep.mubr.f32.mxu0 %v7938_v13  ;;  %v8243_v15 = vld [vmem:[#allocation7 + $0xd0] sm:$0xfe]  ;;  %v8246_v13 = vld [vmem:[#allocation7 + $0xe8] sm:$0x1] }
 0x5a7   : > { %8432 = vmatprep.subr.mxu1 %v11036_v2  ;;  %8516 = vmatpush1.msra.mxu0 %v11105_v58  ;;  %v8288_v2 = vsel %vm6318_vm8, %v8286_v0, %v8287_v22  ;;  %v11072_v58 = vld [vmem:[%s18596_s7 + $0xa98] sm:$0xff]  ;;  %v8244_v22 = vld [vmem:[#allocation7 + $0xd8] sm:$0x1] }
 0x5a8   : > { %8433 = vmatpush1.msra.mxu1 %v11035_v14  ;;  %8120 = vmatmul.mubr.f32.gmra.mxu0 %v7937_v29  ;;  %v8295_v14 = vrot.slane %v8237_v35, 1  ;;  %v8304_v29 = vrot.slane %v8243_v15, 1  ;;  %v8241_v0 = vld [vmem:[#allocation7 + $0xc0] sm:$0xfe] }
 0x5a9   : > { %8517 = vmatprep.subr.mxu0 %v11104_v62  ;;  %8434 = vmatprep.subr.mxu1 %v11034_v49  ;;  %v8296_v62 = vrot.slane %v8240_v30, 1  ;;  %v11071_v49 = vld [vmem:[%s18596_s7 + $0xa90] sm:$0xff]  ;;  %v8298_v35 = vrot.slane %v8241_v0, 1  ;;  %v8299_v30 = vrot.slane %v8244_v22, 1 }
 0x5aa   : > { %8518 = vmatpush1.msra.mxu0 %v11103_v12  ;;  %8435 = vmatpush1.msra.mxu1 %v11033_v21  ;;  %v11070_v12 = vld [vmem:[%s18596_s7 + $0xa88] sm:$0xff]  ;;  %v8305_v21 = vrot.slane %v8246_v13, 1 }
 0x5ab   : > { %8519 = vmatprep.subr.mxu0 %v11102_v36  ;;  %8436 = vmatprep.subr.mxu1 %v11032_v32  ;;  %v11069_v36 = vld [vmem:[%s18596_s7 + $0xa80] sm:$0xff]  ;;  %v8297_v32 = vsel %vm6318_vm8, %v8295_v14, %v8296_v62  ;;  %v8827_v14 = vld [vmem:[%s18598_s9 + $0x78] sm:$0xff] }
 0x5ac   : > { %8520 = vmatpush1.msra.mxu0 %v11101_v16  ;;  %8437 = vmatpush1.msra.mxu1 %v11031_v25  ;;  %v11068_v16 = vld [vmem:[%s18596_s7 + $0xa78] sm:$0xff]  ;;  %v11067_v25 = vld [vmem:[%s18596_s7 + $0xa70] sm:$0xff] }
 0x5ad   : > { %8521 = vmatprep.subr.mxu0 %v11100_v1  ;;  %8438 = vmatprep.subr.mxu1 %v11030_v5  ;;  %v11066_v1 = vld [vmem:[%s18596_s7 + $0xa68] sm:$0xff]  ;;  %v8306_v5 = vsel %vm6318_vm8, %v8304_v29, %v8305_v21  ;;  %v8859_v62 = vld [vmem:[%s18598_s9 + $0x178] sm:$0xff]  ;;  %v8826_v29 = vld [vmem:[%s18598_s9 + $0x70] sm:$0xff] }
 0x5ae   : > { %8522 = vmatpush1.msra.mxu0 %v11099_v23  ;;  %8439 = vmatpush1.msra.mxu1 %v11029_v20  ;;  %v11065_v23 = vld [vmem:[%s18596_s7 + $0xa60] sm:$0xff]  ;;  %v11064_v20 = vld [vmem:[%s18596_s7 + $0xa58] sm:$0xff]  ;;  %v8858_v21 = vld [vmem:[%s18598_s9 + $0x170] sm:$0xff] }
 0x5af   : > { %8523 = vmatprep.subr.mxu0 %v11098_v4  ;;  %8440 = vmatprep.subr.mxu1 %v11028_v24  ;;  %v11063_v4 = vld [vmem:[%s18596_s7 + $0xa50] sm:$0xff]  ;;  %v11061_v24 = vld [vmem:[%s18596_s7 + $0xa40] sm:$0xff] }
 0x5b0   : > { %8524 = vmatpush1.msra.mxu0 %v11097_v3  ;;  %8441 = vmatpush1.msra.mxu1 %v11027_v54  ;;  %v11060_v3 = vld [vmem:[%s18596_s7 + $0xa38] sm:$0xff]  ;;  %v11059_v54 = vld [vmem:[%s18596_s7 + $0xa30] sm:$0xff] }
 0x5b1   : > { %8525 = vmatprep.subr.mxu0 %v11096_v26  ;;  %8442 = vmatprep.subr.mxu1 %v11026_v55  ;;  %v11058_v26 = vld [vmem:[%s18596_s7 + $0xa28] sm:$0xff]  ;;  %v11057_v55 = vld [vmem:[%s18596_s7 + $0xa20] sm:$0xff] }
 0x5b2   : > { %8526 = vmatpush1.msra.mxu0 %v11095_v61  ;;  %8443 = vmatpush1.msra.mxu1 %v11025_v33  ;;  %v8223_v61 = vld [vmem:[#allocation7 + $0x30] sm:$0xfe]  ;;  %v8226_v33 = vld [vmem:[#allocation7 + $0x48] sm:$0x1] }
 0x5b3   : > { %8527 = vmatprep.subr.mxu0 %v11094_v45  ;;  %8444 = vmatprep.subr.mxu1 %v11024_v18  ;;  %v11056_v45 = vld [vmem:[%s18596_s7 + $0xa18] sm:$0xff]  ;;  %v8230_v18 = vld [vmem:[#allocation7 + $0x68] sm:$0xfe] }
 0x5b4   : > { %8528 = vmatpush1.msra.mxu0 %v11093_v44  ;;  %8445 = vmatpush1.msra.mxu1 %v11023_v19  ;;  %v8233_v44 = vld [vmem:[#allocation7 + $0x80] sm:$0x1]  ;;  %v11055_v19 = vld [vmem:[%s18596_s7 + $0xa10] sm:$0xff] }
 0x5b5   : > { %8529 = vmatprep.subr.mxu0 %v11092_v63  ;;  %8446 = vmatprep.subr.mxu1 %v11022_v11  ;;  %v11054_v63 = vld [vmem:[%s18596_s7 + $0xa08] sm:$0xff]  ;;  %v8271_v11 = vrot.slane %v8223_v61, 1  ;;  %v8870_v61 = vld [vmem:[%s18598_s9 + $0x1d0] sm:$0xff] }
 0x5b6   : > { %8530 = vmatpush1.msra.mxu0 %v11091_v48  ;;  %8447 = vmatpush1.msra.mxu1 %v11021_v43  ;;  %v8272_v48 = vrot.slane %v8226_v33, 1  ;;  %v8232_v43 = vld [vmem:[#allocation7 + $0x78] sm:$0x1] }
 0x5b7   : > { %8531 = vmatprep.subr.mxu0 %v11090_v50  ;;  %8448 = vmatprep.subr.mxu1 %v11084_v52  ;;  %v11053_v50 = vld [vmem:[%s18596_s7 + $0xa00] sm:$0xff]  ;;  %v8283_v52 = vrot.slane %v8230_v18, 1  ;;  %v8822_v33 = vld [vmem:[%s18598_s9 + $0x50] sm:$0xff] }
 0x5b8   : > { %8532 = vmatpush1.msra.mxu0 %v11089_v60  ;;  %8449 = vmatpush2.msra.mxu1 %v11083_v51  ;;  %v8284_v60 = vrot.slane %v8233_v44, 1  ;;  %v8236_v51 = vld [vmem:[#allocation7 + $0x98] sm:$0xfe]  ;;  %v8273_v31 = vsel %vm6318_vm8, %v8271_v11, %v8272_v48  ;;  %v8837_v44 = vld [vmem:[%s18598_s9 + $0xc8] sm:$0xff] }
 0x5b9   : > { %8533 = vmatprep.subr.mxu0 %v11088_v53  ;;  %8450 = vmatprep.subr.mxu1 %v11082_v59  ;;  %v8239_v53 = vld [vmem:[#allocation7 + $0xb0] sm:$0x1]  ;;  %v8280_v59 = vrot.slane %v8229_v56, 1 }
 0x5ba   : > { %8534 = vmatpush1.msra.mxu0 %v11087_v57  ;;  %8451 = vmatpush2.msra.mxu1 %v11081_v40  ;;  %v8281_v57 = vrot.slane %v8232_v43, 1  ;;  %v8285_v40 = vsel %vm6318_vm8, %v8283_v52, %v8284_v60  ;;  %v8853_v11 = vld [vmem:[%s18598_s9 + $0x148] sm:$0xff]  ;;  %v8836_v43 = vld [vmem:[%s18598_s9 + $0xc0] sm:$0xff] }
 0x5bb   : > { %8535 = vmatprep.subr.mxu0 %v11086_v38  ;;  %8452 = vmatprep.subr.mxu1 %v11080_v42  ;;  %v8292_v38 = vrot.slane %v8236_v51, 1  ;;  %v8293_v42 = vrot.slane %v8239_v53, 1 }
 0x5bc   : > { %8536 = vmatpush1.msra.mxu0 %v11085_v8  ;;  %8569 = vmatprep.mubr.f32.mxu0 %v12750_v10  ;;  %v8235_v8 = vld [vmem:[#allocation7 + $0x90] sm:$0xfe]  ;;  %v8282_v17 = vsel %vm6318_vm8, %v8280_v59, %v8281_v57 }
 0x5bd   : > { %8453 = vmatpush2.msra.mxu1 %v11079_v6  ;;  %8570 = vmatmul.mubr.f32.vlgmr.msra.gmra.mxu0 %v8279_v7  ;;  %v8245_v6 = vld [vmem:[#allocation7 + $0xe0] sm:$0x1]  ;;  %v8289_v46 = vrot.slane %v8235_v8, 1  ;;  %v8301_v7 = vrot.slane %v8242_v37, 1 }
 0x5be   : > { %8454 = vmatprep.subr.mxu1 %v11078_v41  ;;  %8575 = vmatprep.mubr.f32.mxu0 %v12750_v10  ;;  %v8290_v41 = vrot.slane %v8238_v27, 1 }
 0x5bf   : > { %8455 = vmatpush2.msra.mxu1 %v11077_v28  ;;  %v8294_v28 = vsel %vm6318_vm8, %v8292_v38, %v8293_v42 }
 0x5c0   : > { %8456 = vmatprep.subr.mxu1 %v11076_v39  ;;  %v8302_v39 = vrot.slane %v8245_v6, 1 }
 0x5c1   : > { %8457 = vmatpush2.msra.mxu1 %v11075_v34  ;;  %8576 = vmatmul.mubr.f32.gmra.mxu0 %v8288_v2  ;;  %v8291_v34 = vsel %vm6318_vm8, %v8289_v46, %v8290_v41  ;;  %v8843_v2 = vld [vmem:[%s18598_s9 + $0xf8] sm:$0xff] }
 0x5c2   : > { %8458 = vmatprep.subr.mxu1 %v11074_v9  ;;  %8581 = vmatprep.mubr.f32.mxu0 %v12750_v10  ;;  %v8303_v9 = vsel %vm6318_vm8, %v8301_v7, %v8302_v39 }
 0x5c3   : > { %8459 = vmatpush2.msra.mxu1 %v11073_v47  ;;  %v8300_v47 = vsel %vm6318_vm8, %v8298_v35, %v8299_v30  ;;  %11521 = vmatprep.subr.mxu0 %v8843_v2 }
 0x5c4   : > { %8460 = vmatprep.subr.mxu1 %v11072_v58  ;;  %v8875_v58 = vld [vmem:[%s18598_s9 + $0x1f8] sm:$0xff]  ;;  %11522 = vmatpush3.msra.mxu0 %v8827_v14 }
 0x5c5   : > { %8461 = vmatpush2.msra.mxu1 %v11071_v49  ;;  %8582 = vmatmul.mubr.f32.gmra.mxu0 %v8297_v32  ;;  %v8842_v49 = vld [vmem:[%s18598_s9 + $0xf0] sm:$0xff]  ;;  %v8873_v32 = vld [vmem:[%s18598_s9 + $0x1e8] sm:$0xff] }
 0x5c6   : > { %8462 = vmatprep.subr.mxu1 %v11070_v12  ;;  %8587 = vmatprep.mubr.f32.mxu0 %v12750_v10  ;;  %v11062_v10 = vld [vmem:[%s18596_s7 + $0xa48] sm:$0xff]  ;;  %v8874_v12 = vld [vmem:[%s18598_s9 + $0x1f0] sm:$0xff] }
 0x5c7   : > { %8463 = vmatpush2.msra.mxu1 %v11069_v36  ;;  %v8841_v36 = vld [vmem:[%s18598_s9 + $0xe8] sm:$0xff]  ;;  %11523 = vmatprep.subr.mxu0 %v8842_v49 }
 0x5c8   : > { %8464 = vmatprep.subr.mxu1 %v11068_v16  ;;  %v8825_v16 = vld [vmem:[%s18598_s9 + $0x68] sm:$0xff]  ;;  %11524 = vmatpush3.msra.mxu0 %v8826_v29 }
 0x5c9   : > { %8465 = vmatpush2.msra.mxu1 %v11067_v25  ;;  %8588 = vmatmul.mubr.f32.gmra.mxu0 %v8306_v5  ;;  %v8857_v25 = vld [vmem:[%s18598_s9 + $0x168] sm:$0xff]  ;;  %v8840_v5 = vld [vmem:[%s18598_s9 + $0xe0] sm:$0xff] }
 0x5ca   : > { %8466 = vmatprep.subr.mxu1 %v11066_v1  ;;  %11525 = vmatprep.subr.mxu0 %v8841_v36 }
 0x5cb   : > { %8467 = vmatpush2.msra.mxu1 %v11065_v23  ;;  %v8872_v23 = vld [vmem:[%s18598_s9 + $0x1e0] sm:$0xff]  ;;  %11526 = vmatpush3.msra.mxu0 %v8825_v16 }
 0x5cc   : > { %8468 = vmatprep.subr.mxu1 %v11064_v20  ;;  %v8824_v20 = vld [vmem:[%s18598_s9 + $0x60] sm:$0xff]  ;;  %11527 = vmatprep.subr.mxu0 %v8840_v5  ;;  %v8604_v5 = vlaneseq }
 0x5cd   : > { %8469 = vmatpush2.msra.mxu1 %v11063_v4  ;;  %v8856_v4 = vld [vmem:[%s18598_s9 + $0x160] sm:$0xff]  ;;  %11528 = vmatpush3.msra.mxu0 %v8824_v20 }
 0x5ce   : > { %8470 = vmatprep.subr.mxu1 %v11062_v10  ;;  %v8839_v10 = vld [vmem:[%s18598_s9 + $0xd8] sm:$0xff]  ;;  %vm17383_vm15 = vcmp.lt.s32.totalorder %v8604_v5, 192  ;;  %vm8666_vm2 = vcmp.ge.s32.totalorder %v8604_v5, 64  ;;  %vm8667_vm3 = vcmp.lt.s32.totalorder %v8604_v5, 256 }
 0x5cf   : > { %8471 = vmatpush2.msra.mxu1 %v11061_v24  ;;  %v8871_v24 = vld [vmem:[%s18598_s9 + $0x1d8] sm:$0xff]  ;;  %11529 = vmatprep.subr.mxu0 %v8839_v10  ;;  %vm17481_vm4 = vmand %vm8666_vm2, %vm8667_vm3 }
 0x5d0   : > { %8472 = vmatprep.subr.mxu1 %v11060_v3  ;;  %v8823_v3 = vld [vmem:[%s18598_s9 + $0x58] sm:$0xff] }
 0x5d1   : > { %8473 = vmatpush2.msra.mxu1 %v11059_v54  ;;  %v8855_v54 = vld [vmem:[%s18598_s9 + $0x158] sm:$0xff]  ;;  %11530 = vmatpush3.msra.mxu0 %v8823_v3 }
 0x5d2   : > { %8474 = vmatprep.subr.mxu1 %v11058_v26 }
 0x5d3   : > { %8475 = vmatpush2.msra.mxu1 %v11057_v55  ;;  %v8838_v55 = vld [vmem:[%s18598_s9 + $0xd0] sm:$0xff] }
 0x5d4   : > { %8476 = vmatprep.subr.mxu1 %v11056_v45  ;;  %v8854_v45 = vld [vmem:[%s18598_s9 + $0x150] sm:$0xff]  ;;  %11531 = vmatprep.subr.mxu0 %v8838_v55 }
 0x5d5   : > { %8477 = vmatpush2.msra.mxu1 %v11055_v19  ;;  %v8869_v19 = vld [vmem:[%s18598_s9 + $0x1c8] sm:$0xff]  ;;  %11532 = vmatpush3.msra.mxu0 %v8822_v33  ;;  %v12758_v33 = vmov 1966171168  }
 0x5d6   : > { %8478 = vmatprep.subr.mxu1 %v11054_v63  ;;  %v8821_v63 = vld [vmem:[%s18598_s9 + $0x48] sm:$0xff]  ;;  %11533 = vmatprep.subr.mxu0 %v8837_v44 }
 0x5d7   : > { %8479 = vmatpush2.msra.mxu1 %v11053_v50  ;;  %v8868_v50 = vld [vmem:[%s18598_s9 + $0x1c0] sm:$0xff]  ;;  %11534 = vmatpush3.msra.mxu0 %v8821_v63 }
 0x5d8   : > { %8481 = vmatmul.mubr.f32.vlgmr.msra.gmra.mxu1 %v8273_v31  ;;  %11556 = vmatprep.subr.mxu1 %v8875_v58 }
 0x5d9   : > { %8486 = vmatprep.mubr.f32.mxu1 %v8285_v40  ;;  %11557 = vmatpush3.msra.mxu1 %v8859_v62 }
 0x5da   : > { %11558 = vmatprep.subr.mxu1 %v8874_v12  ;;  %11535 = vmatprep.subr.mxu0 %v8836_v43 }
 0x5db   : > { %11559 = vmatpush3.msra.mxu1 %v8858_v21 }
 0x5dc   : > { %8487 = vmatmul.mubr.f32.gmra.mxu1 %v8282_v17  ;;  %11560 = vmatprep.subr.mxu1 %v8873_v32 }
 0x5dd   : > { %8492 = vmatprep.mubr.f32.mxu1 %v8294_v28  ;;  %11561 = vmatpush3.msra.mxu1 %v8857_v25 }
 0x5de   : > { %11562 = vmatprep.subr.mxu1 %v8872_v23 }
 0x5df   : > { %11563 = vmatpush3.msra.mxu1 %v8856_v4  ;;  %v17276_v4 = vshrl.u32 %v8604_v5, 7 }
 0x5e0   : > { %8493 = vmatmul.mubr.f32.gmra.mxu1 %v8291_v34  ;;  %11564 = vmatprep.subr.mxu1 %v8871_v24 }
 0x5e1   : > { %8498 = vmatprep.mubr.f32.mxu1 %v8303_v9  ;;  %11565 = vmatpush3.msra.mxu1 %v8855_v54  ;;  %v7726_v48 = vpop.f32.mrf.mxu1 }
 0x5e2   : > { %11566 = vmatprep.subr.mxu1 %v8870_v61  ;;  %v17283_v61 = vsub.s32 0, %v17276_v4 }
 0x5e3   : > { %11567 = vmatpush3.msra.mxu1 %v8854_v45  ;;  %v7728_v60 = vpop.f32.mrf.mxu1  ;;  %v8634_v45 = vunpack.c.l.s4 %v12758_v33 }
 0x5e4   : > { %8499 = vmatmul.mubr.f32.gmra.mxu1 %v8300_v47  ;;  %11568 = vmatprep.subr.mxu1 %v8869_v19 }
 0x5e5   : > { %11569 = vmatpush3.msra.mxu1 %v8853_v11  ;;  %v8602_v11 = vld [vmem:[%s18597_s8] sm:$0x3] }
 0x5e6   : > { %11570 = vmatprep.subr.mxu1 %v8868_v50  ;;  %v17294_v50 = vsub.s32 1, %v17276_v4 }
 0x5e7   : > { %v17145_v15 = vpop.f32.mrf.mxu0 }
 0x5e8   : > { %v7727_v10 = vadd.f32 %v7726_v48, %v17145_v15 }
 0x5e9   : > { %v17147_v13 = vpop.f32.mrf.mxu0 }
 0x5ea   : > { %v7729_v3 = vadd.f32 %v7728_v60, %v17147_v13 }
 0x5eb   : > { %v7732_v51 = vpop.f32.mrf.mxu1 }
 0x5ec   : > { %v17185_v1 = vpop.f32.mrf.mxu0 }
 0x5ed   : > { %v7734_v31 = vpop.f32.mrf.mxu1  ;;  %v7733_v44 = vadd.f32 %v7732_v51, %v17185_v1 }
 0x5ee   : > { %v17211_v26 = vpop.f32.mrf.mxu0 }
 0x5ef   : > { %v7735_v15 = vadd.f32 %v7734_v31, %v17211_v26  ;;  %v8635_v26 = vunpack.c.0.s8 %v8634_v45 }
 0x5f5   : > { %v17225_v18 = vpop.f32.mrf.mxu0  ;;  %v7738_v57 = vpop.f32.mrf.mxu1 }
 0x5f6   : > { %v7739_v48 = vadd.f32 %v7738_v57, %v17225_v18 }
 0x5f7   : > { %v7651_v52 = vpop.f32.mrf.mxu0  ;;  %v7740_v38 = vpop.f32.mrf.mxu1 }
 0x5f8   : > { %v7741_v13 = vadd.f32 %v7740_v38, %v7651_v52 }
 0x5ff   : > { %v7655_v56 = vpop.f32.mrf.mxu0  ;;  %v7744_v42 = vpop.f32.mrf.mxu1 }
 0x600   : > { %v7745_v60 = vadd.f32 %v7744_v42, %v7655_v56 }
 0x601   : > { %v17245_v53 = vpop.f32.mrf.mxu0  ;;  %v17251_v27 = vpop.f32.mrf.mxu1 }
 0x602   : > { %v7747_v38 = vadd.f32 %v17251_v27, %v17245_v53 }
 0x60d   : > { %v7904_v59 = vpop.f32.mrf.mxu0 }
 0x60f   : > { %v17247_v40 = vpop.f32.mrf.mxu0 }
 0x612   : > { %v17249_v8 = vpop.f32.mrf.mxu0 }
 0x614   : > { %v17253_v37 = vpop.f32.mrf.mxu0 }
 0x617   : > { %v17255_v17 = vpop.f32.mrf.mxu0 }
 0x619   : > { %v17257_v41 = vpop.f32.mrf.mxu0 }
 0x61c   : > { %v17259_v7 = vpop.f32.mrf.mxu0 }
 0x61e   : > { %v17261_v0 = vpop.f32.mrf.mxu0 }
 0x62c   : > { %v7815_v6 = vpop.f32.mrf.mxu1 }
 0x62d   : > { %v7816_v54 = vadd.f32 %v7815_v6, %v7727_v10 }
 0x62e   : > { %v7817_v46 = vpop.f32.mrf.mxu1 }
 0x62f   : > { %v7818_v19 = vadd.f32 %v7817_v46, %v7729_v3  ;;  %v7905_v6 = vadd.f32 %v7904_v59, %v7816_v54  ;;  %v17297_v3 = vrot.slane %v8602_v11, %v17283_v61 }
 0x631   : > { %v7821_v28 = vpop.f32.mrf.mxu1  ;;  %v7907_v18 = vadd.f32 %v17247_v40, %v7818_v19 }
 0x632   : > { %v7822_v10 = vadd.f32 %v7821_v28, %v7733_v44  ;;  %v17303_v28 = vrot.slane %v8602_v11, %v17294_v50 }
 0x633   : > { %v7823_v39 = vpop.f32.mrf.mxu1 }
 0x634   : > { %v7824_v51 = vadd.f32 %v7823_v39, %v7735_v15  ;;  %v7911_v39 = vadd.f32 %v17249_v8, %v7822_v10 }
 0x636   : > { %v7827_v22 = vpop.f32.mrf.mxu1  ;;  %v7913_v54 = vadd.f32 %v17253_v37, %v7824_v51 }
 0x637   : > { %v7828_v46 = vadd.f32 %v7827_v22, %v7739_v48 }
 0x638   : > { %v7829_v35 = vpop.f32.mrf.mxu1 }
 0x639   : > { %v7830_v56 = vadd.f32 %v7829_v35, %v7741_v13  ;;  %v7917_v40 = vadd.f32 %v17255_v17, %v7828_v46  ;;  %v8820_v17 = vld [vmem:[%s18598_s9 + $0x40] sm:$0xff]  ;;  %v8819_v13 = vld [vmem:[%s18598_s9 + $0x38] sm:$0xff] }
 0x63a   : > { %11536 = vmatpush3.msra.mxu0 %v8820_v17  ;;  %v8863_v17 = vld [vmem:[%s18598_s9 + $0x198] sm:$0xff] }
 0x63b   : > { %v17263_v9 = vpop.f32.mrf.mxu1  ;;  %v7919_v8 = vadd.f32 %v17257_v41, %v7830_v56  ;;  %v8835_v41 = vld [vmem:[%s18598_s9 + $0xb8] sm:$0xff] }
 0x63c   : > { %v7834_v33 = vadd.f32 %v17263_v9, %v7745_v60  ;;  %v8867_v9 = vld [vmem:[%s18598_s9 + $0x1b8] sm:$0xff]  ;;  %11537 = vmatprep.subr.mxu0 %v8835_v41 }
 0x63d   : > { %v17265_v2 = vpop.f32.mrf.mxu1  ;;  %v8851_v60 = vld [vmem:[%s18598_s9 + $0x138] sm:$0xff]  ;;  %11538 = vmatpush3.msra.mxu0 %v8819_v13 }
 0x63e   : > { %v8847_v41 = vld [vmem:[%s18598_s9 + $0x118] sm:$0xff] }
 0x650   : > { %v8192_v14 = vpop.f32.mrf.mxu1 }
 0x652   : > { %v8194_v49 = vpop.f32.mrf.mxu1 }
 0x655   : > { %v8198_v29 = vpop.f32.mrf.mxu1 }
 0x656   : > { %v8103_v34 = vpop.f32.mrf.mxu0 }
 0x657   : > { %v8200_v36 = vpop.f32.mrf.mxu1  ;;  %v8193_v63 = vadd.f32 %v8192_v14, %v8103_v34 }
 0x658   : > { %v8105_v30 = vpop.f32.mrf.mxu0 }
 0x659   : > { %v8195_v1 = vadd.f32 %v8194_v49, %v8105_v30  ;;  %v8215_v52 = vadd.f32 %v8193_v63, %v7905_v6 }
 0x65b   : > { %v8204_v16 = vpop.f32.mrf.mxu1  ;;  %v8216_v22 = vadd.f32 %v8195_v1, %v7907_v18  ;;  %v7923_v1 = vadd.f32 %v17259_v7, %v7834_v33  ;;  %v8850_v18 = vld [vmem:[%s18598_s9 + $0x130] sm:$0xff] }
 0x65d   : > { %v8109_v47 = vpop.f32.mrf.mxu0  ;;  %v17273_v23 = vpop.f32.mrf.mxu1 }
 0x65e   : > { %v8199_v31 = vadd.f32 %v8198_v29, %v8109_v47 }
 0x65f   : > { %v8111_v58 = vpop.f32.mrf.mxu0 }
 0x660   : > { %v8201_v59 = vadd.f32 %v8200_v36, %v8111_v58  ;;  %v8217_v27 = vadd.f32 %v8199_v31, %v7911_v39 }
 0x661   : > { %v17279_v24 = vpop.f32.mrf.mxu1 }
 0x662   : > { %v8218_v37 = vadd.f32 %v8201_v59, %v7913_v54  ;;  %v8817_v59 = vld [vmem:[%s18598_s9 + $0x28] sm:$0xff]  ;;  %v8832_v54 = vld [vmem:[%s18598_s9 + $0xa0] sm:$0xff] }
 0x663   : > { %v8115_v62 = vpop.f32.mrf.mxu0  ;;  %v17291_v43 = vpop.f32.mrf.mxu1 }
 0x664   : > { %v8205_v47 = vadd.f32 %v8204_v16, %v8115_v62  ;;  %v8852_v62 = vld [vmem:[%s18598_s9 + $0x140] sm:$0xff] }
 0x665   : > { %v17267_v12 = vpop.f32.mrf.mxu0  ;;  %11571 = vmatpush3.msra.mxu1 %v8852_v62 }
 0x666   : > { %v8207_v19 = vadd.f32 %v17273_v23, %v17267_v12  ;;  %11572 = vmatprep.subr.mxu1 %v8867_v9 }
 0x667   : > { %11573 = vmatpush3.msra.mxu1 %v8851_v60 }
 0x668   : > { %v17269_v21 = vpop.f32.mrf.mxu0 }
 0x669   : > { %v8211_v63 = vadd.f32 %v17279_v24, %v17269_v21  ;;  %v8834_v21 = vld [vmem:[%s18598_s9 + $0xb0] sm:$0xff] }
 0x66a   : > { %v17271_v32 = vpop.f32.mrf.mxu0  ;;  %v8866_v24 = vld [vmem:[%s18598_s9 + $0x1b0] sm:$0xff]  ;;  %11539 = vmatprep.subr.mxu0 %v8834_v21  ;;  %v8829_v21 = vld [vmem:[%s18598_s9 + $0x88] sm:$0xff] }
 0x66b   : > { %v8213_v46 = vadd.f32 %v17291_v43, %v17271_v32  ;;  %11574 = vmatprep.subr.mxu1 %v8866_v24  ;;  %v8865_v32 = vld [vmem:[%s18598_s9 + $0x1a8] sm:$0xff]  ;;  %v8220_v43 = vadd.f32 %v8207_v19, %v7919_v8 }
 0x66c   : > { %11575 = vmatpush3.msra.mxu1 %v8850_v18  ;;  %v8861_v24 = vld [vmem:[%s18598_s9 + $0x188] sm:$0xff] }
 0x66d   : > { %11576 = vmatprep.subr.mxu1 %v8865_v32  ;;  %v8844_v32 = vld [vmem:[%s18598_s9 + $0x100] sm:$0xff] }
 0x67d   : > { %v8571_v25 = vpop.f32.mrf.mxu0 }
 0x67f   : > { %v8573_v20 = vpop.f32.mrf.mxu0 }
 0x681   : > { %v8577_v55 = vpop.f32.mrf.mxu0 }
 0x683   : > { %v8579_v34 = vpop.f32.mrf.mxu0 }
 0x685   : > { %v8583_v29 = vpop.f32.mrf.mxu0 }
 0x687   : > { %v8585_v11 = vpop.f32.mrf.mxu0 }
 0x698   : > { %v8482_v14 = vpop.f32.mrf.mxu1 }
 0x699   : > { %v8572_v57 = vadd.f32 %v8571_v25, %v8482_v14  ;;  %v17309_v25 = vsub.s32 %v8635_v26, %v17276_v4  ;;  %v8818_v26 = vld [vmem:[%s18598_s9 + $0x30] sm:$0xff] }
 0x69a   : > { %v8484_v42 = vpop.f32.mrf.mxu1  ;;  %11540 = vmatpush3.msra.mxu0 %v8818_v26 }
 0x69b   : > { %v8594_v30 = vadd.f32 %v8572_v57, %v8215_v52  ;;  %v8574_v49 = vadd.f32 %v8573_v20, %v8484_v42  ;;  %v7836_v20 = vadd.f32 %v17265_v2, %v7747_v38  ;;  %v8219_v2 = vadd.f32 %v8205_v47, %v7917_v40  ;;  %v8849_v42 = vld [vmem:[%s18598_s9 + $0x128] sm:$0xff]  ;;  %v8864_v40 = vld [vmem:[%s18598_s9 + $0x1a0] sm:$0xff] }
 0x69c   : > { %v8488_v53 = vpop.f32.mrf.mxu1  ;;  %v8221_v57 = vadd.f32 %v8211_v63, %v7923_v1  ;;  %11577 = vmatpush3.msra.mxu1 %v8849_v42  ;;  %v8830_v63 = vld [vmem:[%s18598_s9 + $0x90] sm:$0xff] }
 0x69d   : > { %v8614_v35 = vadd.f32 %v17297_v3, %v8594_v30  ;;  %v8595_v58 = vadd.f32 %v8574_v49, %v8216_v22  ;;  %v8578_v36 = vadd.f32 %v8577_v55, %v8488_v53  ;;  %v7925_v51 = vadd.f32 %v17261_v0, %v7836_v20  ;;  %v8833_v0 = vld [vmem:[%s18598_s9 + $0xa8] sm:$0xff]  ;;  %11578 = vmatprep.subr.mxu1 %v8864_v40 }
 0x69e   : > { %v8490_v45 = vpop.f32.mrf.mxu1  ;;  %11541 = vmatprep.subr.mxu0 %v8833_v0  ;;  %v8812_v0 = vld [vmem:[%s18598_s9] sm:$0xff] }
 0x69f   : > { %v8615_v16 = vadd.f32 %v17303_v28, %v8595_v58  ;;  %v8596_v44 = vadd.f32 %v8578_v36, %v8217_v27  ;;  %v8580_v55 = vadd.f32 %v8579_v34, %v8490_v45  ;;  %v8622_v15 = vmax.f32 %v8614_v35, 0.0  ;;  %v8589_v34 = vpop.f32.mrf.mxu0  ;;  %11542 = vmatpush3.msra.mxu0 %v8817_v59  ;;  %v8816_v58 = vld [vmem:[%s18598_s9 + $0x20] sm:$0xff]  ;;  %v8831_v45 = vld [vmem:[%s18598_s9 + $0x98] sm:$0xff] }
 0x6a0   : > { %v8494_v48 = vpop.f32.mrf.mxu1  ;;  %v8222_v47 = vadd.f32 %v8213_v46, %v7925_v51  ;;  %11543 = vmatprep.subr.mxu0 %v8832_v54  ;;  %v8848_v36 = vld [vmem:[%s18598_s9 + $0x120] sm:$0xff]  ;;  %v8845_v46 = vld [vmem:[%s18598_s9 + $0x108] sm:$0xff] }
 0x6a1   : > { %v8623_v6 = vmax.f32 %v8615_v16, 0.0  ;;  %v8616_v10 = vadd.f32 %v17297_v3, %v8596_v44  ;;  %v8597_v12 = vadd.f32 %v8580_v55, %v8218_v37  ;;  %v8584_v23 = vadd.f32 %v8583_v29, %v8494_v48  ;;  %v8591_v29 = vpop.f32.mrf.mxu0  ;;  %11544 = vmatpush3.msra.mxu0 %v8816_v58  ;;  %11579 = vmatpush3.msra.mxu1 %v8848_v36  ;;  %v8815_v55 = vld [vmem:[%s18598_s9 + $0x18] sm:$0xff] }
 0x6a2   : > { %v8496_v14 = vpop.f32.mrf.mxu1  ;;  %11545 = vmatprep.subr.mxu0 %v8831_v45  ;;  %11580 = vmatprep.subr.mxu1 %v8863_v17 }
 0x6a3   : > { %v8632_v52 = vcombine.low %v8622_v15, %v8623_v6  ;;  %v8617_v7 = vadd.f32 %v17303_v28, %v8597_v12  ;;  %v8598_v31 = vadd.f32 %v8584_v23, %v8219_v2  ;;  %v8586_v38 = vadd.f32 %v8585_v11, %v8496_v14  ;;  %11546 = vmatpush3.msra.mxu0 %v8815_v55  ;;  %v8862_v11 = vld [vmem:[%s18598_s9 + $0x190] sm:$0xff] }
 0x6a4   : > { %v8500_v56 = vpop.f32.mrf.mxu1  ;;  %v8624_v22 = vmax.f32 %v8616_v10, 0.0  ;;  %11581 = vmatpush3.msra.mxu1 %v8847_v41  ;;  %11547 = vmatprep.subr.mxu0 %v8830_v63  ;;  %v8846_v6 = vld [vmem:[%s18598_s9 + $0x110] sm:$0xff]  ;;  %v17504_v63 = vsub.s32 2, %v17276_v4 }
 0x6a5   : > { %v8639_v39 = vrot.slane %v8632_v52, %v17309_v25  ;;  %v8625_v30 = vmax.f32 %v8617_v7, 0.0  ;;  %v8590_v49 = vadd.f32 %v8589_v34, %v8500_v56  ;;  %v8618_v53 = vadd.f32 %v17297_v3, %v8598_v31  ;;  %11582 = vmatprep.subr.mxu1 %v8862_v11  ;;  %v8828_v52 = vld [vmem:[%s18598_s9 + $0x80] sm:$0xff]  ;;  %v8939_v56 = vld [vmem:[%s18598_s9 + $0x3f8] sm:$0xff] }
 0x6a6   : > { %v8599_v27 = vadd.f32 %v8586_v38, %v8220_v43  ;;  %v8502_v35 = vpop.f32.mrf.mxu1  ;;  %11583 = vmatpush3.msra.mxu1 %v8846_v6  ;;  %v8860_v7 = vld [vmem:[%s18598_s9 + $0x180] sm:$0xff]  ;;  %v8907_v38 = vld [vmem:[%s18598_s9 + $0x2f8] sm:$0xff]  ;;  %v17513_v6 = vsub.s32 5, %v17276_v4 }
 0x6a7   : > { %v8682_v8 = vcombine.low %v8624_v22, %v8625_v30  ;;  %v8600_v33 = vadd.f32 %v8590_v49, %v8221_v57  ;;  %v8592_v20 = vadd.f32 %v8591_v29, %v8502_v35  ;;  %v8653_v16 = vcombine.high %v8639_v39, %v8639_v39  ;;  %11584 = vmatprep.subr.mxu1 %v8861_v24 }
 0x6a8   : > { %v8619_v62 = vadd.f32 %v17303_v28, %v8599_v27  ;;  %v8646_v44 = vrot.slane %v8639_v39, %v17309_v25  ;;  %v8626_v15 = vmax.f32 %v8618_v53, 0.0  ;;  %11585 = vmatpush3.msra.mxu1 %v8845_v46  ;;  %v8906_v46 = vld [vmem:[%s18598_s9 + $0x2f0] sm:$0xff] }
 0x6a9   : > { %v8689_v9 = vrot.slane %v8682_v8, %v17309_v25  ;;  %v8620_v2 = vadd.f32 %v17297_v3, %v8600_v33  ;;  %v8601_v19 = vadd.f32 %v8592_v20, %v8222_v47  ;;  %v8660_v13 = vrot.slane %v8653_v16, %v17309_v25  ;;  %v8814_v3 = vld [vmem:[%s18598_s9 + $0x10] sm:$0xff]  ;;  %11586 = vmatprep.subr.mxu1 %v8860_v7 }
 0x6aa   : > { %v8627_v48 = vmax.f32 %v8619_v62, 0.0  ;;  %8652 = vst.msk [vmem:[#allocation8] sm:$0x3] %vm17383_vm15, %v8646_v44  ;;  %v8670_v60 = vcombine.high %v8646_v44, %v8646_v44  ;;  %11548 = vmatpush3.msra.mxu0 %v8814_v3  ;;  %11587 = vmatpush3.msra.mxu1 %v8844_v32  ;;  %v8922_v7 = vld [vmem:[%s18598_s9 + $0x370] sm:$0xff]  ;;  %v8905_v32 = vld [vmem:[%s18598_s9 + $0x2e8] sm:$0xff] }
 0x6ab   : > { %v8621_v10 = vadd.f32 %v17303_v28, %v8601_v19  ;;  %v8699_v12 = vcombine.high %v8689_v9, %v8689_v9  ;;  %v8696_v23 = vrot.slane %v8689_v9, %v17309_v25  ;;  %8661 = vrot.lane.b32.xlu0 %v8660_v13, %s18612_s15  ;;  %v8673_v51 = vcombine.high %v8660_v13, %v8660_v13  ;;  %v8813_v28 = vld [vmem:[%s18598_s9 + $0x8] sm:$0xff] }
 0x6ac   : > { %v8725_v1 = vcombine.low %v8626_v15, %v8627_v48  ;;  %8672 = vst.msk [vmem:[#allocation8 + $0x3] sm:$0x3] %vm17383_vm15, %v8670_v60  ;;  %11549 = vmatprep.subr.mxu0 %v8829_v21  ;;  %v8628_v34 = vmax.f32 %v8620_v2, 0.0  ;;  %11626 = vmatprep.subr.mxu1 %v8939_v56  ;;  %v17501_v19 = vsub.s32 3, %v17276_v4 }
 0x6ad   : > { %v8629_v14 = vmax.f32 %v8621_v10, 0.0  ;;  %v8706_v26 = vrot.slane %v8699_v12, %v17309_v25  ;;  %8698 = vst.msk [vmem:[#allocation8 + $0x6] sm:$0x3] %vm17383_vm15, %v8696_v23  ;;  %v8713_v18 = vcombine.high %v8696_v23, %v8696_v23  ;;  %11550 = vmatpush3.msra.mxu0 %v8813_v28  ;;  %8674 = vrot.lane.b32.xlu1 %v8673_v51, %s18612_s15  ;;  %v17516_v10 = vsub.s32 7, %v17276_v4  ;;  %v8891_v51 = vld [vmem:[%s18598_s9 + $0x278] sm:$0xff] }
 0x6ae   : > { %v8732_v31 = vrot.slane %v8725_v1, %v17309_v25  ;;  %11551 = vmatprep.subr.mxu0 %v8828_v52  ;;  %v8923_v28 = vld [vmem:[%s18598_s9 + $0x378] sm:$0xff]  ;;  %v8890_v52 = vld [vmem:[%s18598_s9 + $0x270] sm:$0xff] }
 0x6af   : > { %v8768_v43 = vcombine.low %v8628_v34, %v8629_v14  ;;  %v8716_v57 = vcombine.high %v8706_v26, %v8706_v26  ;;  %8715 = vst.msk [vmem:[#allocation8 + $0x9] sm:$0x3] %vm17383_vm15, %v8713_v18  ;;  %8707 = vrot.lane.b32.xlu0 %v8706_v26, %s18612_s15  ;;  %11552 = vmatpush3.msra.mxu0 %v8812_v0  ;;  %v8938_v14 = vld [vmem:[%s18598_s9 + $0x3f0] sm:$0xff]  ;;  %v17559_v0 = vsub.s32 6, %v17276_v4 }
 0x6b0   : > { %v8742_v59 = vcombine.high %v8732_v31, %v8732_v31  ;;  %v8739_v42 = vrot.slane %v8732_v31, %v17309_v25  ;;  %11591 = vmatprep.subr.mxu0 %v8907_v38  ;;  %v17556_v31 = vsub.s32 4, %v17276_v4  ;;  %v8921_v4 = vld [vmem:[%s18598_s9 + $0x368] sm:$0xff] }
 0x6b1   : > { %v8775_v39 = vrot.slane %v8768_v43, %v17309_v25  ;;  %8717 = vrot.lane.b32.xlu1 %v8716_v57, %s18612_s15  ;;  %v8937_v43 = vld [vmem:[%s18598_s9 + $0x3e8] sm:$0xff] }
 0x6b2   : > { %v8749_v22 = vrot.slane %v8742_v59, %v17309_v25  ;;  %8741 = vst.msk [vmem:[#allocation8 + $0xc] sm:$0x3] %vm17383_vm15, %v8739_v42  ;;  %v8756_v30 = vcombine.high %v8739_v42, %v8739_v42  ;;  %v8889_v57 = vld [vmem:[%s18598_s9 + $0x268] sm:$0xff]  ;;  %v8904_v59 = vld [vmem:[%s18598_s9 + $0x2e0] sm:$0xff] }
 0x6b3   : > { %v8785_v49 = vcombine.high %v8775_v39, %v8775_v39  ;;  %v8782_v54 = vrot.slane %v8775_v39, %v17309_v25  ;;  %v8936_v42 = vld [vmem:[%s18598_s9 + $0x3e0] sm:$0xff] }
 0x6b4   : > { %8750 = vrot.lane.b32.xlu0 %v8749_v22, %s18612_s15  ;;  %v8759_v40 = vcombine.high %v8749_v22, %v8749_v22  ;;  %8758 = vst.msk [vmem:[#allocation8 + $0xf] sm:$0x3] %vm17383_vm15, %v8756_v30  ;;  %v8888_v39 = vld [vmem:[%s18598_s9 + $0x260] sm:$0xff]  ;;  %v8903_v30 = vld [vmem:[%s18598_s9 + $0x2d8] sm:$0xff] }
 0x6b5   : > { %v8792_v47 = vrot.slane %v8785_v49, %v17309_v25  ;;  %8784 = vst.msk [vmem:[#allocation8 + $0x12] sm:$0x3] %vm17383_vm15, %v8782_v54  ;;  %v8799_v29 = vcombine.high %v8782_v54, %v8782_v54  ;;  %v8920_v22 = vld [vmem:[%s18598_s9 + $0x360] sm:$0xff]  ;;  %v8935_v49 = vld [vmem:[%s18598_s9 + $0x3d8] sm:$0xff]  ;;  %v8918_v25 = vld [vmem:[%s18598_s9 + $0x350] sm:$0xff] }
 0x6b6   : > { %8760 = vrot.lane.b32.xlu1 %v8759_v40, %s18612_s15  ;;  %v8887_v40 = vld [vmem:[%s18598_s9 + $0x258] sm:$0xff] }
 0x6b7   : > { %v8802_v53 = vcombine.high %v8792_v47, %v8792_v47  ;;  %8801 = vst.msk [vmem:[#allocation8 + $0x15] sm:$0x3] %vm17383_vm15, %v8799_v29  ;;  %v8902_v29 = vld [vmem:[%s18598_s9 + $0x2d0] sm:$0xff] }
 0x6b8   : > { %8793 = vrot.lane.b32.xlu0 %v8792_v47, %s18612_s15  ;;  %v8919_v47 = vld [vmem:[%s18598_s9 + $0x358] sm:$0xff] }
 0x6ba   : > { %8803 = vrot.lane.b32.xlu1 %v8802_v53, %s18612_s15  ;;  %v8934_v53 = vld [vmem:[%s18598_s9 + $0x3d0] sm:$0xff]  ;;  %s378_s15 = scalar_lea.vmem [#allocation9], %s377_s14 }
 0x6bb   : > { %s10180_s22 = sshll.u32 %s378_s15, 4  ;;  %s10181_s22 = int_to_ptr.vmem [resolvable:$true] %s10180_s22 }
 0x6bc   : > { %s12688_s12 = scalar_lea.vmem %s10181_s22, 16  ;;  %p12695_p0 = scmp.lt.s32.totalorder %s10181_s22, %s12693_s0 }
 0x6bd   : > { %p12689_p11 = scmp.ne.s32.totalorder %s10181_s22, %s12688_s12  ;;  %p12696_p1 = scmp.lt.s32.totalorder %s12694_s21, %s12688_s12 }
 0x6bf   : > { %p12690_p12 = pnand %p12689_p11, %p12858_p5  ;;  %p12697_p2 = por %p12696_p1, %p12695_p0 }
 0x6c1   : > { %p12691_p13 = pneg %p12690_p12 }
 0x6c3   : > { %p12698_p3 = pnand %p12697_p2, %p12691_p13 }
 0x71d   : > { %v8662_v27 = vpop.permute.xlu0 %8661 }
 0x71e   : > { %v8663_v35 = vrot.slane %v8662_v27, 7 }
 0x71f   : > { %v8675_v58 = vpop.permute.xlu1 %8674 }
 0x720   : > { %v8664_v36 = vsel %vm6400_vm7, %v8663_v35, %v8662_v27  ;;  %v8676_v8 = vrot.slane %v8675_v58, 7  ;;  %v8886_v27 = vld [vmem:[%s18598_s9 + $0x250] sm:$0xff] }
 0x721   : > { %8669 = vst.msk [vmem:[#allocation8 + $0x1] sm:$0x3] %vm17481_vm4, %v8664_v36  ;;  %v8708_v33 = vpop.permute.xlu0 %8707  ;;  %v8901_v36 = vld [vmem:[%s18598_s9 + $0x2c8] sm:$0xff] }
 0x722   : > { %v8677_v20 = vsel %vm6400_vm7, %v8676_v8, %v8675_v58  ;;  %v8709_v37 = vrot.slane %v8708_v33, 7  ;;  %v8933_v8 = vld [vmem:[%s18598_s9 + $0x3c8] sm:$0xff] }
 0x723   : > { %8679 = vst.msk [vmem:[#allocation8 + $0x4] sm:$0x3] %vm17481_vm4, %v8677_v20  ;;  %v8718_v5 = vpop.permute.xlu1 %8717  ;;  %v8917_v20 = vld [vmem:[%s18598_s9 + $0x348] sm:$0xff] }
 0x724   : > { %v8710_v45 = vsel %vm6400_vm7, %v8709_v37, %v8708_v33  ;;  %v8719_v17 = vrot.slane %v8718_v5, 7  ;;  %v8885_v33 = vld [vmem:[%s18598_s9 + $0x248] sm:$0xff]  ;;  %v8900_v37 = vld [vmem:[%s18598_s9 + $0x2c0] sm:$0xff] }
 0x725   : > { %8712 = vst.msk [vmem:[#allocation8 + $0x7] sm:$0x3] %vm17481_vm4, %v8710_v45  ;;  %v8884_v45 = vld [vmem:[%s18598_s9 + $0x240] sm:$0xff] }
 0x726   : > { %v8751_v62 = vpop.permute.xlu0 %8750  ;;  %v8720_v16 = vsel %vm6400_vm7, %v8719_v17, %v8718_v5  ;;  %v8932_v5 = vld [vmem:[%s18598_s9 + $0x3c0] sm:$0xff] }
 0x727   : > { %v8752_v44 = vrot.slane %v8751_v62, 7  ;;  %8722 = vst.msk [vmem:[#allocation8 + $0xa] sm:$0x3] %vm17481_vm4, %v8720_v16  ;;  %v8916_v17 = vld [vmem:[%s18598_s9 + $0x340] sm:$0xff]  ;;  %v8931_v16 = vld [vmem:[%s18598_s9 + $0x3b8] sm:$0xff] }
 0x728   : > { %v8761_v55 = vpop.permute.xlu1 %8760 }
 0x729   : > { %v8753_v41 = vsel %vm6400_vm7, %v8752_v44, %v8751_v62  ;;  %v8762_v9 = vrot.slane %v8761_v55, 7  ;;  %v8899_v62 = vld [vmem:[%s18598_s9 + $0x2b8] sm:$0xff] }
 0x72a   : > { %8755 = vst.msk [vmem:[#allocation8 + $0xd] sm:$0x3] %vm17481_vm4, %v8753_v41  ;;  %v8794_v2 = vpop.permute.xlu0 %8793  ;;  %v8883_v44 = vld [vmem:[%s18598_s9 + $0x238] sm:$0xff]  ;;  %v8898_v41 = vld [vmem:[%s18598_s9 + $0x2b0] sm:$0xff] }
 0x72b   : > { %v8763_v11 = vsel %vm6400_vm7, %v8762_v9, %v8761_v55  ;;  %v8795_v15 = vrot.slane %v8794_v2, 7  ;;  %v8915_v55 = vld [vmem:[%s18598_s9 + $0x338] sm:$0xff]  ;;  %v8930_v9 = vld [vmem:[%s18598_s9 + $0x3b0] sm:$0xff] }
 0x72c   : > { %8765 = vst.msk [vmem:[#allocation8 + $0x10] sm:$0x3] %vm17481_vm4, %v8763_v11  ;;  %v8804_v48 = vpop.permute.xlu1 %8803  ;;  %v17510_v3 = vld [vmem:[#allocation8] sm:$0xff]  ;;  %v8914_v11 = vld [vmem:[%s18598_s9 + $0x330] sm:$0xff] }
 0x72d   : > { %v8796_v13 = vsel %vm6400_vm7, %v8795_v15, %v8794_v2  ;;  %v8805_v60 = vrot.slane %v8804_v48, 7  ;;  %v9207_v12 = vrot.slane %v17510_v3, %v17294_v50  ;;  %v9215_v23 = vrot.slane %v17510_v3, %v17501_v19  ;;  %v8882_v2 = vld [vmem:[%s18598_s9 + $0x230] sm:$0xff]  ;;  %v8897_v15 = vld [vmem:[%s18598_s9 + $0x2a8] sm:$0xff] }
 0x72e   : > { %8798 = vst.msk [vmem:[#allocation8 + $0x13] sm:$0x3] %vm17481_vm4, %v8796_v13  ;;  %v9203_v21 = vrot.slane %v17510_v3, %v17283_v61  ;;  %v9211_v24 = vrot.slane %v17510_v3, %v17504_v63  ;;  %v9223_v34 = vrot.slane %v17510_v3, %v17513_v6  ;;  %v9231_v18 = vrot.slane %v17510_v3, %v17516_v10  ;;  %v8881_v13 = vld [vmem:[%s18598_s9 + $0x228] sm:$0xff] }
 0x72f   : > { %v8806_v1 = vsel %vm6400_vm7, %v8805_v60, %v8804_v48  ;;  %9384 = vmatprep.mubr.f32.mxu0 %v9207_v12  ;;  %9454 = vmatprep.mubr.f32.mxu1 %v9215_v23  ;;  %v8929_v48 = vld [vmem:[%s18598_s9 + $0x3a8] sm:$0xff]  ;;  %v8896_v12 = vld [vmem:[%s18598_s9 + $0x2a0] sm:$0xff] }
 0x730   : > { %8808 = vst.msk [vmem:[#allocation8 + $0x16] sm:$0x3] %vm17481_vm4, %v8806_v1  ;;  %9385 = vmatmul.mubr.f32.vlgmr.msra.gmra.mxu0 %v9203_v21  ;;  %9455 = vmatmul.mubr.f32.vlgmr.msra.gmra.mxu1 %v9211_v24  ;;  %v8913_v60 = vld [vmem:[%s18598_s9 + $0x328] sm:$0xff]  ;;  %v8928_v23 = vld [vmem:[%s18598_s9 + $0x3a0] sm:$0xff]  ;;  %v8895_v1 = vld [vmem:[%s18598_s9 + $0x298] sm:$0xff] }
 0x731   : > { %v17545_v26 = vld [vmem:[#allocation8 + $0x8] sm:$0xff]  ;;  %11592 = vmatpush3.msra.mxu0 %v8891_v51  ;;  %11627 = vmatpush3.msra.mxu1 %v8923_v28  ;;  %v8880_v21 = vld [vmem:[%s18598_s9 + $0x220] sm:$0xff]  ;;  %v8927_v51 = vld [vmem:[%s18598_s9 + $0x398] sm:$0xff] }
 0x732   : > { %11593 = vmatprep.subr.mxu0 %v8906_v46  ;;  %9524 = vmatprep.mubr.f32.mxu0 %v9223_v34  ;;  %v9251_v38 = vrot.slane %v17545_v26, %v17556_v31  ;;  %v9259_v56 = vrot.slane %v17545_v26, %v17559_v0  ;;  %v8912_v24 = vld [vmem:[%s18598_s9 + $0x320] sm:$0xff]  ;;  %v8879_v28 = vld [vmem:[%s18598_s9 + $0x218] sm:$0xff]  ;;  %v8894_v34 = vld [vmem:[%s18598_s9 + $0x290] sm:$0xff] }
 0x733   : > { %11628 = vmatprep.subr.mxu1 %v8938_v14  ;;  %9594 = vmatprep.mubr.f32.mxu1 %v9231_v18  ;;  %v8911_v46 = vld [vmem:[%s18598_s9 + $0x318] sm:$0xff]  ;;  %v8926_v14 = vld [vmem:[%s18598_s9 + $0x390] sm:$0xff] }
 0x734   : > { %11594 = vmatpush3.msra.mxu0 %v8890_v52  ;;  %11629 = vmatpush3.msra.mxu1 %v8922_v7  ;;  %v8878_v18 = vld [vmem:[%s18598_s9 + $0x210] sm:$0xff]  ;;  %v8893_v7 = vld [vmem:[%s18598_s9 + $0x288] sm:$0xff] }
 0x735   : > { %11595 = vmatprep.subr.mxu0 %v8905_v32  ;;  %11630 = vmatprep.subr.mxu1 %v8937_v43  ;;  %v8910_v52 = vld [vmem:[%s18598_s9 + $0x310] sm:$0xff]  ;;  %v8925_v32 = vld [vmem:[%s18598_s9 + $0x388] sm:$0xff] }
 0x736   : > { %11596 = vmatpush3.msra.mxu0 %v8889_v57  ;;  %11631 = vmatpush3.msra.mxu1 %v8921_v4  ;;  %v8877_v43 = vld [vmem:[%s18598_s9 + $0x208] sm:$0xff]  ;;  %v8892_v4 = vld [vmem:[%s18598_s9 + $0x280] sm:$0xff] }
 0x737   : > { %v17595_v54 = vld [vmem:[#allocation8 + $0x10] sm:$0xff]  ;;  %11597 = vmatprep.subr.mxu0 %v8904_v59  ;;  %11632 = vmatprep.subr.mxu1 %v8936_v42  ;;  %v8909_v57 = vld [vmem:[%s18598_s9 + $0x308] sm:$0xff]  ;;  %v8924_v59 = vld [vmem:[%s18598_s9 + $0x380] sm:$0xff] }
 0x738   : > { %11598 = vmatpush3.msra.mxu0 %v8888_v39  ;;  %11633 = vmatpush3.msra.mxu1 %v8920_v22  ;;  %v9283_v35 = vrot.slane %v17595_v54, %v17556_v31  ;;  %v9291_v58 = vrot.slane %v17595_v54, %v17559_v0  ;;  %v8876_v42 = vld [vmem:[%s18598_s9 + $0x200] sm:$0xff]  ;;  %v9219_v22 = vrot.slane %v17510_v3, %v17556_v31 }
 0x739   : > { %11599 = vmatprep.subr.mxu0 %v8903_v30  ;;  %11634 = vmatprep.subr.mxu1 %v8935_v49  ;;  %v8908_v39 = vld [vmem:[%s18598_s9 + $0x300] sm:$0xff]  ;;  %v9227_v30 = vrot.slane %v17510_v3, %v17559_v0  ;;  %v8971_v49 = vld [vmem:[%s18598_s9 + $0x4f8] sm:$0xff] }
 0x73a   : > { %11600 = vmatpush3.msra.mxu0 %v8887_v40  ;;  %11635 = vmatpush3.msra.mxu1 %v8919_v47  ;;  %v9003_v40 = vld [vmem:[%s18598_s9 + $0x5f8] sm:$0xff] }
 0x73b   : > { %11601 = vmatprep.subr.mxu0 %v8902_v29  ;;  %11636 = vmatprep.subr.mxu1 %v8934_v53  ;;  %v8955_v47 = vld [vmem:[%s18598_s9 + $0x478] sm:$0xff]  ;;  %v9239_v29 = vrot.slane %v17545_v26, %v17294_v50  ;;  %v9247_v53 = vrot.slane %v17545_v26, %v17501_v19 }
 0x73c   : > { %11602 = vmatpush3.msra.mxu0 %v8886_v27  ;;  %11637 = vmatpush3.msra.mxu1 %v8918_v25  ;;  %v8987_v3 = vld [vmem:[%s18598_s9 + $0x578] sm:$0xff]  ;;  %v8970_v27 = vld [vmem:[%s18598_s9 + $0x4f0] sm:$0xff] }
 0x73d   : > { %11603 = vmatprep.subr.mxu0 %v8901_v36  ;;  %11638 = vmatprep.subr.mxu1 %v8933_v8  ;;  %v9002_v25 = vld [vmem:[%s18598_s9 + $0x5f0] sm:$0xff] }
 0x73e   : > { %11604 = vmatpush3.msra.mxu0 %v8885_v33  ;;  %11639 = vmatpush3.msra.mxu1 %v8917_v20  ;;  %v8954_v36 = vld [vmem:[%s18598_s9 + $0x470] sm:$0xff]  ;;  %v8969_v33 = vld [vmem:[%s18598_s9 + $0x4e8] sm:$0xff] }
 0x73f   : > { %11605 = vmatprep.subr.mxu0 %v8900_v37  ;;  %11640 = vmatprep.subr.mxu1 %v8932_v5  ;;  %v8986_v8 = vld [vmem:[%s18598_s9 + $0x570] sm:$0xff]  ;;  %v9001_v20 = vld [vmem:[%s18598_s9 + $0x5e8] sm:$0xff] }
 0x740   : > { %11606 = vmatpush3.msra.mxu0 %v8884_v45  ;;  %11641 = vmatpush3.msra.mxu1 %v8916_v17  ;;  %v8953_v37 = vld [vmem:[%s18598_s9 + $0x468] sm:$0xff]  ;;  %v8968_v45 = vld [vmem:[%s18598_s9 + $0x4e0] sm:$0xff] }
 0x741   : > { %11607 = vmatprep.subr.mxu0 %v8899_v62  ;;  %11642 = vmatprep.subr.mxu1 %v8931_v16  ;;  %v8985_v5 = vld [vmem:[%s18598_s9 + $0x568] sm:$0xff]  ;;  %v9000_v17 = vld [vmem:[%s18598_s9 + $0x5e0] sm:$0xff] }
 0x742   : > { %11608 = vmatpush3.msra.mxu0 %v8883_v44  ;;  %11643 = vmatpush3.msra.mxu1 %v8915_v55  ;;  %v8952_v62 = vld [vmem:[%s18598_s9 + $0x460] sm:$0xff]  ;;  %v8967_v44 = vld [vmem:[%s18598_s9 + $0x4d8] sm:$0xff] }
 0x743   : > { %11609 = vmatprep.subr.mxu0 %v8898_v41  ;;  %11644 = vmatprep.subr.mxu1 %v8930_v9  ;;  %v8984_v16 = vld [vmem:[%s18598_s9 + $0x560] sm:$0xff]  ;;  %v8999_v55 = vld [vmem:[%s18598_s9 + $0x5d8] sm:$0xff] }
 0x744   : > { %11610 = vmatpush3.msra.mxu0 %v8882_v2  ;;  %11645 = vmatpush3.msra.mxu1 %v8914_v11  ;;  %v8951_v41 = vld [vmem:[%s18598_s9 + $0x458] sm:$0xff]  ;;  %v8966_v2 = vld [vmem:[%s18598_s9 + $0x4d0] sm:$0xff] }
 0x745   : > { %11611 = vmatprep.subr.mxu0 %v8897_v15  ;;  %11646 = vmatprep.subr.mxu1 %v8929_v48  ;;  %v8983_v9 = vld [vmem:[%s18598_s9 + $0x558] sm:$0xff]  ;;  %v8998_v11 = vld [vmem:[%s18598_s9 + $0x5d0] sm:$0xff] }
 0x746   : > { %11612 = vmatpush3.msra.mxu0 %v8881_v13  ;;  %11647 = vmatpush3.msra.mxu1 %v8913_v60  ;;  %v8950_v15 = vld [vmem:[%s18598_s9 + $0x450] sm:$0xff]  ;;  %v8965_v13 = vld [vmem:[%s18598_s9 + $0x4c8] sm:$0xff] }
 0x747   : > { %11613 = vmatprep.subr.mxu0 %v8896_v12  ;;  %11648 = vmatprep.subr.mxu1 %v8928_v23  ;;  %v8982_v48 = vld [vmem:[%s18598_s9 + $0x550] sm:$0xff]  ;;  %v8997_v60 = vld [vmem:[%s18598_s9 + $0x5c8] sm:$0xff] }
 0x748   : > { %11614 = vmatpush3.msra.mxu0 %v8880_v21  ;;  %11649 = vmatpush3.msra.mxu1 %v8912_v24  ;;  %v8949_v12 = vld [vmem:[%s18598_s9 + $0x448] sm:$0xff]  ;;  %v8964_v21 = vld [vmem:[%s18598_s9 + $0x4c0] sm:$0xff] }
 0x749   : > { %11615 = vmatprep.subr.mxu0 %v8895_v1  ;;  %11650 = vmatprep.subr.mxu1 %v8927_v51  ;;  %v8981_v23 = vld [vmem:[%s18598_s9 + $0x548] sm:$0xff]  ;;  %v8996_v24 = vld [vmem:[%s18598_s9 + $0x5c0] sm:$0xff] }
 0x74a   : > { %11616 = vmatpush3.msra.mxu0 %v8879_v28  ;;  %11651 = vmatpush3.msra.mxu1 %v8911_v46  ;;  %v8948_v1 = vld [vmem:[%s18598_s9 + $0x440] sm:$0xff]  ;;  %v8963_v28 = vld [vmem:[%s18598_s9 + $0x4b8] sm:$0xff] }
 0x74b   : > { %11617 = vmatprep.subr.mxu0 %v8894_v34  ;;  %11652 = vmatprep.subr.mxu1 %v8926_v14  ;;  %v8980_v51 = vld [vmem:[%s18598_s9 + $0x540] sm:$0xff]  ;;  %v8995_v46 = vld [vmem:[%s18598_s9 + $0x5b8] sm:$0xff] }
 0x74c   : > { %11618 = vmatpush3.msra.mxu0 %v8878_v18  ;;  %11653 = vmatpush3.msra.mxu1 %v8910_v52  ;;  %v8947_v34 = vld [vmem:[%s18598_s9 + $0x438] sm:$0xff]  ;;  %v8962_v18 = vld [vmem:[%s18598_s9 + $0x4b0] sm:$0xff] }
 0x74d   : > { %11619 = vmatprep.subr.mxu0 %v8893_v7  ;;  %11654 = vmatprep.subr.mxu1 %v8925_v32  ;;  %v8979_v14 = vld [vmem:[%s18598_s9 + $0x538] sm:$0xff]  ;;  %v8994_v52 = vld [vmem:[%s18598_s9 + $0x5b0] sm:$0xff] }
 0x74e   : > { %11620 = vmatpush3.msra.mxu0 %v8877_v43  ;;  %11655 = vmatpush3.msra.mxu1 %v8909_v57  ;;  %v8946_v7 = vld [vmem:[%s18598_s9 + $0x430] sm:$0xff]  ;;  %v8961_v43 = vld [vmem:[%s18598_s9 + $0x4a8] sm:$0xff] }
 0x74f   : > { %11621 = vmatprep.subr.mxu0 %v8892_v4  ;;  %11656 = vmatprep.subr.mxu1 %v8924_v59  ;;  %v8978_v32 = vld [vmem:[%s18598_s9 + $0x530] sm:$0xff]  ;;  %v8993_v57 = vld [vmem:[%s18598_s9 + $0x5a8] sm:$0xff] }
 0x750   : > { %11622 = vmatpush3.msra.mxu0 %v8876_v42  ;;  %11657 = vmatpush3.msra.mxu1 %v8908_v39  ;;  %v8945_v4 = vld [vmem:[%s18598_s9 + $0x428] sm:$0xff]  ;;  %v8960_v42 = vld [vmem:[%s18598_s9 + $0x4a0] sm:$0xff] }
 0x751   : > { %9525 = vmatmul.mubr.f32.vlgmr.msra.gmra.mxu0 %v9219_v22  ;;  %9595 = vmatmul.mubr.f32.vlgmr.msra.gmra.mxu1 %v9227_v30  ;;  %v8977_v59 = vld [vmem:[%s18598_s9 + $0x528] sm:$0xff]  ;;  %v8992_v39 = vld [vmem:[%s18598_s9 + $0x5a0] sm:$0xff] }
 0x752   : > { %11661 = vmatprep.subr.mxu0 %v8971_v49  ;;  %11696 = vmatprep.subr.mxu1 %v9003_v40  ;;  %v8944_v22 = vld [vmem:[%s18598_s9 + $0x420] sm:$0xff]  ;;  %v8959_v49 = vld [vmem:[%s18598_s9 + $0x498] sm:$0xff] }
 0x753   : > { %11662 = vmatpush3.msra.mxu0 %v8955_v47  ;;  %9664 = vmatprep.mubr.f32.mxu0 %v9239_v29  ;;  %v8976_v30 = vld [vmem:[%s18598_s9 + $0x520] sm:$0xff]  ;;  %v8991_v40 = vld [vmem:[%s18598_s9 + $0x598] sm:$0xff] }
 0x754   : > { %11697 = vmatpush3.msra.mxu1 %v8987_v3  ;;  %9734 = vmatprep.mubr.f32.mxu1 %v9247_v53  ;;  %v8943_v47 = vld [vmem:[%s18598_s9 + $0x418] sm:$0xff]  ;;  %v8958_v3 = vld [vmem:[%s18598_s9 + $0x490] sm:$0xff] }
 0x755   : > { %11663 = vmatprep.subr.mxu0 %v8970_v27  ;;  %11698 = vmatprep.subr.mxu1 %v9002_v25  ;;  %v8975_v29 = vld [vmem:[%s18598_s9 + $0x518] sm:$0xff]  ;;  %v8990_v53 = vld [vmem:[%s18598_s9 + $0x590] sm:$0xff] }
 0x756   : > { %11664 = vmatpush3.msra.mxu0 %v8954_v36  ;;  %11699 = vmatpush3.msra.mxu1 %v8986_v8  ;;  %v8942_v27 = vld [vmem:[%s18598_s9 + $0x410] sm:$0xff]  ;;  %v8957_v36 = vld [vmem:[%s18598_s9 + $0x488] sm:$0xff] }
 0x757   : > { %11665 = vmatprep.subr.mxu0 %v8969_v33  ;;  %11700 = vmatprep.subr.mxu1 %v9001_v20  ;;  %v8974_v25 = vld [vmem:[%s18598_s9 + $0x510] sm:$0xff]  ;;  %v8989_v8 = vld [vmem:[%s18598_s9 + $0x588] sm:$0xff] }
 0x758   : > { %11666 = vmatpush3.msra.mxu0 %v8953_v37  ;;  %11701 = vmatpush3.msra.mxu1 %v8985_v5  ;;  %v8941_v33 = vld [vmem:[%s18598_s9 + $0x408] sm:$0xff]  ;;  %v8956_v37 = vld [vmem:[%s18598_s9 + $0x480] sm:$0xff] }
 0x759   : > { %11667 = vmatprep.subr.mxu0 %v8968_v45  ;;  %11702 = vmatprep.subr.mxu1 %v9000_v17  ;;  %v8973_v20 = vld [vmem:[%s18598_s9 + $0x508] sm:$0xff]  ;;  %v8988_v5 = vld [vmem:[%s18598_s9 + $0x580] sm:$0xff] }
 0x75a   : > { %11668 = vmatpush3.msra.mxu0 %v8952_v62  ;;  %11703 = vmatpush3.msra.mxu1 %v8984_v16  ;;  %v8940_v45 = vld [vmem:[%s18598_s9 + $0x400] sm:$0xff]  ;;  %v9235_v62 = vrot.slane %v17545_v26, %v17283_v61  ;;  %v9243_v16 = vrot.slane %v17545_v26, %v17504_v63 }
 0x75b   : > { %11669 = vmatprep.subr.mxu0 %v8967_v44  ;;  %11704 = vmatprep.subr.mxu1 %v8999_v55  ;;  %v8972_v17 = vld [vmem:[%s18598_s9 + $0x500] sm:$0xff]  ;;  %v9035_v44 = vld [vmem:[%s18598_s9 + $0x6f8] sm:$0xff] }
 0x75c   : > { %11670 = vmatpush3.msra.mxu0 %v8951_v41  ;;  %11705 = vmatpush3.msra.mxu1 %v8983_v9  ;;  %v9067_v55 = vld [vmem:[%s18598_s9 + $0x7f8] sm:$0xff]  ;;  %v9255_v9 = vrot.slane %v17545_v26, %v17513_v6 }
 0x75d   : > { %11671 = vmatprep.subr.mxu0 %v8966_v2  ;;  %11706 = vmatprep.subr.mxu1 %v8998_v11  ;;  %v9019_v41 = vld [vmem:[%s18598_s9 + $0x678] sm:$0xff]  ;;  %v9263_v11 = vrot.slane %v17545_v26, %v17516_v10  ;;  %v9130_v26 = vld [vmem:[%s18598_s9 + $0x9f0] sm:$0xff] }
 0x75e   : > { %11672 = vmatpush3.msra.mxu0 %v8950_v15  ;;  %11707 = vmatpush3.msra.mxu1 %v8982_v48  ;;  %v9051_v2 = vld [vmem:[%s18598_s9 + $0x778] sm:$0xff]  ;;  %v9034_v15 = vld [vmem:[%s18598_s9 + $0x6f0] sm:$0xff] }
 0x75f   : > { %11673 = vmatprep.subr.mxu0 %v8965_v13  ;;  %11708 = vmatprep.subr.mxu1 %v8997_v60  ;;  %v9066_v48 = vld [vmem:[%s18598_s9 + $0x7f0] sm:$0xff] }
 0x760   : > { %11674 = vmatpush3.msra.mxu0 %v8949_v12  ;;  %11709 = vmatpush3.msra.mxu1 %v8981_v23  ;;  %v9018_v13 = vld [vmem:[%s18598_s9 + $0x670] sm:$0xff]  ;;  %v9033_v12 = vld [vmem:[%s18598_s9 + $0x6e8] sm:$0xff] }
 0x761   : > { %11675 = vmatprep.subr.mxu0 %v8964_v21  ;;  %11710 = vmatprep.subr.mxu1 %v8996_v24  ;;  %v9050_v60 = vld [vmem:[%s18598_s9 + $0x770] sm:$0xff]  ;;  %v9065_v23 = vld [vmem:[%s18598_s9 + $0x7e8] sm:$0xff] }
 0x762   : > { %11676 = vmatpush3.msra.mxu0 %v8948_v1  ;;  %11711 = vmatpush3.msra.mxu1 %v8980_v51  ;;  %v9017_v21 = vld [vmem:[%s18598_s9 + $0x668] sm:$0xff]  ;;  %v9032_v1 = vld [vmem:[%s18598_s9 + $0x6e0] sm:$0xff] }
 0x763   : > { %11677 = vmatprep.subr.mxu0 %v8963_v28  ;;  %11712 = vmatprep.subr.mxu1 %v8995_v46  ;;  %v9049_v24 = vld [vmem:[%s18598_s9 + $0x768] sm:$0xff]  ;;  %v9064_v51 = vld [vmem:[%s18598_s9 + $0x7e0] sm:$0xff] }
 0x764   : > { %11678 = vmatpush3.msra.mxu0 %v8947_v34  ;;  %11713 = vmatpush3.msra.mxu1 %v8979_v14  ;;  %v9016_v28 = vld [vmem:[%s18598_s9 + $0x660] sm:$0xff]  ;;  %v9031_v34 = vld [vmem:[%s18598_s9 + $0x6d8] sm:$0xff] }
 0x765   : > { %11679 = vmatprep.subr.mxu0 %v8962_v18  ;;  %11714 = vmatprep.subr.mxu1 %v8994_v52  ;;  %v9048_v46 = vld [vmem:[%s18598_s9 + $0x760] sm:$0xff]  ;;  %v9063_v14 = vld [vmem:[%s18598_s9 + $0x7d8] sm:$0xff] }
 0x766   : > { %11680 = vmatpush3.msra.mxu0 %v8946_v7  ;;  %11715 = vmatpush3.msra.mxu1 %v8978_v32  ;;  %v9015_v18 = vld [vmem:[%s18598_s9 + $0x658] sm:$0xff]  ;;  %v9030_v7 = vld [vmem:[%s18598_s9 + $0x6d0] sm:$0xff] }
 0x767   : > { %11681 = vmatprep.subr.mxu0 %v8961_v43  ;;  %11716 = vmatprep.subr.mxu1 %v8993_v57  ;;  %v9047_v52 = vld [vmem:[%s18598_s9 + $0x758] sm:$0xff]  ;;  %v9062_v32 = vld [vmem:[%s18598_s9 + $0x7d0] sm:$0xff] }
 0x768   : > { %11682 = vmatpush3.msra.mxu0 %v8945_v4  ;;  %11717 = vmatpush3.msra.mxu1 %v8977_v59  ;;  %v9014_v43 = vld [vmem:[%s18598_s9 + $0x650] sm:$0xff]  ;;  %v9029_v4 = vld [vmem:[%s18598_s9 + $0x6c8] sm:$0xff] }
 0x769   : > { %11683 = vmatprep.subr.mxu0 %v8960_v42  ;;  %11718 = vmatprep.subr.mxu1 %v8992_v39  ;;  %v9046_v57 = vld [vmem:[%s18598_s9 + $0x750] sm:$0xff]  ;;  %v9061_v59 = vld [vmem:[%s18598_s9 + $0x7c8] sm:$0xff] }
 0x76a   : > { %11684 = vmatpush3.msra.mxu0 %v8944_v22  ;;  %11719 = vmatpush3.msra.mxu1 %v8976_v30  ;;  %v9013_v42 = vld [vmem:[%s18598_s9 + $0x648] sm:$0xff]  ;;  %v9028_v22 = vld [vmem:[%s18598_s9 + $0x6c0] sm:$0xff] }
 0x76b   : > { %11685 = vmatprep.subr.mxu0 %v8959_v49  ;;  %11720 = vmatprep.subr.mxu1 %v8991_v40  ;;  %v9045_v39 = vld [vmem:[%s18598_s9 + $0x748] sm:$0xff]  ;;  %v9060_v30 = vld [vmem:[%s18598_s9 + $0x7c0] sm:$0xff] }
 0x76c   : > { %11686 = vmatpush3.msra.mxu0 %v8943_v47  ;;  %11721 = vmatpush3.msra.mxu1 %v8975_v29  ;;  %v9012_v49 = vld [vmem:[%s18598_s9 + $0x640] sm:$0xff]  ;;  %v9027_v47 = vld [vmem:[%s18598_s9 + $0x6b8] sm:$0xff] }
 0x76d   : > { %11687 = vmatprep.subr.mxu0 %v8958_v3  ;;  %11722 = vmatprep.subr.mxu1 %v8990_v53  ;;  %v9044_v40 = vld [vmem:[%s18598_s9 + $0x740] sm:$0xff]  ;;  %v9059_v29 = vld [vmem:[%s18598_s9 + $0x7b8] sm:$0xff] }
 0x76e   : > { %11688 = vmatpush3.msra.mxu0 %v8942_v27  ;;  %11723 = vmatpush3.msra.mxu1 %v8974_v25  ;;  %v9011_v3 = vld [vmem:[%s18598_s9 + $0x638] sm:$0xff]  ;;  %v9026_v27 = vld [vmem:[%s18598_s9 + $0x6b0] sm:$0xff] }
 0x76f   : > { %11689 = vmatprep.subr.mxu0 %v8957_v36  ;;  %11724 = vmatprep.subr.mxu1 %v8989_v8  ;;  %v9043_v53 = vld [vmem:[%s18598_s9 + $0x738] sm:$0xff]  ;;  %v9058_v25 = vld [vmem:[%s18598_s9 + $0x7b0] sm:$0xff] }
 0x770   : > { %11690 = vmatpush3.msra.mxu0 %v8941_v33  ;;  %11725 = vmatpush3.msra.mxu1 %v8973_v20  ;;  %v9010_v36 = vld [vmem:[%s18598_s9 + $0x630] sm:$0xff]  ;;  %v9025_v33 = vld [vmem:[%s18598_s9 + $0x6a8] sm:$0xff] }
 0x771   : > { %11691 = vmatprep.subr.mxu0 %v8956_v37  ;;  %11726 = vmatprep.subr.mxu1 %v8988_v5  ;;  %v9042_v8 = vld [vmem:[%s18598_s9 + $0x730] sm:$0xff]  ;;  %v9057_v20 = vld [vmem:[%s18598_s9 + $0x7a8] sm:$0xff] }
 0x772   : > { %11692 = vmatpush3.msra.mxu0 %v8940_v45  ;;  %11727 = vmatpush3.msra.mxu1 %v8972_v17  ;;  %v9009_v37 = vld [vmem:[%s18598_s9 + $0x628] sm:$0xff]  ;;  %v9024_v45 = vld [vmem:[%s18598_s9 + $0x6a0] sm:$0xff] }
 0x773   : > { %9665 = vmatmul.mubr.f32.vlgmr.msra.gmra.mxu0 %v9235_v62  ;;  %9735 = vmatmul.mubr.f32.vlgmr.msra.gmra.mxu1 %v9243_v16  ;;  %v9041_v5 = vld [vmem:[%s18598_s9 + $0x728] sm:$0xff]  ;;  %v9056_v17 = vld [vmem:[%s18598_s9 + $0x7a0] sm:$0xff] }
 0x774   : > { %11731 = vmatprep.subr.mxu0 %v9035_v44  ;;  %11766 = vmatprep.subr.mxu1 %v9067_v55  ;;  %v9008_v62 = vld [vmem:[%s18598_s9 + $0x620] sm:$0xff]  ;;  %v9023_v44 = vld [vmem:[%s18598_s9 + $0x698] sm:$0xff] }
 0x775   : > { %11732 = vmatpush3.msra.mxu0 %v9019_v41  ;;  %9804 = vmatprep.mubr.f32.mxu0 %v9255_v9  ;;  %v9040_v16 = vld [vmem:[%s18598_s9 + $0x720] sm:$0xff]  ;;  %v9055_v55 = vld [vmem:[%s18598_s9 + $0x798] sm:$0xff] }
 0x776   : > { %11767 = vmatpush3.msra.mxu1 %v9051_v2  ;;  %9874 = vmatprep.mubr.f32.mxu1 %v9263_v11  ;;  %v9007_v41 = vld [vmem:[%s18598_s9 + $0x618] sm:$0xff]  ;;  %v9022_v2 = vld [vmem:[%s18598_s9 + $0x690] sm:$0xff] }
 0x777   : > { %11733 = vmatprep.subr.mxu0 %v9034_v15  ;;  %11768 = vmatprep.subr.mxu1 %v9066_v48  ;;  %v9039_v9 = vld [vmem:[%s18598_s9 + $0x718] sm:$0xff]  ;;  %v9054_v11 = vld [vmem:[%s18598_s9 + $0x790] sm:$0xff] }
 0x778   : > { %11734 = vmatpush3.msra.mxu0 %v9018_v13  ;;  %11769 = vmatpush3.msra.mxu1 %v9050_v60  ;;  %v9006_v15 = vld [vmem:[%s18598_s9 + $0x610] sm:$0xff]  ;;  %v9021_v13 = vld [vmem:[%s18598_s9 + $0x688] sm:$0xff] }
 0x779   : > { %11735 = vmatprep.subr.mxu0 %v9033_v12  ;;  %11770 = vmatprep.subr.mxu1 %v9065_v23  ;;  %v9038_v48 = vld [vmem:[%s18598_s9 + $0x710] sm:$0xff]  ;;  %v9053_v60 = vld [vmem:[%s18598_s9 + $0x788] sm:$0xff] }
 0x77a   : > { %11736 = vmatpush3.msra.mxu0 %v9017_v21  ;;  %11771 = vmatpush3.msra.mxu1 %v9049_v24  ;;  %v9005_v12 = vld [vmem:[%s18598_s9 + $0x608] sm:$0xff]  ;;  %v9020_v21 = vld [vmem:[%s18598_s9 + $0x680] sm:$0xff] }
 0x77b   : > { %11737 = vmatprep.subr.mxu0 %v9032_v1  ;;  %11772 = vmatprep.subr.mxu1 %v9064_v51  ;;  %v9037_v23 = vld [vmem:[%s18598_s9 + $0x708] sm:$0xff]  ;;  %v9052_v24 = vld [vmem:[%s18598_s9 + $0x780] sm:$0xff] }
 0x77c   : > { %11738 = vmatpush3.msra.mxu0 %v9016_v28  ;;  %11773 = vmatpush3.msra.mxu1 %v9048_v46  ;;  %v9004_v1 = vld [vmem:[%s18598_s9 + $0x600] sm:$0xff]  ;;  %v9099_v28 = vld [vmem:[%s18598_s9 + $0x8f8] sm:$0xff] }
 0x77d   : > { %11739 = vmatprep.subr.mxu0 %v9031_v34  ;;  %11774 = vmatprep.subr.mxu1 %v9063_v14  ;;  %v9036_v51 = vld [vmem:[%s18598_s9 + $0x700] sm:$0xff]  ;;  %v9131_v46 = vld [vmem:[%s18598_s9 + $0x9f8] sm:$0xff]  ;;  %v9271_v14 = vrot.slane %v17595_v54, %v17294_v50  ;;  %v9082_v50 = vld [vmem:[%s18598_s9 + $0x870] sm:$0xff] }
 0x77e   : > { %11740 = vmatpush3.msra.mxu0 %v9015_v18  ;;  %11775 = vmatpush3.msra.mxu1 %v9047_v52  ;;  %v9083_v34 = vld [vmem:[%s18598_s9 + $0x878] sm:$0xff]  ;;  %v9279_v52 = vrot.slane %v17595_v54, %v17501_v19  ;;  %v9097_v19 = vld [vmem:[%s18598_s9 + $0x8e8] sm:$0xff] }
 0x77f   : > { %11741 = vmatprep.subr.mxu0 %v9030_v7  ;;  %11776 = vmatprep.subr.mxu1 %v9062_v32  ;;  %v9115_v18 = vld [vmem:[%s18598_s9 + $0x978] sm:$0xff]  ;;  %v9129_v7 = vld [vmem:[%s18598_s9 + $0x9e8] sm:$0xff] }
 0x780   : > { %11742 = vmatpush3.msra.mxu0 %v9014_v43  ;;  %11777 = vmatpush3.msra.mxu1 %v9046_v57  ;;  %v9081_v32 = vld [vmem:[%s18598_s9 + $0x868] sm:$0xff]  ;;  %v9096_v57 = vld [vmem:[%s18598_s9 + $0x8e0] sm:$0xff] }
 0x781   : > { %11743 = vmatprep.subr.mxu0 %v9029_v4  ;;  %11778 = vmatprep.subr.mxu1 %v9061_v59  ;;  %v9113_v43 = vld [vmem:[%s18598_s9 + $0x968] sm:$0xff]  ;;  %v9128_v4 = vld [vmem:[%s18598_s9 + $0x9e0] sm:$0xff] }
 0x782   : > { %11744 = vmatpush3.msra.mxu0 %v9013_v42  ;;  %11779 = vmatpush3.msra.mxu1 %v9045_v39  ;;  %v9080_v59 = vld [vmem:[%s18598_s9 + $0x860] sm:$0xff]  ;;  %v9095_v39 = vld [vmem:[%s18598_s9 + $0x8d8] sm:$0xff] }
 0x783   : > { %11745 = vmatprep.subr.mxu0 %v9028_v22  ;;  %11780 = vmatprep.subr.mxu1 %v9060_v30  ;;  %v9112_v42 = vld [vmem:[%s18598_s9 + $0x960] sm:$0xff]  ;;  %v9127_v22 = vld [vmem:[%s18598_s9 + $0x9d8] sm:$0xff] }
 0x784   : > { %11746 = vmatpush3.msra.mxu0 %v9012_v49  ;;  %11781 = vmatpush3.msra.mxu1 %v9044_v40  ;;  %v9079_v30 = vld [vmem:[%s18598_s9 + $0x858] sm:$0xff]  ;;  %v9094_v40 = vld [vmem:[%s18598_s9 + $0x8d0] sm:$0xff] }
 0x785   : > { %11747 = vmatprep.subr.mxu0 %v9027_v47  ;;  %11782 = vmatprep.subr.mxu1 %v9059_v29  ;;  %v9111_v49 = vld [vmem:[%s18598_s9 + $0x958] sm:$0xff]  ;;  %v9126_v47 = vld [vmem:[%s18598_s9 + $0x9d0] sm:$0xff] }
 0x786   : > { %11748 = vmatpush3.msra.mxu0 %v9011_v3  ;;  %11783 = vmatpush3.msra.mxu1 %v9043_v53  ;;  %v9078_v29 = vld [vmem:[%s18598_s9 + $0x850] sm:$0xff]  ;;  %v9093_v53 = vld [vmem:[%s18598_s9 + $0x8c8] sm:$0xff] }
 0x787   : > { %11749 = vmatprep.subr.mxu0 %v9026_v27  ;;  %11784 = vmatprep.subr.mxu1 %v9058_v25  ;;  %v9110_v3 = vld [vmem:[%s18598_s9 + $0x950] sm:$0xff]  ;;  %v9125_v27 = vld [vmem:[%s18598_s9 + $0x9c8] sm:$0xff] }
 0x788   : > { %11750 = vmatpush3.msra.mxu0 %v9010_v36  ;;  %11785 = vmatpush3.msra.mxu1 %v9042_v8  ;;  %v9077_v25 = vld [vmem:[%s18598_s9 + $0x848] sm:$0xff]  ;;  %v9092_v8 = vld [vmem:[%s18598_s9 + $0x8c0] sm:$0xff] }
 0x789   : > { %11751 = vmatprep.subr.mxu0 %v9025_v33  ;;  %11786 = vmatprep.subr.mxu1 %v9057_v20  ;;  %v9109_v36 = vld [vmem:[%s18598_s9 + $0x948] sm:$0xff]  ;;  %v9124_v33 = vld [vmem:[%s18598_s9 + $0x9c0] sm:$0xff] }
 0x78a   : > { %11752 = vmatpush3.msra.mxu0 %v9009_v37  ;;  %11787 = vmatpush3.msra.mxu1 %v9041_v5  ;;  %v9076_v20 = vld [vmem:[%s18598_s9 + $0x840] sm:$0xff]  ;;  %v9091_v5 = vld [vmem:[%s18598_s9 + $0x8b8] sm:$0xff] }
 0x78b   : > { %11753 = vmatprep.subr.mxu0 %v9024_v45  ;;  %11788 = vmatprep.subr.mxu1 %v9056_v17  ;;  %v9108_v37 = vld [vmem:[%s18598_s9 + $0x940] sm:$0xff]  ;;  %v9123_v45 = vld [vmem:[%s18598_s9 + $0x9b8] sm:$0xff] }
 0x78c   : > { %11754 = vmatpush3.msra.mxu0 %v9008_v62  ;;  %11789 = vmatpush3.msra.mxu1 %v9040_v16  ;;  %v9075_v17 = vld [vmem:[%s18598_s9 + $0x838] sm:$0xff]  ;;  %v9090_v16 = vld [vmem:[%s18598_s9 + $0x8b0] sm:$0xff] }
 0x78d   : > { %11755 = vmatprep.subr.mxu0 %v9023_v44  ;;  %11790 = vmatprep.subr.mxu1 %v9055_v55  ;;  %v9107_v62 = vld [vmem:[%s18598_s9 + $0x938] sm:$0xff]  ;;  %v9122_v44 = vld [vmem:[%s18598_s9 + $0x9b0] sm:$0xff] }
 0x78e   : > { %11756 = vmatpush3.msra.mxu0 %v9007_v41  ;;  %11791 = vmatpush3.msra.mxu1 %v9039_v9  ;;  %v9074_v55 = vld [vmem:[%s18598_s9 + $0x830] sm:$0xff]  ;;  %v9089_v9 = vld [vmem:[%s18598_s9 + $0x8a8] sm:$0xff] }
 0x78f   : > { %11757 = vmatprep.subr.mxu0 %v9022_v2  ;;  %11792 = vmatprep.subr.mxu1 %v9054_v11  ;;  %v9106_v41 = vld [vmem:[%s18598_s9 + $0x930] sm:$0xff]  ;;  %v9121_v2 = vld [vmem:[%s18598_s9 + $0x9a8] sm:$0xff] }
 0x790   : > { %11758 = vmatpush3.msra.mxu0 %v9006_v15  ;;  %11793 = vmatpush3.msra.mxu1 %v9038_v48  ;;  %v9073_v11 = vld [vmem:[%s18598_s9 + $0x828] sm:$0xff]  ;;  %v9088_v48 = vld [vmem:[%s18598_s9 + $0x8a0] sm:$0xff] }
 0x791   : > { %11759 = vmatprep.subr.mxu0 %v9021_v13  ;;  %11794 = vmatprep.subr.mxu1 %v9053_v60  ;;  %v9105_v15 = vld [vmem:[%s18598_s9 + $0x928] sm:$0xff]  ;;  %v9120_v13 = vld [vmem:[%s18598_s9 + $0x9a0] sm:$0xff] }
 0x792   : > { %11760 = vmatpush3.msra.mxu0 %v9005_v12  ;;  %11795 = vmatpush3.msra.mxu1 %v9037_v23  ;;  %v9072_v60 = vld [vmem:[%s18598_s9 + $0x820] sm:$0xff]  ;;  %v9087_v23 = vld [vmem:[%s18598_s9 + $0x898] sm:$0xff] }
 0x793   : > { %11761 = vmatprep.subr.mxu0 %v9020_v21  ;;  %11796 = vmatprep.subr.mxu1 %v9052_v24  ;;  %v9104_v12 = vld [vmem:[%s18598_s9 + $0x920] sm:$0xff]  ;;  %v9119_v21 = vld [vmem:[%s18598_s9 + $0x998] sm:$0xff] }
 0x794   : > { %11762 = vmatpush3.msra.mxu0 %v9004_v1  ;;  %11797 = vmatpush3.msra.mxu1 %v9036_v51  ;;  %v9071_v24 = vld [vmem:[%s18598_s9 + $0x818] sm:$0xff]  ;;  %v9086_v51 = vld [vmem:[%s18598_s9 + $0x890] sm:$0xff] }
 0x795   : > { %9805 = vmatmul.mubr.f32.vlgmr.msra.gmra.mxu0 %v9251_v38  ;;  %9875 = vmatmul.mubr.f32.vlgmr.msra.gmra.mxu1 %v9259_v56  ;;  %v9098_v38 = vld [vmem:[%s18598_s9 + $0x8f0] sm:$0xff]  ;;  %v9103_v1 = vld [vmem:[%s18598_s9 + $0x918] sm:$0xff] }
 0x796   : > { %11801 = vmatprep.subr.mxu0 %v9099_v28  ;;  %11836 = vmatprep.subr.mxu1 %v9131_v46  ;;  %v9114_v56 = vld [vmem:[%s18598_s9 + $0x970] sm:$0xff] }
 0x797   : > { %11802 = vmatpush3.msra.mxu0 %v9083_v34  ;;  %9944 = vmatprep.mubr.f32.mxu0 %v9271_v14  ;;  %v9118_v28 = vld [vmem:[%s18598_s9 + $0x990] sm:$0xff]  ;;  %v9085_v14 = vld [vmem:[%s18598_s9 + $0x888] sm:$0xff] }
 0x798   : > { %11837 = vmatpush3.msra.mxu1 %v9115_v18  ;;  %10014 = vmatprep.mubr.f32.mxu1 %v9279_v52  ;;  %v9070_v46 = vld [vmem:[%s18598_s9 + $0x810] sm:$0xff]  ;;  %v9117_v18 = vld [vmem:[%s18598_s9 + $0x988] sm:$0xff] }
 0x799   : > { %11803 = vmatprep.subr.mxu0 %v9098_v38  ;;  %11838 = vmatprep.subr.mxu1 %v9130_v26  ;;  %v9102_v34 = vld [vmem:[%s18598_s9 + $0x910] sm:$0xff]  ;;  %v9069_v52 = vld [vmem:[%s18598_s9 + $0x808] sm:$0xff]  ;;  %v9084_v26 = vld [vmem:[%s18598_s9 + $0x880] sm:$0xff] }
 0x79a   : > { %11804 = vmatpush3.msra.mxu0 %v9082_v50  ;;  %11839 = vmatpush3.msra.mxu1 %v9114_v56  ;;  %v9101_v38 = vld [vmem:[%s18598_s9 + $0x908] sm:$0xff]  ;;  %v9116_v50 = vld [vmem:[%s18598_s9 + $0x980] sm:$0xff] }
 0x79b   : > { %11805 = vmatprep.subr.mxu0 %v9097_v19  ;;  %11840 = vmatprep.subr.mxu1 %v9129_v7  ;;  %v9068_v56 = vld [vmem:[%s18598_s9 + $0x800] sm:$0xff]  ;;  %v9267_v7 = vrot.slane %v17595_v54, %v17283_v61  ;;  %v12687_v61 = vld [vmem:[#allocation8 + $0x10] sm:$0xff] }
 0x79c   : > { %11806 = vmatpush3.msra.mxu0 %v9081_v32  ;;  %11841 = vmatpush3.msra.mxu1 %v9113_v43  ;;  %v9100_v19 = vld [vmem:[%s18598_s9 + $0x900] sm:$0xff]  ;;  %v9275_v32 = vrot.slane %v17595_v54, %v17504_v63  ;;  %v9163_v43 = vld [vmem:[%s18598_s9 + $0xaf8] sm:$0xff] }
 0x79d   : > { %11807 = vmatprep.subr.mxu0 %v9096_v57  ;;  %11842 = vmatprep.subr.mxu1 %v9128_v4  ;;  %v9195_v57 = vld [vmem:[%s18598_s9 + $0xbf8] sm:$0xff] }
 0x79e   : > { %11808 = vmatpush3.msra.mxu0 %v9080_v59  ;;  %11843 = vmatpush3.msra.mxu1 %v9112_v42  ;;  %v9147_v4 = vld [vmem:[%s18598_s9 + $0xa78] sm:$0xff]  ;;  %v9287_v59 = vrot.slane %v12687_v61, %v17513_v6  ;;  %v9295_v42 = vrot.slane %v12687_v61, %v17516_v10  ;;  %v9146_v6 = vld [vmem:[%s18598_s9 + $0xa70] sm:$0xff]  ;;  %v9161_v10 = vld [vmem:[%s18598_s9 + $0xae8] sm:$0xff] }
 0x79f   : > { %11809 = vmatprep.subr.mxu0 %v9095_v39  ;;  %11844 = vmatprep.subr.mxu1 %v9127_v22  ;;  %v9179_v63 = vld [vmem:[%s18598_s9 + $0xb78] sm:$0xff]  ;;  %v9162_v39 = vld [vmem:[%s18598_s9 + $0xaf0] sm:$0xff]  ;;  %v9165_v61 = vld [vmem:[%s18598_s9 + $0xb08] sm:$0xff] }
 0x7a0   : > { %11810 = vmatpush3.msra.mxu0 %v9079_v30  ;;  %11845 = vmatpush3.msra.mxu1 %v9111_v49  ;;  %v9194_v22 = vld [vmem:[%s18598_s9 + $0xbf0] sm:$0xff]  ;;  %v9193_v49 = vld [vmem:[%s18598_s9 + $0xbe8] sm:$0xff] }
 0x7a1   : > { %11811 = vmatprep.subr.mxu0 %v9094_v40  ;;  %11846 = vmatprep.subr.mxu1 %v9126_v47  ;;  %v9178_v30 = vld [vmem:[%s18598_s9 + $0xb70] sm:$0xff]  ;;  %v9145_v40 = vld [vmem:[%s18598_s9 + $0xa68] sm:$0xff] }
 0x7a2   : > { %11812 = vmatpush3.msra.mxu0 %v9078_v29  ;;  %11847 = vmatpush3.msra.mxu1 %v9110_v3  ;;  %v9177_v47 = vld [vmem:[%s18598_s9 + $0xb68] sm:$0xff]  ;;  %v9160_v29 = vld [vmem:[%s18598_s9 + $0xae0] sm:$0xff] }
 0x7a3   : > { %11813 = vmatprep.subr.mxu0 %v9093_v53  ;;  %11848 = vmatprep.subr.mxu1 %v9125_v27  ;;  %v9192_v3 = vld [vmem:[%s18598_s9 + $0xbe0] sm:$0xff] }
 0x7a4   : > { %11814 = vmatpush3.msra.mxu0 %v9077_v25  ;;  %11849 = vmatpush3.msra.mxu1 %v9109_v36  ;;  %v9144_v53 = vld [vmem:[%s18598_s9 + $0xa60] sm:$0xff]  ;;  %v9159_v25 = vld [vmem:[%s18598_s9 + $0xad8] sm:$0xff] }
 0x7a5   : > { %11815 = vmatprep.subr.mxu0 %v9092_v8  ;;  %11850 = vmatprep.subr.mxu1 %v9124_v33  ;;  %v9176_v27 = vld [vmem:[%s18598_s9 + $0xb60] sm:$0xff]  ;;  %v9191_v36 = vld [vmem:[%s18598_s9 + $0xbd8] sm:$0xff] }
 0x7a6   : > { %11816 = vmatpush3.msra.mxu0 %v9076_v20  ;;  %11851 = vmatpush3.msra.mxu1 %v9108_v37  ;;  %v9143_v8 = vld [vmem:[%s18598_s9 + $0xa58] sm:$0xff]  ;;  %v9158_v20 = vld [vmem:[%s18598_s9 + $0xad0] sm:$0xff] }
 0x7a7   : > { %11817 = vmatprep.subr.mxu0 %v9091_v5  ;;  %11852 = vmatprep.subr.mxu1 %v9123_v45  ;;  %v9175_v33 = vld [vmem:[%s18598_s9 + $0xb58] sm:$0xff]  ;;  %v9190_v37 = vld [vmem:[%s18598_s9 + $0xbd0] sm:$0xff] }
 0x7a8   : > { %11818 = vmatpush3.msra.mxu0 %v9075_v17  ;;  %11853 = vmatpush3.msra.mxu1 %v9107_v62  ;;  %v9142_v5 = vld [vmem:[%s18598_s9 + $0xa50] sm:$0xff]  ;;  %v9157_v17 = vld [vmem:[%s18598_s9 + $0xac8] sm:$0xff] }
 0x7a9   : > { %11819 = vmatprep.subr.mxu0 %v9090_v16  ;;  %11854 = vmatprep.subr.mxu1 %v9122_v44  ;;  %v9174_v45 = vld [vmem:[%s18598_s9 + $0xb50] sm:$0xff]  ;;  %v9189_v62 = vld [vmem:[%s18598_s9 + $0xbc8] sm:$0xff] }
 0x7aa   : > { %11820 = vmatpush3.msra.mxu0 %v9074_v55  ;;  %11855 = vmatpush3.msra.mxu1 %v9106_v41  ;;  %v9141_v16 = vld [vmem:[%s18598_s9 + $0xa48] sm:$0xff]  ;;  %v9156_v55 = vld [vmem:[%s18598_s9 + $0xac0] sm:$0xff] }
 0x7ab   : > { %11821 = vmatprep.subr.mxu0 %v9089_v9  ;;  %11856 = vmatprep.subr.mxu1 %v9121_v2  ;;  %v9173_v44 = vld [vmem:[%s18598_s9 + $0xb48] sm:$0xff]  ;;  %v9188_v41 = vld [vmem:[%s18598_s9 + $0xbc0] sm:$0xff] }
 0x7ac   : > { %11822 = vmatpush3.msra.mxu0 %v9073_v11  ;;  %11857 = vmatpush3.msra.mxu1 %v9105_v15  ;;  %v9140_v9 = vld [vmem:[%s18598_s9 + $0xa40] sm:$0xff]  ;;  %v9155_v11 = vld [vmem:[%s18598_s9 + $0xab8] sm:$0xff] }
 0x7ad   : > { %11823 = vmatprep.subr.mxu0 %v9088_v48  ;;  %11858 = vmatprep.subr.mxu1 %v9120_v13  ;;  %v9172_v2 = vld [vmem:[%s18598_s9 + $0xb40] sm:$0xff]  ;;  %v9187_v15 = vld [vmem:[%s18598_s9 + $0xbb8] sm:$0xff] }
 0x7ae   : > { %11824 = vmatpush3.msra.mxu0 %v9072_v60  ;;  %11859 = vmatpush3.msra.mxu1 %v9104_v12  ;;  %v9139_v48 = vld [vmem:[%s18598_s9 + $0xa38] sm:$0xff]  ;;  %v9154_v60 = vld [vmem:[%s18598_s9 + $0xab0] sm:$0xff] }
 0x7af   : > { %11825 = vmatprep.subr.mxu0 %v9087_v23  ;;  %11860 = vmatprep.subr.mxu1 %v9119_v21  ;;  %v9171_v13 = vld [vmem:[%s18598_s9 + $0xb38] sm:$0xff]  ;;  %v9186_v12 = vld [vmem:[%s18598_s9 + $0xbb0] sm:$0xff] }
 0x7b0   : > { %11826 = vmatpush3.msra.mxu0 %v9071_v24  ;;  %11861 = vmatpush3.msra.mxu1 %v9103_v1  ;;  %v9138_v23 = vld [vmem:[%s18598_s9 + $0xa30] sm:$0xff]  ;;  %v9153_v24 = vld [vmem:[%s18598_s9 + $0xaa8] sm:$0xff] }
 0x7b1   : > { %11827 = vmatprep.subr.mxu0 %v9086_v51  ;;  %11862 = vmatprep.subr.mxu1 %v9118_v28  ;;  %v9170_v21 = vld [vmem:[%s18598_s9 + $0xb30] sm:$0xff]  ;;  %v9185_v1 = vld [vmem:[%s18598_s9 + $0xba8] sm:$0xff] }
 0x7b2   : > { %11828 = vmatpush3.msra.mxu0 %v9070_v46  ;;  %11863 = vmatpush3.msra.mxu1 %v9102_v34  ;;  %v9137_v51 = vld [vmem:[%s18598_s9 + $0xa28] sm:$0xff]  ;;  %v9152_v46 = vld [vmem:[%s18598_s9 + $0xaa0] sm:$0xff] }
 0x7b3   : > { %11829 = vmatprep.subr.mxu0 %v9085_v14  ;;  %11864 = vmatprep.subr.mxu1 %v9117_v18  ;;  %v9169_v28 = vld [vmem:[%s18598_s9 + $0xb28] sm:$0xff]  ;;  %v9184_v34 = vld [vmem:[%s18598_s9 + $0xba0] sm:$0xff] }
 0x7b4   : > { %11830 = vmatpush3.msra.mxu0 %v9069_v52  ;;  %11865 = vmatpush3.msra.mxu1 %v9101_v38  ;;  %v9136_v14 = vld [vmem:[%s18598_s9 + $0xa20] sm:$0xff]  ;;  %v9151_v52 = vld [vmem:[%s18598_s9 + $0xa98] sm:$0xff] }
 0x7b5   : > { %11831 = vmatprep.subr.mxu0 %v9084_v26  ;;  %11866 = vmatprep.subr.mxu1 %v9116_v50  ;;  %v9168_v18 = vld [vmem:[%s18598_s9 + $0xb20] sm:$0xff]  ;;  %v9183_v38 = vld [vmem:[%s18598_s9 + $0xb98] sm:$0xff] }
 0x7b6   : > { %11832 = vmatpush3.msra.mxu0 %v9068_v56  ;;  %11867 = vmatpush3.msra.mxu1 %v9100_v19  ;;  %v9135_v26 = vld [vmem:[%s18598_s9 + $0xa18] sm:$0xff]  ;;  %v9150_v56 = vld [vmem:[%s18598_s9 + $0xa90] sm:$0xff] }
 0x7b7   : > { %9945 = vmatmul.mubr.f32.vlgmr.msra.gmra.mxu0 %v9267_v7  ;;  %10015 = vmatmul.mubr.f32.vlgmr.msra.gmra.mxu1 %v9275_v32  ;;  %v9167_v50 = vld [vmem:[%s18598_s9 + $0xb18] sm:$0xff]  ;;  %v9182_v19 = vld [vmem:[%s18598_s9 + $0xb90] sm:$0xff] }
 0x7b8   : > { %11871 = vmatprep.subr.mxu0 %v9163_v43  ;;  %11906 = vmatprep.subr.mxu1 %v9195_v57  ;;  %v9134_v7 = vld [vmem:[%s18598_s9 + $0xa10] sm:$0xff]  ;;  %v9149_v43 = vld [vmem:[%s18598_s9 + $0xa88] sm:$0xff] }
 0x7b9   : > { %11872 = vmatpush3.msra.mxu0 %v9147_v4  ;;  %10084 = vmatprep.mubr.f32.mxu0 %v9287_v59  ;;  %v9166_v32 = vld [vmem:[%s18598_s9 + $0xb10] sm:$0xff]  ;;  %v9181_v57 = vld [vmem:[%s18598_s9 + $0xb88] sm:$0xff]  ;;  %v9148_v59 = vld [vmem:[%s18598_s9 + $0xa80] sm:$0xff] }
 0x7ba   : > { %11907 = vmatpush3.msra.mxu1 %v9179_v63  ;;  %10154 = vmatprep.mubr.f32.mxu1 %v9295_v42  ;;  %v9133_v4 = vld [vmem:[%s18598_s9 + $0xa08] sm:$0xff]  ;;  %v9180_v63 = vld [vmem:[%s18598_s9 + $0xb80] sm:$0xff] }
 0x7bb   : > { %11873 = vmatprep.subr.mxu0 %v9162_v39  ;;  %11908 = vmatprep.subr.mxu1 %v9194_v22  ;;  %v9132_v42 = vld [vmem:[%s18598_s9 + $0xa00] sm:$0xff] }
 0x7bc   : > { %11874 = vmatpush3.msra.mxu0 %v9146_v6  ;;  %11909 = vmatpush3.msra.mxu1 %v9178_v30  ;;  %v9164_v39 = vld [vmem:[%s18598_s9 + $0xb00] sm:$0xff] }
 0x7bd   : > { %11875 = vmatprep.subr.mxu0 %v9161_v10  ;;  %11910 = vmatprep.subr.mxu1 %v9193_v49 }
 0x7be   : > { %11876 = vmatpush3.msra.mxu0 %v9145_v40  ;;  %11911 = vmatpush3.msra.mxu1 %v9177_v47  ;;  %v9196_v40 = vld [vmem:[%s18599_s10] sm:$0x1] }
 0x7bf   : > { %11877 = vmatprep.subr.mxu0 %v9160_v29  ;;  %11912 = vmatprep.subr.mxu1 %v9192_v3 }
 0x7c0   : > { %11878 = vmatpush3.msra.mxu0 %v9144_v53  ;;  %11913 = vmatpush3.msra.mxu1 %v9176_v27 }
 0x7c1   : > { %11879 = vmatprep.subr.mxu0 %v9159_v25  ;;  %11914 = vmatprep.subr.mxu1 %v9191_v36 }
 0x7c2   : > { %11880 = vmatpush3.msra.mxu0 %v9143_v8  ;;  %11915 = vmatpush3.msra.mxu1 %v9175_v33 }
 0x7c3   : > { %11881 = vmatprep.subr.mxu0 %v9158_v20  ;;  %11916 = vmatprep.subr.mxu1 %v9190_v37 }
 0x7c4   : > { %11882 = vmatpush3.msra.mxu0 %v9142_v5  ;;  %11917 = vmatpush3.msra.mxu1 %v9174_v45 }
 0x7c5   : > { %11883 = vmatprep.subr.mxu0 %v9157_v17  ;;  %11918 = vmatprep.subr.mxu1 %v9189_v62 }
 0x7c6   : > { %11884 = vmatpush3.msra.mxu0 %v9141_v16  ;;  %11919 = vmatpush3.msra.mxu1 %v9173_v44 }
 0x7c7   : > { %11885 = vmatprep.subr.mxu0 %v9156_v55  ;;  %11920 = vmatprep.subr.mxu1 %v9188_v41 }
 0x7c8   : > { %11886 = vmatpush3.msra.mxu0 %v9140_v9  ;;  %11921 = vmatpush3.msra.mxu1 %v9172_v2 }
 0x7c9   : > { %11887 = vmatprep.subr.mxu0 %v9155_v11  ;;  %11922 = vmatprep.subr.mxu1 %v9187_v15 }
 0x7ca   : > { %11888 = vmatpush3.msra.mxu0 %v9139_v48  ;;  %11923 = vmatpush3.msra.mxu1 %v9171_v13 }
 0x7cb   : > { %11889 = vmatprep.subr.mxu0 %v9154_v60  ;;  %11924 = vmatprep.subr.mxu1 %v9186_v12 }
 0x7cc   : > { %11890 = vmatpush3.msra.mxu0 %v9138_v23  ;;  %11925 = vmatpush3.msra.mxu1 %v9170_v21 }
 0x7cd   : > { %11891 = vmatprep.subr.mxu0 %v9153_v24  ;;  %11926 = vmatprep.subr.mxu1 %v9185_v1 }
 0x7ce   : > { %11892 = vmatpush3.msra.mxu0 %v9137_v51  ;;  %11927 = vmatpush3.msra.mxu1 %v9169_v28 }
 0x7cf   : > { %11893 = vmatprep.subr.mxu0 %v9152_v46  ;;  %11928 = vmatprep.subr.mxu1 %v9184_v34 }
 0x7d0   : > { %11894 = vmatpush3.msra.mxu0 %v9136_v14  ;;  %11929 = vmatpush3.msra.mxu1 %v9168_v18 }
 0x7d1   : > { %11895 = vmatprep.subr.mxu0 %v9151_v52  ;;  %11930 = vmatprep.subr.mxu1 %v9183_v38 }
 0x7d2   : > { %11896 = vmatpush3.msra.mxu0 %v9135_v26  ;;  %11931 = vmatpush3.msra.mxu1 %v9167_v50 }
 0x7d3   : > { %11897 = vmatprep.subr.mxu0 %v9150_v56  ;;  %11932 = vmatprep.subr.mxu1 %v9182_v19 }
 0x7d4   : > { %11898 = vmatpush3.msra.mxu0 %v9134_v7  ;;  %11933 = vmatpush3.msra.mxu1 %v9166_v32 }
 0x7d5   : > { %11899 = vmatprep.subr.mxu0 %v9149_v43  ;;  %11934 = vmatprep.subr.mxu1 %v9181_v57 }
 0x7d6   : > { %11900 = vmatpush3.msra.mxu0 %v9133_v4  ;;  %11935 = vmatpush3.msra.mxu1 %v9165_v61 }
 0x7d7   : > { %11901 = vmatprep.subr.mxu0 %v9148_v59  ;;  %11936 = vmatprep.subr.mxu1 %v9180_v63 }
 0x7d8   : > { %11902 = vmatpush3.msra.mxu0 %v9132_v42  ;;  %11937 = vmatpush3.msra.mxu1 %v9164_v39 }
 0x7d9   : > { %10085 = vmatmul.mubr.f32.vlgmr.msra.gmra.mxu0 %v9283_v35  ;;  %10155 = vmatmul.mubr.f32.vlgmr.msra.gmra.mxu1 %v9291_v58 }
 0x7f0   : > { %v11553_v22 = vpop.f32.mrf.mxu0  ;;  %v11588_v30 = vpop.f32.mrf.mxu1 }
 0x7f2   : > { %v11554_v6 = vpop.f32.mrf.mxu0  ;;  %v11589_v47 = vpop.f32.mrf.mxu1 }
 0x7f3   : > { %v11555_v49 = vadd.f32 %v11554_v6, %v11553_v22  ;;  %v11590_v31 = vadd.f32 %v11589_v47, %v11588_v30 }
 0x7f5   : > { %v9387_v3 = vadd.f32 %v11555_v49, %v9196_v40 }
 0x7f7   : > { %v9457_v25 = vadd.f32 %v11590_v31, %v9387_v3 }
 0x811   : > { %v11623_v10 = vpop.f32.mrf.mxu0  ;;  %v11658_v53 = vpop.f32.mrf.mxu1 }
 0x813   : > { %v11624_v29 = vpop.f32.mrf.mxu0  ;;  %v11659_v36 = vpop.f32.mrf.mxu1 }
 0x814   : > { %v11625_v35 = vadd.f32 %v11624_v29, %v11623_v10  ;;  %v11660_v33 = vadd.f32 %v11659_v36, %v11658_v53 }
 0x816   : > { %v9527_v54 = vadd.f32 %v11625_v35, %v9457_v25 }
 0x818   : > { %v9597_v37 = vadd.f32 %v11660_v33, %v9527_v54 }
 0x833   : > { %v11693_v27 = vpop.f32.mrf.mxu0  ;;  %v11728_v58 = vpop.f32.mrf.mxu1 }
 0x835   : > { %v11694_v0 = vpop.f32.mrf.mxu0  ;;  %v11729_v5 = vpop.f32.mrf.mxu1 }
 0x836   : > { %v11695_v20 = vadd.f32 %v11694_v0, %v11693_v27  ;;  %v11730_v44 = vadd.f32 %v11729_v5, %v11728_v58 }
 0x838   : > { %v9667_v17 = vadd.f32 %v11695_v20, %v9597_v37 }
 0x83a   : > { %v9737_v41 = vadd.f32 %v11730_v44, %v9667_v17 }
 0x855   : > { %v11763_v8 = vpop.f32.mrf.mxu0  ;;  %v11798_v62 = vpop.f32.mrf.mxu1 }
 0x857   : > { %v11764_v45 = vpop.f32.mrf.mxu0  ;;  %v11799_v9 = vpop.f32.mrf.mxu1 }
 0x858   : > { %v11765_v55 = vadd.f32 %v11764_v45, %v11763_v8  ;;  %v11800_v48 = vadd.f32 %v11799_v9, %v11798_v62 }
 0x85a   : > { %v9807_v11 = vadd.f32 %v11765_v55, %v9737_v41 }
 0x85c   : > { %v9877_v60 = vadd.f32 %v11800_v48, %v9807_v11 }
 0x877   : > { %v11833_v16 = vpop.f32.mrf.mxu0  ;;  %v11868_v15 = vpop.f32.mrf.mxu1 }
 0x879   : > { %v11834_v2 = vpop.f32.mrf.mxu0  ;;  %v11869_v12 = vpop.f32.mrf.mxu1 }
 0x87a   : > { %v11835_v13 = vadd.f32 %v11834_v2, %v11833_v16  ;;  %v11870_v1 = vadd.f32 %v11869_v12, %v11868_v15 }
 0x87c   : > { %v9947_v23 = vadd.f32 %v11835_v13, %v9877_v60 }
 0x87e   : > { %v10017_v46 = vadd.f32 %v11870_v1, %v9947_v23 }
 0x899   : > { %v11903_v21 = vpop.f32.mrf.mxu0  ;;  %v11938_v24 = vpop.f32.mrf.mxu1 }
 0x89b   : > { %v11904_v51 = vpop.f32.mrf.mxu0  ;;  %v11939_v28 = vpop.f32.mrf.mxu1 }
 0x89c   : > { %v11905_v34 = vadd.f32 %v11904_v51, %v11903_v21  ;;  %v11940_v18 = vadd.f32 %v11939_v28, %v11938_v24 }
 0x89e   : > { %v10087_v14 = vadd.f32 %v11905_v34, %v10017_v46 }
 0x8a0   : > { %v10157_v52 = vadd.f32 %v11940_v18, %v10087_v14 }
 0x8a2   : > { %v10160_v38 = vsub.f32 0.0, %v10157_v52 }
 0x8a4   : > { %v10161_v26 = vmul.f32 1.442695, %v10160_v38 }
 0x8a6   : > { %12661 = vpow2.f32 %v10161_v26 }
 0x8b3   : > { %v12662_v50 = vpop.eup %12661 }
 0x8b4   : > { %v10163_v56 = vadd.f32 1.0, %v12662_v50 }
 0x8b6   : > { %12663 = vrcp.f32 %v10163_v56 }
 0x8c3   : > { %v12664_v19 = vpop.eup %12663 }
 0x8c4   : > { %10166 = vst.msk [vmem:[%s378_s15] sm:$0x1] %vm6025_vm1, %v12664_v19 }
 0x8c5   : > { %12701 = shalt.err (!%p12698_p3)
}
 0x8c6   : > { %s12702_s25 = scalar_lea.hbm %s18553_s13, 16  ;;  %s12706_s30 = scalar_lea.hbm %s18600_s11, 32 }
 0x8c7   : > { %p12703_p4 = scmp.ne.s32.totalorder %s18553_s13, %s12702_s25  ;;  %p12707_p9 = scmp.lt.s32.totalorder %s18553_s13, %s18600_s11 }
 0x8c8   : > { %p12708_p10 = scmp.lt.s32.totalorder %s12706_s30, %s12702_s25 }
 0x8c9   : > { %p12704_p7 = pnand %p12703_p4, %p12858_p5 }
 0x8ca   : > { %p12709_p11 = por %p12708_p10, %p12707_p9 }
 0x8cb   : > { %p12705_p8 = pneg %p12704_p7 }
 0x8cd   : > { %p12710_p12 = pnand %p12709_p11, %p12705_p8 }
 0x8cf   : > { %12713 = shalt.err (!%p12710_p12)
}
 0x8d0   : > { %12613 = dma.vmem_to_hbm [thread:$0]  (%p12858_p5), %s10181_s22, 16, %s18553_s13, %s10168_s29  }
 0x8d1 PF: > { %p12619_p13 = scmp.ge.s32.totalorder %s12748_s20, 2  ;;  %s10192_s0 = sand.u32 1, %s12736_s17  }
 0x8d2   : > { %s10193_s12 = scalar_lea.sflag [#allocation10], %s10192_s0 }
 0x8d3   : > { %p12616_p0 = pnand %p12619_p13, %p12862_p6 }
 0x8d5   : > { %p12617_p1 = pneg %p12616_p0 }
 0x8d7   : > { %12731 = dma.done.wait (%p12617_p1), %s10193_s12, 16  }
 0x8d8   : > { %12733 = vsyncadd (%p12617_p1), %s10193_s12, 4294967280  ;;  %p21_p2 = scmp.ge.s32.totalorder %s12845_s23, 4   ;;  %s18615_s17 = smov %s12740_s18 }
 0x8d9   : > { %s18616_s18 = smov %s12744_s19  ;;  %s18617_s19 = smov %s12856_s26 }
 0x8da   : > { %s18618_s20 = smov %s12845_s23  ;;  %23 = sbr.rel (!%p21_p2) target bundleno = 5 (0x5), region = 417 }
 0x8df   :  { %10197 = vsyncpa [#allocation10], 1 }
 0x8e0   :  { %10199 = vsyncpa [#allocation10 + $0x1], 1 }

</bundles_post_ra>
